<compile_context>
chip_gen: v7x
topology: tpu7x:2x2x1
jax: 0.10.0
libtpu: 0.0.40
codegen_flags: <defaults>
</compile_context>

<pallas_src>
import functools

import jax
import jax.numpy as jnp
from jax.experimental import pallas as pl
from jax.experimental.pallas import tpu as pltpu

NEG_SLOPE = 0.01      # nn.LeakyReLU default
BN_EPS = 1e-5         # nn.BatchNorm3d default


# --------------------------------------------------------------------------- #
# helpers
# --------------------------------------------------------------------------- #
def _pick_tile(m, cap=8192):
    """Largest multiple-of-128 divisor of m (<= cap); else the full length (exempt)."""
    best = None
    t = 128
    while t <= min(m, cap):
        if m % t == 0:
            best = t
        t += 128
    return best if best is not None else m


def _pick_dchunk(d, hw, cin, stack_budget_bytes=8 << 20):
    """Chunk of output d-planes per grid step for the stride-1 conv.

    The chunk must divide D and give a lane length td*HW that is a multiple of 128
    (or the full D, which is exempt); prefer the largest chunk whose stacked K=108
    operand fits the VMEM budget.
    """
    divisors = [t for t in range(1, d + 1) if d % t == 0]
    valid = [t for t in divisors if t == d or (t * hw) % 128 == 0]
    fitting = [t for t in valid if 27 * cin * t * hw * 4 <= stack_budget_bytes]
    return max(fitting) if fitting else min(valid)


def _bn_affine(ssum, ssq, count, gamma, beta):
    """Fold batch stats + (gamma, beta) into per-channel scale/shift (tiny XLA).

    NOTE: variance is E[x^2]-E[x]^2 (clamped at 0); can deviate from PyTorch's two-pass
    computation for very low-variance channels.
    """
    mean = ssum[:, 0] / count
    var = jnp.maximum(ssq[:, 0] / count - mean * mean, 0.0)
    scale = gamma * jax.lax.rsqrt(var + BN_EPS)
    shift = beta - mean * scale
    return scale.reshape(-1, 1), shift.reshape(-1, 1)


def _w108(w):
    """(Cout, Cin, 3,3,3) -> (Cout, 27*Cin) with column index t*Cin + c, t = kd*9+kh*3+kw."""
    cout, cin = w.shape[0], w.shape[1]
    return jnp.transpose(w, (0, 2, 3, 4, 1)).reshape(cout, 27 * cin)


def _hw_masks(h, w, td):
    """(9, td*h*w) combined (kh,kw) boundary masks, periodic over output d-planes."""
    hs = jnp.arange(h)
    ws = jnp.arange(w)
    rows = []
    for kh in range(3):
        hv = ((hs + kh - 1) >= 0) & ((hs + kh - 1) < h)
        for kw in range(3):
            wv = ((ws + kw - 1) >= 0) & ((ws + kw - 1) < w)
            rows.append((hv[:, None] & wv[None, :]).astype(jnp.float32).reshape(1, h * w))
    m9 = jnp.concatenate(rows, axis=0)           # (9, H*W)
    return jnp.tile(m9, (1, td))                 # (9, td*H*W)


# --------------------------------------------------------------------------- #
# Pallas kernels
# --------------------------------------------------------------------------- #
def _conv_s1_kernel(x_ref, w_ref, mask_ref, y_ref, sum_ref, ssq_ref, stack_ref, *,
                    offsets, groups, lt, cin, single_chunk):
    """Stride-1 3x3x3 conv for one (batch, d-chunk) tile as ONE K=27*Cin matmul.

    x_ref    : (1, Cin, Lpad)  flat guard-padded input of one batch
    w_ref    : (Cout, 27*Cin)  taps stacked along the contraction dim
    mask_ref : (9, Lt)         per-(kh,kw) H/W-boundary masks (periodic over d-planes)
    y_ref    : (1, Cout, Lt)   compact conv output tile (no padded columns)
    sum_ref  : (1, Cout, 1)    per-tile batch-stat partials
    ssq_ref  : (1, Cout, 1)
    stack_ref: (27*Cin, Lt)    VMEM scratch holding the stacked operand
    """
    j = pl.program_id(1)
    for t, off in enumerate(offsets):
        if single_chunk:
            tap = x_ref[0, :, off:off + lt]                  # static slice
        else:
            start = pl.multiple_of(j * lt, 128) + off        # lt % 128 == 0 by construction
            tap = x_ref[0, :, pl.ds(start, lt)]
        g = groups[t]
        if g != 4:                                           # centre (kh=kw=1) needs no mask
            tap = tap * mask_ref[g:g + 1, :]
        stack_ref[t * cin:(t + 1) * cin, :] = tap
    y = jnp.dot(w_ref[...], stack_ref[...], preferred_element_type=jnp.float32)
    y_ref[0] = y
    sum_ref[0] = jnp.sum(y, axis=1, keepdims=True)
    ssq_ref[0] = jnp.sum(y * y, axis=1, keepdims=True)


def _conv_strided_kernel(slab_ref, w_ref, y_ref, sum_ref, ssq_ref):
    """Strided 3x3x3 conv: one K=27*Cin matmul from pre-gathered tap slabs."""
    y = jnp.dot(w_ref[...], slab_ref[0], preferred_element_type=jnp.float32)
    y_ref[0] = y
    sum_ref[0] = jnp.sum(y, axis=1, keepdims=True)
    ssq_ref[0] = jnp.sum(y * y, axis=1, keepdims=True)


def _make_k1_kernel(n_extra):
    """Fused: BN-apply + LeakyReLU on the first input, add extras, 1x1 conv, BN partials."""
    def kernel(*refs):
        y_in, sc, sh = refs[0], refs[1], refs[2]
        extras = refs[3:3 + n_extra]
        w = refs[3 + n_extra]
        y_out, sum_ref, ssq_ref = refs[4 + n_extra:7 + n_extra]
        a = y_in[0] * sc[...] + sh[...]
        a = jnp.where(a >= 0, a, NEG_SLOPE * a)
        for e in extras:
            a = a + e[0]
        y = jnp.dot(w[...], a, preferred_element_type=jnp.float32)
        y_out[0] = y
        sum_ref[0] = jnp.sum(y, axis=1, keepdims=True)
        ssq_ref[0] = jnp.sum(y * y, axis=1, keepdims=True)
    return kernel


def _apply_kernel(y_ref, sc_ref, sh_ref, o_ref):
    a = y_ref[0] * sc_ref[...] + sh_ref[...]
    o_ref[0] = jnp.where(a >= 0, a, NEG_SLOPE * a)


# --------------------------------------------------------------------------- #
# pallas_call wrappers
# --------------------------------------------------------------------------- #
def conv3_stride1(x, w108):
    """3x3x3 conv, stride 1, pad 1, NCDHW input -> compact (N, Cout, D*H*W) + BN stats."""
    N, Cin, D, H, W = x.shape
    Cout = w108.shape[0]
    HW = H * W
    M1b = D * HW
    G = HW + W + 1                                    # flat zero guard covers all pad reads
    xg = jnp.pad(x.reshape(N, Cin, M1b), ((0, 0), (0, 0), (G, G)))   # single pad of the input
    Lpad = M1b + 2 * G

    td = _pick_dchunk(D, HW, Cin)
    nd = D // td
    Lt = td * HW

    offsets = tuple(G + (kd - 1) * HW + (kh - 1) * W + (kw - 1)
                    for kd in range(3) for kh in range(3) for kw in range(3))
    groups = tuple(kh * 3 + kw
                   for kd in range(3) for kh in range(3) for kw in range(3))
    mask9 = _hw_masks(H, W, td)                       # (9, Lt), fetched once

    kernel = functools.partial(_conv_s1_kernel, offsets=offsets, groups=groups,
                               lt=Lt, cin=Cin, single_chunk=(nd == 1))

    y, ps, pq = pl.pallas_call(
        kernel,
        out_shape=(jax.ShapeDtypeStruct((N, Cout, M1b), jnp.float32),
                   jax.ShapeDtypeStruct((N * nd, Cout, 1), jnp.float32),
                   jax.ShapeDtypeStruct((N * nd, Cout, 1), jnp.float32)),
        grid=(N, nd),
        in_specs=[pl.BlockSpec((1, Cin, Lpad), lambda n, j: (n, 0, 0)),
                  pl.BlockSpec((Cout, 27 * Cin), lambda n, j: (0, 0)),
                  pl.BlockSpec((9, Lt), lambda n, j: (0, 0))],
        out_specs=(pl.BlockSpec((1, Cout, Lt), lambda n, j: (n, 0, j)),
                   pl.BlockSpec((1, Cout, 1), lambda n, j: (n * nd + j, 0, 0)),
                   pl.BlockSpec((1, Cout, 1), lambda n, j: (n * nd + j, 0, 0))),
        scratch_shapes=[pltpu.VMEM((27 * Cin, Lt), jnp.float32)],
        compiler_params=pltpu.CompilerParams(
            dimension_semantics=("parallel", "parallel")),
    )(xg, w108, mask9)
    return y, jnp.sum(ps, axis=0), jnp.sum(pq, axis=0), M1b


def conv3_strided(xp, w108, stride):
    """3x3x3 conv, stride 2/3, pad 1, from per-tap slabs stacked into K=27*Cin."""
    N, Cin, Dp, Hp, Wp = xp.shape
    Cout = w108.shape[0]
    Do = (Dp - 3) // stride + 1
    Ho = (Hp - 3) // stride + 1
    Wo = (Wp - 3) // stride + 1
    Mob = Do * Ho * Wo
    K = 27 * Cin

    # TODO(synk): gather these slabs in-kernel (pl.ANY + DMA) for large volumes; at
    # stride 2/3 the XLA slabs cost only ~(27/s^3)x the input in HBM.
    slabs = []
    for kd in range(3):
        for kh in range(3):
            for kw in range(3):
                s = xp[:, :,
                       kd: kd + (Do - 1) * stride + 1: stride,
                       kh: kh + (Ho - 1) * stride + 1: stride,
                       kw: kw + (Wo - 1) * stride + 1: stride]
                slabs.append(s.reshape(N, Cin, Mob))
    slab = jnp.concatenate(slabs, axis=1)             # (N, 27*Cin, Mob)

    tm = _pick_tile(Mob)
    nt = Mob // tm
    y, ps, pq = pl.pallas_call(
        _conv_strided_kernel,
        out_shape=(jax.ShapeDtypeStruct((N, Cout, Mob), jnp.float32),
                   jax.ShapeDtypeStruct((N * nt, Cout, 1), jnp.float32),
                   jax.ShapeDtypeStruct((N * nt, Cout, 1), jnp.float32)),
        grid=(N, nt),
        in_specs=[pl.BlockSpec((1, K, tm), lambda n, i: (n, 0, i)),
                  pl.BlockSpec((Cout, K), lambda n, i: (0, 0))],
        out_specs=(pl.BlockSpec((1, Cout, tm), lambda n, i: (n, 0, i)),
                   pl.BlockSpec((1, Cout, 1), lambda n, i: (n * nt + i, 0, 0)),
                   pl.BlockSpec((1, Cout, 1), lambda n, i: (n * nt + i, 0, 0))),
        compiler_params=pltpu.CompilerParams(
            dimension_semantics=("parallel", "parallel")),
    )(slab, w108)
    return y, jnp.sum(ps, axis=0), jnp.sum(pq, axis=0), (Do, Ho, Wo)


def k1_conv_fused(y_pre, scale, shift, extras, w):
    """LeakyReLU(BN(y_pre)) + sum(extras) -> 1x1 conv -> (y, partial BN stats)."""
    N, C, M = y_pre.shape
    Cout = w.shape[0]
    tm = _pick_tile(M)
    nt = M // tm
    in_specs = [pl.BlockSpec((1, C, tm), lambda n, i: (n, 0, i)),
                pl.BlockSpec((C, 1), lambda n, i: (0, 0)),
                pl.BlockSpec((C, 1), lambda n, i: (0, 0))]
    in_specs += [pl.BlockSpec((1, C, tm), lambda n, i: (n, 0, i)) for _ in extras]
    in_specs += [pl.BlockSpec((Cout, C), lambda n, i: (0, 0))]
    y, ps, pq = pl.pallas_call(
        _make_k1_kernel(len(extras)),
        out_shape=(jax.ShapeDtypeStruct((N, Cout, M), jnp.float32),
                   jax.ShapeDtypeStruct((N * nt, Cout, 1), jnp.float32),
                   jax.ShapeDtypeStruct((N * nt, Cout, 1), jnp.float32)),
        grid=(N, nt),
        in_specs=in_specs,
        out_specs=(pl.BlockSpec((1, Cout, tm), lambda n, i: (n, 0, i)),
                   pl.BlockSpec((1, Cout, 1), lambda n, i: (n * nt + i, 0, 0)),
                   pl.BlockSpec((1, Cout, 1), lambda n, i: (n * nt + i, 0, 0))),
        compiler_params=pltpu.CompilerParams(
            dimension_semantics=("parallel", "parallel")),
    )(y_pre, scale, shift, *extras, w)
    return y, jnp.sum(ps, axis=0), jnp.sum(pq, axis=0)


def bn_lrelu_apply(y, scale, shift):
    N, C, M = y.shape
    tm = _pick_tile(M)
    nt = M // tm
    return pl.pallas_call(
        _apply_kernel,
        out_shape=jax.ShapeDtypeStruct((N, C, M), jnp.float32),
        grid=(N, nt),
        in_specs=[pl.BlockSpec((1, C, tm), lambda n, i: (n, 0, i)),
                  pl.BlockSpec((C, 1), lambda n, i: (0, 0)),
                  pl.BlockSpec((C, 1), lambda n, i: (0, 0))],
        out_specs=pl.BlockSpec((1, C, tm), lambda n, i: (n, 0, i)),
        compiler_params=pltpu.CompilerParams(
            dimension_semantics=("parallel", "parallel")),
    )(y, scale, shift)


# --------------------------------------------------------------------------- #
# trilinear interpolation (align_corners=True) via per-axis interpolation matrices
# --------------------------------------------------------------------------- #
def _interp_matrix(out_size, in_size):
    if out_size == 1 or in_size == 1:
        pos = jnp.zeros((out_size,), jnp.float32)
    else:
        pos = jnp.arange(out_size, dtype=jnp.float32) * (in_size - 1) / (out_size - 1)
    lo = jnp.clip(jnp.floor(pos).astype(jnp.int32), 0, in_size - 1)
    hi = jnp.clip(lo + 1, 0, in_size - 1)
    frac = pos - lo.astype(jnp.float32)
    idx = jnp.arange(out_size)
    m = jnp.zeros((out_size, in_size), jnp.float32)
    m = m.at[idx, lo].add(1.0 - frac)
    m = m.at[idx, hi].add(frac)
    return m


def trilinear(x, in_size, out_size):
    if tuple(in_size) == tuple(out_size):
        return x
    N, C, _ = x.shape
    d1, h1, w1 = in_size
    d2, h2, w2 = out_size
    xr = x.reshape(N, C, d1, h1, w1)
    y = jnp.einsum('ad,ncdhw->ncahw', _interp_matrix(d2, d1), xr)
    y = jnp.einsum('bh,ncahw->ncabw', _interp_matrix(h2, h1), y)
    y = jnp.einsum('ew,ncabw->ncabe', _interp_matrix(w2, w1), y)
    return y.reshape(N, C, d2 * h2 * w2)


# --------------------------------------------------------------------------- #
# module
# --------------------------------------------------------------------------- #
def init_params(key, in_dim, out_dim):
    keys = jax.random.split(key, 5)

    def conv_block(k, cin, cout, ksz):
        fan_in = cin * ksz ** 3
        w = jax.random.normal(k, (cout, cin, ksz, ksz, ksz), jnp.float32) / jnp.sqrt(fan_in)
        gamma = jnp.ones((cout,), jnp.float32)
        beta = jnp.zeros((cout,), jnp.float32)
        # NOTE: conv bias omitted -- a per-channel bias before training-mode BatchNorm
        # is subtracted out with the batch mean (exact no-op on the forward output).
        return (w, gamma, beta)

    return {
        "scale1": conv_block(keys[0], in_dim, out_dim, 3),
        "scale2": conv_block(keys[1], in_dim, out_dim, 3),
        "scale3": conv_block(keys[2], in_dim, out_dim, 3),
        "conv1":  conv_block(keys[3], out_dim, out_dim, 1),
        "conv2":  conv_block(keys[4], out_dim, out_dim, 1),
    }


def mutil_stride_module_v3(params, x):
    N, Cin, D, H, W = x.shape
    Cout = params["scale1"][0].shape[0]
    size1 = (D, H, W)

    # ---- scale1: stride-1 conv (K=108 matmul, compact output, fused batch stats) ----
    w1, g1, b1 = params["scale1"]
    y1, s1_sum, s1_ssq, M1b = conv3_stride1(x, _w108(w1))
    sc1, sh1 = _bn_affine(s1_sum, s1_ssq, N * M1b, g1, b1)

    # spatially padded input for the strided-conv tap slabs
    xp = jnp.pad(x, ((0, 0), (0, 0), (1, 1), (1, 1), (1, 1)))

    # ---- scale2: stride-2 conv ----
    w2, g2, b2 = params["scale2"]
    y2, s2_sum, s2_ssq, size2 = conv3_strided(xp, _w108(w2), 2)
    M2b = size2[0] * size2[1] * size2[2]
    sc2, sh2 = _bn_affine(s2_sum, s2_ssq, N * M2b, g2, b2)

    # ---- scale3: stride-3 conv + standalone BN/LReLU apply (needed for interp) ----
    w3, g3, b3 = params["scale3"]
    y3, s3_sum, s3_ssq, size3 = conv3_strided(xp, _w108(w3), 3)
    M3b = size3[0] * size3[1] * size3[2]
    sc3, sh3 = _bn_affine(s3_sum, s3_ssq, N * M3b, g3, b3)
    s3 = bn_lrelu_apply(y3, sc3, sh3)

    # trilinear (align_corners=True) upsampling of scale3 via interpolation matrices
    s3_2 = trilinear(s3, size3, size2)
    s3_1 = trilinear(s3, size3, size1)

    # ---- conv1: fused BN/LReLU(scale2) + residual add + 1x1 conv + stats ----
    wc1, gc1, bc1 = params["conv1"]
    yc1, c1_sum, c1_ssq = k1_conv_fused(y2, sc2, sh2, [s3_2], wc1.reshape(Cout, Cout))
    scc1, shc1 = _bn_affine(c1_sum, c1_ssq, N * M2b, gc1, bc1)
    t = bn_lrelu_apply(yc1, scc1, shc1)
    s2_up = trilinear(t, size2, size1)

    # ---- conv2: fused BN/LReLU(scale1) + residual adds + 1x1 conv + stats ----
    wc2, gc2, bc2 = params["conv2"]
    yc2, c2_sum, c2_ssq = k1_conv_fused(y1, sc1, sh1, [s2_up, s3_1],
                                        wc2.reshape(Cout, Cout))
    scc2, shc2 = _bn_affine(c2_sum, c2_ssq, N * M1b, gc2, bc2)
    out = bn_lrelu_apply(yc2, scc2, shc2)

    return out.reshape(N, Cout, D, H, W)


if __name__ == "__main__":
    key = jax.random.PRNGKey(0)
    kp, kx = jax.random.split(key)
    in_dim, out_dim = 4, 8
    params = init_params(kp, in_dim, out_dim)
    x = jax.random.normal(kx, (2, in_dim, 12, 12, 12), jnp.float32)

    fwd = jax.jit(functools.partial(mutil_stride_module_v3, params))
    out = fwd(x)
    jax.block_until_ready(out)
    assert out.shape == (2, out_dim, 12, 12, 12), out.shape
    assert bool(jnp.all(jnp.isfinite(out)))
    print("KERNEL_OK")
</pallas_src>

<mosaic_0001>
module attributes {stable_mosaic.version = 11 : i64} {
  func.func @_conv_s1_kernel(%arg0: i32, %arg1: i32, %arg2: memref<1x4x2042xf32, #tpu.memory_space<vmem>>, %arg3: memref<8x108xf32, #tpu.memory_space<vmem>>, %arg4: memref<9x1728xf32, #tpu.memory_space<vmem>>, %arg5: memref<1x8x1728xf32, #tpu.memory_space<vmem>>, %arg6: memref<1x8x1xf32, #tpu.memory_space<vmem>>, %arg7: memref<1x8x1xf32, #tpu.memory_space<vmem>>, %arg8: memref<108x1728xf32, #tpu.memory_space<vmem>>) attributes {dimension_semantics = [#tpu.dimension_semantics<parallel>, #tpu.dimension_semantics<parallel>], iteration_bounds = array<i64: 2, 1>, scalar_prefetch = 0 : i64, scratch_operands = 1 : i64, tpu.core_type = #tpu.core_type<tc>, window_params = [{transform_indices = @transform_0, window_bounds = array<i64: 1, 4, 2042>}, {pipeline_mode = #tpu.pipeline_mode<synchronous>, transform_indices = @transform_1, window_bounds = array<i64: 8, 108>}, {pipeline_mode = #tpu.pipeline_mode<synchronous>, transform_indices = @transform_2, window_bounds = array<i64: 9, 1728>}, {transform_indices = @transform_3, window_bounds = array<i64: 1, 8, 1728>}, {transform_indices = @transform_4, window_bounds = array<i64: 1, 8, 1>}, {transform_indices = @transform_5, window_bounds = array<i64: 1, 8, 1>}]} {
    %c0 = arith.constant 0 : index
    %c0_0 = arith.constant 0 : index
    %c0_1 = arith.constant 0 : index
    %0 = vector.load %arg2[%c0, %c0_0, %c0_1] : memref<1x4x2042xf32, #tpu.memory_space<vmem>>, vector<1x4x1728xf32>
    %1 = vector.shape_cast %0 : vector<1x4x1728xf32> to vector<4x1728xf32>
    %c0_2 = arith.constant 0 : index
    %c0_3 = arith.constant 0 : index
    %2 = vector.load %arg4[%c0_2, %c0_3] : memref<9x1728xf32, #tpu.memory_space<vmem>>, vector<1x1728xf32>
    %3 = vector.broadcast %2 : vector<1x1728xf32> to vector<4x1728xf32>
    %4 = arith.mulf %1, %3 : vector<4x1728xf32>
    %c0_4 = arith.constant 0 : index
    %c0_5 = arith.constant 0 : index
    %5 = vector.load %arg8[%c0_4, %c0_5] : memref<108x1728xf32, #tpu.memory_space<vmem>>, vector<4x1728xf32>
    tpu.vector_store %arg8[%c0_4, %c0_5], %4 {strides = array<i32>} : memref<108x1728xf32, #tpu.memory_space<vmem>>, vector<4x1728xf32>,
    %c0_6 = arith.constant 0 : index
    %c0_7 = arith.constant 0 : index
    %c1 = arith.constant 1 : index
    %6 = vector.load %arg2[%c0_6, %c0_7, %c1] : memref<1x4x2042xf32, #tpu.memory_space<vmem>>, vector<1x4x1728xf32>
    %7 = vector.shape_cast %6 : vector<1x4x1728xf32> to vector<4x1728xf32>
    %c1_8 = arith.constant 1 : index
    %c0_9 = arith.constant 0 : index
    %8 = vector.load %arg4[%c1_8, %c0_9] : memref<9x1728xf32, #tpu.memory_space<vmem>>, vector<1x1728xf32>
    %9 = vector.broadcast %8 : vector<1x1728xf32> to vector<4x1728xf32>
    %10 = arith.mulf %7, %9 : vector<4x1728xf32>
    %c4 = arith.constant 4 : index
    %c0_10 = arith.constant 0 : index
    %11 = vector.load %arg8[%c4, %c0_10] : memref<108x1728xf32, #tpu.memory_space<vmem>>, vector<4x1728xf32>
    tpu.vector_store %arg8[%c4, %c0_10], %10 {strides = array<i32>} : memref<108x1728xf32, #tpu.memory_space<vmem>>, vector<4x1728xf32>,
    %c0_11 = arith.constant 0 : index
    %c0_12 = arith.constant 0 : index
    %c2 = arith.constant 2 : index
    %12 = vector.load %arg2[%c0_11, %c0_12, %c2] : memref<1x4x2042xf32, #tpu.memory_space<vmem>>, vector<1x4x1728xf32>
    %13 = vector.shape_cast %12 : vector<1x4x1728xf32> to vector<4x1728xf32>
    %c2_13 = arith.constant 2 : index
    %c0_14 = arith.constant 0 : index
    %14 = vector.load %arg4[%c2_13, %c0_14] : memref<9x1728xf32, #tpu.memory_space<vmem>>, vector<1x1728xf32>
    %15 = vector.broadcast %14 : vector<1x1728xf32> to vector<4x1728xf32>
    %16 = arith.mulf %13, %15 : vector<4x1728xf32>
    %c8 = arith.constant 8 : index
    %c0_15 = arith.constant 0 : index
    %17 = vector.load %arg8[%c8, %c0_15] : memref<108x1728xf32, #tpu.memory_space<vmem>>, vector<4x1728xf32>
    tpu.vector_store %arg8[%c8, %c0_15], %16 {strides = array<i32>} : memref<108x1728xf32, #tpu.memory_space<vmem>>, vector<4x1728xf32>,
    %c0_16 = arith.constant 0 : index
    %c0_17 = arith.constant 0 : index
    %c12 = arith.constant 12 : index
    %18 = vector.load %arg2[%c0_16, %c0_17, %c12] : memref<1x4x2042xf32, #tpu.memory_space<vmem>>, vector<1x4x1728xf32>
    %19 = vector.shape_cast %18 : vector<1x4x1728xf32> to vector<4x1728xf32>
    %c3 = arith.constant 3 : index
    %c0_18 = arith.constant 0 : index
    %20 = vector.load %arg4[%c3, %c0_18] : memref<9x1728xf32, #tpu.memory_space<vmem>>, vector<1x1728xf32>
    %21 = vector.broadcast %20 : vector<1x1728xf32> to vector<4x1728xf32>
    %22 = arith.mulf %19, %21 : vector<4x1728xf32>
    %c12_19 = arith.constant 12 : index
    %c0_20 = arith.constant 0 : index
    %23 = vector.load %arg8[%c12_19, %c0_20] : memref<108x1728xf32, #tpu.memory_space<vmem>>, vector<4x1728xf32>
    tpu.vector_store %arg8[%c12_19, %c0_20], %22 {strides = array<i32>} : memref<108x1728xf32, #tpu.memory_space<vmem>>, vector<4x1728xf32>,
    %c0_21 = arith.constant 0 : index
    %c0_22 = arith.constant 0 : index
    %c13 = arith.constant 13 : index
    %24 = vector.load %arg2[%c0_21, %c0_22, %c13] : memref<1x4x2042xf32, #tpu.memory_space<vmem>>, vector<1x4x1728xf32>
    %25 = vector.shape_cast %24 : vector<1x4x1728xf32> to vector<4x1728xf32>
    %c16 = arith.constant 16 : index
    %c0_23 = arith.constant 0 : index
    %26 = vector.load %arg8[%c16, %c0_23] : memref<108x1728xf32, #tpu.memory_space<vmem>>, vector<4x1728xf32>
    tpu.vector_store %arg8[%c16, %c0_23], %25 {strides = array<i32>} : memref<108x1728xf32, #tpu.memory_space<vmem>>, vector<4x1728xf32>,
    %c0_24 = arith.constant 0 : index
    %c0_25 = arith.constant 0 : index
    %c14 = arith.constant 14 : index
    %27 = vector.load %arg2[%c0_24, %c0_25, %c14] : memref<1x4x2042xf32, #tpu.memory_space<vmem>>, vector<1x4x1728xf32>
    %28 = vector.shape_cast %27 : vector<1x4x1728xf32> to vector<4x1728xf32>
    %c5 = arith.constant 5 : index
    %c0_26 = arith.constant 0 : index
    %29 = vector.load %arg4[%c5, %c0_26] : memref<9x1728xf32, #tpu.memory_space<vmem>>, vector<1x1728xf32>
    %30 = vector.broadcast %29 : vector<1x1728xf32> to vector<4x1728xf32>
    %31 = arith.mulf %28, %30 : vector<4x1728xf32>
    %c20 = arith.constant 20 : index
    %c0_27 = arith.constant 0 : index
    %32 = vector.load %arg8[%c20, %c0_27] : memref<108x1728xf32, #tpu.memory_space<vmem>>, vector<4x1728xf32>
    tpu.vector_store %arg8[%c20, %c0_27], %31 {strides = array<i32>} : memref<108x1728xf32, #tpu.memory_space<vmem>>, vector<4x1728xf32>,
    %c0_28 = arith.constant 0 : index
    %c0_29 = arith.constant 0 : index
    %c24 = arith.constant 24 : index
    %33 = vector.load %arg2[%c0_28, %c0_29, %c24] : memref<1x4x2042xf32, #tpu.memory_space<vmem>>, vector<1x4x1728xf32>
    %34 = vector.shape_cast %33 : vector<1x4x1728xf32> to vector<4x1728xf32>
    %c6 = arith.constant 6 : index
    %c0_30 = arith.constant 0 : index
    %35 = vector.load %arg4[%c6, %c0_30] : memref<9x1728xf32, #tpu.memory_space<vmem>>, vector<1x1728xf32>
    %36 = vector.broadcast %35 : vector<1x1728xf32> to vector<4x1728xf32>
    %37 = arith.mulf %34, %36 : vector<4x1728xf32>
    %c24_31 = arith.constant 24 : index
    %c0_32 = arith.constant 0 : index
    %38 = vector.load %arg8[%c24_31, %c0_32] : memref<108x1728xf32, #tpu.memory_space<vmem>>, vector<4x1728xf32>
    tpu.vector_store %arg8[%c24_31, %c0_32], %37 {strides = array<i32>} : memref<108x1728xf32, #tpu.memory_space<vmem>>, vector<4x1728xf32>,
    %c0_33 = arith.constant 0 : index
    %c0_34 = arith.constant 0 : index
    %c25 = arith.constant 25 : index
    %39 = vector.load %arg2[%c0_33, %c0_34, %c25] : memref<1x4x2042xf32, #tpu.memory_space<vmem>>, vector<1x4x1728xf32>
    %40 = vector.shape_cast %39 : vector<1x4x1728xf32> to vector<4x1728xf32>
    %c7 = arith.constant 7 : index
    %c0_35 = arith.constant 0 : index
    %41 = vector.load %arg4[%c7, %c0_35] : memref<9x1728xf32, #tpu.memory_space<vmem>>, vector<1x1728xf32>
    %42 = vector.broadcast %41 : vector<1x1728xf32> to vector<4x1728xf32>
    %43 = arith.mulf %40, %42 : vector<4x1728xf32>
    %c28 = arith.constant 28 : index
    %c0_36 = arith.constant 0 : index
    %44 = vector.load %arg8[%c28, %c0_36] : memref<108x1728xf32, #tpu.memory_space<vmem>>, vector<4x1728xf32>
    tpu.vector_store %arg8[%c28, %c0_36], %43 {strides = array<i32>} : memref<108x1728xf32, #tpu.memory_space<vmem>>, vector<4x1728xf32>,
    %c0_37 = arith.constant 0 : index
    %c0_38 = arith.constant 0 : index
    %c26 = arith.constant 26 : index
    %45 = vector.load %arg2[%c0_37, %c0_38, %c26] : memref<1x4x2042xf32, #tpu.memory_space<vmem>>, vector<1x4x1728xf32>
    %46 = vector.shape_cast %45 : vector<1x4x1728xf32> to vector<4x1728xf32>
    %c8_39 = arith.constant 8 : index
    %c0_40 = arith.constant 0 : index
    %47 = vector.load %arg4[%c8_39, %c0_40] : memref<9x1728xf32, #tpu.memory_space<vmem>>, vector<1x1728xf32>
    %48 = vector.broadcast %47 : vector<1x1728xf32> to vector<4x1728xf32>
    %49 = arith.mulf %46, %48 : vector<4x1728xf32>
    %c32 = arith.constant 32 : index
    %c0_41 = arith.constant 0 : index
    %50 = vector.load %arg8[%c32, %c0_41] : memref<108x1728xf32, #tpu.memory_space<vmem>>, vector<4x1728xf32>
    tpu.vector_store %arg8[%c32, %c0_41], %49 {strides = array<i32>} : memref<108x1728xf32, #tpu.memory_space<vmem>>, vector<4x1728xf32>,
    %c0_42 = arith.constant 0 : index
    %c0_43 = arith.constant 0 : index
    %c144 = arith.constant 144 : index
    %51 = vector.load %arg2[%c0_42, %c0_43, %c144] : memref<1x4x2042xf32, #tpu.memory_space<vmem>>, vector<1x4x1728xf32>
    %52 = vector.shape_cast %51 : vector<1x4x1728xf32> to vector<4x1728xf32>
    %c0_44 = arith.constant 0 : index
    %c0_45 = arith.constant 0 : index
    %53 = vector.load %arg4[%c0_44, %c0_45] : memref<9x1728xf32, #tpu.memory_space<vmem>>, vector<1x1728xf32>
    %54 = vector.broadcast %53 : vector<1x1728xf32> to vector<4x1728xf32>
    %55 = arith.mulf %52, %54 : vector<4x1728xf32>
    %c36 = arith.constant 36 : index
    %c0_46 = arith.constant 0 : index
    %56 = vector.load %arg8[%c36, %c0_46] : memref<108x1728xf32, #tpu.memory_space<vmem>>, vector<4x1728xf32>
    tpu.vector_store %arg8[%c36, %c0_46], %55 {strides = array<i32>} : memref<108x1728xf32, #tpu.memory_space<vmem>>, vector<4x1728xf32>,
    %c0_47 = arith.constant 0 : index
    %c0_48 = arith.constant 0 : index
    %c145 = arith.constant 145 : index
    %57 = vector.load %arg2[%c0_47, %c0_48, %c145] : memref<1x4x2042xf32, #tpu.memory_space<vmem>>, vector<1x4x1728xf32>
    %58 = vector.shape_cast %57 : vector<1x4x1728xf32> to vector<4x1728xf32>
    %c1_49 = arith.constant 1 : index
    %c0_50 = arith.constant 0 : index
    %59 = vector.load %arg4[%c1_49, %c0_50] : memref<9x1728xf32, #tpu.memory_space<vmem>>, vector<1x1728xf32>
    %60 = vector.broadcast %59 : vector<1x1728xf32> to vector<4x1728xf32>
    %61 = arith.mulf %58, %60 : vector<4x1728xf32>
    %c40 = arith.constant 40 : index
    %c0_51 = arith.constant 0 : index
    %62 = vector.load %arg8[%c40, %c0_51] : memref<108x1728xf32, #tpu.memory_space<vmem>>, vector<4x1728xf32>
    tpu.vector_store %arg8[%c40, %c0_51], %61 {strides = array<i32>} : memref<108x1728xf32, #tpu.memory_space<vmem>>, vector<4x1728xf32>,
    %c0_52 = arith.constant 0 : index
    %c0_53 = arith.constant 0 : index
    %c146 = arith.constant 146 : index
    %63 = vector.load %arg2[%c0_52, %c0_53, %c146] : memref<1x4x2042xf32, #tpu.memory_space<vmem>>, vector<1x4x1728xf32>
    %64 = vector.shape_cast %63 : vector<1x4x1728xf32> to vector<4x1728xf32>
    %c2_54 = arith.constant 2 : index
    %c0_55 = arith.constant 0 : index
    %65 = vector.load %arg4[%c2_54, %c0_55] : memref<9x1728xf32, #tpu.memory_space<vmem>>, vector<1x1728xf32>
    %66 = vector.broadcast %65 : vector<1x1728xf32> to vector<4x1728xf32>
    %67 = arith.mulf %64, %66 : vector<4x1728xf32>
    %c44 = arith.constant 44 : index
    %c0_56 = arith.constant 0 : index
    %68 = vector.load %arg8[%c44, %c0_56] : memref<108x1728xf32, #tpu.memory_space<vmem>>, vector<4x1728xf32>
    tpu.vector_store %arg8[%c44, %c0_56], %67 {strides = array<i32>} : memref<108x1728xf32, #tpu.memory_space<vmem>>, vector<4x1728xf32>,
    %c0_57 = arith.constant 0 : index
    %c0_58 = arith.constant 0 : index
    %c156 = arith.constant 156 : index
    %69 = vector.load %arg2[%c0_57, %c0_58, %c156] : memref<1x4x2042xf32, #tpu.memory_space<vmem>>, vector<1x4x1728xf32>
    %70 = vector.shape_cast %69 : vector<1x4x1728xf32> to vector<4x1728xf32>
    %c3_59 = arith.constant 3 : index
    %c0_60 = arith.constant 0 : index
    %71 = vector.load %arg4[%c3_59, %c0_60] : memref<9x1728xf32, #tpu.memory_space<vmem>>, vector<1x1728xf32>
    %72 = vector.broadcast %71 : vector<1x1728xf32> to vector<4x1728xf32>
    %73 = arith.mulf %70, %72 : vector<4x1728xf32>
    %c48 = arith.constant 48 : index
    %c0_61 = arith.constant 0 : index
    %74 = vector.load %arg8[%c48, %c0_61] : memref<108x1728xf32, #tpu.memory_space<vmem>>, vector<4x1728xf32>
    tpu.vector_store %arg8[%c48, %c0_61], %73 {strides = array<i32>} : memref<108x1728xf32, #tpu.memory_space<vmem>>, vector<4x1728xf32>,
    %c0_62 = arith.constant 0 : index
    %c0_63 = arith.constant 0 : index
    %c157 = arith.constant 157 : index
    %75 = vector.load %arg2[%c0_62, %c0_63, %c157] : memref<1x4x2042xf32, #tpu.memory_space<vmem>>, vector<1x4x1728xf32>
    %76 = vector.shape_cast %75 : vector<1x4x1728xf32> to vector<4x1728xf32>
    %c52 = arith.constant 52 : index
    %c0_64 = arith.constant 0 : index
    %77 = vector.load %arg8[%c52, %c0_64] : memref<108x1728xf32, #tpu.memory_space<vmem>>, vector<4x1728xf32>
    tpu.vector_store %arg8[%c52, %c0_64], %76 {strides = array<i32>} : memref<108x1728xf32, #tpu.memory_space<vmem>>, vector<4x1728xf32>,
    %c0_65 = arith.constant 0 : index
    %c0_66 = arith.constant 0 : index
    %c158 = arith.constant 158 : index
    %78 = vector.load %arg2[%c0_65, %c0_66, %c158] : memref<1x4x2042xf32, #tpu.memory_space<vmem>>, vector<1x4x1728xf32>
    %79 = vector.shape_cast %78 : vector<1x4x1728xf32> to vector<4x1728xf32>
    %c5_67 = arith.constant 5 : index
    %c0_68 = arith.constant 0 : index
    %80 = vector.load %arg4[%c5_67, %c0_68] : memref<9x1728xf32, #tpu.memory_space<vmem>>, vector<1x1728xf32>
    %81 = vector.broadcast %80 : vector<1x1728xf32> to vector<4x1728xf32>
    %82 = arith.mulf %79, %81 : vector<4x1728xf32>
    %c56 = arith.constant 56 : index
    %c0_69 = arith.constant 0 : index
    %83 = vector.load %arg8[%c56, %c0_69] : memref<108x1728xf32, #tpu.memory_space<vmem>>, vector<4x1728xf32>
    tpu.vector_store %arg8[%c56, %c0_69], %82 {strides = array<i32>} : memref<108x1728xf32, #tpu.memory_space<vmem>>, vector<4x1728xf32>,
    %c0_70 = arith.constant 0 : index
    %c0_71 = arith.constant 0 : index
    %c168 = arith.constant 168 : index
    %84 = vector.load %arg2[%c0_70, %c0_71, %c168] : memref<1x4x2042xf32, #tpu.memory_space<vmem>>, vector<1x4x1728xf32>
    %85 = vector.shape_cast %84 : vector<1x4x1728xf32> to vector<4x1728xf32>
    %c6_72 = arith.constant 6 : index
    %c0_73 = arith.constant 0 : index
    %86 = vector.load %arg4[%c6_72, %c0_73] : memref<9x1728xf32, #tpu.memory_space<vmem>>, vector<1x1728xf32>
    %87 = vector.broadcast %86 : vector<1x1728xf32> to vector<4x1728xf32>
    %88 = arith.mulf %85, %87 : vector<4x1728xf32>
    %c60 = arith.constant 60 : index
    %c0_74 = arith.constant 0 : index
    %89 = vector.load %arg8[%c60, %c0_74] : memref<108x1728xf32, #tpu.memory_space<vmem>>, vector<4x1728xf32>
    tpu.vector_store %arg8[%c60, %c0_74], %88 {strides = array<i32>} : memref<108x1728xf32, #tpu.memory_space<vmem>>, vector<4x1728xf32>,
    %c0_75 = arith.constant 0 : index
    %c0_76 = arith.constant 0 : index
    %c169 = arith.constant 169 : index
    %90 = vector.load %arg2[%c0_75, %c0_76, %c169] : memref<1x4x2042xf32, #tpu.memory_space<vmem>>, vector<1x4x1728xf32>
    %91 = vector.shape_cast %90 : vector<1x4x1728xf32> to vector<4x1728xf32>
    %c7_77 = arith.constant 7 : index
    %c0_78 = arith.constant 0 : index
    %92 = vector.load %arg4[%c7_77, %c0_78] : memref<9x1728xf32, #tpu.memory_space<vmem>>, vector<1x1728xf32>
    %93 = vector.broadcast %92 : vector<1x1728xf32> to vector<4x1728xf32>
    %94 = arith.mulf %91, %93 : vector<4x1728xf32>
    %c64 = arith.constant 64 : index
    %c0_79 = arith.constant 0 : index
    %95 = vector.load %arg8[%c64, %c0_79] : memref<108x1728xf32, #tpu.memory_space<vmem>>, vector<4x1728xf32>
    tpu.vector_store %arg8[%c64, %c0_79], %94 {strides = array<i32>} : memref<108x1728xf32, #tpu.memory_space<vmem>>, vector<4x1728xf32>,
    %c0_80 = arith.constant 0 : index
    %c0_81 = arith.constant 0 : index
    %c170 = arith.constant 170 : index
    %96 = vector.load %arg2[%c0_80, %c0_81, %c170] : memref<1x4x2042xf32, #tpu.memory_space<vmem>>, vector<1x4x1728xf32>
    %97 = vector.shape_cast %96 : vector<1x4x1728xf32> to vector<4x1728xf32>
    %c8_82 = arith.constant 8 : index
    %c0_83 = arith.constant 0 : index
    %98 = vector.load %arg4[%c8_82, %c0_83] : memref<9x1728xf32, #tpu.memory_space<vmem>>, vector<1x1728xf32>
    %99 = vector.broadcast %98 : vector<1x1728xf32> to vector<4x1728xf32>
    %100 = arith.mulf %97, %99 : vector<4x1728xf32>
    %c68 = arith.constant 68 : index
    %c0_84 = arith.constant 0 : index
    %101 = vector.load %arg8[%c68, %c0_84] : memref<108x1728xf32, #tpu.memory_space<vmem>>, vector<4x1728xf32>
    tpu.vector_store %arg8[%c68, %c0_84], %100 {strides = array<i32>} : memref<108x1728xf32, #tpu.memory_space<vmem>>, vector<4x1728xf32>,
    %c0_85 = arith.constant 0 : index
    %c0_86 = arith.constant 0 : index
    %c288 = arith.constant 288 : index
    %102 = vector.load %arg2[%c0_85, %c0_86, %c288] : memref<1x4x2042xf32, #tpu.memory_space<vmem>>, vector<1x4x1728xf32>
    %103 = vector.shape_cast %102 : vector<1x4x1728xf32> to vector<4x1728xf32>
    %c0_87 = arith.constant 0 : index
    %c0_88 = arith.constant 0 : index
    %104 = vector.load %arg4[%c0_87, %c0_88] : memref<9x1728xf32, #tpu.memory_space<vmem>>, vector<1x1728xf32>
    %105 = vector.broadcast %104 : vector<1x1728xf32> to vector<4x1728xf32>
    %106 = arith.mulf %103, %105 : vector<4x1728xf32>
    %c72 = arith.constant 72 : index
    %c0_89 = arith.constant 0 : index
    %107 = vector.load %arg8[%c72, %c0_89] : memref<108x1728xf32, #tpu.memory_space<vmem>>, vector<4x1728xf32>
    tpu.vector_store %arg8[%c72, %c0_89], %106 {strides = array<i32>} : memref<108x1728xf32, #tpu.memory_space<vmem>>, vector<4x1728xf32>,
    %c0_90 = arith.constant 0 : index
    %c0_91 = arith.constant 0 : index
    %c289 = arith.constant 289 : index
    %108 = vector.load %arg2[%c0_90, %c0_91, %c289] : memref<1x4x2042xf32, #tpu.memory_space<vmem>>, vector<1x4x1728xf32>
    %109 = vector.shape_cast %108 : vector<1x4x1728xf32> to vector<4x1728xf32>
    %c1_92 = arith.constant 1 : index
    %c0_93 = arith.constant 0 : index
    %110 = vector.load %arg4[%c1_92, %c0_93] : memref<9x1728xf32, #tpu.memory_space<vmem>>, vector<1x1728xf32>
    %111 = vector.broadcast %110 : vector<1x1728xf32> to vector<4x1728xf32>
    %112 = arith.mulf %109, %111 : vector<4x1728xf32>
    %c76 = arith.constant 76 : index
    %c0_94 = arith.constant 0 : index
    %113 = vector.load %arg8[%c76, %c0_94] : memref<108x1728xf32, #tpu.memory_space<vmem>>, vector<4x1728xf32>
    tpu.vector_store %arg8[%c76, %c0_94], %112 {strides = array<i32>} : memref<108x1728xf32, #tpu.memory_space<vmem>>, vector<4x1728xf32>,
    %c0_95 = arith.constant 0 : index
    %c0_96 = arith.constant 0 : index
    %c290 = arith.constant 290 : index
    %114 = vector.load %arg2[%c0_95, %c0_96, %c290] : memref<1x4x2042xf32, #tpu.memory_space<vmem>>, vector<1x4x1728xf32>
    %115 = vector.shape_cast %114 : vector<1x4x1728xf32> to vector<4x1728xf32>
    %c2_97 = arith.constant 2 : index
    %c0_98 = arith.constant 0 : index
    %116 = vector.load %arg4[%c2_97, %c0_98] : memref<9x1728xf32, #tpu.memory_space<vmem>>, vector<1x1728xf32>
    %117 = vector.broadcast %116 : vector<1x1728xf32> to vector<4x1728xf32>
    %118 = arith.mulf %115, %117 : vector<4x1728xf32>
    %c80 = arith.constant 80 : index
    %c0_99 = arith.constant 0 : index
    %119 = vector.load %arg8[%c80, %c0_99] : memref<108x1728xf32, #tpu.memory_space<vmem>>, vector<4x1728xf32>
    tpu.vector_store %arg8[%c80, %c0_99], %118 {strides = array<i32>} : memref<108x1728xf32, #tpu.memory_space<vmem>>, vector<4x1728xf32>,
    %c0_100 = arith.constant 0 : index
    %c0_101 = arith.constant 0 : index
    %c300 = arith.constant 300 : index
    %120 = vector.load %arg2[%c0_100, %c0_101, %c300] : memref<1x4x2042xf32, #tpu.memory_space<vmem>>, vector<1x4x1728xf32>
    %121 = vector.shape_cast %120 : vector<1x4x1728xf32> to vector<4x1728xf32>
    %c3_102 = arith.constant 3 : index
    %c0_103 = arith.constant 0 : index
    %122 = vector.load %arg4[%c3_102, %c0_103] : memref<9x1728xf32, #tpu.memory_space<vmem>>, vector<1x1728xf32>
    %123 = vector.broadcast %122 : vector<1x1728xf32> to vector<4x1728xf32>
    %124 = arith.mulf %121, %123 : vector<4x1728xf32>
    %c84 = arith.constant 84 : index
    %c0_104 = arith.constant 0 : index
    %125 = vector.load %arg8[%c84, %c0_104] : memref<108x1728xf32, #tpu.memory_space<vmem>>, vector<4x1728xf32>
    tpu.vector_store %arg8[%c84, %c0_104], %124 {strides = array<i32>} : memref<108x1728xf32, #tpu.memory_space<vmem>>, vector<4x1728xf32>,
    %c0_105 = arith.constant 0 : index
    %c0_106 = arith.constant 0 : index
    %c301 = arith.constant 301 : index
    %126 = vector.load %arg2[%c0_105, %c0_106, %c301] : memref<1x4x2042xf32, #tpu.memory_space<vmem>>, vector<1x4x1728xf32>
    %127 = vector.shape_cast %126 : vector<1x4x1728xf32> to vector<4x1728xf32>
    %c88 = arith.constant 88 : index
    %c0_107 = arith.constant 0 : index
    %128 = vector.load %arg8[%c88, %c0_107] : memref<108x1728xf32, #tpu.memory_space<vmem>>, vector<4x1728xf32>
    tpu.vector_store %arg8[%c88, %c0_107], %127 {strides = array<i32>} : memref<108x1728xf32, #tpu.memory_space<vmem>>, vector<4x1728xf32>,
    %c0_108 = arith.constant 0 : index
    %c0_109 = arith.constant 0 : index
    %c302 = arith.constant 302 : index
    %129 = vector.load %arg2[%c0_108, %c0_109, %c302] : memref<1x4x2042xf32, #tpu.memory_space<vmem>>, vector<1x4x1728xf32>
    %130 = vector.shape_cast %129 : vector<1x4x1728xf32> to vector<4x1728xf32>
    %c5_110 = arith.constant 5 : index
    %c0_111 = arith.constant 0 : index
    %131 = vector.load %arg4[%c5_110, %c0_111] : memref<9x1728xf32, #tpu.memory_space<vmem>>, vector<1x1728xf32>
    %132 = vector.broadcast %131 : vector<1x1728xf32> to vector<4x1728xf32>
    %133 = arith.mulf %130, %132 : vector<4x1728xf32>
    %c92 = arith.constant 92 : index
    %c0_112 = arith.constant 0 : index
    %134 = vector.load %arg8[%c92, %c0_112] : memref<108x1728xf32, #tpu.memory_space<vmem>>, vector<4x1728xf32>
    tpu.vector_store %arg8[%c92, %c0_112], %133 {strides = array<i32>} : memref<108x1728xf32, #tpu.memory_space<vmem>>, vector<4x1728xf32>,
    %c0_113 = arith.constant 0 : index
    %c0_114 = arith.constant 0 : index
    %c312 = arith.constant 312 : index
    %135 = vector.load %arg2[%c0_113, %c0_114, %c312] : memref<1x4x2042xf32, #tpu.memory_space<vmem>>, vector<1x4x1728xf32>
    %136 = vector.shape_cast %135 : vector<1x4x1728xf32> to vector<4x1728xf32>
    %c6_115 = arith.constant 6 : index
    %c0_116 = arith.constant 0 : index
    %137 = vector.load %arg4[%c6_115, %c0_116] : memref<9x1728xf32, #tpu.memory_space<vmem>>, vector<1x1728xf32>
    %138 = vector.broadcast %137 : vector<1x1728xf32> to vector<4x1728xf32>
    %139 = arith.mulf %136, %138 : vector<4x1728xf32>
    %c96 = arith.constant 96 : index
    %c0_117 = arith.constant 0 : index
    %140 = vector.load %arg8[%c96, %c0_117] : memref<108x1728xf32, #tpu.memory_space<vmem>>, vector<4x1728xf32>
    tpu.vector_store %arg8[%c96, %c0_117], %139 {strides = array<i32>} : memref<108x1728xf32, #tpu.memory_space<vmem>>, vector<4x1728xf32>,
    %c0_118 = arith.constant 0 : index
    %c0_119 = arith.constant 0 : index
    %c313 = arith.constant 313 : index
    %141 = vector.load %arg2[%c0_118, %c0_119, %c313] : memref<1x4x2042xf32, #tpu.memory_space<vmem>>, vector<1x4x1728xf32>
    %142 = vector.shape_cast %141 : vector<1x4x1728xf32> to vector<4x1728xf32>
    %c7_120 = arith.constant 7 : index
    %c0_121 = arith.constant 0 : index
    %143 = vector.load %arg4[%c7_120, %c0_121] : memref<9x1728xf32, #tpu.memory_space<vmem>>, vector<1x1728xf32>
    %144 = vector.broadcast %143 : vector<1x1728xf32> to vector<4x1728xf32>
    %145 = arith.mulf %142, %144 : vector<4x1728xf32>
    %c100 = arith.constant 100 : index
    %c0_122 = arith.constant 0 : index
    %146 = vector.load %arg8[%c100, %c0_122] : memref<108x1728xf32, #tpu.memory_space<vmem>>, vector<4x1728xf32>
    tpu.vector_store %arg8[%c100, %c0_122], %145 {strides = array<i32>} : memref<108x1728xf32, #tpu.memory_space<vmem>>, vector<4x1728xf32>,
    %c0_123 = arith.constant 0 : index
    %c0_124 = arith.constant 0 : index
    %c314 = arith.constant 314 : index
    %147 = vector.load %arg2[%c0_123, %c0_124, %c314] : memref<1x4x2042xf32, #tpu.memory_space<vmem>>, vector<1x4x1728xf32>
    %148 = vector.shape_cast %147 : vector<1x4x1728xf32> to vector<4x1728xf32>
    %c8_125 = arith.constant 8 : index
    %c0_126 = arith.constant 0 : index
    %149 = vector.load %arg4[%c8_125, %c0_126] : memref<9x1728xf32, #tpu.memory_space<vmem>>, vector<1x1728xf32>
    %150 = vector.broadcast %149 : vector<1x1728xf32> to vector<4x1728xf32>
    %151 = arith.mulf %148, %150 : vector<4x1728xf32>
    %c104 = arith.constant 104 : index
    %c0_127 = arith.constant 0 : index
    %152 = vector.load %arg8[%c104, %c0_127] : memref<108x1728xf32, #tpu.memory_space<vmem>>, vector<4x1728xf32>
    tpu.vector_store %arg8[%c104, %c0_127], %151 {strides = array<i32>} : memref<108x1728xf32, #tpu.memory_space<vmem>>, vector<4x1728xf32>,
    %c0_128 = arith.constant 0 : index
    %c0_129 = arith.constant 0 : index
    %153 = vector.load %arg3[%c0_128, %c0_129] : memref<8x108xf32, #tpu.memory_space<vmem>>, vector<8x108xf32>
    %c0_130 = arith.constant 0 : index
    %c0_131 = arith.constant 0 : index
    %154 = vector.load %arg8[%c0_130, %c0_131] : memref<108x1728xf32, #tpu.memory_space<vmem>>, vector<108x1728xf32>
    %cst = arith.constant dense<0.000000e+00> : vector<8x1728xf32>
    %155 = tpu.matmul %153, %154, %cst {dimension_numbers = #tpu.dot_dimension_numbers<[1], [0], [0], [1], [0, 0, 1, 1], [], []>} : vector<8x108xf32>, vector<108x1728xf32>, vector<8x1728xf32> -> vector<8x1728xf32>
    %c0_132 = arith.constant 0 : index
    %c0_133 = arith.constant 0 : index
    %c0_134 = arith.constant 0 : index
    %156 = vector.load %arg5[%c0_132, %c0_133, %c0_134] : memref<1x8x1728xf32, #tpu.memory_space<vmem>>, vector<1x8x1728xf32>
    %157 = vector.shape_cast %156 : vector<1x8x1728xf32> to vector<8x1728xf32>
    %158 = vector.shape_cast %155 : vector<8x1728xf32> to vector<1x8x1728xf32>
    tpu.vector_store %arg5[%c0_132, %c0_133, %c0_134], %158 {strides = array<i32>} : memref<1x8x1728xf32, #tpu.memory_space<vmem>>, vector<1x8x1728xf32>,
    %cst_135 = arith.constant dense<0.000000e+00> : vector<8xf32>
    %159 = vector.multi_reduction <add>, %155, %cst_135 [1] : vector<8x1728xf32> to vector<8xf32>
    %160 = vector.shape_cast %159 : vector<8xf32> to vector<8x1xf32>
    %c0_136 = arith.constant 0 : index
    %c0_137 = arith.constant 0 : index
    %c0_138 = arith.constant 0 : index
    %161 = vector.load %arg6[%c0_136, %c0_137, %c0_138] : memref<1x8x1xf32, #tpu.memory_space<vmem>>, vector<1x8x1xf32>
    %162 = vector.shape_cast %161 : vector<1x8x1xf32> to vector<8x1xf32>
    %163 = vector.shape_cast %160 : vector<8x1xf32> to vector<1x8x1xf32>
    tpu.vector_store %arg6[%c0_136, %c0_137, %c0_138], %163 {strides = array<i32>} : memref<1x8x1xf32, #tpu.memory_space<vmem>>, vector<1x8x1xf32>,
    %164 = arith.mulf %155, %155 : vector<8x1728xf32>
    %cst_139 = arith.constant dense<0.000000e+00> : vector<8xf32>
    %165 = vector.multi_reduction <add>, %164, %cst_139 [1] : vector<8x1728xf32> to vector<8xf32>
    %166 = vector.shape_cast %165 : vector<8xf32> to vector<8x1xf32>
    %c0_140 = arith.constant 0 : index
    %c0_141 = arith.constant 0 : index
    %c0_142 = arith.constant 0 : index
    %167 = vector.load %arg7[%c0_140, %c0_141, %c0_142] : memref<1x8x1xf32, #tpu.memory_space<vmem>>, vector<1x8x1xf32>
    %168 = vector.shape_cast %167 : vector<1x8x1xf32> to vector<8x1xf32>
    %169 = vector.shape_cast %166 : vector<8x1xf32> to vector<1x8x1xf32>
    tpu.vector_store %arg7[%c0_140, %c0_141, %c0_142], %169 {strides = array<i32>} : memref<1x8x1xf32, #tpu.memory_space<vmem>>, vector<1x8x1xf32>,
    return
  }
  func.func @transform_0(%arg0: i32, %arg1: i32) -> (i32, i32, i32) {
    %c0_i32 = arith.constant 0 : i32
    %c0_i32_0 = arith.constant 0 : i32
    %c0_i32_1 = arith.constant 0 : i32
    return %arg0, %c0_i32, %c0_i32_0 : i32, i32, i32
  }
  func.func @transform_1(%arg0: i32, %arg1: i32) -> (i32, i32) {
    %c0_i32 = arith.constant 0 : i32
    %c0_i32_0 = arith.constant 0 : i32
    %c0_i32_1 = arith.constant 0 : i32
    return %c0_i32, %c0_i32_0 : i32, i32
  }
  func.func @transform_2(%arg0: i32, %arg1: i32) -> (i32, i32) {
    %c0_i32 = arith.constant 0 : i32
    %c0_i32_0 = arith.constant 0 : i32
    %c0_i32_1 = arith.constant 0 : i32
    return %c0_i32, %c0_i32_0 : i32, i32
  }
  func.func @transform_3(%arg0: i32, %arg1: i32) -> (i32, i32, i32) {
    %c0_i32 = arith.constant 0 : i32
    %c0_i32_0 = arith.constant 0 : i32
    return %arg0, %c0_i32, %arg1 : i32, i32, i32
  }
  func.func @transform_4(%arg0: i32, %arg1: i32) -> (i32, i32, i32) {
    %c1_i32 = arith.constant 1 : i32
    %0 = arith.muli %arg0, %c1_i32 : i32
    %1 = arith.addi %0, %arg1 : i32
    %c0_i32 = arith.constant 0 : i32
    %c0_i32_0 = arith.constant 0 : i32
    %c0_i32_1 = arith.constant 0 : i32
    return %1, %c0_i32, %c0_i32_0 : i32, i32, i32
  }
  func.func @transform_5(%arg0: i32, %arg1: i32) -> (i32, i32, i32) {
    %c1_i32 = arith.constant 1 : i32
    %0 = arith.muli %arg0, %c1_i32 : i32
    %1 = arith.addi %0, %arg1 : i32
    %c0_i32 = arith.constant 0 : i32
    %c0_i32_0 = arith.constant 0 : i32
    %c0_i32_1 = arith.constant 0 : i32
    return %1, %c0_i32, %c0_i32_0 : i32, i32, i32
  }
}

module attributes {stable_mosaic.version = 11 : i64} {
  func.func @_conv_strided_kernel(%arg0: i32, %arg1: i32, %arg2: memref<1x108x64xf32, #tpu.memory_space<vmem>>, %arg3: memref<8x108xf32, #tpu.memory_space<vmem>>, %arg4: memref<1x8x64xf32, #tpu.memory_space<vmem>>, %arg5: memref<1x8x1xf32, #tpu.memory_space<vmem>>, %arg6: memref<1x8x1xf32, #tpu.memory_space<vmem>>) attributes {dimension_semantics = [#tpu.dimension_semantics<parallel>, #tpu.dimension_semantics<parallel>], iteration_bounds = array<i64: 2, 1>, scalar_prefetch = 0 : i64, scratch_operands = 0 : i64, tpu.core_type = #tpu.core_type<tc>, window_params = [{transform_indices = @transform_0, window_bounds = array<i64: 1, 108, 64>}, {pipeline_mode = #tpu.pipeline_mode<synchronous>, transform_indices = @transform_1, window_bounds = array<i64: 8, 108>}, {transform_indices = @transform_2, window_bounds = array<i64: 1, 8, 64>}, {transform_indices = @transform_3, window_bounds = array<i64: 1, 8, 1>}, {transform_indices = @transform_4, window_bounds = array<i64: 1, 8, 1>}]} {
    %c0 = arith.constant 0 : index
    %c0_0 = arith.constant 0 : index
    %0 = vector.load %arg3[%c0, %c0_0] : memref<8x108xf32, #tpu.memory_space<vmem>>, vector<8x108xf32>
    %c0_1 = arith.constant 0 : index
    %c0_2 = arith.constant 0 : index
    %c0_3 = arith.constant 0 : index
    %1 = vector.load %arg2[%c0_1, %c0_2, %c0_3] : memref<1x108x64xf32, #tpu.memory_space<vmem>>, vector<1x108x64xf32>
    %2 = vector.shape_cast %1 : vector<1x108x64xf32> to vector<108x64xf32>
    %cst = arith.constant dense<0.000000e+00> : vector<8x64xf32>
    %3 = tpu.matmul %0, %2, %cst {dimension_numbers = #tpu.dot_dimension_numbers<[1], [0], [0], [1], [0, 0, 1, 1], [], []>} : vector<8x108xf32>, vector<108x64xf32>, vector<8x64xf32> -> vector<8x64xf32>
    %c0_4 = arith.constant 0 : index
    %c0_5 = arith.constant 0 : index
    %c0_6 = arith.constant 0 : index
    %4 = vector.load %arg4[%c0_4, %c0_5, %c0_6] : memref<1x8x64xf32, #tpu.memory_space<vmem>>, vector<1x8x64xf32>
    %5 = vector.shape_cast %4 : vector<1x8x64xf32> to vector<8x64xf32>
    %6 = vector.shape_cast %3 : vector<8x64xf32> to vector<1x8x64xf32>
    tpu.vector_store %arg4[%c0_4, %c0_5, %c0_6], %6 {strides = array<i32>} : memref<1x8x64xf32, #tpu.memory_space<vmem>>, vector<1x8x64xf32>,
    %cst_7 = arith.constant dense<0.000000e+00> : vector<8xf32>
    %7 = vector.multi_reduction <add>, %3, %cst_7 [1] : vector<8x64xf32> to vector<8xf32>
    %8 = vector.shape_cast %7 : vector<8xf32> to vector<8x1xf32>
    %c0_8 = arith.constant 0 : index
    %c0_9 = arith.constant 0 : index
    %c0_10 = arith.constant 0 : index
    %9 = vector.load %arg5[%c0_8, %c0_9, %c0_10] : memref<1x8x1xf32, #tpu.memory_space<vmem>>, vector<1x8x1xf32>
    %10 = vector.shape_cast %9 : vector<1x8x1xf32> to vector<8x1xf32>
    %11 = vector.shape_cast %8 : vector<8x1xf32> to vector<1x8x1xf32>
    tpu.vector_store %arg5[%c0_8, %c0_9, %c0_10], %11 {strides = array<i32>} : memref<1x8x1xf32, #tpu.memory_space<vmem>>, vector<1x8x1xf32>,
    %12 = arith.mulf %3, %3 : vector<8x64xf32>
    %cst_11 = arith.constant dense<0.000000e+00> : vector<8xf32>
    %13 = vector.multi_reduction <add>, %12, %cst_11 [1] : vector<8x64xf32> to vector<8xf32>
    %14 = vector.shape_cast %13 : vector<8xf32> to vector<8x1xf32>
    %c0_12 = arith.constant 0 : index
    %c0_13 = arith.constant 0 : index
    %c0_14 = arith.constant 0 : index
    %15 = vector.load %arg6[%c0_12, %c0_13, %c0_14] : memref<1x8x1xf32, #tpu.memory_space<vmem>>, vector<1x8x1xf32>
    %16 = vector.shape_cast %15 : vector<1x8x1xf32> to vector<8x1xf32>
    %17 = vector.shape_cast %14 : vector<8x1xf32> to vector<1x8x1xf32>
    tpu.vector_store %arg6[%c0_12, %c0_13, %c0_14], %17 {strides = array<i32>} : memref<1x8x1xf32, #tpu.memory_space<vmem>>, vector<1x8x1xf32>,
    return
  }
  func.func @transform_0(%arg0: i32, %arg1: i32) -> (i32, i32, i32) {
    %c0_i32 = arith.constant 0 : i32
    %c0_i32_0 = arith.constant 0 : i32
    return %arg0, %c0_i32, %arg1 : i32, i32, i32
  }
  func.func @transform_1(%arg0: i32, %arg1: i32) -> (i32, i32) {
    %c0_i32 = arith.constant 0 : i32
    %c0_i32_0 = arith.constant 0 : i32
    %c0_i32_1 = arith.constant 0 : i32
    return %c0_i32, %c0_i32_0 : i32, i32
  }
  func.func @transform_2(%arg0: i32, %arg1: i32) -> (i32, i32, i32) {
    %c0_i32 = arith.constant 0 : i32
    %c0_i32_0 = arith.constant 0 : i32
    return %arg0, %c0_i32, %arg1 : i32, i32, i32
  }
  func.func @transform_3(%arg0: i32, %arg1: i32) -> (i32, i32, i32) {
    %c1_i32 = arith.constant 1 : i32
    %0 = arith.muli %arg0, %c1_i32 : i32
    %1 = arith.addi %0, %arg1 : i32
    %c0_i32 = arith.constant 0 : i32
    %c0_i32_0 = arith.constant 0 : i32
    %c0_i32_1 = arith.constant 0 : i32
    return %1, %c0_i32, %c0_i32_0 : i32, i32, i32
  }
  func.func @transform_4(%arg0: i32, %arg1: i32) -> (i32, i32, i32) {
    %c1_i32 = arith.constant 1 : i32
    %0 = arith.muli %arg0, %c1_i32 : i32
    %1 = arith.addi %0, %arg1 : i32
    %c0_i32 = arith.constant 0 : i32
    %c0_i32_0 = arith.constant 0 : i32
    %c0_i32_1 = arith.constant 0 : i32
    return %1, %c0_i32, %c0_i32_0 : i32, i32, i32
  }
}

module attributes {stable_mosaic.version = 11 : i64} {
  func.func @_apply_kernel(%arg0: i32, %arg1: i32, %arg2: memref<1x8x64xf32, #tpu.memory_space<vmem>>, %arg3: memref<8x1xf32, #tpu.memory_space<vmem>>, %arg4: memref<8x1xf32, #tpu.memory_space<vmem>>, %arg5: memref<1x8x64xf32, #tpu.memory_space<vmem>>) attributes {dimension_semantics = [#tpu.dimension_semantics<parallel>, #tpu.dimension_semantics<parallel>], iteration_bounds = array<i64: 2, 1>, scalar_prefetch = 0 : i64, scratch_operands = 0 : i64, tpu.core_type = #tpu.core_type<tc>, window_params = [{transform_indices = @transform_0, window_bounds = array<i64: 1, 8, 64>}, {pipeline_mode = #tpu.pipeline_mode<synchronous>, transform_indices = @transform_1, window_bounds = array<i64: 8, 1>}, {pipeline_mode = #tpu.pipeline_mode<synchronous>, transform_indices = @transform_2, window_bounds = array<i64: 8, 1>}, {transform_indices = @transform_3, window_bounds = array<i64: 1, 8, 64>}]} {
    %c0 = arith.constant 0 : index
    %c0_0 = arith.constant 0 : index
    %c0_1 = arith.constant 0 : index
    %0 = vector.load %arg2[%c0, %c0_0, %c0_1] : memref<1x8x64xf32, #tpu.memory_space<vmem>>, vector<1x8x64xf32>
    %1 = vector.shape_cast %0 : vector<1x8x64xf32> to vector<8x64xf32>
    %c0_2 = arith.constant 0 : index
    %c0_3 = arith.constant 0 : index
    %2 = vector.load %arg3[%c0_2, %c0_3] : memref<8x1xf32, #tpu.memory_space<vmem>>, vector<8x1xf32>
    %3 = vector.broadcast %2 : vector<8x1xf32> to vector<8x64xf32>
    %4 = arith.mulf %1, %3 : vector<8x64xf32>
    %c0_4 = arith.constant 0 : index
    %c0_5 = arith.constant 0 : index
    %5 = vector.load %arg4[%c0_4, %c0_5] : memref<8x1xf32, #tpu.memory_space<vmem>>, vector<8x1xf32>
    %6 = vector.broadcast %5 : vector<8x1xf32> to vector<8x64xf32>
    %7 = arith.addf %4, %6 : vector<8x64xf32>
    %cst = arith.constant 0.000000e+00 : f32
    %8 = vector.broadcast %cst : f32 to vector<8x64xf32>
    %9 = arith.cmpf oge, %7, %8 : vector<8x64xf32>
    %cst_6 = arith.constant 0.00999999977 : f32
    %10 = vector.broadcast %cst_6 : f32 to vector<8x64xf32>
    %11 = arith.mulf %10, %7 : vector<8x64xf32>
    %12 = arith.select %9, %7, %11 : vector<8x64xi1>, vector<8x64xf32>
    %c0_7 = arith.constant 0 : index
    %c0_8 = arith.constant 0 : index
    %c0_9 = arith.constant 0 : index
    %13 = vector.load %arg5[%c0_7, %c0_8, %c0_9] : memref<1x8x64xf32, #tpu.memory_space<vmem>>, vector<1x8x64xf32>
    %14 = vector.shape_cast %13 : vector<1x8x64xf32> to vector<8x64xf32>
    %15 = vector.shape_cast %12 : vector<8x64xf32> to vector<1x8x64xf32>
    tpu.vector_store %arg5[%c0_7, %c0_8, %c0_9], %15 {strides = array<i32>} : memref<1x8x64xf32, #tpu.memory_space<vmem>>, vector<1x8x64xf32>,
    return
  }
  func.func @transform_0(%arg0: i32, %arg1: i32) -> (i32, i32, i32) {
    %c0_i32 = arith.constant 0 : i32
    %c0_i32_0 = arith.constant 0 : i32
    return %arg0, %c0_i32, %arg1 : i32, i32, i32
  }
  func.func @transform_1(%arg0: i32, %arg1: i32) -> (i32, i32) {
    %c0_i32 = arith.constant 0 : i32
    %c0_i32_0 = arith.constant 0 : i32
    %c0_i32_1 = arith.constant 0 : i32
    return %c0_i32, %c0_i32_0 : i32, i32
  }
  func.func @transform_2(%arg0: i32, %arg1: i32) -> (i32, i32) {
    %c0_i32 = arith.constant 0 : i32
    %c0_i32_0 = arith.constant 0 : i32
    %c0_i32_1 = arith.constant 0 : i32
    return %c0_i32, %c0_i32_0 : i32, i32
  }
  func.func @transform_3(%arg0: i32, %arg1: i32) -> (i32, i32, i32) {
    %c0_i32 = arith.constant 0 : i32
    %c0_i32_0 = arith.constant 0 : i32
    return %arg0, %c0_i32, %arg1 : i32, i32, i32
  }
}

module attributes {stable_mosaic.version = 11 : i64} {
  func.func @_conv_strided_kernel(%arg0: i32, %arg1: i32, %arg2: memref<1x108x216xf32, #tpu.memory_space<vmem>>, %arg3: memref<8x108xf32, #tpu.memory_space<vmem>>, %arg4: memref<1x8x216xf32, #tpu.memory_space<vmem>>, %arg5: memref<1x8x1xf32, #tpu.memory_space<vmem>>, %arg6: memref<1x8x1xf32, #tpu.memory_space<vmem>>) attributes {dimension_semantics = [#tpu.dimension_semantics<parallel>, #tpu.dimension_semantics<parallel>], iteration_bounds = array<i64: 2, 1>, scalar_prefetch = 0 : i64, scratch_operands = 0 : i64, tpu.core_type = #tpu.core_type<tc>, window_params = [{transform_indices = @transform_0, window_bounds = array<i64: 1, 108, 216>}, {pipeline_mode = #tpu.pipeline_mode<synchronous>, transform_indices = @transform_1, window_bounds = array<i64: 8, 108>}, {transform_indices = @transform_2, window_bounds = array<i64: 1, 8, 216>}, {transform_indices = @transform_3, window_bounds = array<i64: 1, 8, 1>}, {transform_indices = @transform_4, window_bounds = array<i64: 1, 8, 1>}]} {
    %c0 = arith.constant 0 : index
    %c0_0 = arith.constant 0 : index
    %0 = vector.load %arg3[%c0, %c0_0] : memref<8x108xf32, #tpu.memory_space<vmem>>, vector<8x108xf32>
    %c0_1 = arith.constant 0 : index
    %c0_2 = arith.constant 0 : index
    %c0_3 = arith.constant 0 : index
    %1 = vector.load %arg2[%c0_1, %c0_2, %c0_3] : memref<1x108x216xf32, #tpu.memory_space<vmem>>, vector<1x108x216xf32>
    %2 = vector.shape_cast %1 : vector<1x108x216xf32> to vector<108x216xf32>
    %cst = arith.constant dense<0.000000e+00> : vector<8x216xf32>
    %3 = tpu.matmul %0, %2, %cst {dimension_numbers = #tpu.dot_dimension_numbers<[1], [0], [0], [1], [0, 0, 1, 1], [], []>} : vector<8x108xf32>, vector<108x216xf32>, vector<8x216xf32> -> vector<8x216xf32>
    %c0_4 = arith.constant 0 : index
    %c0_5 = arith.constant 0 : index
    %c0_6 = arith.constant 0 : index
    %4 = vector.load %arg4[%c0_4, %c0_5, %c0_6] : memref<1x8x216xf32, #tpu.memory_space<vmem>>, vector<1x8x216xf32>
    %5 = vector.shape_cast %4 : vector<1x8x216xf32> to vector<8x216xf32>
    %6 = vector.shape_cast %3 : vector<8x216xf32> to vector<1x8x216xf32>
    tpu.vector_store %arg4[%c0_4, %c0_5, %c0_6], %6 {strides = array<i32>} : memref<1x8x216xf32, #tpu.memory_space<vmem>>, vector<1x8x216xf32>,
    %cst_7 = arith.constant dense<0.000000e+00> : vector<8xf32>
    %7 = vector.multi_reduction <add>, %3, %cst_7 [1] : vector<8x216xf32> to vector<8xf32>
    %8 = vector.shape_cast %7 : vector<8xf32> to vector<8x1xf32>
    %c0_8 = arith.constant 0 : index
    %c0_9 = arith.constant 0 : index
    %c0_10 = arith.constant 0 : index
    %9 = vector.load %arg5[%c0_8, %c0_9, %c0_10] : memref<1x8x1xf32, #tpu.memory_space<vmem>>, vector<1x8x1xf32>
    %10 = vector.shape_cast %9 : vector<1x8x1xf32> to vector<8x1xf32>
    %11 = vector.shape_cast %8 : vector<8x1xf32> to vector<1x8x1xf32>
    tpu.vector_store %arg5[%c0_8, %c0_9, %c0_10], %11 {strides = array<i32>} : memref<1x8x1xf32, #tpu.memory_space<vmem>>, vector<1x8x1xf32>,
    %12 = arith.mulf %3, %3 : vector<8x216xf32>
    %cst_11 = arith.constant dense<0.000000e+00> : vector<8xf32>
    %13 = vector.multi_reduction <add>, %12, %cst_11 [1] : vector<8x216xf32> to vector<8xf32>
    %14 = vector.shape_cast %13 : vector<8xf32> to vector<8x1xf32>
    %c0_12 = arith.constant 0 : index
    %c0_13 = arith.constant 0 : index
    %c0_14 = arith.constant 0 : index
    %15 = vector.load %arg6[%c0_12, %c0_13, %c0_14] : memref<1x8x1xf32, #tpu.memory_space<vmem>>, vector<1x8x1xf32>
    %16 = vector.shape_cast %15 : vector<1x8x1xf32> to vector<8x1xf32>
    %17 = vector.shape_cast %14 : vector<8x1xf32> to vector<1x8x1xf32>
    tpu.vector_store %arg6[%c0_12, %c0_13, %c0_14], %17 {strides = array<i32>} : memref<1x8x1xf32, #tpu.memory_space<vmem>>, vector<1x8x1xf32>,
    return
  }
  func.func @transform_0(%arg0: i32, %arg1: i32) -> (i32, i32, i32) {
    %c0_i32 = arith.constant 0 : i32
    %c0_i32_0 = arith.constant 0 : i32
    return %arg0, %c0_i32, %arg1 : i32, i32, i32
  }
  func.func @transform_1(%arg0: i32, %arg1: i32) -> (i32, i32) {
    %c0_i32 = arith.constant 0 : i32
    %c0_i32_0 = arith.constant 0 : i32
    %c0_i32_1 = arith.constant 0 : i32
    return %c0_i32, %c0_i32_0 : i32, i32
  }
  func.func @transform_2(%arg0: i32, %arg1: i32) -> (i32, i32, i32) {
    %c0_i32 = arith.constant 0 : i32
    %c0_i32_0 = arith.constant 0 : i32
    return %arg0, %c0_i32, %arg1 : i32, i32, i32
  }
  func.func @transform_3(%arg0: i32, %arg1: i32) -> (i32, i32, i32) {
    %c1_i32 = arith.constant 1 : i32
    %0 = arith.muli %arg0, %c1_i32 : i32
    %1 = arith.addi %0, %arg1 : i32
    %c0_i32 = arith.constant 0 : i32
    %c0_i32_0 = arith.constant 0 : i32
    %c0_i32_1 = arith.constant 0 : i32
    return %1, %c0_i32, %c0_i32_0 : i32, i32, i32
  }
  func.func @transform_4(%arg0: i32, %arg1: i32) -> (i32, i32, i32) {
    %c1_i32 = arith.constant 1 : i32
    %0 = arith.muli %arg0, %c1_i32 : i32
    %1 = arith.addi %0, %arg1 : i32
    %c0_i32 = arith.constant 0 : i32
    %c0_i32_0 = arith.constant 0 : i32
    %c0_i32_1 = arith.constant 0 : i32
    return %1, %c0_i32, %c0_i32_0 : i32, i32, i32
  }
}

module attributes {stable_mosaic.version = 11 : i64} {
  func.func @kernel(%arg0: i32, %arg1: i32, %arg2: memref<1x8x216xf32, #tpu.memory_space<vmem>>, %arg3: memref<8x1xf32, #tpu.memory_space<vmem>>, %arg4: memref<8x1xf32, #tpu.memory_space<vmem>>, %arg5: memref<1x8x216xf32, #tpu.memory_space<vmem>>, %arg6: memref<8x8xf32, #tpu.memory_space<vmem>>, %arg7: memref<1x8x216xf32, #tpu.memory_space<vmem>>, %arg8: memref<1x8x1xf32, #tpu.memory_space<vmem>>, %arg9: memref<1x8x1xf32, #tpu.memory_space<vmem>>) attributes {dimension_semantics = [#tpu.dimension_semantics<parallel>, #tpu.dimension_semantics<parallel>], iteration_bounds = array<i64: 2, 1>, scalar_prefetch = 0 : i64, scratch_operands = 0 : i64, tpu.core_type = #tpu.core_type<tc>, window_params = [{transform_indices = @transform_0, window_bounds = array<i64: 1, 8, 216>}, {pipeline_mode = #tpu.pipeline_mode<synchronous>, transform_indices = @transform_1, window_bounds = array<i64: 8, 1>}, {pipeline_mode = #tpu.pipeline_mode<synchronous>, transform_indices = @transform_2, window_bounds = array<i64: 8, 1>}, {transform_indices = @transform_3, window_bounds = array<i64: 1, 8, 216>}, {pipeline_mode = #tpu.pipeline_mode<synchronous>, transform_indices = @transform_4, window_bounds = array<i64: 8, 8>}, {transform_indices = @transform_5, window_bounds = array<i64: 1, 8, 216>}, {transform_indices = @transform_6, window_bounds = array<i64: 1, 8, 1>}, {transform_indices = @transform_7, window_bounds = array<i64: 1, 8, 1>}]} {
    %c0 = arith.constant 0 : index
    %c0_0 = arith.constant 0 : index
    %c0_1 = arith.constant 0 : index
    %0 = vector.load %arg2[%c0, %c0_0, %c0_1] : memref<1x8x216xf32, #tpu.memory_space<vmem>>, vector<1x8x216xf32>
    %1 = vector.shape_cast %0 : vector<1x8x216xf32> to vector<8x216xf32>
    %c0_2 = arith.constant 0 : index
    %c0_3 = arith.constant 0 : index
    %2 = vector.load %arg3[%c0_2, %c0_3] : memref<8x1xf32, #tpu.memory_space<vmem>>, vector<8x1xf32>
    %3 = vector.broadcast %2 : vector<8x1xf32> to vector<8x216xf32>
    %4 = arith.mulf %1, %3 : vector<8x216xf32>
    %c0_4 = arith.constant 0 : index
    %c0_5 = arith.constant 0 : index
    %5 = vector.load %arg4[%c0_4, %c0_5] : memref<8x1xf32, #tpu.memory_space<vmem>>, vector<8x1xf32>
    %6 = vector.broadcast %5 : vector<8x1xf32> to vector<8x216xf32>
    %7 = arith.addf %4, %6 : vector<8x216xf32>
    %cst = arith.constant 0.000000e+00 : f32
    %8 = vector.broadcast %cst : f32 to vector<8x216xf32>
    %9 = arith.cmpf oge, %7, %8 : vector<8x216xf32>
    %cst_6 = arith.constant 0.00999999977 : f32
    %10 = vector.broadcast %cst_6 : f32 to vector<8x216xf32>
    %11 = arith.mulf %10, %7 : vector<8x216xf32>
    %12 = arith.select %9, %7, %11 : vector<8x216xi1>, vector<8x216xf32>
    %c0_7 = arith.constant 0 : index
    %c0_8 = arith.constant 0 : index
    %c0_9 = arith.constant 0 : index
    %13 = vector.load %arg5[%c0_7, %c0_8, %c0_9] : memref<1x8x216xf32, #tpu.memory_space<vmem>>, vector<1x8x216xf32>
    %14 = vector.shape_cast %13 : vector<1x8x216xf32> to vector<8x216xf32>
    %15 = arith.addf %12, %14 : vector<8x216xf32>
    %c0_10 = arith.constant 0 : index
    %c0_11 = arith.constant 0 : index
    %16 = vector.load %arg6[%c0_10, %c0_11] : memref<8x8xf32, #tpu.memory_space<vmem>>, vector<8x8xf32>
    %cst_12 = arith.constant dense<0.000000e+00> : vector<8x216xf32>
    %17 = tpu.matmul %16, %15, %cst_12 {dimension_numbers = #tpu.dot_dimension_numbers<[1], [0], [0], [1], [0, 0, 1, 1], [], []>} : vector<8x8xf32>, vector<8x216xf32>, vector<8x216xf32> -> vector<8x216xf32>
    %c0_13 = arith.constant 0 : index
    %c0_14 = arith.constant 0 : index
    %c0_15 = arith.constant 0 : index
    %18 = vector.load %arg7[%c0_13, %c0_14, %c0_15] : memref<1x8x216xf32, #tpu.memory_space<vmem>>, vector<1x8x216xf32>
    %19 = vector.shape_cast %18 : vector<1x8x216xf32> to vector<8x216xf32>
    %20 = vector.shape_cast %17 : vector<8x216xf32> to vector<1x8x216xf32>
    tpu.vector_store %arg7[%c0_13, %c0_14, %c0_15], %20 {strides = array<i32>} : memref<1x8x216xf32, #tpu.memory_space<vmem>>, vector<1x8x216xf32>,
    %cst_16 = arith.constant dense<0.000000e+00> : vector<8xf32>
    %21 = vector.multi_reduction <add>, %17, %cst_16 [1] : vector<8x216xf32> to vector<8xf32>
    %22 = vector.shape_cast %21 : vector<8xf32> to vector<8x1xf32>
    %c0_17 = arith.constant 0 : index
    %c0_18 = arith.constant 0 : index
    %c0_19 = arith.constant 0 : index
    %23 = vector.load %arg8[%c0_17, %c0_18, %c0_19] : memref<1x8x1xf32, #tpu.memory_space<vmem>>, vector<1x8x1xf32>
    %24 = vector.shape_cast %23 : vector<1x8x1xf32> to vector<8x1xf32>
    %25 = vector.shape_cast %22 : vector<8x1xf32> to vector<1x8x1xf32>
    tpu.vector_store %arg8[%c0_17, %c0_18, %c0_19], %25 {strides = array<i32>} : memref<1x8x1xf32, #tpu.memory_space<vmem>>, vector<1x8x1xf32>,
    %26 = arith.mulf %17, %17 : vector<8x216xf32>
    %cst_20 = arith.constant dense<0.000000e+00> : vector<8xf32>
    %27 = vector.multi_reduction <add>, %26, %cst_20 [1] : vector<8x216xf32> to vector<8xf32>
    %28 = vector.shape_cast %27 : vector<8xf32> to vector<8x1xf32>
    %c0_21 = arith.constant 0 : index
    %c0_22 = arith.constant 0 : index
    %c0_23 = arith.constant 0 : index
    %29 = vector.load %arg9[%c0_21, %c0_22, %c0_23] : memref<1x8x1xf32, #tpu.memory_space<vmem>>, vector<1x8x1xf32>
    %30 = vector.shape_cast %29 : vector<1x8x1xf32> to vector<8x1xf32>
    %31 = vector.shape_cast %28 : vector<8x1xf32> to vector<1x8x1xf32>
    tpu.vector_store %arg9[%c0_21, %c0_22, %c0_23], %31 {strides = array<i32>} : memref<1x8x1xf32, #tpu.memory_space<vmem>>, vector<1x8x1xf32>,
    return
  }
  func.func @transform_0(%arg0: i32, %arg1: i32) -> (i32, i32, i32) {
    %c0_i32 = arith.constant 0 : i32
    %c0_i32_0 = arith.constant 0 : i32
    return %arg0, %c0_i32, %arg1 : i32, i32, i32
  }
  func.func @transform_1(%arg0: i32, %arg1: i32) -> (i32, i32) {
    %c0_i32 = arith.constant 0 : i32
    %c0_i32_0 = arith.constant 0 : i32
    %c0_i32_1 = arith.constant 0 : i32
    return %c0_i32, %c0_i32_0 : i32, i32
  }
  func.func @transform_2(%arg0: i32, %arg1: i32) -> (i32, i32) {
    %c0_i32 = arith.constant 0 : i32
    %c0_i32_0 = arith.constant 0 : i32
    %c0_i32_1 = arith.constant 0 : i32
    return %c0_i32, %c0_i32_0 : i32, i32
  }
  func.func @transform_3(%arg0: i32, %arg1: i32) -> (i32, i32, i32) {
    %c0_i32 = arith.constant 0 : i32
    %c0_i32_0 = arith.constant 0 : i32
    return %arg0, %c0_i32, %arg1 : i32, i32, i32
  }
  func.func @transform_4(%arg0: i32, %arg1: i32) -> (i32, i32) {
    %c0_i32 = arith.constant 0 : i32
    %c0_i32_0 = arith.constant 0 : i32
    %c0_i32_1 = arith.constant 0 : i32
    return %c0_i32, %c0_i32_0 : i32, i32
  }
  func.func @transform_5(%arg0: i32, %arg1: i32) -> (i32, i32, i32) {
    %c0_i32 = arith.constant 0 : i32
    %c0_i32_0 = arith.constant 0 : i32
    return %arg0, %c0_i32, %arg1 : i32, i32, i32
  }
  func.func @transform_6(%arg0: i32, %arg1: i32) -> (i32, i32, i32) {
    %c1_i32 = arith.constant 1 : i32
    %0 = arith.muli %arg0, %c1_i32 : i32
    %1 = arith.addi %0, %arg1 : i32
    %c0_i32 = arith.constant 0 : i32
    %c0_i32_0 = arith.constant 0 : i32
    %c0_i32_1 = arith.constant 0 : i32
    return %1, %c0_i32, %c0_i32_0 : i32, i32, i32
  }
  func.func @transform_7(%arg0: i32, %arg1: i32) -> (i32, i32, i32) {
    %c1_i32 = arith.constant 1 : i32
    %0 = arith.muli %arg0, %c1_i32 : i32
    %1 = arith.addi %0, %arg1 : i32
    %c0_i32 = arith.constant 0 : i32
    %c0_i32_0 = arith.constant 0 : i32
    %c0_i32_1 = arith.constant 0 : i32
    return %1, %c0_i32, %c0_i32_0 : i32, i32, i32
  }
}

module attributes {stable_mosaic.version = 11 : i64} {
  func.func @_apply_kernel(%arg0: i32, %arg1: i32, %arg2: memref<1x8x216xf32, #tpu.memory_space<vmem>>, %arg3: memref<8x1xf32, #tpu.memory_space<vmem>>, %arg4: memref<8x1xf32, #tpu.memory_space<vmem>>, %arg5: memref<1x8x216xf32, #tpu.memory_space<vmem>>) attributes {dimension_semantics = [#tpu.dimension_semantics<parallel>, #tpu.dimension_semantics<parallel>], iteration_bounds = array<i64: 2, 1>, scalar_prefetch = 0 : i64, scratch_operands = 0 : i64, tpu.core_type = #tpu.core_type<tc>, window_params = [{transform_indices = @transform_0, window_bounds = array<i64: 1, 8, 216>}, {pipeline_mode = #tpu.pipeline_mode<synchronous>, transform_indices = @transform_1, window_bounds = array<i64: 8, 1>}, {pipeline_mode = #tpu.pipeline_mode<synchronous>, transform_indices = @transform_2, window_bounds = array<i64: 8, 1>}, {transform_indices = @transform_3, window_bounds = array<i64: 1, 8, 216>}]} {
    %c0 = arith.constant 0 : index
    %c0_0 = arith.constant 0 : index
    %c0_1 = arith.constant 0 : index
    %0 = vector.load %arg2[%c0, %c0_0, %c0_1] : memref<1x8x216xf32, #tpu.memory_space<vmem>>, vector<1x8x216xf32>
    %1 = vector.shape_cast %0 : vector<1x8x216xf32> to vector<8x216xf32>
    %c0_2 = arith.constant 0 : index
    %c0_3 = arith.constant 0 : index
    %2 = vector.load %arg3[%c0_2, %c0_3] : memref<8x1xf32, #tpu.memory_space<vmem>>, vector<8x1xf32>
    %3 = vector.broadcast %2 : vector<8x1xf32> to vector<8x216xf32>
    %4 = arith.mulf %1, %3 : vector<8x216xf32>
    %c0_4 = arith.constant 0 : index
    %c0_5 = arith.constant 0 : index
    %5 = vector.load %arg4[%c0_4, %c0_5] : memref<8x1xf32, #tpu.memory_space<vmem>>, vector<8x1xf32>
    %6 = vector.broadcast %5 : vector<8x1xf32> to vector<8x216xf32>
    %7 = arith.addf %4, %6 : vector<8x216xf32>
    %cst = arith.constant 0.000000e+00 : f32
    %8 = vector.broadcast %cst : f32 to vector<8x216xf32>
    %9 = arith.cmpf oge, %7, %8 : vector<8x216xf32>
    %cst_6 = arith.constant 0.00999999977 : f32
    %10 = vector.broadcast %cst_6 : f32 to vector<8x216xf32>
    %11 = arith.mulf %10, %7 : vector<8x216xf32>
    %12 = arith.select %9, %7, %11 : vector<8x216xi1>, vector<8x216xf32>
    %c0_7 = arith.constant 0 : index
    %c0_8 = arith.constant 0 : index
    %c0_9 = arith.constant 0 : index
    %13 = vector.load %arg5[%c0_7, %c0_8, %c0_9] : memref<1x8x216xf32, #tpu.memory_space<vmem>>, vector<1x8x216xf32>
    %14 = vector.shape_cast %13 : vector<1x8x216xf32> to vector<8x216xf32>
    %15 = vector.shape_cast %12 : vector<8x216xf32> to vector<1x8x216xf32>
    tpu.vector_store %arg5[%c0_7, %c0_8, %c0_9], %15 {strides = array<i32>} : memref<1x8x216xf32, #tpu.memory_space<vmem>>, vector<1x8x216xf32>,
    return
  }
  func.func @transform_0(%arg0: i32, %arg1: i32) -> (i32, i32, i32) {
    %c0_i32 = arith.constant 0 : i32
    %c0_i32_0 = arith.constant 0 : i32
    return %arg0, %c0_i32, %arg1 : i32, i32, i32
  }
  func.func @transform_1(%arg0: i32, %arg1: i32) -> (i32, i32) {
    %c0_i32 = arith.constant 0 : i32
    %c0_i32_0 = arith.constant 0 : i32
    %c0_i32_1 = arith.constant 0 : i32
    return %c0_i32, %c0_i32_0 : i32, i32
  }
  func.func @transform_2(%arg0: i32, %arg1: i32) -> (i32, i32) {
    %c0_i32 = arith.constant 0 : i32
    %c0_i32_0 = arith.constant 0 : i32
    %c0_i32_1 = arith.constant 0 : i32
    return %c0_i32, %c0_i32_0 : i32, i32
  }
  func.func @transform_3(%arg0: i32, %arg1: i32) -> (i32, i32, i32) {
    %c0_i32 = arith.constant 0 : i32
    %c0_i32_0 = arith.constant 0 : i32
    return %arg0, %c0_i32, %arg1 : i32, i32, i32
  }
}

module attributes {stable_mosaic.version = 11 : i64} {
  func.func @kernel(%arg0: i32, %arg1: i32, %arg2: memref<1x8x1728xf32, #tpu.memory_space<vmem>>, %arg3: memref<8x1xf32, #tpu.memory_space<vmem>>, %arg4: memref<8x1xf32, #tpu.memory_space<vmem>>, %arg5: memref<1x8x1728xf32, #tpu.memory_space<vmem>>, %arg6: memref<1x8x1728xf32, #tpu.memory_space<vmem>>, %arg7: memref<8x8xf32, #tpu.memory_space<vmem>>, %arg8: memref<1x8x1728xf32, #tpu.memory_space<vmem>>, %arg9: memref<1x8x1xf32, #tpu.memory_space<vmem>>, %arg10: memref<1x8x1xf32, #tpu.memory_space<vmem>>) attributes {dimension_semantics = [#tpu.dimension_semantics<parallel>, #tpu.dimension_semantics<parallel>], iteration_bounds = array<i64: 2, 1>, scalar_prefetch = 0 : i64, scratch_operands = 0 : i64, tpu.core_type = #tpu.core_type<tc>, window_params = [{transform_indices = @transform_0, window_bounds = array<i64: 1, 8, 1728>}, {pipeline_mode = #tpu.pipeline_mode<synchronous>, transform_indices = @transform_1, window_bounds = array<i64: 8, 1>}, {pipeline_mode = #tpu.pipeline_mode<synchronous>, transform_indices = @transform_2, window_bounds = array<i64: 8, 1>}, {transform_indices = @transform_3, window_bounds = array<i64: 1, 8, 1728>}, {transform_indices = @transform_4, window_bounds = array<i64: 1, 8, 1728>}, {pipeline_mode = #tpu.pipeline_mode<synchronous>, transform_indices = @transform_5, window_bounds = array<i64: 8, 8>}, {transform_indices = @transform_6, window_bounds = array<i64: 1, 8, 1728>}, {transform_indices = @transform_7, window_bounds = array<i64: 1, 8, 1>}, {transform_indices = @transform_8, window_bounds = array<i64: 1, 8, 1>}]} {
    %c0 = arith.constant 0 : index
    %c0_0 = arith.constant 0 : index
    %c0_1 = arith.constant 0 : index
    %0 = vector.load %arg2[%c0, %c0_0, %c0_1] : memref<1x8x1728xf32, #tpu.memory_space<vmem>>, vector<1x8x1728xf32>
    %1 = vector.shape_cast %0 : vector<1x8x1728xf32> to vector<8x1728xf32>
    %c0_2 = arith.constant 0 : index
    %c0_3 = arith.constant 0 : index
    %2 = vector.load %arg3[%c0_2, %c0_3] : memref<8x1xf32, #tpu.memory_space<vmem>>, vector<8x1xf32>
    %3 = vector.broadcast %2 : vector<8x1xf32> to vector<8x1728xf32>
    %4 = arith.mulf %1, %3 : vector<8x1728xf32>
    %c0_4 = arith.constant 0 : index
    %c0_5 = arith.constant 0 : index
    %5 = vector.load %arg4[%c0_4, %c0_5] : memref<8x1xf32, #tpu.memory_space<vmem>>, vector<8x1xf32>
    %6 = vector.broadcast %5 : vector<8x1xf32> to vector<8x1728xf32>
    %7 = arith.addf %4, %6 : vector<8x1728xf32>
    %cst = arith.constant 0.000000e+00 : f32
    %8 = vector.broadcast %cst : f32 to vector<8x1728xf32>
    %9 = arith.cmpf oge, %7, %8 : vector<8x1728xf32>
    %cst_6 = arith.constant 0.00999999977 : f32
    %10 = vector.broadcast %cst_6 : f32 to vector<8x1728xf32>
    %11 = arith.mulf %10, %7 : vector<8x1728xf32>
    %12 = arith.select %9, %7, %11 : vector<8x1728xi1>, vector<8x1728xf32>
    %c0_7 = arith.constant 0 : index
    %c0_8 = arith.constant 0 : index
    %c0_9 = arith.constant 0 : index
    %13 = vector.load %arg5[%c0_7, %c0_8, %c0_9] : memref<1x8x1728xf32, #tpu.memory_space<vmem>>, vector<1x8x1728xf32>
    %14 = vector.shape_cast %13 : vector<1x8x1728xf32> to vector<8x1728xf32>
    %15 = arith.addf %12, %14 : vector<8x1728xf32>
    %c0_10 = arith.constant 0 : index
    %c0_11 = arith.constant 0 : index
    %c0_12 = arith.constant 0 : index
    %16 = vector.load %arg6[%c0_10, %c0_11, %c0_12] : memref<1x8x1728xf32, #tpu.memory_space<vmem>>, vector<1x8x1728xf32>
    %17 = vector.shape_cast %16 : vector<1x8x1728xf32> to vector<8x1728xf32>
    %18 = arith.addf %15, %17 : vector<8x1728xf32>
    %c0_13 = arith.constant 0 : index
    %c0_14 = arith.constant 0 : index
    %19 = vector.load %arg7[%c0_13, %c0_14] : memref<8x8xf32, #tpu.memory_space<vmem>>, vector<8x8xf32>
    %cst_15 = arith.constant dense<0.000000e+00> : vector<8x1728xf32>
    %20 = tpu.matmul %19, %18, %cst_15 {dimension_numbers = #tpu.dot_dimension_numbers<[1], [0], [0], [1], [0, 0, 1, 1], [], []>} : vector<8x8xf32>, vector<8x1728xf32>, vector<8x1728xf32> -> vector<8x1728xf32>
    %c0_16 = arith.constant 0 : index
    %c0_17 = arith.constant 0 : index
    %c0_18 = arith.constant 0 : index
    %21 = vector.load %arg8[%c0_16, %c0_17, %c0_18] : memref<1x8x1728xf32, #tpu.memory_space<vmem>>, vector<1x8x1728xf32>
    %22 = vector.shape_cast %21 : vector<1x8x1728xf32> to vector<8x1728xf32>
    %23 = vector.shape_cast %20 : vector<8x1728xf32> to vector<1x8x1728xf32>
    tpu.vector_store %arg8[%c0_16, %c0_17, %c0_18], %23 {strides = array<i32>} : memref<1x8x1728xf32, #tpu.memory_space<vmem>>, vector<1x8x1728xf32>,
    %cst_19 = arith.constant dense<0.000000e+00> : vector<8xf32>
    %24 = vector.multi_reduction <add>, %20, %cst_19 [1] : vector<8x1728xf32> to vector<8xf32>
    %25 = vector.shape_cast %24 : vector<8xf32> to vector<8x1xf32>
    %c0_20 = arith.constant 0 : index
    %c0_21 = arith.constant 0 : index
    %c0_22 = arith.constant 0 : index
    %26 = vector.load %arg9[%c0_20, %c0_21, %c0_22] : memref<1x8x1xf32, #tpu.memory_space<vmem>>, vector<1x8x1xf32>
    %27 = vector.shape_cast %26 : vector<1x8x1xf32> to vector<8x1xf32>
    %28 = vector.shape_cast %25 : vector<8x1xf32> to vector<1x8x1xf32>
    tpu.vector_store %arg9[%c0_20, %c0_21, %c0_22], %28 {strides = array<i32>} : memref<1x8x1xf32, #tpu.memory_space<vmem>>, vector<1x8x1xf32>,
    %29 = arith.mulf %20, %20 : vector<8x1728xf32>
    %cst_23 = arith.constant dense<0.000000e+00> : vector<8xf32>
    %30 = vector.multi_reduction <add>, %29, %cst_23 [1] : vector<8x1728xf32> to vector<8xf32>
    %31 = vector.shape_cast %30 : vector<8xf32> to vector<8x1xf32>
    %c0_24 = arith.constant 0 : index
    %c0_25 = arith.constant 0 : index
    %c0_26 = arith.constant 0 : index
    %32 = vector.load %arg10[%c0_24, %c0_25, %c0_26] : memref<1x8x1xf32, #tpu.memory_space<vmem>>, vector<1x8x1xf32>
    %33 = vector.shape_cast %32 : vector<1x8x1xf32> to vector<8x1xf32>
    %34 = vector.shape_cast %31 : vector<8x1xf32> to vector<1x8x1xf32>
    tpu.vector_store %arg10[%c0_24, %c0_25, %c0_26], %34 {strides = array<i32>} : memref<1x8x1xf32, #tpu.memory_space<vmem>>, vector<1x8x1xf32>,
    return
  }
  func.func @transform_0(%arg0: i32, %arg1: i32) -> (i32, i32, i32) {
    %c0_i32 = arith.constant 0 : i32
    %c0_i32_0 = arith.constant 0 : i32
    return %arg0, %c0_i32, %arg1 : i32, i32, i32
  }
  func.func @transform_1(%arg0: i32, %arg1: i32) -> (i32, i32) {
    %c0_i32 = arith.constant 0 : i32
    %c0_i32_0 = arith.constant 0 : i32
    %c0_i32_1 = arith.constant 0 : i32
    return %c0_i32, %c0_i32_0 : i32, i32
  }
  func.func @transform_2(%arg0: i32, %arg1: i32) -> (i32, i32) {
    %c0_i32 = arith.constant 0 : i32
    %c0_i32_0 = arith.constant 0 : i32
    %c0_i32_1 = arith.constant 0 : i32
    return %c0_i32, %c0_i32_0 : i32, i32
  }
  func.func @transform_3(%arg0: i32, %arg1: i32) -> (i32, i32, i32) {
    %c0_i32 = arith.constant 0 : i32
    %c0_i32_0 = arith.constant 0 : i32
    return %arg0, %c0_i32, %arg1 : i32, i32, i32
  }
  func.func @transform_4(%arg0: i32, %arg1: i32) -> (i32, i32, i32) {
    %c0_i32 = arith.constant 0 : i32
    %c0_i32_0 = arith.constant 0 : i32
    return %arg0, %c0_i32, %arg1 : i32, i32, i32
  }
  func.func @transform_5(%arg0: i32, %arg1: i32) -> (i32, i32) {
    %c0_i32 = arith.constant 0 : i32
    %c0_i32_0 = arith.constant 0 : i32
    %c0_i32_1 = arith.constant 0 : i32
    return %c0_i32, %c0_i32_0 : i32, i32
  }
  func.func @transform_6(%arg0: i32, %arg1: i32) -> (i32, i32, i32) {
    %c0_i32 = arith.constant 0 : i32
    %c0_i32_0 = arith.constant 0 : i32
    return %arg0, %c0_i32, %arg1 : i32, i32, i32
  }
  func.func @transform_7(%arg0: i32, %arg1: i32) -> (i32, i32, i32) {
    %c1_i32 = arith.constant 1 : i32
    %0 = arith.muli %arg0, %c1_i32 : i32
    %1 = arith.addi %0, %arg1 : i32
    %c0_i32 = arith.constant 0 : i32
    %c0_i32_0 = arith.constant 0 : i32
    %c0_i32_1 = arith.constant 0 : i32
    return %1, %c0_i32, %c0_i32_0 : i32, i32, i32
  }
  func.func @transform_8(%arg0: i32, %arg1: i32) -> (i32, i32, i32) {
    %c1_i32 = arith.constant 1 : i32
    %0 = arith.muli %arg0, %c1_i32 : i32
    %1 = arith.addi %0, %arg1 : i32
    %c0_i32 = arith.constant 0 : i32
    %c0_i32_0 = arith.constant 0 : i32
    %c0_i32_1 = arith.constant 0 : i32
    return %1, %c0_i32, %c0_i32_0 : i32, i32, i32
  }
}

module attributes {stable_mosaic.version = 11 : i64} {
  func.func @_apply_kernel(%arg0: i32, %arg1: i32, %arg2: memref<1x8x1728xf32, #tpu.memory_space<vmem>>, %arg3: memref<8x1xf32, #tpu.memory_space<vmem>>, %arg4: memref<8x1xf32, #tpu.memory_space<vmem>>, %arg5: memref<1x8x1728xf32, #tpu.memory_space<vmem>>) attributes {dimension_semantics = [#tpu.dimension_semantics<parallel>, #tpu.dimension_semantics<parallel>], iteration_bounds = array<i64: 2, 1>, scalar_prefetch = 0 : i64, scratch_operands = 0 : i64, tpu.core_type = #tpu.core_type<tc>, window_params = [{transform_indices = @transform_0, window_bounds = array<i64: 1, 8, 1728>}, {pipeline_mode = #tpu.pipeline_mode<synchronous>, transform_indices = @transform_1, window_bounds = array<i64: 8, 1>}, {pipeline_mode = #tpu.pipeline_mode<synchronous>, transform_indices = @transform_2, window_bounds = array<i64: 8, 1>}, {transform_indices = @transform_3, window_bounds = array<i64: 1, 8, 1728>}]} {
    %c0 = arith.constant 0 : index
    %c0_0 = arith.constant 0 : index
    %c0_1 = arith.constant 0 : index
    %0 = vector.load %arg2[%c0, %c0_0, %c0_1] : memref<1x8x1728xf32, #tpu.memory_space<vmem>>, vector<1x8x1728xf32>
    %1 = vector.shape_cast %0 : vector<1x8x1728xf32> to vector<8x1728xf32>
    %c0_2 = arith.constant 0 : index
    %c0_3 = arith.constant 0 : index
    %2 = vector.load %arg3[%c0_2, %c0_3] : memref<8x1xf32, #tpu.memory_space<vmem>>, vector<8x1xf32>
    %3 = vector.broadcast %2 : vector<8x1xf32> to vector<8x1728xf32>
    %4 = arith.mulf %1, %3 : vector<8x1728xf32>
    %c0_4 = arith.constant 0 : index
    %c0_5 = arith.constant 0 : index
    %5 = vector.load %arg4[%c0_4, %c0_5] : memref<8x1xf32, #tpu.memory_space<vmem>>, vector<8x1xf32>
    %6 = vector.broadcast %5 : vector<8x1xf32> to vector<8x1728xf32>
    %7 = arith.addf %4, %6 : vector<8x1728xf32>
    %cst = arith.constant 0.000000e+00 : f32
    %8 = vector.broadcast %cst : f32 to vector<8x1728xf32>
    %9 = arith.cmpf oge, %7, %8 : vector<8x1728xf32>
    %cst_6 = arith.constant 0.00999999977 : f32
    %10 = vector.broadcast %cst_6 : f32 to vector<8x1728xf32>
    %11 = arith.mulf %10, %7 : vector<8x1728xf32>
    %12 = arith.select %9, %7, %11 : vector<8x1728xi1>, vector<8x1728xf32>
    %c0_7 = arith.constant 0 : index
    %c0_8 = arith.constant 0 : index
    %c0_9 = arith.constant 0 : index
    %13 = vector.load %arg5[%c0_7, %c0_8, %c0_9] : memref<1x8x1728xf32, #tpu.memory_space<vmem>>, vector<1x8x1728xf32>
    %14 = vector.shape_cast %13 : vector<1x8x1728xf32> to vector<8x1728xf32>
    %15 = vector.shape_cast %12 : vector<8x1728xf32> to vector<1x8x1728xf32>
    tpu.vector_store %arg5[%c0_7, %c0_8, %c0_9], %15 {strides = array<i32>} : memref<1x8x1728xf32, #tpu.memory_space<vmem>>, vector<1x8x1728xf32>,
    return
  }
  func.func @transform_0(%arg0: i32, %arg1: i32) -> (i32, i32, i32) {
    %c0_i32 = arith.constant 0 : i32
    %c0_i32_0 = arith.constant 0 : i32
    return %arg0, %c0_i32, %arg1 : i32, i32, i32
  }
  func.func @transform_1(%arg0: i32, %arg1: i32) -> (i32, i32) {
    %c0_i32 = arith.constant 0 : i32
    %c0_i32_0 = arith.constant 0 : i32
    %c0_i32_1 = arith.constant 0 : i32
    return %c0_i32, %c0_i32_0 : i32, i32
  }
  func.func @transform_2(%arg0: i32, %arg1: i32) -> (i32, i32) {
    %c0_i32 = arith.constant 0 : i32
    %c0_i32_0 = arith.constant 0 : i32
    %c0_i32_1 = arith.constant 0 : i32
    return %c0_i32, %c0_i32_0 : i32, i32
  }
  func.func @transform_3(%arg0: i32, %arg1: i32) -> (i32, i32, i32) {
    %c0_i32 = arith.constant 0 : i32
    %c0_i32_0 = arith.constant 0 : i32
    return %arg0, %c0_i32, %arg1 : i32, i32, i32
  }
}

</mosaic_0001>

<bundles_post_ra>
// kernel: tile.9
= control target key start
LH: loop header
LB: loop body
LE: loop exit
PB: predicated region body
PF: predicated region fallthrough
CT: control target
= control target key end

     0   :  { %vm118_vm0 = vcmask 1041409   ;;  %vm122_vm1 = vcmask 1042434   ;;  %vm126_vm2 = vcmask 1043459   ;;  %vm130_vm3 = vcmask 1044484   ;;  %s187_s22 = smov 3  ;;  %s1689_s4 = smov 112   ;;  %s3098_s0 = inlined_call_operand.vmem [shape: f32[9,12,144], index: 0, kind: input, shape index: {}]   ;;  %s3099_s1 = inlined_call_operand.vmem [shape: f32[9,1728], index: 1, kind: output, shape index: {}]  }
   0x1   :  { %v1362_v0 = vld [vmem:[%s3098_s0 + $0x7] sm:$0x1]   ;;  %vm134_vm4 = vcmask 1045509   ;;  %vm138_vm5 = vcmask 1046534   ;;  %vm142_vm6 = vcmask 1047559   ;;  %vm20_vm7 = vcmask 130048  }
   0x2   :  { %v1363_v1 = vld [vmem:[%s3098_s0 + $0x26] sm:$0x2]   ;;  %v1371_v15 = vld [vmem:[%s3098_s0 + $0xf] sm:$0x1]   ;;  %v1394_v41 = vld [vmem:[%s3098_s0 + $0x106] sm:$0x1]  }
   0x3   :  { %v1364_v2 = vld [vmem:[%s3098_s0 + $0x45] sm:$0x4]   ;;  %v119_v3 = vsel %vm118_vm0, %v1363_v1, %v1362_v0  ;;  %v1372_v16 = vld [vmem:[%s3098_s0 + $0x2e] sm:$0x2]   ;;  %v1395_v42 = vld [vmem:[%s3098_s0 + $0x5] sm:$0x2]  }
   0x4   :  { %v1365_v4 = vld [vmem:[%s3098_s0 + $0x64] sm:$0x8]   ;;  %v123_v7 = vsel %vm122_vm1, %v1364_v2, %v119_v3  ;;  %v1373_v17 = vld [vmem:[%s3098_s0 + $0x4d] sm:$0x4]   ;;  %v154_v19 = vsel %vm118_vm0, %v1372_v16, %v1371_v15  ;;  %v241_v45 = vsel %vm118_vm0, %v1395_v42, %v1394_v41  ;;  %v1396_v46 = vld [vmem:[%s3098_s0 + $0x24] sm:$0x4]  }
   0x5   :  { %v1366_v5 = vld [vmem:[%s3098_s0 + $0x83] sm:$0x10]   ;;  %v127_v10 = vsel %vm126_vm2, %v1365_v4, %v123_v7  ;;  %v1374_v20 = vld [vmem:[%s3098_s0 + $0x6c] sm:$0x8]   ;;  %v158_v23 = vsel %vm122_vm1, %v1373_v17, %v154_v19  ;;  %v1397_v47 = vld [vmem:[%s3098_s0 + $0x43] sm:$0x8]   ;;  %v245_v51 = vsel %vm122_vm1, %v1396_v46, %v241_v45 }
   0x6   :  { %v1367_v6 = vld [vmem:[%s3098_s0 + $0xa2] sm:$0x20]   ;;  %v131_v13 = vsel %vm130_vm3, %v1366_v5, %v127_v10  ;;  %v1375_v21 = vld [vmem:[%s3098_s0 + $0x8b] sm:$0x10]   ;;  %v162_v28 = vsel %vm126_vm2, %v1374_v20, %v158_v23  ;;  %v1398_v48 = vld [vmem:[%s3098_s0 + $0x62] sm:$0x10]   ;;  %v249_v56 = vsel %vm126_vm2, %v1397_v47, %v245_v51 }
   0x7   :  { %v1368_v8 = vld [vmem:[%s3098_s0 + $0xc1] sm:$0x40]   ;;  %v135_v18 = vsel %vm134_vm4, %v1367_v6, %v131_v13  ;;  %v1376_v24 = vld [vmem:[%s3098_s0 + $0xaa] sm:$0x20]   ;;  %v166_v32 = vsel %vm130_vm3, %v1375_v21, %v162_v28  ;;  %v1399_v52 = vld [vmem:[%s3098_s0 + $0x81] sm:$0x20]   ;;  %v253_v60 = vsel %vm130_vm3, %v1398_v48, %v249_v56 }
   0x8   :  { %v1369_v9 = vld [vmem:[%s3098_s0 + $0xe0] sm:$0x80]   ;;  %v139_v22 = vsel %vm138_vm5, %v1368_v8, %v135_v18  ;;  %v1377_v25 = vld [vmem:[%s3098_s0 + $0xc9] sm:$0x40]   ;;  %v170_v37 = vsel %vm134_vm4, %v1376_v24, %v166_v32  ;;  %v1400_v53 = vld [vmem:[%s3098_s0 + $0xa0] sm:$0x40]   ;;  %v257_v2 = vsel %vm134_vm4, %v1399_v52, %v253_v60 }
   0x9   :  { %v1391_v11 = vld [vmem:[%s3098_s0 + $0xc7] sm:$0x1]   ;;  %v1378_v26 = vld [vmem:[%s3098_s0 + $0xe8] sm:$0x80]   ;;  %v143_v27 = vsel %vm142_vm6, %v1369_v9, %v139_v22  ;;  %v174_v43 = vsel %vm138_vm5, %v1377_v25, %v170_v37  ;;  %v1401_v54 = vld [vmem:[%s3098_s0 + $0xbf] sm:$0x80]   ;;  %v261_v7 = vsel %vm138_vm5, %v1400_v53, %v257_v2 }
   0xa   :  { %v1392_v12 = vld [vmem:[%s3098_s0 + $0xe6] sm:$0x2]   ;;  %144 = vrot.lane.b32.xlu0 %v143_v27, %s1689_s4  ;;  %v178_v49 = vsel %vm142_vm6, %v1378_v26, %v174_v43  ;;  %v1404_v57 = vld [vmem:[%s3098_s0 + $0x10e] sm:$0x1]   ;;  %vm314_vm8 = vcmask 261120   ;;  %s1690_s18 = smov 96  }
   0xb   :  { %v230_v14 = vsel %vm118_vm0, %v1392_v12, %v1391_v11  ;;  %v1381_v29 = vld [vmem:[%s3098_s0 + $0x107] ss:$8 sm:%s187_s22]   ;;  %v1405_v58 = vld [vmem:[%s3098_s0 + $0xd] sm:$0x2]   ;;  %v1414_v9 = vld [vmem:[%s3098_s0 + $0xe6] sm:$0x1]   ;;  %v265_v12 = vsel %vm142_vm6, %v1401_v54, %v261_v7 }
   0xc   :  { %231 = vrot.lane.b32.xlu1 %v230_v14, %s1689_s4  ;;  %v1382_v30 = vld [vmem:[%s3098_s0 + $0x5] sm:$0x4]   ;;  %v278_v61 = vsel %vm118_vm0, %v1405_v58, %v1404_v57  ;;  %v1406_v62 = vld [vmem:[%s3098_s0 + $0x2c] sm:$0x4]   ;;  %v1418_v11 = vld [vmem:[%s3098_s0 + $0x106] sm:$0x1]  }
   0xd   :  { %v1383_v31 = vld [vmem:[%s3098_s0 + $0x24] sm:$0x8]   ;;  %v192_v33 = vsel %vm122_vm1, %v1382_v30, %v1381_v29  ;;  %v1407_v63 = vld [vmem:[%s3098_s0 + $0x4b] sm:$0x8]   ;;  %v282_v3 = vsel %vm122_vm1, %v1406_v62, %v278_v61  ;;  %v1419_v14 = vld [vmem:[%s3098_s0 + $0x5] sm:$0x2]  }
   0xe   :  { %v1384_v34 = vld [vmem:[%s3098_s0 + $0x43] sm:$0x10]   ;;  %v196_v39 = vsel %vm126_vm2, %v1383_v31, %v192_v33  ;;  %179 = vrot.lane.b32.xlu0 %v178_v49, %s1689_s4  ;;  %v1408_v0 = vld [vmem:[%s3098_s0 + $0x6a] sm:$0x10]   ;;  %v286_v8 = vsel %vm126_vm2, %v1407_v63, %v282_v3  ;;  %v1420_v15 = vld [vmem:[%s3098_s0 + $0x24] sm:$0x4]   ;;  %v329_v18 = vsel %vm118_vm0, %v1419_v14, %v1418_v11 }
   0xf   :  { %v1385_v35 = vld [vmem:[%s3098_s0 + $0x62] sm:$0x20]   ;;  %v200_v44 = vsel %vm130_vm3, %v1384_v34, %v196_v39  ;;  %v1409_v4 = vld [vmem:[%s3098_s0 + $0x89] sm:$0x20]   ;;  %v290_v13 = vsel %vm130_vm3, %v1408_v0, %v286_v8  ;;  %v1421_v16 = vld [vmem:[%s3098_s0 + $0x43] sm:$0x8]   ;;  %v333_v23 = vsel %vm122_vm1, %v1420_v15, %v329_v18 }
  0x10   :  { %v1386_v36 = vld [vmem:[%s3098_s0 + $0x81] sm:$0x40]   ;;  %v204_v50 = vsel %vm134_vm4, %v1385_v35, %v200_v44  ;;  %v1410_v5 = vld [vmem:[%s3098_s0 + $0xa8] sm:$0x40]   ;;  %v294_v17 = vsel %vm134_vm4, %v1409_v4, %v290_v13  ;;  %v1422_v19 = vld [vmem:[%s3098_s0 + $0x62] sm:$0x10]   ;;  %v337_v28 = vsel %vm126_vm2, %v1421_v16, %v333_v23 }
  0x11   :  { %v1380_v38 = vld [vmem:[%s3098_s0 + $0x107] sm:$0x1]   ;;  %v208_v55 = vsel %vm138_vm5, %v1386_v36, %v204_v50  ;;  %v1411_v6 = vld [vmem:[%s3098_s0 + $0xc7] sm:$0x80]   ;;  %v1423_v20 = vld [vmem:[%s3098_s0 + $0x81] sm:$0x20]   ;;  %v298_v21 = vsel %vm138_vm5, %v1410_v5, %v294_v17  ;;  %v341_v32 = vsel %vm130_vm3, %v1422_v19, %v337_v28 }
  0x12   :  { %v1387_v40 = vld [vmem:[%s3098_s0 + $0xa0] sm:$0x80]   ;;  %v1415_v10 = vld [vmem:[%s3098_s0 + $0xee] sm:$0x1]   ;;  %266 = vrot.lane.b32.xlu0 %v265_v12, %s1690_s18  ;;  %v1424_v24 = vld [vmem:[%s3098_s0 + $0xa0] sm:$0x40]   ;;  %v302_v27 = vsel %vm142_vm6, %v1411_v6, %v298_v21  ;;  %v345_v37 = vsel %vm134_vm4, %v1423_v20, %v341_v32 }
  0x13   :  { %v212_v59 = vsel %vm142_vm6, %v1387_v40, %v208_v55  ;;  %v315_v22 = vsel %vm314_vm8, %v1415_v10, %v1414_v9  ;;  %v1425_v25 = vld [vmem:[%s3098_s0 + $0xbf] sm:$0x80]   ;;  %v1430_v26 = vld [vmem:[%s3098_s0 + $0x105] sm:$0x1]   ;;  %v1440_v41 = vld [vmem:[%s3098_s0 + $0x10d] sm:$0x1]   ;;  %v349_v42 = vsel %vm138_vm5, %v1424_v24, %v345_v37 }
  0x14   :  { %v214_v1 = vsel %vm20_vm7, %v212_v59, %v1380_v38  ;;  %v1431_v29 = vld [vmem:[%s3098_s0 + $0x4] sm:$0x2]   ;;  %v1428_v33 = vld [vmem:[%s3098_s0 + $0xe6] sm:$0x1]   ;;  %v1441_v44 = vld [vmem:[%s3098_s0 + $0xc] sm:$0x2]   ;;  %v353_v47 = vsel %vm142_vm6, %v1425_v25, %v349_v42 }
  0x15   :  { %215 = vrot.lane.b32.xlu1 %v214_v1, %s1689_s4  ;;  %v1432_v30 = vld [vmem:[%s3098_s0 + $0x23] sm:$0x4]   ;;  %v373_v34 = vsel %vm118_vm0, %v1431_v29, %v1430_v26  ;;  %v1442_v45 = vld [vmem:[%s3098_s0 + $0x2b] sm:$0x4]   ;;  %v410_v49 = vsel %vm118_vm0, %v1441_v44, %v1440_v41  ;;  %vm446_vm9 = vcmask 392192   ;;  %s1691_s22 = smov 80  }
  0x16   :  { %v1433_v31 = vld [vmem:[%s3098_s0 + $0x42] sm:$0x8]   ;;  %316 = vrot.lane.b32.xlu0 %v315_v22, %s1690_s18  ;;  %v377_v38 = vsel %vm122_vm1, %v1432_v30, %v373_v34  ;;  %v1443_v46 = vld [vmem:[%s3098_s0 + $0x4a] sm:$0x8]   ;;  %v414_v53 = vsel %vm122_vm1, %v1442_v45, %v410_v49  ;;  %v1487_v11 = vld [vmem:[%s3098_s0 + $0x4] sm:$0x1]  }
  0x17   :  { %v1434_v35 = vld [vmem:[%s3098_s0 + $0x61] sm:$0x10]   ;;  %v381_v43 = vsel %vm126_vm2, %v1433_v31, %v377_v38  ;;  %v1444_v50 = vld [vmem:[%s3098_s0 + $0x69] sm:$0x10]   ;;  %v418_v58 = vsel %vm126_vm2, %v1443_v46, %v414_v53  ;;  %v1488_v12 = vld [vmem:[%s3098_s0 + $0x23] sm:$0x2]  }
  0x18   :  { %v1435_v36 = vld [vmem:[%s3098_s0 + $0x80] sm:$0x20]   ;;  %v385_v48 = vsel %vm130_vm3, %v1434_v35, %v381_v43  ;;  %v1445_v51 = vld [vmem:[%s3098_s0 + $0x88] sm:$0x20]   ;;  %v422_v63 = vsel %vm130_vm3, %v1444_v50, %v418_v58  ;;  %v587_v16 = vsel %vm118_vm0, %v1488_v12, %v1487_v11  ;;  %v1489_v17 = vld [vmem:[%s3098_s0 + $0x42] sm:$0x4]  }
  0x19   :  { %303 = vrot.lane.b32.xlu1 %v302_v27, %s1690_s18  ;;  %v1436_v39 = vld [vmem:[%s3098_s0 + $0x9f] sm:$0x40]   ;;  %v389_v52 = vsel %vm134_vm4, %v1435_v36, %v385_v48  ;;  %v1446_v54 = vld [vmem:[%s3098_s0 + $0xa7] sm:$0x40]   ;;  %v426_v4 = vsel %vm134_vm4, %v1445_v51, %v422_v63  ;;  %v1490_v18 = vld [vmem:[%s3098_s0 + $0x61] sm:$0x8]   ;;  %v591_v21 = vsel %vm122_vm1, %v1489_v17, %v587_v16 }
  0x1a   :  { %v1437_v40 = vld [vmem:[%s3098_s0 + $0xbe] sm:$0x80]   ;;  %v1447_v55 = vld [vmem:[%s3098_s0 + $0xc6] sm:$0x80]   ;;  %363 = vrot.lane.b32.xlu0 %v1428_v33, %s1690_s18  ;;  %v393_v57 = vsel %vm138_vm5, %v1436_v39, %v389_v52  ;;  %v430_v8 = vsel %vm138_vm5, %v1446_v54, %v426_v4  ;;  %v1491_v19 = vld [vmem:[%s3098_s0 + $0x80] sm:$0x10]   ;;  %v595_v25 = vsel %vm126_vm2, %v1490_v18, %v591_v21 }
  0x1b   :  { %v1450_v56 = vld [vmem:[%s3098_s0 + $0xe5] sm:$0x1]   ;;  %v397_v62 = vsel %vm142_vm6, %v1437_v40, %v393_v57  ;;  %v1451_v0 = vld [vmem:[%s3098_s0 + $0xed] sm:$0x1]   ;;  %v434_v13 = vsel %vm142_vm6, %v1447_v55, %v430_v8  ;;  %v1492_v22 = vld [vmem:[%s3098_s0 + $0x9f] sm:$0x20]   ;;  %v599_v30 = vsel %vm130_vm3, %v1491_v19, %v595_v25 }
  0x1c   :  { %v1454_v59 = vld [vmem:[%s3098_s0 + $0x5] sm:$0x1]   ;;  %v447_v14 = vsel %vm446_vm9, %v1451_v0, %v1450_v56  ;;  %v1493_v23 = vld [vmem:[%s3098_s0 + $0xbe] sm:$0x40]   ;;  %v1538_v27 = vld [vmem:[%s3098_s0 + $0x13] sm:$0x1]   ;;  %v603_v36 = vsel %vm134_vm4, %v1492_v22, %v599_v30 }
  0x1d   :  { %354 = vrot.lane.b32.xlu1 %v353_v47, %s1690_s18  ;;  %v1455_v60 = vld [vmem:[%s3098_s0 + $0x24] sm:$0x2]   ;;  %v1494_v26 = vld [vmem:[%s3098_s0 + $0xdd] sm:$0x80]   ;;  %v1539_v28 = vld [vmem:[%s3098_s0 + $0x32] sm:$0x2]   ;;  %v607_v40 = vsel %vm138_vm5, %v1493_v23, %v603_v36 }
  0x1e   :  { %v1456_v61 = vld [vmem:[%s3098_s0 + $0x43] sm:$0x4]   ;;  %v461_v1 = vsel %vm118_vm0, %v1455_v60, %v1454_v59  ;;  %435 = vrot.lane.b32.xlu0 %v434_v13, %s1691_s22  ;;  %v785_v31 = vsel %vm118_vm0, %v1539_v28, %v1538_v27  ;;  %v1540_v32 = vld [vmem:[%s3098_s0 + $0x51] sm:$0x4]   ;;  %s816_s29 = smov 3  ;;  %v611_v44 = vsel %vm142_vm6, %v1494_v26, %v607_v40  ;;  %s1020_s17 = smov 3 }
  0x1f   :  { %v1457_v2 = vld [vmem:[%s3098_s0 + $0x62] sm:$0x8]   ;;  %v465_v5 = vsel %vm122_vm1, %v1456_v61, %v461_v1  ;;  %v1541_v33 = vld [vmem:[%s3098_s0 + $0x70] sm:$0x8]   ;;  %v789_v37 = vsel %vm122_vm1, %v1540_v32, %v785_v31  ;;  %v1548_v42 = vld [vmem:[%s3098_s0 + $0x1] sm:$0x4]  }
  0x20   :  { %v1458_v3 = vld [vmem:[%s3098_s0 + $0x81] sm:$0x10]   ;;  %v469_v9 = vsel %vm126_vm2, %v1457_v2, %v465_v5  ;;  %v1542_v34 = vld [vmem:[%s3098_s0 + $0x8f] sm:$0x10]   ;;  %v793_v41 = vsel %vm126_vm2, %v1541_v33, %v789_v37  ;;  %v1549_v43 = vld [vmem:[%s3098_s0 + $0x20] sm:$0x8]  }
  0x21   :  { %v1459_v6 = vld [vmem:[%s3098_s0 + $0xa0] sm:$0x20]   ;;  %398 = vrot.lane.b32.xlu1 %v397_v62, %s1691_s22  ;;  %v473_v15 = vsel %vm130_vm3, %v1458_v3, %v469_v9  ;;  %v1543_v38 = vld [vmem:[%s3098_s0 + $0xae] sm:$0x20]   ;;  %v1496_v45 = vld [vmem:[%s3098_s0 + $0x104] sm:$0x1]   ;;  %v797_v46 = vsel %vm130_vm3, %v1542_v34, %v793_v41 }
  0x22   :  { %v1460_v7 = vld [vmem:[%s3098_s0 + $0xbf] sm:$0x40]   ;;  %v477_v20 = vsel %vm134_vm4, %v1459_v6, %v473_v15  ;;  %v1544_v39 = vld [vmem:[%s3098_s0 + $0xcd] sm:$0x40]   ;;  %v1550_v48 = vld [vmem:[%s3098_s0 + $0x3f] sm:$0x10]   ;;  %v801_v49 = vsel %vm134_vm4, %v1543_v38, %v797_v46 }
  0x23   :  { %v1461_v10 = vld [vmem:[%s3098_s0 + $0xde] sm:$0x80]   ;;  %v481_v24 = vsel %vm138_vm5, %v1460_v7, %v477_v20  ;;  %v1547_v47 = vld [vmem:[%s3098_s0 + $0x103] ss:$16 sm:%s816_s29]   ;;  %v805_v54 = vsel %vm138_vm5, %v1544_v39, %v801_v49  ;;  %v1022_v57 = vld [vmem:[%s3098_s0] sm:$0x4]  }
  0x24   :  { %v485_v29 = vsel %vm142_vm6, %v1461_v10, %v481_v24  ;;  %v1463_v35 = vld [vmem:[%s3098_s0 + $0x105] sm:$0x1]   ;;  %v1545_v50 = vld [vmem:[%s3098_s0 + $0xec] sm:$0x80]   ;;  %v821_v51 = vsel %vm122_vm1, %v1548_v42, %v1547_v47  ;;  %v1551_v52 = vld [vmem:[%s3098_s0 + $0x5e] sm:$0x20]  }
  0x25   :  { %448 = vrot.lane.b32.xlu1 %v447_v14, %s1691_s22  ;;  %486 = vrot.lane.b32.xlu0 %v485_v29, %s1691_s22  ;;  %v1552_v53 = vld [vmem:[%s3098_s0 + $0x7d] sm:$0x40]   ;;  %v825_v55 = vsel %vm126_vm2, %v1549_v43, %v821_v51  ;;  %s1692_s21 = smov 64   ;;  %v1601_v62 = vld [vmem:[%s3098_s0 + $0x1f] sm:$0x8]   ;;  %s1055_s2 = smov 6  ;;  %v809_v63 = vsel %vm142_vm6, %v1545_v50, %v805_v54 }
  0x26   :  { %v1553_v56 = vld [vmem:[%s3098_s0 + $0x9c] sm:$0x80]   ;;  %v829_v58 = vsel %vm130_vm3, %v1550_v48, %v825_v55  ;;  %v1600_v61 = vld [vmem:[%s3098_s0 + $0x102] ss:$16 sm:%s1020_s17]   ;;  %vm1057_vm10 = vcmask 1042433   ;;  %s1693_s15 = smov 48  }
  0x27   :  { %v1556_v59 = vld [vmem:[%s3098_s0 + $0xc3] sm:$0x1]   ;;  %v833_v0 = vsel %vm134_vm4, %v1551_v52, %v829_v58  ;;  %v1024_v1 = vsel %vm122_vm1, %v1022_v57, %v1600_v61  ;;  %v1602_v2 = vld [vmem:[%s3098_s0 + $0x3e] sm:$0x10]   ;;  %v1610_v8 = vld [vmem:[%s3098_s0 + $0x2f] sm:$0x8]  }
  0x28   :  { %v1557_v60 = vld [vmem:[%s3098_s0 + $0xe2] sm:$0x2]   ;;  %v1603_v3 = vld [vmem:[%s3098_s0 + $0x5d] sm:$0x20]   ;;  %v837_v4 = vsel %vm138_vm5, %v1552_v53, %v833_v0  ;;  %v1028_v5 = vsel %vm126_vm2, %v1601_v62, %v1024_v1  ;;  %v1611_v12 = vld [vmem:[%s3098_s0 + $0x4e] sm:$0x10]  }
  0x29   :  { %493 = vrot.lane.b32.xlu1 %v1463_v35, %s1691_s22  ;;  %612 = vrot.lane.b32.xlu0 %v611_v44, %s1692_s21  ;;  %v1604_v6 = vld [vmem:[%s3098_s0 + $0x7c] sm:$0x40]   ;;  %v841_v9 = vsel %vm142_vm6, %v1553_v56, %v837_v4  ;;  %v1032_v10 = vsel %vm130_vm3, %v1602_v2, %v1028_v5  ;;  %v1612_v16 = vld [vmem:[%s3098_s0 + $0x6d] sm:$0x20]   ;;  %v854_v18 = vsel %vm118_vm0, %v1557_v60, %v1556_v59  ;;  %vm530_vm11 = vcmask 523264   ;;  %s2216_s17 = smov 3 }
  0x2a   :  { %v1608_v7 = vld [vmem:[%s3098_s0 + $0xc2] sm:$0x1]   ;;  %v1036_v13 = vsel %vm134_vm4, %v1603_v3, %v1032_v10  ;;  %v1613_v17 = vld [vmem:[%s3098_s0 + $0x8c] sm:$0x40]   ;;  %v1465_v22 = vld [vmem:[%s3098_s0 + $0x4] sm:$0x1]  }
  0x2b   :  { %v1609_v11 = vld [vmem:[%s3098_s0 + $0x1b2] ss:$-208 sm:%s1055_s2]   ;;  %v1040_v19 = vsel %vm138_vm5, %v1604_v6, %v1036_v13  ;;  %v1466_v23 = vld [vmem:[%s3098_s0 + $0x23] sm:$0x2]   ;;  %v1498_v41 = vld [vmem:[%s3098_s0 + $0x3] sm:$0x1]  }
  0x2c   :  { %v1605_v14 = vld [vmem:[%s3098_s0 + $0x9b] sm:$0x80]   ;;  %v1058_v15 = vsel %vm1057_vm10, %v1609_v11, %v1608_v7  ;;  %v1614_v21 = vld [vmem:[%s3098_s0 + $0xab] sm:$0x80]   ;;  %v503_v25 = vsel %vm118_vm0, %v1466_v23, %v1465_v22  ;;  %v1467_v26 = vld [vmem:[%s3098_s0 + $0x42] sm:$0x4]  }
  0x2d   :  { %619 = vrot.lane.b32.xlu1 %v1496_v45, %s1692_s21  ;;  %810 = vrot.lane.b32.xlu0 %v809_v63, %s1693_s15  ;;  %v1062_v20 = vsel %vm126_vm2, %v1610_v8, %v1058_v15  ;;  %v1468_v27 = vld [vmem:[%s3098_s0 + $0x61] sm:$0x8]   ;;  %v1044_v29 = vsel %vm142_vm6, %v1605_v14, %v1040_v19  ;;  %v1617_v31 = vld [vmem:[%s3098_s0 + $0xd2] sm:$0x1]   ;;  %v507_v33 = vsel %vm122_vm1, %v1467_v26, %v503_v25  ;;  %s1694_s27 = smov 32   ;;  %s768_s5 = smov 3 }
  0x2e   :  { %v1066_v24 = vsel %vm130_vm3, %v1611_v12, %v1062_v20  ;;  %v1469_v28 = vld [vmem:[%s3098_s0 + $0x80] sm:$0x10]   ;;  %v1618_v32 = vld [vmem:[%s3098_s0 + $0xf1] sm:$0x2]   ;;  %v511_v36 = vsel %vm126_vm2, %v1468_v27, %v507_v33  ;;  %v1499_v42 = vld [vmem:[%s3098_s0 + $0x22] sm:$0x2]  }
  0x2f   :  { %v1070_v30 = vsel %vm134_vm4, %v1612_v16, %v1066_v24  ;;  %v1470_v34 = vld [vmem:[%s3098_s0 + $0x9f] sm:$0x20]   ;;  %v515_v40 = vsel %vm130_vm3, %v1469_v28, %v511_v36  ;;  %v1500_v43 = vld [vmem:[%s3098_s0 + $0x41] sm:$0x4]   ;;  %v1484_v46 = vld [vmem:[%s3098_s0 + $0x10c] sm:$0x1]   ;;  %v629_v47 = vsel %vm118_vm0, %v1499_v42, %v1498_v41  ;;  %v1091_v50 = vsel %vm118_vm0, %v1618_v32, %v1617_v31 }
  0x30   :  { %v1074_v35 = vsel %vm138_vm5, %v1613_v17, %v1070_v30  ;;  %v1471_v37 = vld [vmem:[%s3098_s0 + $0xbe] sm:$0x40]   ;;  %v519_v44 = vsel %vm134_vm4, %v1470_v34, %v515_v40  ;;  %v1501_v48 = vld [vmem:[%s3098_s0 + $0x60] sm:$0x8]   ;;  %v633_v52 = vsel %vm122_vm1, %v1500_v43, %v629_v47  ;;  %v1516_v55 = vld [vmem:[%s3098_s0 + $0x13] sm:$0x1]  }
  0x31   :  { %842 = vrot.lane.b32.xlu1 %v841_v9, %s1693_s15  ;;  %855 = vrot.lane.b32.xlu0 %v854_v18, %s1693_s15  ;;  %v1472_v38 = vld [vmem:[%s3098_s0 + $0xdd] sm:$0x80]   ;;  %v1078_v39 = vsel %vm142_vm6, %v1614_v21, %v1074_v35  ;;  %v1502_v49 = vld [vmem:[%s3098_s0 + $0x7f] sm:$0x10]   ;;  %v523_v51 = vsel %vm138_vm5, %v1471_v37, %v519_v44  ;;  %v637_v56 = vsel %vm126_vm2, %v1501_v48, %v633_v52  ;;  %vm400_vm12 = vcmask 654336   ;;  %s931_s8 = smov 3 }
  0x32   :  { %v1483_v45 = vld [vmem:[%s3098_s0 + $0x104] sm:$0x1]   ;;  %v1503_v53 = vld [vmem:[%s3098_s0 + $0x9e] sm:$0x20]   ;;  %v1517_v57 = vld [vmem:[%s3098_s0 + $0x32] sm:$0x2]   ;;  %v527_v60 = vsel %vm142_vm6, %v1472_v38, %v523_v51  ;;  %v641_v61 = vsel %vm130_vm3, %v1502_v49, %v637_v56 }
  0x33   :  { %v1504_v54 = vld [vmem:[%s3098_s0 + $0xbd] sm:$0x40]   ;;  %v1518_v58 = vld [vmem:[%s3098_s0 + $0x51] sm:$0x4]   ;;  %v699_v63 = vsel %vm118_vm0, %v1517_v57, %v1516_v55  ;;  %v645_v2 = vsel %vm134_vm4, %v1503_v53, %v641_v61  ;;  %v573_v6 = vsel %vm530_vm11, %v1484_v46, %v1483_v45  ;;  %v1559_v9 = vld [vmem:[%s3098_s0 + $0x12] sm:$0x1]  }
  0x34   :  { %v1519_v59 = vld [vmem:[%s3098_s0 + $0x70] sm:$0x8]   ;;  %v1505_v62 = vld [vmem:[%s3098_s0 + $0xdc] sm:$0x80]   ;;  %v703_v3 = vsel %vm122_vm1, %v1518_v58, %v699_v63  ;;  %v649_v7 = vsel %vm138_vm5, %v1504_v54, %v645_v2  ;;  %v1560_v10 = vld [vmem:[%s3098_s0 + $0x31] sm:$0x2]  }
  0x35   :  { %1045 = vrot.lane.b32.xlu1 %v1044_v29, %s1694_s27  ;;  %1079 = vrot.lane.b32.xlu0 %v1078_v39, %s1694_s27  ;;  %v1520_v0 = vld [vmem:[%s3098_s0 + $0x8f] sm:$0x10]   ;;  %v707_v8 = vsel %vm126_vm2, %v1519_v59, %v703_v3  ;;  %v865_v13 = vsel %vm118_vm0, %v1560_v10, %v1559_v9  ;;  %v1561_v14 = vld [vmem:[%s3098_s0 + $0x50] sm:$0x4]   ;;  %v653_v17 = vsel %vm142_vm6, %v1505_v62, %v649_v7  ;;  %vm268_vm13 = vcmask 785408   ;;  %s1168_s30 = smov 6 }
  0x36   :  { %v1521_v1 = vld [vmem:[%s3098_s0 + $0xae] sm:$0x20]   ;;  %v711_v11 = vsel %vm130_vm3, %v1520_v0, %v707_v8  ;;  %v1562_v15 = vld [vmem:[%s3098_s0 + $0x6f] sm:$0x8]   ;;  %v1535_v19 = vld [vmem:[%s3098_s0 + $0x10b] ss:$16 sm:%s768_s5]   ;;  %v869_v20 = vsel %vm122_vm1, %v1561_v14, %v865_v13 }
  0x37   :  { %v1522_v4 = vld [vmem:[%s3098_s0 + $0xcd] sm:$0x40]   ;;  %v1563_v16 = vld [vmem:[%s3098_s0 + $0x8e] sm:$0x10]   ;;  %v715_v18 = vsel %vm134_vm4, %v1521_v1, %v711_v11  ;;  %v873_v24 = vsel %vm126_vm2, %v1562_v15, %v869_v20  ;;  %v933_v27 = vld [vmem:[%s3098_s0] sm:$0x4]  }
  0x38   :  { %v1523_v5 = vld [vmem:[%s3098_s0 + $0xec] sm:$0x80]   ;;  %v1564_v21 = vld [vmem:[%s3098_s0 + $0xad] sm:$0x20]   ;;  %v719_v23 = vsel %vm138_vm5, %v1522_v4, %v715_v18  ;;  %s1098_s5 = smov 3  ;;  %v877_v29 = vsel %vm130_vm3, %v1563_v16, %v873_v24  ;;  %vm146_vm14 = vcmask 916480  }
  0x39   :  { %1092 = vrot.lane.b32.xlu1 %v1091_v50, %s1694_s27  ;;  %528 = vrot.lane.b32.xlu0 %v527_v60, %s1692_s21  ;;  %v1534_v12 = vld [vmem:[%s3098_s0 + $0x103] ss:$16 sm:%s2216_s17]   ;;  %v723_v28 = vsel %vm142_vm6, %v1523_v5, %v719_v23  ;;  %v881_v34 = vsel %vm134_vm4, %v1564_v21, %v877_v29  ;;  %s1695_s3 = smov 16   ;;  %s1132_s10 = smov 3  ;;  %vm8_vm15 = vcmask 1043458  }
  0x3a   :  { %v1565_v22 = vld [vmem:[%s3098_s0 + $0xcc] sm:$0x40]   ;;  %v1578_v31 = vld [vmem:[%s3098_s0 + $0x1f] sm:$0x8]   ;;  %v771_v39 = vsel %vm400_vm12, %v1535_v19, %v1534_v12  ;;  %v1596_v43 = vld [vmem:[%s3098_s0 + $0xca] sm:$0x1]  }
  0x3b   :  { %v1566_v25 = vld [vmem:[%s3098_s0 + $0xeb] sm:$0x80]   ;;  %v1579_v32 = vld [vmem:[%s3098_s0 + $0x3e] sm:$0x10]   ;;  %v885_v40 = vsel %vm138_vm5, %v1565_v22, %v881_v34  ;;  %v1597_v44 = vld [vmem:[%s3098_s0 + $0xe9] sm:$0x2]  }
  0x3c   :  { %v1577_v26 = vld [vmem:[%s3098_s0 + $0x102] ss:$16 sm:%s931_s8]   ;;  %v1620_v46 = vld [vmem:[%s3098_s0 + $0x101] ss:$16 sm:%s1098_s5]   ;;  %v889_v48 = vsel %vm142_vm6, %v1566_v25, %v885_v40  ;;  %v1008_v55 = vsel %vm118_vm0, %v1597_v44, %v1596_v43  ;;  %s2438_s5 = smov 3  ;;  %s1256_s14 = smov 3 }
  0x3d   :  { %574 = vrot.lane.b32.xlu1 %v573_v6, %s1692_s21  ;;  %v935_v30 = vsel %vm122_vm1, %v933_v27, %v1577_v26  ;;  %v1580_v33 = vld [vmem:[%s3098_s0 + $0x5d] sm:$0x20]   ;;  %654 = vrot.lane.b32.xlu0 %v653_v17, %s1693_s15  ;;  %v1621_v47 = vld [vmem:[%s3098_s0 - $0x1] sm:$0x4]   ;;  %s1290_s8 = smov 3  ;;  %s1324_s11 = smov 3 }
  0x3e   :  { %v939_v35 = vsel %vm126_vm2, %v1578_v31, %v935_v30  ;;  %v1581_v36 = vld [vmem:[%s3098_s0 + $0x7c] sm:$0x40]   ;;  %v1103_v50 = vsel %vm122_vm1, %v1621_v47, %v1620_v46  ;;  %v1622_v51 = vld [vmem:[%s3098_s0 + $0x1e] sm:$0x8]   ;;  %v1640_v63 = vld [vmem:[%s3098_s0 + $0x2e] sm:$0x8]  }
  0x3f   :  { %v1582_v37 = vld [vmem:[%s3098_s0 + $0x9b] sm:$0x80]   ;;  %v943_v41 = vsel %vm130_vm3, %v1579_v32, %v939_v35  ;;  %v1623_v52 = vld [vmem:[%s3098_s0 + $0x3d] sm:$0x10]   ;;  %v1107_v56 = vsel %vm126_vm2, %v1622_v51, %v1103_v50  ;;  %v1641_v0 = vld [vmem:[%s3098_s0 + $0x4d] sm:$0x10]  }
  0x40   :  { %v1594_v38 = vld [vmem:[%s3098_s0 + $0xc2] sm:$0x1]   ;;  %v947_v45 = vsel %vm134_vm4, %v1580_v33, %v943_v41  ;;  %v1624_v53 = vld [vmem:[%s3098_s0 + $0x5c] sm:$0x20]   ;;  %v1111_v61 = vsel %vm130_vm3, %v1623_v52, %v1107_v56  ;;  %v1642_v3 = vld [vmem:[%s3098_s0 + $0x6c] sm:$0x20]  }
  0x41   :  { %v1595_v42 = vld [vmem:[%s3098_s0 + $0xe1] sm:$0x2]   ;;  %724 = vrot.lane.b32.xlu1 %v723_v28, %s1693_s15  ;;  %v951_v49 = vsel %vm138_vm5, %v1581_v36, %v947_v45  ;;  %772 = vrot.lane.b32.xlu0 %v771_v39, %s1693_s15  ;;  %v1625_v57 = vld [vmem:[%s3098_s0 + $0x7b] sm:$0x40]   ;;  %v1115_v1 = vsel %vm134_vm4, %v1624_v53, %v1111_v61  ;;  %s3_s12 = smov 3  ;;  %s11_s16 = smov 48 }
  0x42   :  { %v1002_v54 = vsel %vm118_vm0, %v1595_v42, %v1594_v38  ;;  %v1626_v58 = vld [vmem:[%s3098_s0 + $0x9a] sm:$0x80]   ;;  %v955_v60 = vsel %vm142_vm6, %v1582_v37, %v951_v49  ;;  %v1643_v4 = vld [vmem:[%s3098_s0 + $0x8b] sm:$0x40]   ;;  %v1119_v7 = vsel %vm138_vm5, %v1625_v57, %v1115_v1  ;;  %v1658_v12 = vld [vmem:[%s3098_s0 + $0xd9] sm:$0x1]  }
  0x43   :  { %v1638_v59 = vld [vmem:[%s3098_s0 + $0xc1] sm:$0x1]   ;;  %v1644_v5 = vld [vmem:[%s3098_s0 + $0xaa] sm:$0x80]   ;;  %v1010_v6 = vsel %vm268_vm13, %v1008_v55, %v1002_v54  ;;  %v1659_v13 = vld [vmem:[%s3098_s0 + $0xf8] sm:$0x2]   ;;  %v1123_v15 = vsel %vm142_vm6, %v1626_v58, %v1119_v7 }
  0x44   :  { %v1639_v62 = vld [vmem:[%s3098_s0 + $0x1b1] ss:$-208 sm:%s1168_s30]   ;;  %v1474_v14 = vld [vmem:[%s3098_s0 + $0xc] sm:$0x1]   ;;  %v1244_v22 = vsel %vm118_vm0, %v1659_v13, %v1658_v12  ;;  %v1507_v30 = vld [vmem:[%s3098_s0 + $0xb] sm:$0x1]  }
  0x45   :  { %890 = vrot.lane.b32.xlu1 %v889_v48, %s1694_s27  ;;  %v1171_v2 = vsel %vm1057_vm10, %v1639_v62, %v1638_v59  ;;  %v1656_v9 = vld [vmem:[%s3098_s0 + $0xd1] sm:$0x1]   ;;  %956 = vrot.lane.b32.xlu0 %v955_v60, %s1694_s27  ;;  %v1475_v17 = vld [vmem:[%s3098_s0 + $0x2b] sm:$0x2]   ;;  %s16_s25 = smov 192  ;;  %s30_s26 = smov 3 }
  0x46   :  { %v1175_v8 = vsel %vm126_vm2, %v1640_v63, %v1171_v2  ;;  %v1657_v10 = vld [vmem:[%s3098_s0 + $0xf0] sm:$0x2]   ;;  %v1476_v18 = vld [vmem:[%s3098_s0 + $0x4a] sm:$0x4]   ;;  %v538_v23 = vsel %vm118_vm0, %v1475_v17, %v1474_v14  ;;  %v1508_v31 = vld [vmem:[%s3098_s0 + $0x2a] sm:$0x2]  }
  0x47   :  { %v1179_v11 = vsel %vm130_vm3, %v1641_v0, %v1175_v8  ;;  %v1477_v19 = vld [vmem:[%s3098_s0 + $0x69] sm:$0x8]   ;;  %v1238_v21 = vsel %vm118_vm0, %v1657_v10, %v1656_v9  ;;  %v542_v28 = vsel %vm122_vm1, %v1476_v18, %v538_v23  ;;  %v664_v33 = vsel %vm118_vm0, %v1508_v31, %v1507_v30  ;;  %v1509_v34 = vld [vmem:[%s3098_s0 + $0x49] sm:$0x4]   ;;  %v1525_v45 = vld [vmem:[%s3098_s0 + $0x1b] sm:$0x1]  }
  0x48   :  { %v1183_v16 = vsel %vm134_vm4, %v1642_v3, %v1179_v11  ;;  %v1478_v24 = vld [vmem:[%s3098_s0 + $0x88] sm:$0x10]   ;;  %v546_v32 = vsel %vm126_vm2, %v1477_v19, %v542_v28  ;;  %v1510_v35 = vld [vmem:[%s3098_s0 + $0x68] sm:$0x8]   ;;  %v1246_v37 = vsel %vm146_vm14, %v1244_v22, %v1238_v21  ;;  %v668_v39 = vsel %vm122_vm1, %v1509_v34, %v664_v33  ;;  %v1526_v46 = vld [vmem:[%s3098_s0 + $0x3a] sm:$0x2]  }
  0x49   :  { %1011 = vrot.lane.b32.xlu1 %v1010_v6, %s1694_s27  ;;  %v1187_v20 = vsel %vm138_vm5, %v1643_v4, %v1183_v16  ;;  %v1479_v25 = vld [vmem:[%s3098_s0 + $0xa7] sm:$0x20]   ;;  %1124 = vrot.lane.b32.xlu0 %v1123_v15, %s1695_s3  ;;  %v1511_v36 = vld [vmem:[%s3098_s0 + $0x87] sm:$0x10]   ;;  %v550_v38 = vsel %vm130_vm3, %v1478_v24, %v546_v32  ;;  %v672_v44 = vsel %vm126_vm2, %v1510_v35, %v668_v39  ;;  %s33_s28 = smov 12  ;;  %s38_s30 = smov 48 }
  0x4a   :  { %v1480_v26 = vld [vmem:[%s3098_s0 + $0xc6] sm:$0x40]   ;;  %v1191_v27 = vsel %vm142_vm6, %v1644_v5, %v1187_v20  ;;  %v1512_v40 = vld [vmem:[%s3098_s0 + $0xa6] sm:$0x20]   ;;  %v554_v43 = vsel %vm134_vm4, %v1479_v25, %v550_v38  ;;  %v1527_v47 = vld [vmem:[%s3098_s0 + $0x59] sm:$0x4]   ;;  %v676_v49 = vsel %vm130_vm3, %v1511_v36, %v672_v44  ;;  %v734_v50 = vsel %vm118_vm0, %v1526_v46, %v1525_v45 }
  0x4b   :  { %v1481_v29 = vld [vmem:[%s3098_s0 + $0xe5] sm:$0x80]   ;;  %v1513_v41 = vld [vmem:[%s3098_s0 + $0xc5] sm:$0x40]   ;;  %v558_v48 = vsel %vm138_vm5, %v1480_v26, %v554_v43  ;;  %v1528_v51 = vld [vmem:[%s3098_s0 + $0x78] sm:$0x8]   ;;  %v680_v55 = vsel %vm134_vm4, %v1512_v40, %v676_v49  ;;  %v738_v56 = vsel %vm122_vm1, %v1527_v47, %v734_v50 }
  0x4c   :  { %v1514_v42 = vld [vmem:[%s3098_s0 + $0xe4] sm:$0x80]   ;;  %v1529_v52 = vld [vmem:[%s3098_s0 + $0x97] sm:$0x10]   ;;  %v562_v54 = vsel %vm142_vm6, %v1481_v29, %v558_v48  ;;  %v1568_v59 = vld [vmem:[%s3098_s0 + $0x1a] sm:$0x1]   ;;  %v684_v60 = vsel %vm138_vm5, %v1513_v41, %v680_v55  ;;  %v742_v61 = vsel %vm126_vm2, %v1528_v51, %v738_v56 }
  0x4d   :  { %1192 = vrot.lane.b32.xlu1 %v1191_v27, %s1695_s3  ;;  %v1530_v53 = vld [vmem:[%s3098_s0 + $0xb6] sm:$0x20]   ;;  %1247 = vrot.lane.b32.xlu0 %v1246_v37, %s1695_s3  ;;  %v1569_v62 = vld [vmem:[%s3098_s0 + $0x39] sm:$0x2]   ;;  %v688_v1 = vsel %vm142_vm6, %v1514_v42, %v684_v60  ;;  %v746_v2 = vsel %vm130_vm3, %v1529_v52, %v742_v61  ;;  %s43_s2 = smov 192  ;;  %s92_s6 = smov 48 }
  0x4e   :  { %v1531_v57 = vld [vmem:[%s3098_s0 + $0xd5] sm:$0x40]   ;;  %v1570_v63 = vld [vmem:[%s3098_s0 + $0x58] sm:$0x4]   ;;  %v900_v3 = vsel %vm118_vm0, %v1569_v62, %v1568_v59  ;;  %v750_v7 = vsel %vm134_vm4, %v1530_v53, %v746_v2  ;;  %v1586_v11 = vld [vmem:[%s3098_s0 + $0x8] sm:$0x4]  }
  0x4f   :  { %v1532_v58 = vld [vmem:[%s3098_s0 + $0xf4] sm:$0x80]   ;;  %v1571_v0 = vld [vmem:[%s3098_s0 + $0x77] sm:$0x8]   ;;  %v904_v8 = vsel %vm122_vm1, %v1570_v63, %v900_v3  ;;  %v754_v12 = vsel %vm138_vm5, %v1531_v57, %v750_v7  ;;  %v1587_v15 = vld [vmem:[%s3098_s0 + $0x27] sm:$0x8]  }
  0x50   :  { %v1572_v4 = vld [vmem:[%s3098_s0 + $0x96] sm:$0x10]   ;;  %v908_v13 = vsel %vm126_vm2, %v1571_v0, %v904_v8  ;;  %v1588_v16 = vld [vmem:[%s3098_s0 + $0x46] sm:$0x10]   ;;  %v758_v18 = vsel %vm142_vm6, %v1532_v58, %v754_v12  ;;  %v1629_v25 = vld [vmem:[%s3098_s0 + $0x109] ss:$16 sm:%s1132_s10]  }
  0x51   :  { %563 = vrot.lane.b32.xlu1 %v562_v54, %s1692_s21  ;;  %v1573_v5 = vld [vmem:[%s3098_s0 + $0xb5] sm:$0x20]   ;;  %689 = vrot.lane.b32.xlu0 %v688_v1, %s1693_s15  ;;  %v1589_v17 = vld [vmem:[%s3098_s0 + $0x65] sm:$0x20]   ;;  %v912_v19 = vsel %vm130_vm3, %v1572_v4, %v908_v13  ;;  %s1202_s21 = smov 6  ;;  %vm13_vm0 = vcmask 1045508  }
  0x52   :  { %v1574_v6 = vld [vmem:[%s3098_s0 + $0xd4] sm:$0x40]   ;;  %v1590_v21 = vld [vmem:[%s3098_s0 + $0x84] sm:$0x40]   ;;  %v916_v23 = vsel %vm134_vm4, %v1573_v5, %v912_v19  ;;  %v1630_v26 = vld [vmem:[%s3098_s0 + $0x7] sm:$0x4]  }
  0x53   :  { %v1575_v9 = vld [vmem:[%s3098_s0 + $0xf3] sm:$0x80]   ;;  %v1591_v22 = vld [vmem:[%s3098_s0 + $0xa3] sm:$0x80]   ;;  %v920_v27 = vsel %vm138_vm5, %v1574_v6, %v916_v23  ;;  %v1137_v29 = vsel %vm122_vm1, %v1630_v26, %v1629_v25  ;;  %v1631_v30 = vld [vmem:[%s3098_s0 + $0x26] sm:$0x8]  }
  0x54   :  { %v1585_v10 = vld [vmem:[%s3098_s0 + $0x10a] ss:$16 sm:%s2438_s5]   ;;  %v1632_v31 = vld [vmem:[%s3098_s0 + $0x45] sm:$0x10]   ;;  %v924_v33 = vsel %vm142_vm6, %v1575_v9, %v920_v27  ;;  %v1141_v35 = vsel %vm126_vm2, %v1631_v30, %v1137_v29  ;;  %v1649_v42 = vld [vmem:[%s3098_s0 + $0x36] sm:$0x8]  }
  0x55   :  { %v969_v14 = vsel %vm122_vm1, %v1586_v11, %v1585_v10  ;;  %759 = vrot.lane.b32.xlu1 %v758_v18, %s1693_s15  ;;  %v1633_v32 = vld [vmem:[%s3098_s0 + $0x64] sm:$0x20]   ;;  %925 = vrot.lane.b32.xlu0 %v924_v33, %s1694_s27  ;;  %v1145_v40 = vsel %vm130_vm3, %v1632_v31, %v1141_v35  ;;  %v1650_v45 = vld [vmem:[%s3098_s0 + $0x55] sm:$0x10]   ;;  %s64_s10 = smov 12  ;;  %s68_s15 = smov 48 }
  0x56   :  { %v973_v20 = vsel %vm126_vm2, %v1587_v15, %v969_v14  ;;  %v1634_v36 = vld [vmem:[%s3098_s0 + $0x83] sm:$0x40]   ;;  %v1149_v43 = vsel %vm134_vm4, %v1633_v32, %v1145_v40  ;;  %v1651_v46 = vld [vmem:[%s3098_s0 + $0x74] sm:$0x20]   ;;  %v1662_v51 = vld [vmem:[%s3098_s0 + $0x111] ss:$-272 sm:%s1256_s14]  }
  0x57   :  { %v977_v24 = vsel %vm130_vm3, %v1588_v16, %v973_v20  ;;  %v1635_v37 = vld [vmem:[%s3098_s0 + $0xa2] sm:$0x80]   ;;  %v1652_v47 = vld [vmem:[%s3098_s0 + $0x93] sm:$0x40]   ;;  %v1153_v48 = vsel %vm138_vm5, %v1634_v36, %v1149_v43  ;;  %v1663_v52 = vld [vmem:[%s3098_s0 + $0x1f] sm:$0x4]  }
  0x58   :  { %v981_v28 = vsel %vm134_vm4, %v1589_v17, %v977_v24  ;;  %v1647_v38 = vld [vmem:[%s3098_s0 + $0xc9] sm:$0x1]   ;;  %v1653_v50 = vld [vmem:[%s3098_s0 + $0xb2] sm:$0x80]   ;;  %v1157_v53 = vsel %vm142_vm6, %v1635_v37, %v1153_v48  ;;  %v1261_v55 = vsel %vm122_vm1, %v1663_v52, %v1662_v51  ;;  %v1664_v56 = vld [vmem:[%s3098_s0 + $0x3e] sm:$0x8]  }
  0x59   :  { %v985_v34 = vsel %vm138_vm5, %v1590_v21, %v981_v28  ;;  %v1648_v41 = vld [vmem:[%s3098_s0 + $0x1b9] ss:$-208 sm:%s1202_s21]   ;;  %v1665_v57 = vld [vmem:[%s3098_s0 + $0x5d] sm:$0x10]   ;;  %1158 = vrot.lane.b32.xlu0 %v1157_v53, %s1695_s3  ;;  %v1265_v60 = vsel %vm126_vm2, %v1664_v56, %v1261_v55  ;;  %s6_s14 = smov 12  ;;  %s84_s5 = smov 3 }
  0x5a   :  { %v989_v39 = vsel %vm142_vm6, %v1591_v22, %v985_v34  ;;  %v1205_v44 = vsel %vm1057_vm10, %v1648_v41, %v1647_v38  ;;  %v1666_v58 = vld [vmem:[%s3098_s0 + $0x7c] sm:$0x20]   ;;  %v1672_v63 = vld [vmem:[%s3098_s0 + $0x2f] sm:$0x4]   ;;  %v1269_v1 = vsel %vm130_vm3, %v1665_v57, %v1265_v60  ;;  %v1331_v16 = vld [vmem:[%s3098_s0 + $0x8] ss:$16 sm:%s3_s12]  }
  0x5b   :  { %990 = vrot.lane.b32.xlu1 %v989_v39, %s1694_s27  ;;  %v1209_v49 = vsel %vm126_vm2, %v1649_v42, %v1205_v44  ;;  %v1667_v61 = vld [vmem:[%s3098_s0 + $0x9b] sm:$0x40]   ;;  %v1673_v3 = vld [vmem:[%s3098_s0 + $0x4e] sm:$0x8]   ;;  %v1273_v6 = vsel %vm134_vm4, %v1666_v58, %v1269_v1  ;;  %vm614_vm10 = vcmask 1048064  }
  0x5c   :  { %v1213_v54 = vsel %vm130_vm3, %v1650_v45, %v1209_v49  ;;  %v1668_v62 = vld [vmem:[%s3098_s0 + $0xba] sm:$0x80]   ;;  %v1674_v4 = vld [vmem:[%s3098_s0 + $0x6d] sm:$0x10]   ;;  %v1277_v9 = vsel %vm138_vm5, %v1667_v61, %v1273_v6  ;;  %v1332_v20 = vld [vmem:[%s3098_s0 + $0x8] ss:$16 sm:%s6_s14]  }
  0x5d   :  { %v1217_v59 = vsel %vm134_vm4, %v1651_v46, %v1213_v54  ;;  %v1671_v2 = vld [vmem:[%s3098_s0 + $0xe1] ss:$-208 sm:%s1290_s8]   ;;  %v1281_v12 = vsel %vm142_vm6, %v1668_v62, %v1277_v9  ;;  %v9_v21 = vsel %vm8_vm15, %v1332_v20, %v1331_v16  ;;  %v1333_v22 = vld [vmem:[%s3098_s0 + $0x8] ss:$16 sm:%s11_s16]   ;;  %s62_s8 = smov 3 }
  0x5e   :  { %v1221_v0 = vsel %vm138_vm5, %v1652_v47, %v1217_v59  ;;  %v1295_v7 = vsel %vm122_vm1, %v1672_v63, %v1671_v2  ;;  %v1675_v8 = vld [vmem:[%s3098_s0 + $0x8c] sm:$0x20]   ;;  %1282 = vrot.lane.b32.xlu0 %v1281_v12, %s1695_s3  ;;  %vm18_vm1 = vcmask 1047558   ;;  %v14_v23 = vsel %vm13_vm0, %v1333_v22, %v9_v21  ;;  %v1334_v24 = vld [vmem:[%s3098_s0 + $0x8] ss:$16 sm:%s16_s25]  }
  0x5f   :  { %v1225_v5 = vsel %vm142_vm6, %v1653_v50, %v1221_v0  ;;  %v1299_v10 = vsel %vm126_vm2, %v1673_v3, %v1295_v7  ;;  %v1676_v11 = vld [vmem:[%s3098_s0 + $0xab] sm:$0x40]   ;;  %v19_v25 = vsel %vm18_vm1, %v1334_v24, %v14_v23  ;;  %v1339_v26 = vld [vmem:[%s3098_s0 + $0x88] ss:$16 sm:%s30_s26]   ;;  %vm181_vm2 = vcmask 1048448  }
  0x60   :  { %1226 = vrot.lane.b32.xlu1 %v1225_v5, %s1695_s3  ;;  %v1303_v13 = vsel %vm130_vm3, %v1674_v4, %v1299_v10  ;;  %v1677_v14 = vld [vmem:[%s3098_s0 + $0xca] sm:$0x80]   ;;  %v1340_v27 = vld [vmem:[%s3098_s0 + $0x88] ss:$16 sm:%s33_s28]   ;;  %s72_s28 = smov 192  ;;  %vm305_vm3 = vcmask 917248  }
  0x61   :  { %v1307_v15 = vsel %vm134_vm4, %v1675_v8, %v1303_v13  ;;  %v1680_v18 = vld [vmem:[%s3098_s0 + $0xf1] ss:$16 sm:%s1324_s11]   ;;  %1335 = vst.msk [vmem:[%s3099_s1 + $0x8] ss:$72 sm:$0x3] %vm20_vm7, %v19_v25   ;;  %v36_v28 = vsel %vm8_vm15, %v1340_v27, %v1339_v26  ;;  %vm356_vm4 = vcmask 1048320  }
  0x62   :  { %v1311_v17 = vsel %vm138_vm5, %v1676_v11, %v1307_v15  ;;  %1326 = vrot.lane.b32.xlu0 %v1680_v18, %s1695_s3  ;;  %1336 = vst.msk [vmem:[%s3099_s1 - $0x87] ss:$72 sm:$0xc] %vm20_vm7, %v19_v25   ;;  %1337 = vst.msk [vmem:[%s3099_s1 - $0x116] ss:$72 sm:$0x30] %vm20_vm7, %v19_v25  }
  0x63   :  { %v1315_v19 = vsel %vm142_vm6, %v1677_v14, %v1311_v17  ;;  %1338 = vst.msk [vmem:[%s3099_s1 - $0x1a5] ss:$72 sm:$0xc0] %vm20_vm7, %v19_v25   ;;  %v1341_v29 = vld [vmem:[%s3098_s0 + $0x88] ss:$16 sm:%s38_s30]   ;;  %vm437_vm5 = vcmask 786048  }
  0x64   :  { %1316 = vrot.lane.b32.xlu1 %v1315_v19, %s1695_s3  ;;  %s57_s3 = smov 3  ;;  %v1342_v30 = vld [vmem:[%s3098_s0 + $0x88] ss:$16 sm:%s43_s2]   ;;  %v41_v31 = vsel %vm13_vm0, %v1341_v29, %v36_v28  ;;  %s87_s2 = smov 12  ;;  %vm488_vm6 = vcmask 1048192  }
  0x65   :  { %v1347_v32 = vld [vmem:[%s3098_s0 + $0x108] ss:$16 sm:%s57_s3]   ;;  %v63_v33 = vld [vmem:[%s3098_s0] ss:$16 sm:%s62_s8]   ;;  %v46_v34 = vsel %vm18_vm1, %v1342_v30, %v41_v31  ;;  %s97_s8 = smov 192 }
  0x66   :  { %1348 = vst.msk [vmem:[%s3099_s1 + $0x78] ss:$72 sm:$0x3] %vm20_vm7, %v1347_v32   ;;  %v65_v35 = vld [vmem:[%s3098_s0] ss:$16 sm:%s64_s10]   ;;  %s110_s10 = smov 3 }
  0x67   :  { %v69_v36 = vld [vmem:[%s3098_s0] ss:$16 sm:%s68_s15]   ;;  %1343 = vst.msk [vmem:[%s3099_s1 + $0xc] ss:$72 sm:$0x3] %vm20_vm7, %v46_v34   ;;  %v67_v37 = vsel %vm8_vm15, %v65_v35, %v63_v33 }
  0x68   :  { %1344 = vst.msk [vmem:[%s3099_s1 - $0x83] ss:$72 sm:$0xc] %vm20_vm7, %v46_v34   ;;  %1345 = vst.msk [vmem:[%s3099_s1 - $0x112] ss:$72 sm:$0x30] %vm20_vm7, %v46_v34   ;;  %v71_v40 = vsel %vm13_vm0, %v69_v36, %v67_v37 }
  0x69   :  { %1346 = vst.msk [vmem:[%s3099_s1 - $0x1a1] ss:$72 sm:$0xc0] %vm20_vm7, %v46_v34   ;;  %v73_v38 = vld [vmem:[%s3098_s0] ss:$16 sm:%s72_s28]  }
  0x6a   :  { %v1352_v39 = vld [vmem:[%s3098_s0 + $0x80] ss:$16 sm:%s84_s5]   ;;  %v75_v43 = vsel %vm18_vm1, %v73_v38, %v71_v40 }
  0x6b   :  { %v1353_v41 = vld [vmem:[%s3098_s0 + $0x80] ss:$16 sm:%s87_s2]   ;;  %76 = vst [vmem:[%s3099_s1] ss:$72 sm:$0x3] %v75_v43  }
  0x6c   :  { %v1354_v42 = vld [vmem:[%s3098_s0 + $0x80] ss:$16 sm:%s92_s6]   ;;  %v90_v44 = vsel %vm8_vm15, %v1353_v41, %v1352_v39  ;;  %1349 = vst [vmem:[%s3099_s1 - $0x8f] ss:$72 sm:$0xc] %v75_v43  }
  0x6d   :  { %v1355_v45 = vld [vmem:[%s3098_s0 + $0x80] ss:$16 sm:%s97_s8]   ;;  %1350 = vst [vmem:[%s3099_s1 - $0x11e] ss:$72 sm:$0x30] %v75_v43   ;;  %v95_v47 = vsel %vm13_vm0, %v1354_v42, %v90_v44 }
  0x6e   :  { %v1360_v46 = vld [vmem:[%s3098_s0 + $0x100] ss:$16 sm:%s110_s10]   ;;  %1351 = vst [vmem:[%s3099_s1 - $0x1ad] ss:$72 sm:$0xc0] %v75_v43   ;;  %v100_v48 = vsel %vm18_vm1, %v1355_v45, %v95_v47 }
  0x6f   :  { %1361 = vst [vmem:[%s3099_s1 + $0x70] ss:$72 sm:$0x3] %v1360_v46   ;;  %1356 = vst [vmem:[%s3099_s1 + $0x4] ss:$72 sm:$0x3] %v100_v48  }
  0x70   :  { %1357 = vst [vmem:[%s3099_s1 - $0x8b] ss:$72 sm:$0xc] %v100_v48   ;;  %1358 = vst [vmem:[%s3099_s1 - $0x11a] ss:$72 sm:$0x30] %v100_v48  }
  0x71   :  { %1359 = vst [vmem:[%s3099_s1 - $0x1a9] ss:$72 sm:$0xc0] %v100_v48  }
  0x7c   :  { %v145_v50 = vpop.permute.xlu0 %144  }
  0x7d   :  { %1370 = vst.msk [vmem:[%s3099_s1 + $0x40] sm:$0xff] %vm146_vm14, %v145_v50  }
  0x7e   :  { %v232_v49 = vpop.permute.xlu1 %231  }
  0x7f   :  { %1393 = vst.msk [vmem:[%s3099_s1 + $0x3e] sm:$0x3] %vm181_vm2, %v232_v49  }
  0x80   :  { %v180_v51 = vpop.permute.xlu0 %179  }
  0x81   :  { %1379 = vst.msk [vmem:[%s3099_s1 + $0x40] sm:$0xff] %vm181_vm2, %v180_v51  }
  0x84   :  { %v267_v53 = vpop.permute.xlu0 %266  }
  0x87   :  { %v216_v52 = vpop.permute.xlu1 %215  }
  0x88   :  { %1388 = vst.msk [vmem:[%s3099_s1 + $0xb0] sm:$0x1] %vm146_vm14, %v216_v52   ;;  %v317_v55 = vpop.permute.xlu0 %316   ;;  %vm565_vm14 = vcmask 654848  }
  0x89   :  { %1390 = vst.msk [vmem:[%s3099_s1 + $0x36] sm:$0xfc] %vm181_vm2, %v216_v52   ;;  %1389 = vst.msk [vmem:[%s3099_s1 + $0xa8] ss:$8 sm:$0x3] %vm181_vm2, %v216_v52  }
  0x8a   :  { %1402 = vst.msk [vmem:[%s3099_s1 + $0xa8] ss:$-112 sm:$0x3] %vm268_vm13, %v267_v53   ;;  %1403 = vst.msk [vmem:[%s3099_s1 + $0x37] sm:$0xfc] %vm268_vm13, %v267_v53  }
  0x8b   :  { %v304_v54 = vpop.permute.xlu1 %303   ;;  %1416 = vst.msk [vmem:[%s3099_s1 + $0x3f] sm:$0x1] %vm268_vm13, %v317_v55   ;;  %vm1047_vm13 = vcmask 1047808  }
  0x8c   :  { %1412 = vst.msk [vmem:[%s3099_s1 + $0xa8] ss:$-112 sm:$0x3] %vm305_vm3, %v304_v54   ;;  %1413 = vst.msk [vmem:[%s3099_s1 + $0x37] sm:$0xfc] %vm305_vm3, %v304_v54   ;;  %v364_v57 = vpop.permute.xlu0 %363  }
  0x8d   :  { %1417 = vst.msk [vmem:[%s3099_s1 + $0x3f] sm:$0x1] %vm305_vm3, %v317_v55  }
  0x8e   :  { %1429 = vst.msk [vmem:[%s3099_s1 + $0x37] sm:$0x1] %vm356_vm4, %v364_v57  }
  0x8f   :  { %v355_v56 = vpop.permute.xlu1 %354  }
  0x90   :  { %1426 = vst.msk [vmem:[%s3099_s1 + $0xa0] ss:$-112 sm:$0x3] %vm356_vm4, %v355_v56   ;;  %1427 = vst.msk [vmem:[%s3099_s1 + $0x2f] sm:$0xfc] %vm356_vm4, %v355_v56   ;;  %v436_v59 = vpop.permute.xlu0 %435  }
  0x93   :  { %v399_v58 = vpop.permute.xlu1 %398  }
  0x94   :  { %1438 = vst.msk [vmem:[%s3099_s1 + $0xa0] ss:$-112 sm:$0x3] %vm400_vm12, %v399_v58   ;;  %1439 = vst.msk [vmem:[%s3099_s1 + $0x2f] sm:$0xfc] %vm400_vm12, %v399_v58  }
  0x95   :  { %1448 = vst.msk [vmem:[%s3099_s1 + $0xa0] ss:$-112 sm:$0x3] %vm437_vm5, %v436_v59   ;;  %1449 = vst.msk [vmem:[%s3099_s1 + $0x2f] sm:$0xfc] %vm437_vm5, %v436_v59  }
  0x97   :  { %v449_v60 = vpop.permute.xlu1 %448   ;;  %v487_v61 = vpop.permute.xlu0 %486  }
  0x98   :  { %1452 = vst.msk [vmem:[%s3099_s1 + $0x37] sm:$0x1] %vm400_vm12, %v449_v60   ;;  %vm812_vm12 = vcmask 1047936  }
  0x99   :  { %1453 = vst.msk [vmem:[%s3099_s1 + $0x37] sm:$0x1] %vm437_vm5, %v449_v60  }
  0x9a   :  { %1462 = vst.msk [vmem:[%s3099_s1 + $0x28] sm:$0xff] %vm488_vm6, %v487_v61  }
  0x9b   :  { %v494_v62 = vpop.permute.xlu1 %493   ;;  %v613_v63 = vpop.permute.xlu0 %612  }
  0x9c   :  { %1464 = vst.msk [vmem:[%s3099_s1 + $0x98] sm:$0x1] %vm488_vm6, %v494_v62  }
  0x9d   :  { %1495 = vst.msk [vmem:[%s3099_s1 + $0x20] sm:$0xff] %vm614_vm10, %v613_v63  }
  0x9f   :  { %v620_v0 = vpop.permute.xlu1 %619   ;;  %v811_v1 = vpop.permute.xlu0 %810  }
  0xa0   :  { %1497 = vst.msk [vmem:[%s3099_s1 + $0x90] sm:$0x1] %vm614_vm10, %v620_v0  }
  0xa1   :  { %1546 = vst.msk [vmem:[%s3099_s1 + $0x60] sm:$0xff] %vm812_vm12, %v811_v1  }
  0xa3   :  { %v843_v2 = vpop.permute.xlu1 %842   ;;  %v856_v3 = vpop.permute.xlu0 %855  }
  0xa4   :  { %1554 = vst.msk [vmem:[%s3099_s1 + $0x88] ss:$72 sm:$0x3] %vm812_vm12, %v843_v2   ;;  %1555 = vst.msk [vmem:[%s3099_s1 + $0x16] sm:$0xfc] %vm812_vm12, %v843_v2  }
  0xa5   :  { %1558 = vst.msk [vmem:[%s3099_s1 + $0x1e] sm:$0x3] %vm812_vm12, %v856_v3  }
  0xa7   :  { %v1046_v4 = vpop.permute.xlu1 %1045   ;;  %v1080_v5 = vpop.permute.xlu0 %1079  }
  0xa8   :  { %1606 = vst.msk [vmem:[%s3099_s1 + $0x80] ss:$72 sm:$0x3] %vm1047_vm13, %v1046_v4   ;;  %1607 = vst.msk [vmem:[%s3099_s1 + $0xe] sm:$0xfc] %vm1047_vm13, %v1046_v4  }
  0xa9   :  { %1615 = vst.msk [vmem:[%s3099_s1 + $0x16] sm:$0x3] %vm1047_vm13, %v1080_v5   ;;  %1616 = vst.msk [vmem:[%s3099_s1 + $0x56] sm:$0xfc] %vm1047_vm13, %v1080_v5  }
  0xab   :  { %v1093_v6 = vpop.permute.xlu1 %1092   ;;  %v529_v7 = vpop.permute.xlu0 %528  }
  0xac   :  { %1619 = vst.msk [vmem:[%s3099_s1 + $0x5e] sm:$0x3] %vm1047_vm13, %v1093_v6  }
  0xad   :  { %1473 = vst.msk [vmem:[%s3099_s1 + $0x28] sm:$0xff] %vm530_vm11, %v529_v7  }
  0xaf   :  { %v575_v8 = vpop.permute.xlu1 %574   ;;  %v655_v9 = vpop.permute.xlu0 %654  }
  0xb0   :  { %1485 = vst.msk [vmem:[%s3099_s1 + $0x98] sm:$0x1] %vm530_vm11, %v575_v8   ;;  %vm691_vm11 = vcmask 523648  }
  0xb1   :  { %1486 = vst.msk [vmem:[%s3099_s1 + $0x98] sm:$0x1] %vm565_vm14, %v575_v8  }
  0xb2   :  { %1506 = vst.msk [vmem:[%s3099_s1 + $0x20] sm:$0xff] %vm446_vm9, %v655_v9  }
  0xb3   :  { %v725_v10 = vpop.permute.xlu1 %724   ;;  %v773_v11 = vpop.permute.xlu0 %772  }
  0xb4   :  { %1524 = vst.msk [vmem:[%s3099_s1 + $0x68] sm:$0xff] %vm446_vm9, %v725_v10   ;;  %1536 = vst.msk [vmem:[%s3099_s1 + $0x90] ss:$72 sm:$0x3] %vm446_vm9, %v773_v11   ;;  %vm927_vm9 = vcmask 392448  }
  0xb5   :  { %1537 = vst.msk [vmem:[%s3099_s1 + $0x90] ss:$72 sm:$0x3] %vm691_vm11, %v773_v11  }
  0xb7   :  { %v891_v12 = vpop.permute.xlu1 %890   ;;  %v957_v13 = vpop.permute.xlu0 %956  }
  0xb8   :  { %1567 = vst.msk [vmem:[%s3099_s1 + $0x60] sm:$0xff] %vm314_vm8, %v891_v12   ;;  %1583 = vst.msk [vmem:[%s3099_s1 + $0x88] ss:$72 sm:$0x3] %vm314_vm8, %v957_v13  }
  0xb9   :  { %1584 = vst.msk [vmem:[%s3099_s1 + $0x16] sm:$0xfc] %vm314_vm8, %v957_v13  }
  0xbb   :  { %v1012_v14 = vpop.permute.xlu1 %1011   ;;  %v1125_v15 = vpop.permute.xlu0 %1124  }
  0xbc   :  { %1598 = vst.msk [vmem:[%s3099_s1 + $0x1e] sm:$0x3] %vm314_vm8, %v1012_v14   ;;  %vm1160_vm8 = vcmask 261248  }
  0xbd   :  { %1599 = vst.msk [vmem:[%s3099_s1 + $0x1e] sm:$0x3] %vm927_vm9, %v1012_v14  }
  0xbe   :  { %1627 = vst.msk [vmem:[%s3099_s1 + $0x80] ss:$72 sm:$0x3] %vm20_vm7, %v1125_v15   ;;  %1628 = vst.msk [vmem:[%s3099_s1 + $0xe] sm:$0xfc] %vm20_vm7, %v1125_v15  }
  0xbf   :  { %v1193_v16 = vpop.permute.xlu1 %1192   ;;  %v1248_v17 = vpop.permute.xlu0 %1247  }
  0xc0   :  { %1645 = vst.msk [vmem:[%s3099_s1 + $0x16] sm:$0x3] %vm20_vm7, %v1193_v16   ;;  %1646 = vst.msk [vmem:[%s3099_s1 + $0x56] sm:$0xfc] %vm20_vm7, %v1193_v16  }
  0xc1   :  { %1660 = vst.msk [vmem:[%s3099_s1 + $0x5e] sm:$0x3] %vm20_vm7, %v1248_v17   ;;  %vm1284_vm7 = vcmask 1047680  }
  0xc2   :  { %1661 = vst.msk [vmem:[%s3099_s1 + $0x5e] sm:$0x3] %vm1160_vm8, %v1248_v17  }
  0xc3   :  { %v564_v18 = vpop.permute.xlu1 %563   ;;  %v690_v19 = vpop.permute.xlu0 %689  }
  0xc4   :  { %1482 = vst.msk [vmem:[%s3099_s1 + $0x28] sm:$0xff] %vm565_vm14, %v564_v18  }
  0xc5   :  { %1515 = vst.msk [vmem:[%s3099_s1 + $0x20] sm:$0xff] %vm691_vm11, %v690_v19  }
  0xc7   :  { %v760_v20 = vpop.permute.xlu1 %759   ;;  %v926_v21 = vpop.permute.xlu0 %925  }
  0xc8   :  { %1533 = vst.msk [vmem:[%s3099_s1 + $0x68] sm:$0xff] %vm691_vm11, %v760_v20  }
  0xc9   :  { %1576 = vst.msk [vmem:[%s3099_s1 + $0x60] sm:$0xff] %vm927_vm9, %v926_v21  }
  0xcb   :  { %v1159_v23 = vpop.permute.xlu0 %1158  }
  0xcc   :  { %1636 = vst.msk [vmem:[%s3099_s1 + $0x80] ss:$72 sm:$0x3] %vm1160_vm8, %v1159_v23   ;;  %1637 = vst.msk [vmem:[%s3099_s1 + $0xe] sm:$0xfc] %vm1160_vm8, %v1159_v23  }
  0xcd   :  { %v991_v22 = vpop.permute.xlu1 %990  }
  0xce   :  { %1592 = vst.msk [vmem:[%s3099_s1 + $0x88] ss:$72 sm:$0x3] %vm927_vm9, %v991_v22   ;;  %1593 = vst.msk [vmem:[%s3099_s1 + $0x16] sm:$0xfc] %vm927_vm9, %v991_v22  }
  0xd0   :  { %v1283_v25 = vpop.permute.xlu0 %1282  }
  0xd1   :  { %1669 = vst.msk [vmem:[%s3099_s1 + $0xc0] ss:$-184 sm:$0x3] %vm1284_vm7, %v1283_v25   ;;  %1670 = vst.msk [vmem:[%s3099_s1 + $0x7] sm:$0xfc] %vm1284_vm7, %v1283_v25  }
  0xd2   :  { %v1227_v24 = vpop.permute.xlu1 %1226  }
  0xd3   :  { %1654 = vst.msk [vmem:[%s3099_s1 + $0x16] sm:$0x3] %vm1160_vm8, %v1227_v24   ;;  %1655 = vst.msk [vmem:[%s3099_s1 + $0x56] sm:$0xfc] %vm1160_vm8, %v1227_v24  }
  0xd4   :  { %v1327_v27 = vpop.permute.xlu0 %1326  }
  0xd5   :  { %1681 = vst.msk [vmem:[%s3099_s1 + $0x57] ss:$33 sm:$0x3] %vm1284_vm7, %v1327_v27  }
  0xd6   :  { %v1317_v26 = vpop.permute.xlu1 %1316  }
  0xd7   :  { %1678 = vst.msk [vmem:[%s3099_s1 + $0xf] ss:$65 sm:$0x3] %vm1284_vm7, %v1317_v26   ;;  %1679 = vst.msk [vmem:[%s3099_s1 + $0x4f] sm:$0xfc] %vm1284_vm7, %v1317_v26  }

// kernel: mutil_stride_module_v3.10
= control target key start
LH: loop header
LB: loop body
LE: loop exit
PB: predicated region body
PF: predicated region fallthrough
CT: control target
= control target key end

     0   :  { %s672_s15 = smov 0   ;;  %s674_s16 = smov 0   ;;  %s718_s0 = inlined_call_operand.vmem [shape: f32[2,108,64], index: 0, kind: input, shape index: {}]   ;;  %s719_s1 = inlined_call_operand.vmem [shape: f32[8,108], index: 1, kind: input, shape index: {}]   ;;  %s720_s2 = inlined_call_operand.vmem [shape: f32[2,8,64], index: 2, kind: output, shape index: {0}]   ;;  %s721_s3 = inlined_call_operand.vmem [shape: f32[2,8,1], index: 3, kind: output, shape index: {1}]   ;;  %s722_s4 = inlined_call_operand.vmem [shape: f32[2,8,1], index: 4, kind: output, shape index: {2}]  }
   0x1   :  { %s676_s17 = smov 0  }
   0x2 LB: > { %s27_s18 = sadd.s32 1, %s637_s16  ;;  %p513_p0 = scmp.ge.s32.totalorder %s641_s17, 1  ;;  %s641_s17 = sphi %s676_s17, %s15_s17   ;;  %s637_s16 = sphi %s674_s16, %s724_s16   ;;  %s633_s15 = sphi %s672_s15, %s723_s15  }
   0x3   : > { %p29_p1 = scmp.ge.s32.totalorder %s27_s18, 2  ;;  %p190_p2 = scmp.lt.s32.totalorder %s641_s17, 3 }
   0x5   : > { %s726_s18 = smov (%p29_p1, %s27_s18), 0  ;;  %p191_p3 = pnand %p513_p0, %p190_p2 }
   0x6   : > { %p231_p4 = scmp.lt.s32.totalorder (!%p191_p3), %s633_s15, 1  ;;  %v643_v0 = vmov (!%p191_p3), 0.0|0.0   ;;  %vm644_vm0 = vmmov (!%p191_p3), 0   ;;  %v645_v1 = vmov (!%p191_p3), 0.0   ;;  %vm277_vm1 = vcmask (!%p191_p3), 1043456   ;;  %v258_v23 = vld [vmem:[%s719_s1] sm:$0xff] (!%p191_p3) }
   0x7   : > { %194 = sbr.rel (%p191_p3) target bundleno = 408 (0x198), region = 28  ;;  %568 = vmatprep.subr.bf16.mxu0 (!%p191_p3), %v643_v0  ;;  %565 = vmatprep.mubr.msk.f32.mxu0 (!%p191_p3), %vm644_vm0, %v645_v1  ;;  %vm646_vm2 = vmmov (!%p191_p3), 1   ;;  %vm273_vm4 = vcmask (!%p191_p3), 883712   ;;  %vm351_vm5 = vcmask (!%p191_p3), 523264   ;;  %vm356_vm6 = vcmask (!%p191_p3), 7168  }
   0x8   : > { %vm588_vm3 = vmpackc.low (!%p191_p3), %vm277_vm1, %vm646_vm2 }
   0xe   : > { %s728_s15 = smov (!%p231_p4, %s633_s15), 1 }
   0xf   : > { %s590_s19 = smul.u32 112, %s728_s15  ;;  %s515_s25 = sshll.u32 %s728_s15, 3 }
  0x10   : > { %s245_s28 = scalar_lea.vmem %s720_s2, %s515_s25  ;;  %s250_s5 = scalar_lea.vmem %s721_s3, %s515_s25 }
  0x11   : > { %s238_s22 = scalar_lea.vmem %s718_s0, %s590_s19  ;;  %s256_s8 = scalar_lea.vmem %s722_s4, %s515_s25 }
  0x12   : > { %v259_v2 = vld [vmem:[%s238_s22] sm:$0xff]  ;;  %v260_v3 = vld [vmem:[%s238_s22 + $0x8] sm:$0xff]  ;;  %v261_v4 = vld [vmem:[%s238_s22 + $0x10] sm:$0xff] }
  0x13   : > { %v569_v5 = vpack.c.bf16 %v260_v3, %v259_v2  ;;  %v262_v6 = vld [vmem:[%s238_s22 + $0x18] sm:$0xff]  ;;  %v263_v8 = vld [vmem:[%s238_s22 + $0x20] sm:$0xff]  ;;  %v264_v9 = vld [vmem:[%s238_s22 + $0x28] sm:$0xff] }
  0x14   : > { %v572_v7 = vpack.c.bf16 %v262_v6, %v261_v4  ;;  %v575_v10 = vpack.c.bf16 %v264_v9, %v263_v8  ;;  %v265_v11 = vld [vmem:[%s238_s22 + $0x30] sm:$0xff]  ;;  %v266_v12 = vld [vmem:[%s238_s22 + $0x38] sm:$0xff]  ;;  %v267_v14 = vld [vmem:[%s238_s22 + $0x40] sm:$0xff] }
  0x15   : > { %570 = vmatpush3.bf16.msra.mxu0 %v569_v5  ;;  %v578_v13 = vpack.c.bf16 %v266_v12, %v265_v11  ;;  %v268_v15 = vld [vmem:[%s238_s22 + $0x48] sm:$0xff]  ;;  %v269_v17 = vld [vmem:[%s238_s22 + $0x50] sm:$0xff]  ;;  %v270_v18 = vld [vmem:[%s238_s22 + $0x58] sm:$0xff] }
  0x16   : > { %571 = vmatprep.subr.bf16.mxu0 %v643_v0  ;;  %v581_v16 = vpack.c.bf16 %v268_v15, %v267_v14  ;;  %v584_v19 = vpack.c.bf16 %v270_v18, %v269_v17  ;;  %v271_v20 = vld [vmem:[%s238_s22 + $0x60] sm:$0xff]  ;;  %v272_v21 = vld [vmem:[%s238_s22 + $0x68] sm:$0xf] }
  0x17   : > { %v587_v22 = vpack.c.bf16 %v272_v21, %v271_v20 }
  0x19   : > { %573 = vmatpush3.bf16.msra.mxu0 %v572_v7 }
  0x1a   : > { %574 = vmatprep.subr.bf16.mxu0 %v643_v0 }
  0x1d   : > { %576 = vmatpush3.bf16.msra.mxu0 %v575_v10 }
  0x1e   : > { %577 = vmatprep.subr.bf16.mxu0 %v643_v0 }
  0x21   : > { %579 = vmatpush3.bf16.msra.mxu0 %v578_v13 }
  0x22   : > { %580 = vmatprep.subr.bf16.mxu0 %v643_v0 }
  0x25   : > { %582 = vmatpush3.bf16.msra.mxu0 %v581_v16 }
  0x26   : > { %583 = vmatprep.subr.bf16.mxu0 %v643_v0 }
  0x29   : > { %585 = vmatpush3.bf16.msra.mxu0 %v584_v19 }
  0x2a   : > { %586 = vmatprep.subr.bf16.mxu0 %v643_v0 }
  0x2d   : > { %589 = vmatpush3.bf16.msk.msra.mxu0 %vm588_vm3, %v587_v22 }
  0x30   : > { %566 = vmatmul.mubr.msk.f32.vlgmr.msra.gmra.mrb[0].mxu0 %vm273_vm4, %v258_v23 }
 0x103   : > { %v347_v24 = vpop.f32.mrb[0].mxu0 }
 0x104   : > { %v567_v25 = vpop.f32.mrb[1].mxu0  ;;  %v353_v26 = vsel %vm351_vm5, %v347_v24, 0.0  ;;  %352 = vst.msk [vmem:[%s245_s28] sm:$0xff] %vm351_vm5, %v347_v24  ;;  %v358_v27 = vmul.f32 %v347_v24, %v347_v24 }
 0x105   : > { %354 = vadd.xlane.f32.xlu0 %v353_v26 }
 0x106   : > { %v359_v28 = vsel %vm351_vm5, %v358_v27, 0.0 }
 0x109   : > { %360 = vadd.xlane.f32.xlu0 %v359_v28 }
 0x192   : > { %v355_v29 = vpop.xlane.xlu0 %354 }
 0x193   : > { %357 = vst.msk [vmem:[%s250_s5] sm:$0xff] %vm356_vm6, %v355_v29 }
 0x196   : > { %v361_v30 = vpop.xlane.xlu0 %360 }
 0x197   : > { %362 = vst.msk [vmem:[%s256_s8] sm:$0xff] %vm356_vm6, %v361_v30 }
 0x198 PF: > { %s15_s17 = sadd.s32 1, %s641_s17   ;;  %s723_s15 = smov %s637_s16 }
 0x199   : > { %p12_p5 = scmp.ge.s32.totalorder %s15_s17, 4   ;;  %s724_s16 = smov %s726_s18 }
 0x19b   :  { %14 = sbr.rel (!%p12_p5) target bundleno = 2 (0x2), region = 82 }

// kernel: mutil_stride_module_v3.11
= control target key start
LH: loop header
LB: loop body
LE: loop exit
PB: predicated region body
PF: predicated region fallthrough
CT: control target
= control target key end

     0   :  { %s371_s12 = smov 0   ;;  %s373_s13 = smov 0   ;;  %s407_s0 = inlined_call_operand.vmem [shape: f32[2,8,64], index: 0, kind: input, shape index: {}]   ;;  %s408_s1 = inlined_call_operand.vmem [shape: f32[8,1], index: 1, kind: input, shape index: {}]   ;;  %s409_s2 = inlined_call_operand.vmem [shape: f32[8,1], index: 2, kind: input, shape index: {}]   ;;  %s410_s3 = inlined_call_operand.vmem [shape: f32[2,8,64], index: 3, kind: output, shape index: {}]  }
   0x1   :  { %s375_s14 = smov 0  }
   0x2 LB: > { %s25_s15 = sadd.s32 1, %s344_s13  ;;  %p295_p0 = scmp.ge.s32.totalorder %s348_s14, 1  ;;  %s348_s14 = sphi %s375_s14, %s13_s14   ;;  %s344_s13 = sphi %s373_s13, %s412_s13   ;;  %s340_s12 = sphi %s371_s12, %s411_s12  }
   0x3   : > { %p27_p1 = scmp.ge.s32.totalorder %s25_s15, 2  ;;  %p155_p2 = scmp.lt.s32.totalorder %s348_s14, 3 }
   0x5   : > { %s414_s15 = smov (%p27_p1, %s25_s15), 0  ;;  %p156_p3 = pnand %p295_p0, %p155_p2 }
   0x6   : > { %v198_v0 = vld [vmem:[%s408_s1] sm:$0xff] (!%p156_p3)  ;;  %v350_v1 = vmov (!%p156_p3), 0   ;;  %p183_p4 = scmp.lt.s32.totalorder (!%p156_p3), %s340_s12, 1  ;;  %vm215_vm0 = vcmask (!%p156_p3), 523264  }
   0x7   : > { %159 = sbr.rel (%p156_p3) target bundleno = 146 (0x92), region = 32  ;;  %325 = vset.pattern.permute.xlu0 (!%p156_p3), %v350_v1  ;;  %v205_v2 = vld [vmem:[%s409_s2] sm:$0xff] (!%p156_p3) }
   0x8   : > { %201 = vperm.xlu0 (!%p156_p3), %325, %v198_v0  }
   0xc   : > { %208 = vperm.xlu0 (!%p156_p3), %325, %v205_v2  }
   0xe   : > { %s416_s12 = smov (!%p183_p4, %s340_s12), 1 }
   0xf   : > { %s296_s20 = sshll.u32 %s416_s12, 3 }
  0x10   : > { %s189_s23 = scalar_lea.vmem %s407_s0, %s296_s20  ;;  %s196_s26 = scalar_lea.vmem %s410_s3, %s296_s20 }
  0x11   : > { %v197_v4 = vld [vmem:[%s189_s23] sm:$0xff] }
  0x87   : > { %v202_v3 = vpop.permute.xlu0 %201 }
  0x88   : > { %v204_v5 = vmul.f32 %v202_v3, %v197_v4 }
  0x8b   : > { %v209_v6 = vpop.permute.xlu0 %208 }
  0x8c   : > { %v211_v7 = vadd.f32 %v209_v6, %v204_v5 }
  0x8e   : > { %vm212_vm1 = vcmp.ge.f32.partialorder %v211_v7, 0.0  ;;  %v213_v8 = vmul.f32 0.01, %v211_v7 }
  0x90   : > { %v214_v9 = vsel %vm212_vm1, %v211_v7, %v213_v8 }
  0x91   : > { %216 = vst.msk [vmem:[%s196_s26] sm:$0xff] %vm215_vm0, %v214_v9 }
  0x92 PF: > { %s13_s14 = sadd.s32 1, %s348_s14   ;;  %s411_s12 = smov %s344_s13 }
  0x93   : > { %p10_p5 = scmp.ge.s32.totalorder %s13_s14, 4   ;;  %s412_s13 = smov %s414_s15 }
  0x95   :  { %12 = sbr.rel (!%p10_p5) target bundleno = 2 (0x2), region = 62 }

// kernel: mutil_stride_module_v3.8
= control target key start
LH: loop header
LB: loop body
LE: loop exit
PB: predicated region body
PF: predicated region fallthrough
CT: control target
= control target key end

     0   :  { %s7035_s18 = smov 0   ;;  %s7037_s19 = smov 0   ;;  %s10526_s0 = inlined_call_operand.vmem [shape: f32[2,4,2042], index: 0, kind: input, shape index: {}]   ;;  %s10527_s1 = inlined_call_operand.vmem [shape: f32[8,108], index: 1, kind: input, shape index: {}]   ;;  %s10528_s2 = inlined_call_operand.vmem [shape: f32[9,1728], index: 2, kind: input, shape index: {}]   ;;  %s10529_s3 = inlined_call_operand.vmem [shape: f32[2,8,1728], index: 3, kind: output, shape index: {0}]   ;;  %s10530_s4 = inlined_call_operand.vmem [shape: f32[2,8,1], index: 4, kind: output, shape index: {1}]   ;;  %s10531_s5 = inlined_call_operand.vmem [shape: f32[2,8,1], index: 5, kind: output, shape index: {2}]  }
   0x1   :  { %s7039_s20 = smov 0  }
   0x2 LB: > { %s28_s21 = sadd.s32 1, %s6948_s19  ;;  %p6506_p0 = scmp.ge.s32.totalorder %s6952_s20, 1  ;;  %s6952_s20 = sphi %s7039_s20, %s16_s20   ;;  %s6948_s19 = sphi %s7037_s19, %s10890_s19   ;;  %s6944_s18 = sphi %s7035_s18, %s10889_s18  }
   0x3   : > { %p30_p1 = scmp.ge.s32.totalorder %s28_s21, 2  ;;  %p210_p2 = scmp.lt.s32.totalorder %s6952_s20, 3 }
   0x5   : > { %s10892_s21 = smov (%p30_p1, %s28_s21), 0  ;;  %p211_p3 = pnand %p6506_p0, %p210_p2 }
   0x7   : > { %214 = sbr.rel (%p211_p3) target bundleno = 2618 (0xa3a), region = 32 }
   0xe   : > { %v295_v0 = vlaneseq  ;;  %v6514_v1 = vld [vmem:[%s10528_s2 + $0x1] ss:$8 sm:$0xf]  ;;  %v6518_v24 = vld [vmem:[%s10528_s2 + $0x2] ss:$8 sm:$0xf] }
   0xf   : > { %v6515_v2 = vld [vmem:[%s10528_s2 + $0x1] ss:$8 sm:$0xf0]  ;;  %v6519_v25 = vld [vmem:[%s10528_s2 + $0x2] ss:$8 sm:$0xf0] }
  0x10   : > { %v6516_v3 = vld [vmem:[%s10528_s2 + $0x41] ss:$8 sm:$0xf]  ;;  %v296_v4 = vshrl.u32 %v295_v0, 7  ;;  %v418_v5 = vor.u32 %v6515_v2, %v6514_v1  ;;  %s6954_s9 = smov 1   ;;  %v633_v34 = vor.u32 %v6519_v25, %v6518_v24  ;;  %s6955_s14 = smov 2  }
  0x11   : > { %v6517_v6 = vld [vmem:[%s10528_s2 + $0x41] ss:$8 sm:$0x30]  ;;  %v6520_v41 = vld [vmem:[%s10528_s2 + $0x42] ss:$8 sm:$0xf] }
  0x12   : > { %v422_v7 = vor.u32 %v6517_v6, %v6516_v3  ;;  %v7067_v8 = vsub.s32 4, %v296_v4  ;;  %v7069_v9 = vsub.s32 5, %v296_v4  ;;  %v7071_v10 = vsub.s32 0, %v296_v4  ;;  %v6521_v42 = vld [vmem:[%s10528_s2 + $0x42] ss:$8 sm:$0x30] }
  0x13   : > { %v7073_v11 = vsub.s32 1, %v296_v4  ;;  %v7075_v12 = vsub.s32 6, %v296_v4  ;;  %v7077_v13 = vsub.s32 7, %v296_v4  ;;  %v7079_v14 = vsub.s32 2, %v296_v4  ;;  %p252_p4 = scmp.lt.s32.totalorder %s6944_s18, 1  ;;  %s6956_s27 = smov 12  }
  0x14   : > { %v7081_v15 = vsub.s32 3, %v296_v4  ;;  %v444_v16 = vrot.slane %v418_v5, %v7067_v8  ;;  %v448_v17 = vrot.slane %v418_v5, %v7069_v9  ;;  %v428_v18 = vrot.slane %v418_v5, %v7071_v10  ;;  %v6522_v56 = vld [vmem:[%s10528_s2 + $0x3] ss:$8 sm:$0xf]  ;;  %s6957_s7 = smov 115   ;;  %s6958_s12 = smov 127  }
  0x15   : > { %v432_v19 = vrot.slane %v418_v5, %v7073_v11  ;;  %v452_v20 = vrot.slane %v418_v5, %v7075_v12  ;;  %v456_v21 = vrot.slane %v418_v5, %v7077_v13  ;;  %v436_v22 = vrot.slane %v418_v5, %v7079_v14  ;;  %v6523_v57 = vld [vmem:[%s10528_s2 + $0x3] ss:$8 sm:$0xf0]  ;;  %s10894_s18 = smov (!%p252_p4, %s6944_s18), 1  ;;  %s6959_s13 = smov 126  }
  0x16   : > { %v440_v23 = vrot.slane %v418_v5, %v7081_v15  ;;  %v483_v26 = vcombine.low %v444_v16, %v448_v17  ;;  %v468_v30 = vrot.slane %v422_v7, %v7079_v14  ;;  %v472_v31 = vrot.slane %v422_v7, %v7081_v15  ;;  %v6525_v16 = vld [vmem:[%s10528_s2 + $0x43] ss:$8 sm:$0x30]  ;;  %s6625_s28 = sshll.u32 %s10894_s18, 6  ;;  %s6960_s22 = smov 116  }
  0x17   : > { %v481_v27 = vcombine.low %v428_v18, %v432_v19  ;;  %v484_v28 = vcombine.low %v452_v20, %v456_v21  ;;  %v460_v32 = vrot.slane %v422_v7, %v7071_v10  ;;  %v464_v33 = vrot.slane %v422_v7, %v7073_v11  ;;  %s7171_s6 = scalar_lea.vmem %s10526_s0, %s6625_s28  ;;  %s6961_s8 = smov 14  }
  0x18   : > { %v482_v29 = vcombine.low %v436_v22, %v440_v23  ;;  %492 = vrot.lane.b32.xlu1 %v483_v26, %s6954_s9  ;;  %v486_v35 = vcombine.low %v468_v30, %v472_v31  ;;  %v476_v36 = vrot.slane %v422_v7, %v7067_v8  ;;  %v480_v37 = vrot.slane %v422_v7, %v7069_v9  ;;  %v6524_v7 = vld [vmem:[%s10528_s2 + $0x43] ss:$8 sm:$0xf]  ;;  %s6963_s17 = smov 24   ;;  %s6977_s23 = smov 99  }
  0x19   : > { %488 = vrot.lane.b32.xlu0 %v481_v27, %s6954_s9  ;;  %v485_v38 = vcombine.low %v460_v32, %v464_v33  ;;  %v643_v39 = vrot.slane %v633_v34, %v7071_v10  ;;  %v647_v40 = vrot.slane %v633_v34, %v7073_v11  ;;  %v659_v44 = vrot.slane %v633_v34, %v7067_v8  ;;  %s6980_s10 = smov 40   ;;  %s6981_s11 = smov 42  }
  0x1a   : > { %v487_v43 = vcombine.low %v476_v36, %v480_v37  ;;  %v663_v45 = vrot.slane %v633_v34, %v7069_v9  ;;  %v637_v46 = vor.u32 %v6521_v42, %v6520_v41  ;;  %v651_v48 = vrot.slane %v633_v34, %v7079_v14  ;;  %v7181_v37 = vld [vmem:[%s7171_s6 + $0x8] sm:$0xff]  ;;  %s6983_s26 = smov 41   ;;  %s6985_s15 = smov 44  }
  0x1b   : > { %v696_v47 = vcombine.low %v643_v39, %v647_v40  ;;  %v655_v49 = vrot.slane %v633_v34, %v7081_v15  ;;  %v667_v54 = vrot.slane %v633_v34, %v7075_v12  ;;  %v671_v55 = vrot.slane %v633_v34, %v7077_v13  ;;  %v286_v39 = vld [vmem:[%s10528_s2] ss:$8 sm:$0xf]  ;;  %s6986_s30 = smov 46   ;;  %s6991_s25 = smov 88  }
  0x1c   : > { %494 = vrot.lane.b32.xlu1 %v484_v28, %s6954_s9  ;;  %v698_v50 = vcombine.low %v659_v44, %v663_v45  ;;  %v675_v51 = vrot.slane %v637_v46, %v7071_v10  ;;  %v679_v52 = vrot.slane %v637_v46, %v7073_v11  ;;  %v691_v59 = vrot.slane %v637_v46, %v7067_v8  ;;  %v287_v40 = vld [vmem:[%s10528_s2] ss:$8 sm:$0xf0]  ;;  %s6993_s28 = smov 86   ;;  %s6994_s29 = smov 96  }
  0x1d   : > { %490 = vrot.lane.b32.xlu0 %v482_v29, %s6954_s9  ;;  %v697_v53 = vcombine.low %v651_v48, %v655_v49  ;;  %v695_v60 = vrot.slane %v637_v46, %v7069_v9  ;;  %v846_v61 = vor.u32 %v6523_v57, %v6522_v56  ;;  %v699_v62 = vcombine.low %v667_v54, %v671_v55  ;;  %s6995_s16 = smov 95   ;;  %s10554_s24 = smov 83  }
  0x1e   : > { %v700_v58 = vcombine.low %v675_v51, %v679_v52  ;;  %v683_v63 = vrot.slane %v637_v46, %v7079_v14  ;;  %v687_v0 = vrot.slane %v637_v46, %v7081_v15  ;;  %v850_v21 = vor.u32 %v6525_v16, %v6524_v7 }
  0x1f   : > { %v864_v1 = vrot.slane %v846_v61, %v7079_v14  ;;  %v868_v2 = vrot.slane %v846_v61, %v7081_v15  ;;  %v856_v3 = vrot.slane %v846_v61, %v7071_v10  ;;  %v702_v4 = vcombine.low %v691_v59, %v695_v60 }
  0x20   : > { %498 = vrot.lane.b32.xlu1 %v486_v35, %s6954_s9  ;;  %v701_v5 = vcombine.low %v683_v63, %v687_v0  ;;  %v860_v6 = vrot.slane %v846_v61, %v7073_v11  ;;  %v872_v17 = vrot.slane %v846_v61, %v7067_v8  ;;  %v876_v18 = vrot.slane %v846_v61, %v7069_v9  ;;  %v7174_v35 = vld [vmem:[%s7171_s6] sm:$0xff] }
  0x21   : > { %496 = vrot.lane.b32.xlu0 %v485_v38, %s6954_s9  ;;  %v880_v19 = vrot.slane %v846_v61, %v7075_v12  ;;  %v884_v20 = vrot.slane %v846_v61, %v7077_v13  ;;  %v910_v22 = vcombine.low %v864_v1, %v868_v2  ;;  %v888_v26 = vrot.slane %v850_v21, %v7071_v10  ;;  %v7187_v38 = vld [vmem:[%s7171_s6 + $0x10] sm:$0xff] }
  0x22   : > { %v909_v23 = vcombine.low %v856_v3, %v860_v6  ;;  %v911_v24 = vcombine.low %v872_v17, %v876_v18  ;;  %v892_v27 = vrot.slane %v850_v21, %v7073_v11  ;;  %v896_v28 = vrot.slane %v850_v21, %v7079_v14 }
  0x23   : > { %v912_v25 = vcombine.low %v880_v19, %v884_v20  ;;  %v900_v29 = vrot.slane %v850_v21, %v7081_v15  ;;  %v904_v30 = vrot.slane %v850_v21, %v7067_v8  ;;  %v908_v33 = vrot.slane %v850_v21, %v7069_v9 }
  0x24   : > { %703 = vrot.lane.b32.xlu1 %v696_v47, %s6955_s14  ;;  %v913_v31 = vcombine.low %v888_v26, %v892_v27  ;;  %v1063_v36 = vcombine.high %v7174_v35, %v7174_v35  ;;  %v7197_v41 = vor.u32 %v287_v40, %v286_v39  ;;  %vm10549_vm0 = vcmask 7168   ;;  %v281_v26 = vld [vmem:[%s7171_s6 + $0x10] sm:$0xff] }
  0x25   : > { %500 = vrot.lane.b32.xlu0 %v487_v43, %s6954_s9  ;;  %v914_v32 = vcombine.low %v896_v28, %v900_v29  ;;  %v915_v34 = vcombine.low %v904_v30, %v908_v33  ;;  %vm724_vm1 = vcmask 15360   ;;  %vm511_vm2 = vcmask 1043456   ;;  %v6512_v40 = vld [vmem:[%s10528_s2 + $0x40] ss:$8 sm:$0xf]  ;;  %s6988_s9 = smov 57  }
  0x26   : > { %v298_v42 = vrot.slane %v7197_v41, %v7071_v10  ;;  %v302_v43 = vrot.slane %v7197_v41, %v7073_v11  ;;  %v306_v2 = vrot.slane %v7197_v41, %v7079_v14  ;;  %v310_v3 = vrot.slane %v7197_v41, %v7081_v15 }
  0x27   : > { %v314_v19 = vrot.slane %v7197_v41, %v7067_v8  ;;  %v318_v20 = vrot.slane %v7197_v41, %v7069_v9  ;;  %vm937_vm3 = vcmask 97280   ;;  %v326_v39 = vrot.slane %v7197_v41, %v7077_v13 }
  0x28   : > { %707 = vrot.lane.b32.xlu1 %v698_v50, %s6955_s14  ;;  %v351_v44 = vcombine.low %v298_v42, %v302_v43  ;;  %v352_v7 = vcombine.low %v306_v2, %v310_v3  ;;  %v6513_v42 = vld [vmem:[%s10528_s2 + $0x40] ss:$8 sm:$0x30]  ;;  %vm1098_vm4 = vcmask 941056   ;;  %vm10585_vm5 = vcmask 519168  }
  0x29   : > { %705 = vrot.lane.b32.xlu0 %v697_v53, %s6955_s14  ;;  %vm580_vm6 = vcmask 1039360   ;;  %vm794_vm7 = vcmask 1031168   ;;  %vm1007_vm8 = vcmask 949248   ;;  %vm10573_vm9 = vcmask 523268  }
  0x2a   : > { %v365_v45 = vmul.f32 %v7174_v35, %v351_v44  ;;  %v366_v18 = vmul.f32 %v7181_v37, %v352_v7  ;;  %v283_v7 = vld [vmem:[%s7171_s6 + $0x20] sm:$0xff]  ;;  %vm1241_vm10 = vcmask 113664   ;;  %vm1311_vm11 = vcmask 932864  }
  0x2b   : > { %vm1454_vm12 = vcmask 195584   ;;  %vm1524_vm13 = vcmask 850944   ;;  %vm1667_vm14 = vcmask 203776   ;;  %vm1737_vm15 = vcmask 842752  }
  0x2c   : > { %711 = vrot.lane.b32.xlu1 %v700_v58, %s6955_s14  ;;  %393 = vst [vmem:[#allocation2] sm:$0xf] %v365_v45  ;;  %v379_v17 = vcombine.high %v365_v45, %v365_v45  ;;  %395 = vst [vmem:[#allocation2 + $0x10] sm:$0xf] %v366_v18  ;;  %v380_v28 = vcombine.high %v366_v18, %v366_v18  ;;  %v292_v45 = vor.u32 %v6513_v42, %v6512_v40  ;;  %v7316_v42 = vld [vmem:[%s7171_s6 + $0x20] sm:$0xff] }
  0x2d   : > { %709 = vrot.lane.b32.xlu0 %v699_v62, %s6955_s14 }
  0x2e   : > { %394 = vst [vmem:[#allocation2 + $0x8] sm:$0xf] %v379_v17  ;;  %396 = vst [vmem:[#allocation2 + $0x18] sm:$0xf] %v380_v28  ;;  %v334_v2 = vrot.slane %v292_v45, %v7073_v11  ;;  %v346_v17 = vrot.slane %v292_v45, %v7067_v8  ;;  %v350_v18 = vrot.slane %v292_v45, %v7069_v9 }
  0x30   : > { %715 = vrot.lane.b32.xlu1 %v702_v4, %s6955_s14 }
  0x31   : > { %713 = vrot.lane.b32.xlu0 %v701_v5, %s6955_s14  ;;  %s10540_s14 = smov 58  }
  0x34   : > { %918 = vrot.lane.b32.xlu1 %v910_v22, %s6956_s27 }
  0x35   : > { %916 = vrot.lane.b32.xlu0 %v909_v23, %s6956_s27 }
  0x38   : > { %922 = vrot.lane.b32.xlu1 %v912_v25, %s6956_s27 }
  0x39   : > { %920 = vrot.lane.b32.xlu0 %v911_v24, %s6956_s27  ;;  %v353_v24 = vcombine.low %v314_v19, %v318_v20  ;;  %v7301_v20 = vld [vmem:[%s7171_s6 + $0x18] sm:$0xff] }
  0x3b   : > { %v367_v29 = vmul.f32 %v353_v24, %v281_v26 }
  0x3c   : > { %926 = vrot.lane.b32.xlu1 %v914_v32, %s6956_s27 }
  0x3d   : > { %924 = vrot.lane.b32.xlu0 %v913_v31, %s6956_s27  ;;  %397 = vst [vmem:[#allocation2 + $0x20] sm:$0xf] %v367_v29 }
  0x40   : > { %1070 = vrot.lane.b32.xlu1 %v7174_v35, %s6957_s7 }
  0x41   : > { %928 = vrot.lane.b32.xlu0 %v915_v34, %s6956_s27  ;;  %s6992_s27 = smov 87  }
  0x44   : > { %1074 = vrot.lane.b32.xlu1 %v7181_v37, %s6957_s7 }
  0x45   : > { %1072 = vrot.lane.b32.xlu0 %v1063_v36, %s6957_s7  ;;  %v322_v36 = vrot.slane %v7197_v41, %v7075_v12 }
  0x48   : > { %1078 = vrot.lane.b32.xlu1 %v7187_v38, %s6957_s7 }
  0x8a   : > { %v7204_v46 = vpop.permute.xlu1 %492 }
  0x8b   : > { %v489_v47 = vpop.permute.xlu0 %488  ;;  %v504_v16 = vrot.slane %v7204_v46, 4 }
  0x8c   : > { %v502_v48 = vrot.slane %v489_v47, 4 }
  0x8e   : > { %v510_v49 = vsel %vm10549_vm0, %v502_v48, %v489_v47  ;;  %v7207_v50 = vpop.permute.xlu1 %494 }
  0x8f   : > { %v491_v51 = vpop.permute.xlu0 %490  ;;  %v531_v52 = vmul.f32 %v7174_v35, %v510_v49  ;;  %v505_v43 = vrot.slane %v7207_v50, 4  ;;  %v282_v49 = vld [vmem:[%s7171_s6 + $0x18] sm:$0xff] }
  0x90   : > { %v503_v4 = vrot.slane %v491_v51, 4 }
  0x91   : > { %554 = vrot.lane.b32.xlu0 %v531_v52, %s6958_s12  ;;  %v545_v53 = vcombine.low %v531_v52, %v531_v52  ;;  %v330_v52 = vrot.slane %v292_v45, %v7071_v10 }
  0x92   : > { %v7211_v54 = vpop.permute.xlu1 %498  ;;  %v512_v21 = vsel %vm511_vm2, %v502_v48, %v503_v4  ;;  %v514_v27 = vsel %vm511_vm2, %v503_v4, %v504_v16  ;;  %v381_v48 = vcombine.high %v367_v29, %v367_v29 }
  0x93   : > { %v7213_v55 = vpop.permute.xlu0 %496  ;;  %552 = vrot.lane.b32.xlu1 %v545_v53, %s6958_s12  ;;  %v513_v30 = vsel %vm10549_vm0, %v512_v21, %v491_v51  ;;  %v515_v44 = vsel %vm10549_vm0, %v514_v27, %v7204_v46  ;;  %v354_v51 = vcombine.low %v322_v36, %v326_v39  ;;  %v516_v53 = vsel %vm511_vm2, %v504_v16, %v505_v43 }
  0x94   : > { %v532_v41 = vmul.f32 %v7181_v37, %v513_v30  ;;  %398 = vst [vmem:[#allocation2 + $0x28] sm:$0xf] %v381_v48  ;;  %v533_v3 = vmul.f32 %v7187_v38, %v515_v44  ;;  %v355_v16 = vcombine.low %v330_v52, %v334_v2  ;;  %v517_v19 = vsel %vm10549_vm0, %v516_v53, %v7207_v50  ;;  %v7330_v2 = vld [vmem:[%s7171_s6 + $0x28] sm:$0xff] }
  0x95   : > { %v507_v21 = vrot.slane %v7211_v54, 4  ;;  %v338_v30 = vrot.slane %v292_v45, %v7079_v14  ;;  %v342_v36 = vrot.slane %v292_v45, %v7081_v15  ;;  %v357_v39 = vcombine.low %v346_v17, %v350_v18 }
  0x96   : > { %v7216_v56 = vpop.permute.xlu1 %703  ;;  %v546_v4 = vcombine.low %v532_v41, %v532_v41  ;;  %v369_v29 = vmul.f32 %v355_v16, %v283_v7  ;;  %v547_v50 = vcombine.low %v533_v3, %v533_v3 }
  0x97   : > { %v7218_v57 = vpop.permute.xlu0 %500  ;;  %v717_v58 = vrot.slane %v7216_v56, 4 }
  0x98   : > { %401 = vst [vmem:[#allocation2 + $0x40] sm:$0xf] %v369_v29  ;;  %v383_v44 = vcombine.high %v369_v29, %v369_v29 }
  0x99   : > { %v725_v59 = vsel %vm724_vm1, %v717_v58, %v7216_v56 }
  0x9a   : > { %v7225_v60 = vpop.permute.xlu1 %707  ;;  %v745_v62 = vmul.f32 %v7174_v35, %v725_v59  ;;  %v506_v59 = vrot.slane %v7213_v55, 4  ;;  %402 = vst [vmem:[#allocation2 + $0x48] sm:$0xf] %v383_v44 }
  0x9b   : > { %v7227_v61 = vpop.permute.xlu0 %705 }
  0x9c   : > { %766 = vrot.lane.b32.xlu0 %v745_v62, %s6959_s13  ;;  %v759_v63 = vcombine.high %v745_v62, %v745_v62  ;;  %v518_v24 = vsel %vm511_vm2, %v505_v43, %v506_v59  ;;  %v4619_v43 = vld [vmem:[%s7171_s6 + $0x28] sm:$0xff]  ;;  %v718_v16 = vrot.slane %v7227_v61, 4 }
  0x9d   : > { %v519_v40 = vsel %vm10549_vm0, %v518_v24, %v7213_v55  ;;  %v7343_v24 = vld [vmem:[%s7171_s6 + $0x30] sm:$0xff] }
  0x9e   : > { %v7231_v0 = vpop.permute.xlu1 %711  ;;  %768 = vrot.lane.b32.xlu1 %v759_v63, %s6959_s13  ;;  %v368_v63 = vmul.f32 %v354_v51, %v282_v49  ;;  %v356_v51 = vcombine.low %v338_v30, %v342_v36 }
  0x9f   : > { %v7233_v1 = vpop.permute.xlu0 %709 }
  0xa0   : > { %399 = vst [vmem:[#allocation2 + $0x30] sm:$0xf] %v368_v63  ;;  %v382_v28 = vcombine.high %v368_v63, %v368_v63  ;;  %v535_v63 = vmul.f32 %v519_v40, %v7316_v42 }
  0xa2   : > { %v7240_v5 = vpop.permute.xlu1 %715  ;;  %400 = vst [vmem:[#allocation2 + $0x38] sm:$0xf] %v382_v28  ;;  %v549_v18 = vcombine.low %v535_v63, %v535_v63 }
  0xa3   : > { %v7242_v6 = vpop.permute.xlu0 %713 }
  0xa6   : > { %v7251_v22 = vpop.permute.xlu1 %918 }
  0xa7   : > { %v7253_v23 = vpop.permute.xlu0 %916 }
  0xa8   : > { %v930_v25 = vrot.slane %v7253_v23, 4 }
  0xaa   : > { %v938_v31 = vsel %vm937_vm3, %v930_v25, %v7253_v23  ;;  %v7266_v34 = vpop.permute.xlu1 %922 }
  0xab   : > { %v958_v32 = vmul.f32 %v7174_v35, %v938_v31  ;;  %v7264_v33 = vpop.permute.xlu0 %920  ;;  %v534_v31 = vmul.f32 %v517_v19, %v7301_v20 }
  0xad   : > { %981 = vrot.lane.b32.xlu0 %v958_v32, %s6960_s22  ;;  %v972_v47 = vcombine.low %v958_v32, %v958_v32  ;;  %v4620_v32 = vld [vmem:[%s7171_s6 + $0x30] sm:$0xff]  ;;  %v548_v53 = vcombine.low %v534_v31, %v534_v31 }
  0xae   : > { %v7290_v62 = vpop.permute.xlu1 %926  ;;  %v371_v52 = vmul.f32 %v4620_v32, %v357_v39  ;;  %v721_v32 = vrot.slane %v7231_v0, 4 }
  0xaf   : > { %979 = vrot.lane.b32.xlu1 %v972_v47, %s6960_s22  ;;  %v7288_v46 = vpop.permute.xlu0 %924  ;;  %v508_v47 = vrot.slane %v7218_v57, 4 }
  0xb0   : > { %405 = vst [vmem:[#allocation2 + $0x60] sm:$0xf] %v371_v52 }
  0xb1   : > { %558 = vrot.lane.b32.xlu0 %v532_v41, %s6958_s12  ;;  %v520_v41 = vsel %vm511_vm2, %v506_v59, %v507_v21  ;;  %v370_v59 = vmul.f32 %v4619_v43, %v356_v51  ;;  %v522_v7 = vsel %vm511_vm2, %v507_v21, %v508_v47  ;;  %v719_v21 = vrot.slane %v7225_v60, 4 }
  0xb2   : > { %v1071_v27 = vpop.permute.xlu1 %1070  ;;  %v722_v43 = vrot.slane %v7242_v6, 4 }
  0xb3   : > { %556 = vrot.lane.b32.xlu1 %v546_v4, %s6958_s12  ;;  %v7306_v26 = vpop.permute.xlu0 %928  ;;  %v385_v4 = vcombine.high %v371_v52, %v371_v52  ;;  %v384_v17 = vcombine.high %v370_v59, %v370_v59  ;;  %403 = vst [vmem:[#allocation2 + $0x50] sm:$0xf] %v370_v59  ;;  %v931_v52 = vrot.slane %v7251_v22, 4 }
  0xb4   : > { %v734_v51 = vsel %vm511_vm2, %v721_v32, %v722_v43 }
  0xb5   : > { %562 = vrot.lane.b32.xlu0 %v533_v3, %s6958_s12  ;;  %v521_v3 = vsel %vm10549_vm0, %v520_v41, %v7211_v54  ;;  %407 = vst.msk [vmem:[#allocation2 + $0x68] sm:$0xf] %vm10585_vm5, %v385_v4  ;;  %404 = vst [vmem:[#allocation2 + $0x58] sm:$0xf] %v384_v17  ;;  %v523_v54 = vsel %vm10549_vm0, %v522_v7, %v7218_v57  ;;  %v720_v57 = vrot.slane %v7233_v1, 4  ;;  %vm5438_vm0 = vcmask 474112  }
  0xb6   : > { %v7322_v48 = vpop.permute.xlu1 %1074  ;;  %v536_v19 = vmul.f32 %v521_v3, %v7330_v2  ;;  %v537_v29 = vmul.f32 %v523_v54, %v7343_v24  ;;  %v932_v3 = vrot.slane %v7264_v33, 4 }
  0xb7   : > { %560 = vrot.lane.b32.xlu1 %v547_v50, %s6958_s12  ;;  %v1073_v49 = vpop.permute.xlu0 %1072  ;;  %v728_v50 = vsel %vm511_vm2, %v718_v16, %v719_v21  ;;  %v730_v36 = vsel %vm511_vm2, %v719_v21, %v720_v57 }
  0xb8   : > { %v1099_v45 = vsel %vm1098_vm4, %v1071_v27, %v1073_v49  ;;  %v1100_v55 = vsel %vm1098_vm4, %v1073_v49, %v7322_v48  ;;  %v726_v27 = vsel %vm511_vm2, %v717_v58, %v718_v16  ;;  %v550_v28 = vcombine.low %v536_v19, %v536_v19 }
  0xb9   : > { %566 = vrot.lane.b32.xlu0 %v534_v31, %s6958_s12  ;;  %1126 = vst [vmem:[#allocation2 + $0xe0] sm:$0xf] %v1099_v45  ;;  %1127 = vst [vmem:[#allocation2 + $0xe8] sm:$0xf] %v1100_v55  ;;  %v727_v30 = vsel %vm724_vm1, %v726_v27, %v7227_v61  ;;  %v551_v56 = vcombine.low %v537_v29, %v537_v29  ;;  %v729_v31 = vsel %vm724_vm1, %v728_v50, %v7225_v60 }
  0xba   : > { %v746_v58 = vmul.f32 %v7181_v37, %v727_v30  ;;  %v747_v39 = vmul.f32 %v7187_v38, %v729_v31  ;;  %v731_v40 = vsel %vm724_vm1, %v730_v36, %v7233_v1  ;;  %v732_v60 = vsel %vm511_vm2, %v720_v57, %v721_v32 }
  0xbb   : > { %564 = vrot.lane.b32.xlu1 %v548_v53, %s6958_s12  ;;  %v748_v47 = vmul.f32 %v731_v40, %v7301_v20  ;;  %v733_v41 = vsel %vm724_vm1, %v732_v60, %v7231_v0  ;;  %v723_v49 = vrot.slane %v7240_v5, 4  ;;  %v735_v55 = vsel %vm724_vm1, %v734_v51, %v7242_v6  ;;  %v6526_v60 = vld [vmem:[%s10528_s2 + $0x5] ss:$8 sm:$0xf] }
  0xbc   : > { %v760_v61 = vcombine.high %v746_v58, %v746_v58  ;;  %v761_v44 = vcombine.high %v747_v39, %v747_v39  ;;  %v749_v45 = vmul.f32 %v733_v41, %v7316_v42  ;;  %v939_v6 = vsel %vm511_vm2, %v930_v25, %v931_v52  ;;  %v7456_v41 = vpop.permute.xlu1 %1078 }
  0xbd   : > { %570 = vrot.lane.b32.xlu0 %v535_v63, %s6958_s12  ;;  %v762_v1 = vcombine.high %v748_v47, %v748_v47  ;;  %v736_v0 = vsel %vm511_vm2, %v722_v43, %v723_v49  ;;  %v750_v63 = vmul.f32 %v735_v55, %v7330_v2  ;;  %v940_v16 = vsel %vm937_vm3, %v939_v6, %v7251_v22  ;;  %v6528_v55 = vld [vmem:[%s10528_s2 + $0x45] ss:$8 sm:$0xf] }
  0xbe   : > { %v763_v53 = vcombine.high %v749_v45, %v749_v45  ;;  %v737_v59 = vsel %vm724_vm1, %v736_v0, %v7240_v5  ;;  %v941_v17 = vsel %vm511_vm2, %v931_v52, %v932_v3  ;;  %v933_v5 = vrot.slane %v7266_v34, 4  ;;  %v6529_v52 = vld [vmem:[%s10528_s2 + $0x45] ss:$8 sm:$0x30] }
  0xbf   : > { %568 = vrot.lane.b32.xlu1 %v549_v18, %s6958_s12  ;;  %v764_v4 = vcombine.high %v750_v63, %v750_v63  ;;  %v751_v7 = vmul.f32 %v737_v59, %v7343_v24  ;;  %v959_v23 = vmul.f32 %v7181_v37, %v940_v16  ;;  %v942_v25 = vsel %vm937_vm3, %v941_v17, %v7264_v33 }
  0xc0   : > { %v934_v22 = vrot.slane %v7288_v46, 4  ;;  %v960_v21 = vmul.f32 %v7187_v38, %v942_v25  ;;  %v935_v33 = vrot.slane %v7290_v62, 4  ;;  %v1067_v51 = vcombine.high %v7316_v42, %v7316_v42 }
  0xc1   : > { %574 = vrot.lane.b32.xlu0 %v536_v19, %s6958_s12  ;;  %v765_v18 = vcombine.high %v751_v7, %v751_v7  ;;  %v943_v19 = vsel %vm511_vm2, %v932_v3, %v933_v5  ;;  %v973_v54 = vcombine.low %v959_v23, %v959_v23  ;;  %v1069_v16 = vcombine.high %v7343_v24, %v7343_v24 }
  0xc2   : > { %v944_v27 = vsel %vm937_vm3, %v943_v19, %v7266_v34  ;;  %v947_v50 = vsel %vm511_vm2, %v934_v22, %v935_v33  ;;  %v936_v34 = vrot.slane %v7306_v26, 4  ;;  %vm1880_vm1 = vcmask 211968  }
  0xc3   : > { %572 = vrot.lane.b32.xlu1 %v550_v28, %s6958_s12  ;;  %v945_v28 = vsel %vm511_vm2, %v933_v5, %v934_v22  ;;  %v961_v30 = vmul.f32 %v944_v27, %v7301_v20  ;;  %v948_v31 = vsel %vm937_vm3, %v947_v50, %v7290_v62  ;;  %v1064_v62 = vcombine.high %v7181_v37, %v7181_v37 }
  0xc4   : > { %v946_v57 = vsel %vm937_vm3, %v945_v28, %v7288_v46  ;;  %v949_v32 = vsel %vm511_vm2, %v935_v33, %v936_v34  ;;  %v963_v36 = vmul.f32 %v948_v31, %v7330_v2 }
  0xc5   : > { %578 = vrot.lane.b32.xlu0 %v537_v29, %s6958_s12  ;;  %v974_v29 = vcombine.low %v960_v21, %v960_v21 }
  0xc7   : > { %576 = vrot.lane.b32.xlu1 %v551_v56, %s6958_s12  ;;  %v975_v56 = vcombine.low %v961_v30, %v961_v30  ;;  %s6989_s12 = smov 56  }
  0xc9   : > { %770 = vrot.lane.b32.xlu0 %v746_v58, %s6959_s13  ;;  %v962_v58 = vmul.f32 %v946_v57, %v7316_v42 }
  0xcb   : > { %772 = vrot.lane.b32.xlu1 %v760_v61, %s6959_s13  ;;  %v976_v46 = vcombine.low %v962_v58, %v962_v58  ;;  %v950_v61 = vsel %vm937_vm3, %v949_v32, %v7306_v26  ;;  %v1065_v26 = vcombine.high %v7187_v38, %v7187_v38  ;;  %vm1950_vm3 = vcmask 834560  }
  0xcc   : > { %v964_v40 = vmul.f32 %v950_v61, %v7343_v24 }
  0xcd   : > { %774 = vrot.lane.b32.xlu0 %v747_v39, %s6959_s13  ;;  %v977_v39 = vcombine.low %v963_v36, %v963_v36 }
  0xce   : > { %v978_v43 = vcombine.low %v964_v40, %v964_v40 }
  0xcf   : > { %776 = vrot.lane.b32.xlu1 %v761_v44, %s6959_s13  ;;  %v6527_v44 = vld [vmem:[%s10528_s2 + $0x5] ss:$8 sm:$0xf0] }
  0xd0   : > { %v1150_v49 = vor.u32 %v6527_v44, %v6526_v60 }
  0xd1   : > { %778 = vrot.lane.b32.xlu0 %v748_v47, %s6959_s13  ;;  %v1066_v47 = vcombine.high %v7301_v20, %v7301_v20 }
  0xd2   : > { %v1176_v6 = vrot.slane %v1150_v49, %v7067_v8  ;;  %v1168_v17 = vrot.slane %v1150_v49, %v7079_v14  ;;  %v1172_v5 = vrot.slane %v1150_v49, %v7081_v15  ;;  %v1184_v22 = vrot.slane %v1150_v49, %v7075_v12 }
  0xd3   : > { %780 = vrot.lane.b32.xlu1 %v762_v1, %s6959_s13  ;;  %v1160_v1 = vrot.slane %v1150_v49, %v7071_v10 }
  0xd4   : > { %v1214_v19 = vcombine.low %v1168_v17, %v1172_v5 }
  0xd5   : > { %782 = vrot.lane.b32.xlu0 %v749_v45, %s6959_s13  ;;  %v1164_v45 = vrot.slane %v1150_v49, %v7073_v11 }
  0xd7   : > { %784 = vrot.lane.b32.xlu1 %v763_v53, %s6959_s13  ;;  %v1068_v53 = vcombine.high %v7330_v2, %v7330_v2  ;;  %v1213_v3 = vcombine.low %v1160_v1, %v1164_v45 }
  0xd9   : > { %786 = vrot.lane.b32.xlu0 %v750_v63, %s6959_s13 }
  0xdb   : > { %788 = vrot.lane.b32.xlu1 %v764_v4, %s6959_s13  ;;  %v1180_v4 = vrot.slane %v1150_v49, %v7069_v9 }
  0xdd   : > { %790 = vrot.lane.b32.xlu0 %v751_v7, %s6959_s13  ;;  %v1154_v7 = vor.u32 %v6529_v52, %v6528_v55 }
  0xdf   : > { %792 = vrot.lane.b32.xlu1 %v765_v18, %s6959_s13  ;;  %v1215_v18 = vcombine.low %v1176_v6, %v1180_v4  ;;  %v1196_v25 = vrot.slane %v1154_v7, %v7073_v11  ;;  %v1208_v28 = vrot.slane %v1154_v7, %v7067_v8  ;;  %v1212_v33 = vrot.slane %v1154_v7, %v7069_v9  ;;  %s6979_s13 = smov 98  }
  0xe0   : > { %v1200_v57 = vrot.slane %v1154_v7, %v7079_v14  ;;  %v1204_v50 = vrot.slane %v1154_v7, %v7081_v15 }
  0xe1   : > { %985 = vrot.lane.b32.xlu0 %v959_v23, %s6960_s22  ;;  %v1192_v23 = vrot.slane %v1154_v7, %v7071_v10 }
  0xe3   : > { %983 = vrot.lane.b32.xlu1 %v973_v54, %s6960_s22  ;;  %v1188_v54 = vrot.slane %v1150_v49, %v7077_v13  ;;  %v1217_v27 = vcombine.low %v1192_v23, %v1196_v25 }
  0xe5   : > { %989 = vrot.lane.b32.xlu0 %v960_v21, %s6960_s22 }
  0xe7   : > { %987 = vrot.lane.b32.xlu1 %v974_v29, %s6960_s22  ;;  %v1216_v29 = vcombine.low %v1184_v22, %v1188_v54 }
  0xe9   : > { %993 = vrot.lane.b32.xlu0 %v961_v30, %s6960_s22 }
  0xeb   : > { %991 = vrot.lane.b32.xlu1 %v975_v56, %s6960_s22  ;;  %v1219_v56 = vcombine.low %v1208_v28, %v1212_v33 }
  0xed   : > { %997 = vrot.lane.b32.xlu0 %v962_v58, %s6960_s22  ;;  %v1218_v58 = vcombine.low %v1200_v57, %v1204_v50 }
  0xef   : > { %995 = vrot.lane.b32.xlu1 %v976_v46, %s6960_s22 }
  0xf1   : > { %1001 = vrot.lane.b32.xlu0 %v963_v36, %s6960_s22 }
  0xf3   : > { %999 = vrot.lane.b32.xlu1 %v977_v39, %s6960_s22 }
  0xf5   : > { %1005 = vrot.lane.b32.xlu0 %v964_v40, %s6960_s22 }
  0xf7   : > { %1003 = vrot.lane.b32.xlu1 %v978_v43, %s6960_s22  ;;  %s6964_s22 = smov 104  }
  0xf9   : > { %1076 = vrot.lane.b32.xlu0 %v1064_v62, %s6957_s7 }
  0xfb   : > { %1082 = vrot.lane.b32.xlu1 %v7301_v20, %s6957_s7 }
  0xfd   : > { %1080 = vrot.lane.b32.xlu0 %v1065_v26, %s6957_s7 }
  0xff   : > { %1086 = vrot.lane.b32.xlu1 %v7316_v42, %s6957_s7 }
 0x101   : > { %1084 = vrot.lane.b32.xlu0 %v1066_v47, %s6957_s7 }
 0x103   : > { %1090 = vrot.lane.b32.xlu1 %v7330_v2, %s6957_s7  ;;  %v555_v0 = vpop.permute.xlu0 %554 }
 0x105   : > { %1088 = vrot.lane.b32.xlu0 %v1067_v51, %s6957_s7  ;;  %v553_v63 = vpop.permute.xlu1 %552 }
 0x106   : > { %v581_v59 = vsel %vm580_vm6, %v553_v63, %v555_v0 }
 0x107   : > { %608 = vst [vmem:[#allocation2] sm:$0xf0] %v581_v59  ;;  %1094 = vrot.lane.b32.xlu1 %v7343_v24, %s6957_s7 }
 0x109   : > { %1092 = vrot.lane.b32.xlu0 %v1068_v53, %s6957_s7 }
 0x10b   : > { %1220 = vrot.lane.b32.xlu1 %v1213_v3, %s6961_s8 }
 0x10d   : > { %1096 = vrot.lane.b32.xlu0 %v1069_v16, %s6957_s7  ;;  %s6962_s7 = smov 114  }
 0x10e   : > { %v767_v21 = vpop.permute.xlu0 %766 }
 0x10f   : > { %1224 = vrot.lane.b32.xlu1 %v1215_v18, %s6961_s8 }
 0x110   : > { %v769_v30 = vpop.permute.xlu1 %768 }
 0x111   : > { %1222 = vrot.lane.b32.xlu0 %v1214_v19, %s6961_s8  ;;  %v795_v34 = vsel %vm794_vm7, %v767_v21, %v769_v30 }
 0x112   : > { %822 = vst [vmem:[#allocation2 + $0x70] sm:$0xf] %v795_v34 }
 0x113   : > { %1228 = vrot.lane.b32.xlu1 %v1217_v27, %s6961_s8 }
 0x115   : > { %1226 = vrot.lane.b32.xlu0 %v1216_v29, %s6961_s8 }
 0x117   : > { %1232 = vrot.lane.b32.xlu1 %v1219_v56, %s6961_s8 }
 0x119   : > { %1230 = vrot.lane.b32.xlu0 %v1218_v58, %s6961_s8  ;;  %s6965_s8 = smov 25  }
 0x11f   : > { %v7494_v31 = vpop.permute.xlu0 %981 }
 0x121   : > { %v980_v32 = vpop.permute.xlu1 %979 }
 0x122   : > { %v1008_v46 = vsel %vm1007_vm8, %v980_v32, %v7494_v31 }
 0x123   : > { %1035 = vst [vmem:[#allocation2 + $0x70] sm:$0xf0] %v1008_v46  ;;  %v559_v36 = vpop.permute.xlu0 %558 }
 0x125   : > { %v557_v61 = vpop.permute.xlu1 %556 }
 0x126   : > { %v582_v39 = vsel %vm580_vm6, %v555_v0, %v557_v61  ;;  %v583_v40 = vsel %vm580_vm6, %v557_v61, %v559_v36 }
 0x127   : > { %609 = vst [vmem:[#allocation2 + $0x8] sm:$0xf0] %v582_v39  ;;  %610 = vst [vmem:[#allocation2 + $0x10] sm:$0xf0] %v583_v40  ;;  %v563_v62 = vpop.permute.xlu0 %562 }
 0x129   : > { %v561_v43 = vpop.permute.xlu1 %560 }
 0x12a   : > { %v584_v26 = vsel %vm580_vm6, %v559_v36, %v561_v43  ;;  %v585_v60 = vsel %vm580_vm6, %v561_v43, %v563_v62 }
 0x12b   : > { %611 = vst [vmem:[#allocation2 + $0x18] sm:$0xf0] %v584_v26  ;;  %612 = vst [vmem:[#allocation2 + $0x20] sm:$0xf0] %v585_v60  ;;  %v567_v44 = vpop.permute.xlu0 %566 }
 0x12d   : > { %v565_v47 = vpop.permute.xlu1 %564 }
 0x12e   : > { %v586_v49 = vsel %vm580_vm6, %v563_v62, %v565_v47  ;;  %v587_v51 = vsel %vm580_vm6, %v565_v47, %v567_v44 }
 0x12f   : > { %613 = vst [vmem:[#allocation2 + $0x28] sm:$0xf0] %v586_v49  ;;  %614 = vst [vmem:[#allocation2 + $0x30] sm:$0xf0] %v587_v51  ;;  %v571_v1 = vpop.permute.xlu0 %570 }
 0x131   : > { %v569_v45 = vpop.permute.xlu1 %568 }
 0x132   : > { %v588_v55 = vsel %vm580_vm6, %v567_v44, %v569_v45  ;;  %v589_v52 = vsel %vm580_vm6, %v569_v45, %v571_v1 }
 0x133   : > { %615 = vst [vmem:[#allocation2 + $0x38] sm:$0xf0] %v588_v55  ;;  %616 = vst [vmem:[#allocation2 + $0x40] sm:$0xf0] %v589_v52  ;;  %v575_v0 = vpop.permute.xlu0 %574 }
 0x135   : > { %v573_v53 = vpop.permute.xlu1 %572 }
 0x136   : > { %v590_v63 = vsel %vm580_vm6, %v571_v1, %v573_v53  ;;  %v591_v59 = vsel %vm580_vm6, %v573_v53, %v575_v0  ;;  %v5565_v1 = vld [vmem:[#allocation2 + $0x70] sm:$0xff] }
 0x137   : > { %617 = vst [vmem:[#allocation2 + $0x48] sm:$0xf0] %v590_v63  ;;  %618 = vst [vmem:[#allocation2 + $0x50] sm:$0xf0] %v591_v59  ;;  %v579_v3 = vpop.permute.xlu0 %578  ;;  %v5551_v63 = vld [vmem:[#allocation2] sm:$0xff] }
 0x138   : > { %622 = vst.msk [vmem:[#allocation2 + $0x68] sm:$0xf0] %vm10573_vm9, %v579_v3  ;;  %v6628_v59 = vpack.c.bf16 %v5565_v1, %v5551_v63 }
 0x139   : > { %v577_v6 = vpop.permute.xlu1 %576 }
 0x13a   : > { %v592_v4 = vsel %vm580_vm6, %v575_v0, %v577_v6  ;;  %v593_v7 = vsel %vm580_vm6, %v577_v6, %v579_v3  ;;  %vm2161_vm6 = vcmask 916480  }
 0x13b   : > { %619 = vst [vmem:[#allocation2 + $0x58] sm:$0xf0] %v592_v4  ;;  %620 = vst [vmem:[#allocation2 + $0x60] sm:$0xf0] %v593_v7  ;;  %v771_v16 = vpop.permute.xlu0 %770 }
 0x13c   : > { %v796_v17 = vsel %vm794_vm7, %v769_v30, %v771_v16 }
 0x13d   : > { %823 = vst [vmem:[#allocation2 + $0x78] sm:$0xf] %v796_v17  ;;  %v773_v5 = vpop.permute.xlu1 %772 }
 0x13e   : > { %v797_v18 = vsel %vm794_vm7, %v771_v16, %v773_v5  ;;  %v5554_v16 = vld [vmem:[#allocation2 + $0x18] sm:$0xff] }
 0x13f   : > { %824 = vst [vmem:[#allocation2 + $0x80] sm:$0xf] %v797_v18  ;;  %v775_v23 = vpop.permute.xlu0 %774 }
 0x140   : > { %v798_v25 = vsel %vm794_vm7, %v773_v5, %v775_v23 }
 0x141   : > { %825 = vst [vmem:[#allocation2 + $0x88] sm:$0xf] %v798_v25  ;;  %v777_v19 = vpop.permute.xlu1 %776 }
 0x142   : > { %v799_v22 = vsel %vm794_vm7, %v775_v23, %v777_v19  ;;  %v5553_v23 = vld [vmem:[#allocation2 + $0x10] sm:$0xff] }
 0x143   : > { %826 = vst [vmem:[#allocation2 + $0x90] sm:$0xf] %v799_v22  ;;  %v779_v54 = vpop.permute.xlu0 %778 }
 0x144   : > { %v800_v21 = vsel %vm794_vm7, %v777_v19, %v779_v54 }
 0x145   : > { %827 = vst [vmem:[#allocation2 + $0x98] sm:$0xf] %v800_v21  ;;  %v781_v27 = vpop.permute.xlu1 %780 }
 0x146   : > { %v801_v28 = vsel %vm794_vm7, %v779_v54, %v781_v27 }
 0x147   : > { %828 = vst [vmem:[#allocation2 + $0xa0] sm:$0xf] %v801_v28  ;;  %v783_v33 = vpop.permute.xlu0 %782 }
 0x148   : > { %v802_v29 = vsel %vm794_vm7, %v781_v27, %v783_v33 }
 0x149   : > { %829 = vst [vmem:[#allocation2 + $0xa8] sm:$0xf] %v802_v29  ;;  %v785_v30 = vpop.permute.xlu1 %784 }
 0x14a   : > { %v803_v57 = vsel %vm794_vm7, %v783_v33, %v785_v30 }
 0x14b   : > { %830 = vst [vmem:[#allocation2 + $0xb0] sm:$0xf] %v803_v57  ;;  %v787_v50 = vpop.permute.xlu0 %786 }
 0x14c   : > { %v804_v34 = vsel %vm794_vm7, %v785_v30, %v787_v50 }
 0x14d   : > { %831 = vst [vmem:[#allocation2 + $0xb8] sm:$0xf] %v804_v34  ;;  %v789_v56 = vpop.permute.xlu1 %788 }
 0x14e   : > { %v805_v58 = vsel %vm794_vm7, %v787_v50, %v789_v56 }
 0x14f   : > { %832 = vst [vmem:[#allocation2 + $0xc0] sm:$0xf] %v805_v58  ;;  %v791_v32 = vpop.permute.xlu0 %790 }
 0x150   : > { %v806_v46 = vsel %vm794_vm7, %v789_v56, %v791_v32 }
 0x151   : > { %833 = vst [vmem:[#allocation2 + $0xc8] sm:$0xf] %v806_v46  ;;  %v793_v36 = vpop.permute.xlu1 %792 }
 0x152   : > { %v807_v61 = vsel %vm794_vm7, %v791_v32, %v793_v36  ;;  %835 = vst.msk [vmem:[#allocation2 + $0xd8] sm:$0xf] %vm10585_vm5, %v793_v36  ;;  %vm2302_vm7 = vcmask 138240  }
 0x153   : > { %834 = vst [vmem:[#allocation2 + $0xd0] sm:$0xf] %v807_v61  ;;  %v986_v39 = vpop.permute.xlu0 %985 }
 0x155   : > { %v984_v40 = vpop.permute.xlu1 %983 }
 0x156   : > { %v1009_v62 = vsel %vm1007_vm8, %v7494_v31, %v984_v40  ;;  %v1010_v43 = vsel %vm1007_vm8, %v984_v40, %v986_v39  ;;  %v5552_v31 = vld [vmem:[#allocation2 + $0x8] sm:$0xff] }
 0x157   : > { %1036 = vst [vmem:[#allocation2 + $0x78] sm:$0xf0] %v1009_v62  ;;  %1037 = vst [vmem:[#allocation2 + $0x80] sm:$0xf0] %v1010_v43  ;;  %v990_v26 = vpop.permute.xlu0 %989 }
 0x159   : > { %v988_v60 = vpop.permute.xlu1 %987 }
 0x15a   : > { %v1011_v44 = vsel %vm1007_vm8, %v986_v39, %v988_v60  ;;  %v1012_v47 = vsel %vm1007_vm8, %v988_v60, %v990_v26 }
 0x15b   : > { %1038 = vst [vmem:[#allocation2 + $0x88] sm:$0xf0] %v1011_v44  ;;  %1039 = vst [vmem:[#allocation2 + $0x90] sm:$0xf0] %v1012_v47  ;;  %v994_v49 = vpop.permute.xlu0 %993 }
 0x15d   : > { %v992_v51 = vpop.permute.xlu1 %991 }
 0x15e   : > { %v1013_v45 = vsel %vm1007_vm8, %v990_v26, %v992_v51  ;;  %v1014_v55 = vsel %vm1007_vm8, %v992_v51, %v994_v49  ;;  %v5566_v52 = vld [vmem:[#allocation2 + $0x78] sm:$0xff]  ;;  %v5567_v6 = vld [vmem:[#allocation2 + $0x80] sm:$0xff] }
 0x15f   : > { %1040 = vst [vmem:[#allocation2 + $0x98] sm:$0xf0] %v1013_v45  ;;  %1041 = vst [vmem:[#allocation2 + $0xa0] sm:$0xf0] %v1014_v55  ;;  %v998_v0 = vpop.permute.xlu0 %997  ;;  %v6626_v53 = vpack.c.bf16 %v5566_v52, %v5552_v31  ;;  %v6658_v25 = vpack.c.bf16 %v5567_v6, %v5553_v23 }
 0x161   : > { %v996_v3 = vpop.permute.xlu1 %995  ;;  %6627 = vmatprep.subr.bf16.mxu0 %v6626_v53 }
 0x162   : > { %v1015_v4 = vsel %vm1007_vm8, %v994_v49, %v996_v3  ;;  %v1016_v7 = vsel %vm1007_vm8, %v996_v3, %v998_v0  ;;  %6629 = vmatpush1.bf16.msra.mxu0 %v6628_v59  ;;  %v5568_v17 = vld [vmem:[#allocation2 + $0x88] sm:$0xff] }
 0x163   : > { %1042 = vst [vmem:[#allocation2 + $0xa8] sm:$0xf0] %v1015_v4  ;;  %1043 = vst [vmem:[#allocation2 + $0xb0] sm:$0xf0] %v1016_v7  ;;  %v1002_v5 = vpop.permute.xlu0 %1001  ;;  %v6656_v18 = vpack.c.bf16 %v5568_v17, %v5554_v16 }
 0x165   : > { %v1000_v19 = vpop.permute.xlu1 %999  ;;  %6657 = vmatprep.subr.bf16.mxu1 %v6656_v18 }
 0x166   : > { %v1017_v22 = vsel %vm1007_vm8, %v998_v0, %v1000_v19  ;;  %v1018_v54 = vsel %vm1007_vm8, %v1000_v19, %v1002_v5  ;;  %6659 = vmatpush1.bf16.msra.mxu1 %v6658_v25 }
 0x167   : > { %1044 = vst [vmem:[#allocation2 + $0xb8] sm:$0xf0] %v1017_v22  ;;  %1045 = vst [vmem:[#allocation2 + $0xc0] sm:$0xf0] %v1018_v54  ;;  %v1006_v21 = vpop.permute.xlu0 %1005 }
 0x168   : > { %1048 = vst.msk [vmem:[#allocation2 + $0xd8] sm:$0xf0] %vm10573_vm9, %v1006_v21 }
 0x169   : > { %v1004_v27 = vpop.permute.xlu1 %1003 }
 0x16a   : > { %v1019_v28 = vsel %vm1007_vm8, %v1002_v5, %v1004_v27  ;;  %v1020_v33 = vsel %vm1007_vm8, %v1004_v27, %v1006_v21  ;;  %vm2372_vm8 = vcmask 908288  }
 0x16b   : > { %1046 = vst [vmem:[#allocation2 + $0xc8] sm:$0xf0] %v1019_v28  ;;  %1047 = vst [vmem:[#allocation2 + $0xd0] sm:$0xf0] %v1020_v33  ;;  %v1077_v29 = vpop.permute.xlu0 %1076 }
 0x16c   : > { %v1101_v30 = vsel %vm1098_vm4, %v7322_v48, %v1077_v29  ;;  %v1102_v57 = vsel %vm1098_vm4, %v1077_v29, %v7456_v41 }
 0x16d   : > { %1128 = vst [vmem:[#allocation2 + $0xf0] sm:$0xf] %v1101_v30  ;;  %1129 = vst [vmem:[#allocation2 + $0xf8] sm:$0xf] %v1102_v57  ;;  %v1083_v50 = vpop.permute.xlu1 %1082 }
 0x16f   : > { %v1081_v34 = vpop.permute.xlu0 %1080 }
 0x170   : > { %v1103_v56 = vsel %vm1098_vm4, %v7456_v41, %v1081_v34  ;;  %v1104_v58 = vsel %vm1098_vm4, %v1081_v34, %v1083_v50 }
 0x171   : > { %1130 = vst [vmem:[#allocation2 + $0x100] sm:$0xf] %v1103_v56  ;;  %1131 = vst [vmem:[#allocation2 + $0x108] sm:$0xf] %v1104_v58  ;;  %v1087_v32 = vpop.permute.xlu1 %1086 }
 0x173   : > { %v1085_v46 = vpop.permute.xlu0 %1084 }
 0x174   : > { %v1105_v36 = vsel %vm1098_vm4, %v1083_v50, %v1085_v46  ;;  %v1106_v48 = vsel %vm1098_vm4, %v1085_v46, %v1087_v32  ;;  %v6530_v50 = vld [vmem:[%s10528_s2 + $0x6] ss:$8 sm:$0xf] }
 0x175   : > { %1132 = vst [vmem:[#allocation2 + $0x110] sm:$0xf] %v1105_v36  ;;  %1133 = vst [vmem:[#allocation2 + $0x118] sm:$0xf] %v1106_v48  ;;  %v1091_v61 = vpop.permute.xlu1 %1090 }
 0x177   : > { %v1089_v39 = vpop.permute.xlu0 %1088 }
 0x178   : > { %v1107_v40 = vsel %vm1098_vm4, %v1087_v32, %v1089_v39  ;;  %v1108_v62 = vsel %vm1098_vm4, %v1089_v39, %v1091_v61 }
 0x179   : > { %1134 = vst [vmem:[#allocation2 + $0x120] sm:$0xf] %v1107_v40  ;;  %1135 = vst [vmem:[#allocation2 + $0x128] sm:$0xf] %v1108_v62  ;;  %v1095_v41 = vpop.permute.xlu1 %1094 }
 0x17a   : > { %v6532_v40 = vld [vmem:[%s10528_s2 + $0x46] ss:$8 sm:$0xf] }
 0x17b   : > { %v1093_v43 = vpop.permute.xlu0 %1092  ;;  %v6533_v62 = vld [vmem:[%s10528_s2 + $0x46] ss:$8 sm:$0x30] }
 0x17c   : > { %v1109_v26 = vsel %vm1098_vm4, %v1091_v61, %v1093_v43  ;;  %v1110_v60 = vsel %vm1098_vm4, %v1093_v43, %v1095_v41 }
 0x17d   : > { %1136 = vst [vmem:[#allocation2 + $0x130] sm:$0xf] %v1109_v26  ;;  %1137 = vst [vmem:[#allocation2 + $0x138] sm:$0xf] %v1110_v60  ;;  %v1221_v44 = vpop.permute.xlu1 %1220 }
 0x17e   : > { %v1234_v47 = vrot.slane %v1221_v44, 4 }
 0x17f   : > { %v1097_v49 = vpop.permute.xlu0 %1096 }
 0x180   : > { %v1242_v51 = vsel %vm1241_vm10, %v1234_v47, %v1221_v44  ;;  %v1111_v1 = vsel %vm1098_vm4, %v1095_v41, %v1097_v49  ;;  %1139 = vst.msk [vmem:[#allocation2 + $0x148] sm:$0xf] %vm10585_vm5, %v1097_v49  ;;  %v1367_v49 = vor.u32 %v6533_v62, %v6532_v40  ;;  %vm2091_vm4 = vcmask 130048  }
 0x181   : > { %1138 = vst [vmem:[#allocation2 + $0x140] sm:$0xf] %v1111_v1  ;;  %v1225_v45 = vpop.permute.xlu1 %1224  ;;  %v1262_v55 = vmul.f32 %v1242_v51, %v7174_v35 }
 0x182   : > { %v1236_v31 = vrot.slane %v1225_v45, 4  ;;  %v1413_v1 = vrot.slane %v1367_v49, %v7079_v14 }
 0x183   : > { %v1223_v52 = vpop.permute.xlu0 %1222  ;;  %1285 = vrot.lane.b32.xlu1 %v1262_v55, %s6962_s7  ;;  %v1276_v0 = vcombine.low %v1262_v55, %v1262_v55 }
 0x184   : > { %v1235_v53 = vrot.slane %v1223_v52, 4 }
 0x185   : > { %1283 = vrot.lane.b32.xlu0 %v1276_v0, %s6962_s7  ;;  %v1229_v63 = vpop.permute.xlu1 %1228 }
 0x186   : > { %v1243_v59 = vsel %vm511_vm2, %v1234_v47, %v1235_v53  ;;  %v1245_v3 = vsel %vm511_vm2, %v1235_v53, %v1236_v31  ;;  %v1238_v17 = vrot.slane %v1229_v63, 4 }
 0x187   : > { %v1244_v6 = vsel %vm1241_vm10, %v1243_v59, %v1223_v52  ;;  %v1246_v4 = vsel %vm1241_vm10, %v1245_v3, %v1225_v45  ;;  %v1227_v7 = vpop.permute.xlu0 %1226  ;;  %v1417_v45 = vrot.slane %v1367_v49, %v7081_v15  ;;  %v1409_v52 = vrot.slane %v1367_v49, %v7073_v11 }
 0x188   : > { %v1237_v35 = vrot.slane %v1227_v7, 4  ;;  %v1263_v16 = vmul.f32 %v1244_v6, %v7181_v37  ;;  %v1264_v23 = vmul.f32 %v1246_v4, %v7187_v38  ;;  %v1425_v59 = vrot.slane %v1367_v49, %v7069_v9 }
 0x189   : > { %v1233_v21 = vpop.permute.xlu1 %1232  ;;  %v1431_v0 = vcombine.low %v1413_v1, %v1417_v45 }
 0x18a   : > { %v1247_v5 = vsel %vm511_vm2, %v1236_v31, %v1237_v35  ;;  %1289 = vrot.lane.b32.xlu1 %v1263_v16, %s6962_s7  ;;  %v1277_v18 = vcombine.low %v1263_v16, %v1263_v16  ;;  %v1249_v22 = vsel %vm511_vm2, %v1237_v35, %v1238_v17  ;;  %v1278_v37 = vcombine.low %v1264_v23, %v1264_v23 }
 0x18b   : > { %v1248_v25 = vsel %vm1241_vm10, %v1247_v5, %v1227_v7  ;;  %v1231_v19 = vpop.permute.xlu0 %1230  ;;  %v1250_v28 = vsel %vm1241_vm10, %v1249_v22, %v1229_v63  ;;  %v1240_v38 = vrot.slane %v1233_v21, 4  ;;  %v1405_v31 = vrot.slane %v1367_v49, %v7071_v10 }
 0x18c   : > { %1287 = vrot.lane.b32.xlu0 %v1277_v18, %s6962_s7  ;;  %v1239_v54 = vrot.slane %v1231_v19, 4  ;;  %v1265_v27 = vmul.f32 %v1248_v25, %v7301_v20  ;;  %v1266_v30 = vmul.f32 %v1250_v28, %v7316_v42  ;;  %v6531_v20 = vld [vmem:[%s10528_s2 + $0x6] ss:$8 sm:$0xf0]  ;;  %v1421_v63 = vrot.slane %v1367_v49, %v7067_v8 }
 0x18d   : > { %v1363_v42 = vor.u32 %v6531_v20, %v6530_v50  ;;  %v1430_v53 = vcombine.low %v1405_v31, %v1409_v52 }
 0x18e   : > { %1293 = vrot.lane.b32.xlu1 %v1264_v23, %s6962_s7  ;;  %v1251_v33 = vsel %vm511_vm2, %v1238_v17, %v1239_v54  ;;  %v1279_v29 = vcombine.low %v1265_v27, %v1265_v27  ;;  %v1253_v34 = vsel %vm511_vm2, %v1239_v54, %v1240_v38  ;;  %v1280_v56 = vcombine.low %v1266_v30, %v1266_v30 }
 0x18f   : > { %v1252_v57 = vsel %vm1241_vm10, %v1251_v33, %v1231_v19  ;;  %v1254_v32 = vsel %vm1241_vm10, %v1253_v34, %v1233_v21  ;;  %v1381_v48 = vrot.slane %v1363_v42, %v7079_v14  ;;  %v1385_v61 = vrot.slane %v1363_v42, %v7081_v15 }
 0x190   : > { %1291 = vrot.lane.b32.xlu0 %v1278_v37, %s6962_s7  ;;  %v1267_v58 = vmul.f32 %v1252_v57, %v7330_v2  ;;  %v1268_v36 = vmul.f32 %v1254_v32, %v7343_v24  ;;  %v1373_v39 = vrot.slane %v1363_v42, %v7071_v10  ;;  %v1377_v2 = vrot.slane %v1363_v42, %v7073_v11 }
 0x191   : > { %v1427_v41 = vcombine.low %v1381_v48, %v1385_v61  ;;  %v1397_v43 = vrot.slane %v1363_v42, %v7075_v12  ;;  %v1401_v26 = vrot.slane %v1363_v42, %v7077_v13  ;;  %v1389_v44 = vrot.slane %v1363_v42, %v7067_v8 }
 0x192   : > { %1297 = vrot.lane.b32.xlu1 %v1265_v27, %s6962_s7  ;;  %v1281_v46 = vcombine.low %v1267_v58, %v1267_v58  ;;  %v1282_v24 = vcombine.low %v1268_v36, %v1268_v36  ;;  %v1426_v60 = vcombine.low %v1373_v39, %v1377_v2  ;;  %v1393_v47 = vrot.slane %v1363_v42, %v7069_v9  ;;  %v7632_v2 = vld [vmem:[%s7171_s6 + $0x8] sm:$0xff] }
 0x193   : > { %v1429_v51 = vcombine.low %v1397_v43, %v1401_v26  ;;  %v1432_v3 = vcombine.low %v1421_v63, %v1425_v59  ;;  %vm2513_vm10 = vcmask 146432  }
 0x194   : > { %1295 = vrot.lane.b32.xlu0 %v1279_v29, %s6962_s7  ;;  %v1428_v55 = vcombine.low %v1389_v44, %v1393_v47  ;;  %v7640_v47 = vld [vmem:[%s7171_s6 + $0x10] sm:$0xff] }
 0x196   : > { %1301 = vrot.lane.b32.xlu1 %v1266_v30, %s6962_s7 }
 0x198   : > { %1299 = vrot.lane.b32.xlu0 %v1280_v56, %s6962_s7 }
 0x19a   : > { %1305 = vrot.lane.b32.xlu1 %v1267_v58, %s6962_s7 }
 0x19c   : > { %1303 = vrot.lane.b32.xlu0 %v1281_v46, %s6962_s7 }
 0x19e   : > { %1309 = vrot.lane.b32.xlu1 %v1268_v36, %s6962_s7  ;;  %v7628_v36 = vld [vmem:[%s7171_s6] sm:$0xff] }
 0x1a0   : > { %1307 = vrot.lane.b32.xlu0 %v1282_v24, %s6962_s7  ;;  %s6966_s7 = smov 103  }
 0x1a2   : > { %1435 = vrot.lane.b32.xlu1 %v1427_v41, %s6963_s17 }
 0x1a4   : > { %1433 = vrot.lane.b32.xlu0 %v1426_v60, %s6963_s17 }
 0x1a6   : > { %1439 = vrot.lane.b32.xlu1 %v1429_v51, %s6963_s17 }
 0x1a8   : > { %1437 = vrot.lane.b32.xlu0 %v1428_v55, %s6963_s17 }
 0x1aa   : > { %1443 = vrot.lane.b32.xlu1 %v1431_v0, %s6963_s17 }
 0x1ac   : > { %1441 = vrot.lane.b32.xlu0 %v1430_v53, %s6963_s17  ;;  %v7649_v53 = vld [vmem:[%s7171_s6 + $0x18] sm:$0xff] }
 0x1b0   : > { %1445 = vrot.lane.b32.xlu0 %v1432_v3, %s6963_s17  ;;  %s6967_s17 = smov 26  }
 0x1f5   : > { %v1286_v6 = vpop.permute.xlu1 %1285 }
 0x1f7   : > { %v1284_v4 = vpop.permute.xlu0 %1283 }
 0x1f8   : > { %v1312_v7 = vsel %vm1311_vm11, %v1284_v4, %v1286_v6 }
 0x1f9   : > { %1339 = vst [vmem:[#allocation2 + $0xe0] sm:$0xf0] %v1312_v7 }
 0x1fc   : > { %v1290_v35 = vpop.permute.xlu1 %1289 }
 0x1fe   : > { %v1288_v16 = vpop.permute.xlu0 %1287 }
 0x1ff   : > { %v1313_v17 = vsel %vm1311_vm11, %v1286_v6, %v1288_v16  ;;  %v1314_v5 = vsel %vm1311_vm11, %v1288_v16, %v1290_v35 }
 0x200   : > { %1340 = vst [vmem:[#allocation2 + $0xe8] sm:$0xf0] %v1313_v17  ;;  %1341 = vst [vmem:[#allocation2 + $0xf0] sm:$0xf0] %v1314_v5  ;;  %v1294_v18 = vpop.permute.xlu1 %1293 }
 0x202   : > { %v1292_v23 = vpop.permute.xlu0 %1291 }
 0x203   : > { %v1315_v25 = vsel %vm1311_vm11, %v1290_v35, %v1292_v23  ;;  %v1316_v19 = vsel %vm1311_vm11, %v1292_v23, %v1294_v18  ;;  %v7657_v35 = vld [vmem:[%s7171_s6 + $0x20] sm:$0xff] }
 0x204   : > { %1342 = vst [vmem:[#allocation2 + $0xf8] sm:$0xf0] %v1315_v25  ;;  %1343 = vst [vmem:[#allocation2 + $0x100] sm:$0xf0] %v1316_v19  ;;  %v1298_v22 = vpop.permute.xlu1 %1297 }
 0x205   : > { %v6534_v25 = vld [vmem:[%s10528_s2 + $0x7] ss:$8 sm:$0xf] }
 0x206   : > { %v1296_v54 = vpop.permute.xlu0 %1295  ;;  %v6535_v19 = vld [vmem:[%s10528_s2 + $0x7] ss:$8 sm:$0xf0] }
 0x207   : > { %v1317_v21 = vsel %vm1311_vm11, %v1294_v18, %v1296_v54  ;;  %v1318_v37 = vsel %vm1311_vm11, %v1296_v54, %v1298_v22 }
 0x208   : > { %1344 = vst [vmem:[#allocation2 + $0x108] sm:$0xf0] %v1317_v21  ;;  %1345 = vst [vmem:[#allocation2 + $0x110] sm:$0xf0] %v1318_v37  ;;  %v1302_v27 = vpop.permute.xlu1 %1301  ;;  %v1576_v37 = vor.u32 %v6535_v19, %v6534_v25 }
 0x20a   : > { %v1300_v28 = vpop.permute.xlu0 %1299 }
 0x20b   : > { %v1319_v33 = vsel %vm1311_vm11, %v1298_v22, %v1300_v28  ;;  %v1320_v38 = vsel %vm1311_vm11, %v1300_v28, %v1302_v27  ;;  %v7671_v22 = vld [vmem:[%s7171_s6 + $0x28] sm:$0xff] }
 0x20c   : > { %1346 = vst [vmem:[#allocation2 + $0x118] sm:$0xf0] %v1319_v33  ;;  %1347 = vst [vmem:[#allocation2 + $0x120] sm:$0xf0] %v1320_v38  ;;  %v1306_v29 = vpop.permute.xlu1 %1305  ;;  %v7679_v33 = vld [vmem:[%s7171_s6 + $0x30] sm:$0xff] }
 0x20e   : > { %v1304_v30 = vpop.permute.xlu0 %1303 }
 0x20f   : > { %v1321_v57 = vsel %vm1311_vm11, %v1302_v27, %v1304_v30  ;;  %v1322_v50 = vsel %vm1311_vm11, %v1304_v30, %v1306_v29  ;;  %v1590_v30 = vrot.slane %v1576_v37, %v7073_v11 }
 0x210   : > { %1348 = vst [vmem:[#allocation2 + $0x128] sm:$0xf0] %v1321_v57  ;;  %1349 = vst [vmem:[#allocation2 + $0x130] sm:$0xf0] %v1322_v50  ;;  %v1310_v20 = vpop.permute.xlu1 %1309 }
 0x211   : > { %1352 = vst.msk [vmem:[#allocation2 + $0x148] sm:$0xf0] %vm10573_vm9, %v1310_v20 }
 0x212   : > { %v1308_v34 = vpop.permute.xlu0 %1307 }
 0x213   : > { %v1323_v56 = vsel %vm1311_vm11, %v1306_v29, %v1308_v34  ;;  %v1324_v58 = vsel %vm1311_vm11, %v1308_v34, %v1310_v20  ;;  %v1586_v29 = vrot.slane %v1576_v37, %v7071_v10  ;;  %v6536_v20 = vld [vmem:[%s10528_s2 + $0x47] ss:$8 sm:$0xf]  ;;  %vm2583_vm11 = vcmask 900096  }
 0x214   : > { %1350 = vst [vmem:[#allocation2 + $0x138] sm:$0xf0] %v1323_v56  ;;  %1351 = vst [vmem:[#allocation2 + $0x140] sm:$0xf0] %v1324_v58  ;;  %v1436_v42 = vpop.permute.xlu1 %1435  ;;  %v1594_v56 = vrot.slane %v1576_v37, %v7079_v14  ;;  %v1598_v58 = vrot.slane %v1576_v37, %v7081_v15 }
 0x215   : > { %v1448_v32 = vrot.slane %v1436_v42, 4  ;;  %v6537_v34 = vld [vmem:[%s10528_s2 + $0x47] ss:$8 sm:$0x30] }
 0x216   : > { %v1434_v46 = vpop.permute.xlu0 %1433 }
 0x217   : > { %v1447_v48 = vrot.slane %v1434_v46, 4 }
 0x218   : > { %v1440_v61 = vpop.permute.xlu1 %1439 }
 0x219   : > { %v1455_v39 = vsel %vm1454_vm12, %v1447_v48, %v1434_v46  ;;  %v1456_v40 = vsel %vm511_vm2, %v1447_v48, %v1448_v32  ;;  %v1450_v43 = vrot.slane %v1440_v61, 4  ;;  %v1602_v46 = vrot.slane %v1576_v37, %v7067_v8 }
 0x21a   : > { %v1475_v62 = vmul.f32 %v1455_v39, %v7628_v36  ;;  %v1457_v24 = vsel %vm1454_vm12, %v1456_v40, %v1436_v42  ;;  %v1438_v41 = vpop.permute.xlu0 %1437  ;;  %v1639_v42 = vcombine.low %v1586_v29, %v1590_v30  ;;  %v1606_v48 = vrot.slane %v1576_v37, %v7069_v9 }
 0x21b   : > { %v1449_v26 = vrot.slane %v1438_v41, 4  ;;  %v1476_v44 = vmul.f32 %v1457_v24, %v7632_v2  ;;  %v1640_v39 = vcombine.low %v1594_v56, %v1598_v58  ;;  %v1610_v40 = vrot.slane %v1576_v37, %v7075_v12 }
 0x21c   : > { %v1489_v60 = vcombine.high %v1475_v62, %v1475_v62  ;;  %1496 = vrot.lane.b32.xlu1 %v1475_v62, %s6964_s22  ;;  %v1444_v31 = vpop.permute.xlu1 %1443  ;;  %v1614_v62 = vrot.slane %v1576_v37, %v7077_v13  ;;  %v1641_v24 = vcombine.low %v1602_v46, %v1606_v48 }
 0x21d   : > { %v1458_v49 = vsel %vm511_vm2, %v1448_v32, %v1449_v26  ;;  %v1460_v1 = vsel %vm511_vm2, %v1449_v26, %v1450_v43  ;;  %v1490_v52 = vcombine.high %v1476_v44, %v1476_v44  ;;  %v1452_v3 = vrot.slane %v1444_v31, 4 }
 0x21e   : > { %v1459_v51 = vsel %vm1454_vm12, %v1458_v49, %v1438_v41  ;;  %1498 = vrot.lane.b32.xlu0 %v1489_v60, %s6964_s22  ;;  %v1442_v45 = vpop.permute.xlu0 %1441  ;;  %v1461_v63 = vsel %vm1454_vm12, %v1460_v1, %v1440_v61  ;;  %v1580_v61 = vor.u32 %v6537_v34, %v6536_v20  ;;  %v1642_v26 = vcombine.low %v1610_v40, %v1614_v62 }
 0x21f   : > { %v1451_v55 = vrot.slane %v1442_v45, 4  ;;  %v1477_v0 = vmul.f32 %v1459_v51, %v7640_v47  ;;  %v1478_v7 = vmul.f32 %v1461_v63, %v7649_v53 }
 0x220   : > { %1500 = vrot.lane.b32.xlu1 %v1476_v44, %s6964_s22  ;;  %v1618_v41 = vrot.slane %v1580_v61, %v7071_v10  ;;  %v1626_v60 = vrot.slane %v1580_v61, %v7079_v14  ;;  %v1630_v44 = vrot.slane %v1580_v61, %v7081_v15  ;;  %v1634_v51 = vrot.slane %v1580_v61, %v7067_v8 }
 0x221   : > { %v1462_v59 = vsel %vm511_vm2, %v1450_v43, %v1451_v55  ;;  %v1491_v4 = vcombine.high %v1477_v0, %v1477_v0  ;;  %v1464_v17 = vsel %vm511_vm2, %v1451_v55, %v1452_v3  ;;  %v1492_v18 = vcombine.high %v1478_v7, %v1478_v7 }
 0x222   : > { %1502 = vrot.lane.b32.xlu0 %v1490_v52, %s6964_s22  ;;  %v1446_v6 = vpop.permute.xlu0 %1445  ;;  %v1463_v16 = vsel %vm1454_vm12, %v1462_v59, %v1442_v45  ;;  %v1465_v54 = vsel %vm1454_vm12, %v1464_v17, %v1444_v31  ;;  %v1622_v43 = vrot.slane %v1580_v61, %v7073_v11  ;;  %v1638_v1 = vrot.slane %v1580_v61, %v7069_v9 }
 0x223   : > { %v1453_v5 = vrot.slane %v1446_v6, 4  ;;  %v1479_v23 = vmul.f32 %v1463_v16, %v7657_v35  ;;  %v1480_v28 = vmul.f32 %v1465_v54, %v7671_v22  ;;  %v1644_v45 = vcombine.low %v1626_v60, %v1630_v44 }
 0x224   : > { %1504 = vrot.lane.b32.xlu1 %v1477_v0, %s6964_s22  ;;  %v1643_v49 = vcombine.low %v1618_v41, %v1622_v43  ;;  %v1645_v55 = vcombine.low %v1634_v51, %v1638_v1 }
 0x225   : > { %v1466_v21 = vsel %vm511_vm2, %v1452_v3, %v1453_v5  ;;  %v1493_v27 = vcombine.high %v1479_v23, %v1479_v23  ;;  %v1494_v57 = vcombine.high %v1480_v28, %v1480_v28 }
 0x226   : > { %1506 = vrot.lane.b32.xlu0 %v1491_v4, %s6964_s22  ;;  %v1467_v38 = vsel %vm1454_vm12, %v1466_v21, %v1446_v6  ;;  %vm2724_vm12 = vcmask 228352  }
 0x227   : > { %v1481_v50 = vmul.f32 %v1467_v38, %v7679_v33 }
 0x228   : > { %1508 = vrot.lane.b32.xlu1 %v1478_v7, %s6964_s22 }
 0x229   : > { %v1495_v32 = vcombine.high %v1481_v50, %v1481_v50 }
 0x22a   : > { %1510 = vrot.lane.b32.xlu0 %v1492_v18, %s6964_s22 }
 0x22c   : > { %1512 = vrot.lane.b32.xlu1 %v1479_v23, %s6964_s22 }
 0x22e   : > { %1514 = vrot.lane.b32.xlu0 %v1493_v27, %s6964_s22 }
 0x230   : > { %1516 = vrot.lane.b32.xlu1 %v1480_v28, %s6964_s22 }
 0x232   : > { %1518 = vrot.lane.b32.xlu0 %v1494_v57, %s6964_s22 }
 0x234   : > { %1520 = vrot.lane.b32.xlu1 %v1481_v50, %s6964_s22 }
 0x236   : > { %1522 = vrot.lane.b32.xlu0 %v1495_v32, %s6964_s22  ;;  %s6968_s22 = smov 102  }
 0x238   : > { %1646 = vrot.lane.b32.xlu1 %v1639_v42, %s6965_s8 }
 0x23a   : > { %1648 = vrot.lane.b32.xlu0 %v1640_v39, %s6965_s8 }
 0x23c   : > { %1650 = vrot.lane.b32.xlu1 %v1641_v24, %s6965_s8 }
 0x23e   : > { %1652 = vrot.lane.b32.xlu0 %v1642_v26, %s6965_s8 }
 0x240   : > { %1654 = vrot.lane.b32.xlu1 %v1643_v49, %s6965_s8 }
 0x242   : > { %1656 = vrot.lane.b32.xlu0 %v1644_v45, %s6965_s8 }
 0x244   : > { %1658 = vrot.lane.b32.xlu1 %v1645_v55, %s6965_s8  ;;  %s6969_s8 = smov 16  }
 0x28e   : > { %v1497_v31 = vpop.permute.xlu1 %1496 }
 0x290   : > { %v1499_v52 = vpop.permute.xlu0 %1498 }
 0x291   : > { %v1525_v0 = vsel %vm1524_vm13, %v1497_v31, %v1499_v52 }
 0x292   : > { %1552 = vst [vmem:[#allocation2 + $0x150] sm:$0xf] %v1525_v0  ;;  %v1501_v63 = vpop.permute.xlu1 %1500 }
 0x293   : > { %v1526_v59 = vsel %vm1524_vm13, %v1499_v52, %v1501_v63 }
 0x294   : > { %1553 = vst [vmem:[#allocation2 + $0x158] sm:$0xf] %v1526_v59  ;;  %v1503_v3 = vpop.permute.xlu0 %1502 }
 0x295   : > { %v1527_v6 = vsel %vm1524_vm13, %v1501_v63, %v1503_v3 }
 0x296   : > { %1554 = vst [vmem:[#allocation2 + $0x160] sm:$0xf] %v1527_v6  ;;  %v1505_v4 = vpop.permute.xlu1 %1504 }
 0x297   : > { %v1528_v7 = vsel %vm1524_vm13, %v1503_v3, %v1505_v4 }
 0x298   : > { %1555 = vst [vmem:[#allocation2 + $0x168] sm:$0xf] %v1528_v7  ;;  %v1507_v16 = vpop.permute.xlu0 %1506 }
 0x299   : > { %v1529_v17 = vsel %vm1524_vm13, %v1505_v4, %v1507_v16 }
 0x29a   : > { %1556 = vst [vmem:[#allocation2 + $0x170] sm:$0xf] %v1529_v17  ;;  %v1509_v5 = vpop.permute.xlu1 %1508 }
 0x29b   : > { %v1530_v18 = vsel %vm1524_vm13, %v1507_v16, %v1509_v5 }
 0x29c   : > { %1557 = vst [vmem:[#allocation2 + $0x178] sm:$0xf] %v1530_v18  ;;  %v1511_v23 = vpop.permute.xlu0 %1510  ;;  %v6538_v18 = vld [vmem:[%s10528_s2 + $0x70] ss:$8 sm:$0xf] }
 0x29d   : > { %v1531_v25 = vsel %vm1524_vm13, %v1509_v5, %v1511_v23 }
 0x29e   : > { %1558 = vst [vmem:[#allocation2 + $0x180] sm:$0xf] %v1531_v25  ;;  %v1513_v19 = vpop.permute.xlu1 %1512 }
 0x29f   : > { %v1532_v54 = vsel %vm1524_vm13, %v1511_v23, %v1513_v19  ;;  %v6539_v23 = vld [vmem:[%s10528_s2 + $0x70] ss:$8 sm:$0xf0] }
 0x2a0   : > { %1559 = vst [vmem:[#allocation2 + $0x188] sm:$0xf] %v1532_v54  ;;  %v1515_v21 = vpop.permute.xlu0 %1514 }
 0x2a1   : > { %v1533_v37 = vsel %vm1524_vm13, %v1513_v19, %v1515_v21 }
 0x2a2   : > { %1560 = vst [vmem:[#allocation2 + $0x190] sm:$0xf] %v1533_v37  ;;  %v1517_v27 = vpop.permute.xlu1 %1516 }
 0x2a3   : > { %v1534_v28 = vsel %vm1524_vm13, %v1515_v21, %v1517_v27  ;;  %v1789_v21 = vor.u32 %v6539_v23, %v6538_v18  ;;  %v5580_v23 = vld [vmem:[#allocation2 + $0xe8] sm:$0xff] }
 0x2a4   : > { %1561 = vst [vmem:[#allocation2 + $0x198] sm:$0xf] %v1534_v28  ;;  %v1519_v38 = vpop.permute.xlu0 %1518 }
 0x2a5   : > { %v1535_v29 = vsel %vm1524_vm13, %v1517_v27, %v1519_v38 }
 0x2a6   : > { %1562 = vst [vmem:[#allocation2 + $0x1a0] sm:$0xf] %v1535_v29  ;;  %v1521_v30 = vpop.permute.xlu1 %1520  ;;  %v1811_v29 = vrot.slane %v1789_v21, %v7081_v15 }
 0x2a7   : > { %v1536_v57 = vsel %vm1524_vm13, %v1519_v38, %v1521_v30  ;;  %v1807_v38 = vrot.slane %v1789_v21, %v7079_v14 }
 0x2a8   : > { %1563 = vst [vmem:[#allocation2 + $0x1a8] sm:$0xf] %v1536_v57  ;;  %v1523_v50 = vpop.permute.xlu0 %1522  ;;  %v1803_v57 = vrot.slane %v1789_v21, %v7073_v11 }
 0x2a9   : > { %v1537_v20 = vsel %vm1524_vm13, %v1521_v30, %v1523_v50  ;;  %1565 = vst.msk [vmem:[#allocation2 + $0x1b8] sm:$0xf] %vm10585_vm5, %v1523_v50  ;;  %v1799_v30 = vrot.slane %v1789_v21, %v7071_v10  ;;  %v6540_v50 = vld [vmem:[%s10528_s2 + $0xb0] ss:$8 sm:$0xf]  ;;  %vm2794_vm13 = vcmask 818176  }
 0x2aa   : > { %1564 = vst [vmem:[#allocation2 + $0x1b0] sm:$0xf] %v1537_v20  ;;  %v1647_v34 = vpop.permute.xlu1 %1646  ;;  %v6541_v20 = vld [vmem:[%s10528_s2 + $0xb0] ss:$8 sm:$0x30] }
 0x2ab   : > { %v1660_v56 = vrot.slane %v1647_v34, 4 }
 0x2ac   : > { %v1649_v58 = vpop.permute.xlu0 %1648 }
 0x2ad   : > { %v1668_v42 = vsel %vm1667_vm14, %v1660_v56, %v1647_v34  ;;  %v1661_v32 = vrot.slane %v1649_v58, 4 }
 0x2ae   : > { %v1688_v46 = vmul.f32 %v1668_v42, %v7628_v36  ;;  %v1651_v48 = vpop.permute.xlu1 %1650  ;;  %v1827_v42 = vrot.slane %v1789_v21, %v7077_v13 }
 0x2af   : > { %v1669_v61 = vsel %vm511_vm2, %v1660_v56, %v1661_v32  ;;  %v1662_v39 = vrot.slane %v1651_v48, 4  ;;  %v1853_v56 = vcombine.low %v1807_v38, %v1811_v29 }
 0x2b0   : > { %v1702_v40 = vcombine.low %v1688_v46, %v1688_v46  ;;  %v1670_v62 = vsel %vm1667_vm14, %v1669_v61, %v1649_v58  ;;  %1711 = vrot.lane.b32.xlu1 %v1688_v46, %s6966_s7  ;;  %v1653_v24 = vpop.permute.xlu0 %1652  ;;  %v1823_v58 = vrot.slane %v1789_v21, %v7075_v12  ;;  %v1815_v46 = vrot.slane %v1789_v21, %v7067_v8 }
 0x2b1   : > { %v1689_v41 = vmul.f32 %v1670_v62, %v7632_v2  ;;  %v1671_v43 = vsel %vm511_vm2, %v1661_v32, %v1662_v39  ;;  %v1663_v26 = vrot.slane %v1653_v24, 4  ;;  %v1852_v32 = vcombine.low %v1799_v30, %v1803_v57  ;;  %v5582_v30 = vld [vmem:[#allocation2 + $0xf8] sm:$0xff] }
 0x2b2   : > { %v1672_v60 = vsel %vm1667_vm14, %v1671_v43, %v1651_v48  ;;  %1709 = vrot.lane.b32.xlu0 %v1702_v40, %s6966_s7  ;;  %v1655_v44 = vpop.permute.xlu1 %1654  ;;  %v1819_v48 = vrot.slane %v1789_v21, %v7069_v9  ;;  %v1793_v61 = vor.u32 %v6541_v20, %v6540_v50  ;;  %v5579_v21 = vld [vmem:[#allocation2 + $0xe0] sm:$0xff] }
 0x2b3   : > { %v1703_v49 = vcombine.low %v1689_v41, %v1689_v41  ;;  %v1673_v51 = vsel %vm511_vm2, %v1662_v39, %v1663_v26  ;;  %v1664_v1 = vrot.slane %v1655_v44, 4  ;;  %v1690_v45 = vmul.f32 %v1672_v60, %v7640_v47 }
 0x2b4   : > { %1715 = vrot.lane.b32.xlu1 %v1689_v41, %s6966_s7  ;;  %v1657_v55 = vpop.permute.xlu0 %1656  ;;  %v1674_v31 = vsel %vm1667_vm14, %v1673_v51, %v1653_v24  ;;  %v1855_v39 = vcombine.low %v1823_v58, %v1827_v42  ;;  %v1839_v40 = vrot.slane %v1793_v61, %v7079_v14  ;;  %v1843_v62 = vrot.slane %v1793_v61, %v7081_v15 }
 0x2b5   : > { %v1675_v52 = vsel %vm511_vm2, %v1663_v26, %v1664_v1  ;;  %v1665_v0 = vrot.slane %v1657_v55, 4  ;;  %v1704_v59 = vcombine.low %v1690_v45, %v1690_v45  ;;  %v1691_v3 = vmul.f32 %v1674_v31, %v7649_v53 }
 0x2b6   : > { %1713 = vrot.lane.b32.xlu0 %v1703_v49, %s6966_s7  ;;  %v1659_v63 = vpop.permute.xlu1 %1658  ;;  %v1676_v6 = vsel %vm1667_vm14, %v1675_v52, %v1655_v44  ;;  %v1854_v24 = vcombine.low %v1815_v46, %v1819_v48  ;;  %v1831_v41 = vrot.slane %v1793_v61, %v7071_v10  ;;  %v1835_v43 = vrot.slane %v1793_v61, %v7073_v11 }
 0x2b7   : > { %v1677_v4 = vsel %vm511_vm2, %v1664_v1, %v1665_v0  ;;  %v1666_v7 = vrot.slane %v1659_v63, 4  ;;  %v1705_v16 = vcombine.low %v1691_v3, %v1691_v3  ;;  %v1692_v17 = vmul.f32 %v1676_v6, %v7657_v35 }
 0x2b8   : > { %1719 = vrot.lane.b32.xlu1 %v1690_v45, %s6966_s7  ;;  %v1678_v5 = vsel %vm1667_vm14, %v1677_v4, %v1657_v55  ;;  %v1857_v26 = vcombine.low %v1839_v40, %v1843_v62  ;;  %v1856_v60 = vcombine.low %v1831_v41, %v1835_v43  ;;  %v1847_v44 = vrot.slane %v1793_v61, %v7067_v8 }
 0x2b9   : > { %v1679_v25 = vsel %vm511_vm2, %v1665_v0, %v1666_v7  ;;  %v1706_v19 = vcombine.low %v1692_v17, %v1692_v17  ;;  %v1693_v54 = vmul.f32 %v1678_v5, %v7671_v22  ;;  %v1851_v49 = vrot.slane %v1793_v61, %v7069_v9 }
 0x2ba   : > { %1717 = vrot.lane.b32.xlu0 %v1704_v59, %s6966_s7  ;;  %v1680_v37 = vsel %vm1667_vm14, %v1679_v25, %v1659_v63  ;;  %vm2885_vm14 = vcmask 809984  }
 0x2bb   : > { %v1707_v27 = vcombine.low %v1693_v54, %v1693_v54  ;;  %v1694_v28 = vmul.f32 %v1680_v37, %v7679_v33  ;;  %v1858_v51 = vcombine.low %v1847_v44, %v1851_v49 }
 0x2bc   : > { %1723 = vrot.lane.b32.xlu1 %v1691_v3, %s6966_s7 }
 0x2bd   : > { %v1708_v34 = vcombine.low %v1694_v28, %v1694_v28 }
 0x2be   : > { %1721 = vrot.lane.b32.xlu0 %v1705_v16, %s6966_s7 }
 0x2c0   : > { %1727 = vrot.lane.b32.xlu1 %v1692_v17, %s6966_s7 }
 0x2c2   : > { %1725 = vrot.lane.b32.xlu0 %v1706_v19, %s6966_s7 }
 0x2c4   : > { %1731 = vrot.lane.b32.xlu1 %v1693_v54, %s6966_s7 }
 0x2c6   : > { %1729 = vrot.lane.b32.xlu0 %v1707_v27, %s6966_s7 }
 0x2c8   : > { %1735 = vrot.lane.b32.xlu1 %v1694_v28, %s6966_s7 }
 0x2ca   : > { %1733 = vrot.lane.b32.xlu0 %v1708_v34, %s6966_s7  ;;  %v5581_v34 = vld [vmem:[#allocation2 + $0xf0] sm:$0xff]  ;;  %s6970_s7 = smov 112  }
 0x2cc   : > { %1861 = vrot.lane.b32.xlu1 %v1853_v56, %s6967_s17 }
 0x2ce   : > { %1859 = vrot.lane.b32.xlu0 %v1852_v32, %s6967_s17 }
 0x2d0   : > { %1865 = vrot.lane.b32.xlu1 %v1855_v39, %s6967_s17 }
 0x2d2   : > { %1863 = vrot.lane.b32.xlu0 %v1854_v24, %s6967_s17 }
 0x2d4   : > { %1869 = vrot.lane.b32.xlu1 %v1857_v26, %s6967_s17 }
 0x2d6   : > { %1867 = vrot.lane.b32.xlu0 %v1856_v60, %s6967_s17 }
 0x2da   : > { %1871 = vrot.lane.b32.xlu0 %v1858_v51, %s6967_s17  ;;  %s6971_s17 = smov 17  }
 0x322   : > { %v1712_v1 = vpop.permute.xlu1 %1711 }
 0x324   : > { %v1710_v45 = vpop.permute.xlu0 %1709 }
 0x325   : > { %v1738_v55 = vsel %vm1737_vm15, %v1710_v45, %v1712_v1 }
 0x326   : > { %1765 = vst [vmem:[#allocation2 + $0x150] sm:$0xf0] %v1738_v55  ;;  %v1716_v31 = vpop.permute.xlu1 %1715 }
 0x328   : > { %v1714_v52 = vpop.permute.xlu0 %1713 }
 0x329   : > { %v1739_v0 = vsel %vm1737_vm15, %v1712_v1, %v1714_v52  ;;  %v1740_v63 = vsel %vm1737_vm15, %v1714_v52, %v1716_v31 }
 0x32a   : > { %1766 = vst [vmem:[#allocation2 + $0x158] sm:$0xf0] %v1739_v0  ;;  %1767 = vst [vmem:[#allocation2 + $0x160] sm:$0xf0] %v1740_v63  ;;  %v1720_v59 = vpop.permute.xlu1 %1719 }
 0x32c   : > { %v1718_v3 = vpop.permute.xlu0 %1717 }
 0x32d   : > { %v1741_v6 = vsel %vm1737_vm15, %v1716_v31, %v1718_v3  ;;  %v1742_v4 = vsel %vm1737_vm15, %v1718_v3, %v1720_v59  ;;  %v5593_v17 = vld [vmem:[#allocation2 + $0x150] sm:$0xff] }
 0x32e   : > { %1768 = vst [vmem:[#allocation2 + $0x168] sm:$0xf0] %v1741_v6  ;;  %1769 = vst [vmem:[#allocation2 + $0x170] sm:$0xf0] %v1742_v4  ;;  %v1724_v7 = vpop.permute.xlu1 %1723  ;;  %v6632_v37 = vpack.c.bf16 %v5593_v17, %v5579_v21 }
 0x32f   : > { %v1999_v21 = vld [vmem:[%s10528_s2] ss:$8 sm:$0xf] }
 0x330   : > { %v1722_v16 = vpop.permute.xlu0 %1721 }
 0x331   : > { %v1743_v5 = vsel %vm1737_vm15, %v1720_v59, %v1722_v16  ;;  %v1744_v18 = vsel %vm1737_vm15, %v1722_v16, %v1724_v7  ;;  %v5594_v25 = vld [vmem:[#allocation2 + $0x158] sm:$0xff]  ;;  %v5595_v28 = vld [vmem:[#allocation2 + $0x160] sm:$0xff] }
 0x332   : > { %1770 = vst [vmem:[#allocation2 + $0x178] sm:$0xf0] %v1743_v5  ;;  %1771 = vst [vmem:[#allocation2 + $0x180] sm:$0xf0] %v1744_v18  ;;  %v1728_v19 = vpop.permute.xlu1 %1727  ;;  %v6630_v54 = vpack.c.bf16 %v5594_v25, %v5580_v23  ;;  %v6662_v56 = vpack.c.bf16 %v5595_v28, %v5581_v34 }
 0x333   : > { %v6542_v34 = vld [vmem:[%s10528_s2 + $0x40] ss:$8 sm:$0xf] }
 0x334   : > { %v1726_v27 = vpop.permute.xlu0 %1725  ;;  %6631 = vmatprep.subr.bf16.mxu0 %v6630_v54 }
 0x335   : > { %v1745_v38 = vsel %vm1737_vm15, %v1724_v7, %v1726_v27  ;;  %v1746_v29 = vsel %vm1737_vm15, %v1726_v27, %v1728_v19  ;;  %6633 = vmatpush1.bf16.msra.mxu0 %v6632_v37  ;;  %v5596_v57 = vld [vmem:[#allocation2 + $0x168] sm:$0xff] }
 0x336   : > { %1772 = vst [vmem:[#allocation2 + $0x188] sm:$0xf0] %v1745_v38  ;;  %1773 = vst [vmem:[#allocation2 + $0x190] sm:$0xf0] %v1746_v29  ;;  %v1732_v50 = vpop.permute.xlu1 %1731  ;;  %v6660_v20 = vpack.c.bf16 %v5596_v57, %v5582_v30 }
 0x338   : > { %v1730_v58 = vpop.permute.xlu0 %1729  ;;  %6661 = vmatprep.subr.bf16.mxu1 %v6660_v20 }
 0x339   : > { %v1747_v42 = vsel %vm1737_vm15, %v1728_v19, %v1730_v58  ;;  %v1748_v32 = vsel %vm1737_vm15, %v1730_v58, %v1732_v50  ;;  %6663 = vmatpush1.bf16.msra.mxu1 %v6662_v56 }
 0x33a   : > { %1774 = vst [vmem:[#allocation2 + $0x198] sm:$0xf0] %v1747_v42  ;;  %1775 = vst [vmem:[#allocation2 + $0x1a0] sm:$0xf0] %v1748_v32  ;;  %v1736_v46 = vpop.permute.xlu1 %1735 }
 0x33b   : > { %1778 = vst.msk [vmem:[#allocation2 + $0x1b8] sm:$0xf0] %vm10573_vm9, %v1736_v46 }
 0x33c   : > { %v1734_v48 = vpop.permute.xlu0 %1733 }
 0x33d   : > { %v1749_v61 = vsel %vm1737_vm15, %v1732_v50, %v1734_v48  ;;  %v1750_v39 = vsel %vm1737_vm15, %v1734_v48, %v1736_v46  ;;  %vm3026_vm15 = vcmask 244736  }
 0x33e   : > { %1776 = vst [vmem:[#allocation2 + $0x1a8] sm:$0xf0] %v1749_v61  ;;  %1777 = vst [vmem:[#allocation2 + $0x1b0] sm:$0xf0] %v1750_v39  ;;  %v1862_v40 = vpop.permute.xlu1 %1861 }
 0x33f   : > { %v1874_v62 = vrot.slane %v1862_v40, 4 }
 0x340   : > { %v1860_v24 = vpop.permute.xlu0 %1859 }
 0x341   : > { %v1873_v41 = vrot.slane %v1860_v24, 4 }
 0x342   : > { %v1866_v43 = vpop.permute.xlu1 %1865 }
 0x343   : > { %v1881_v26 = vsel %vm1880_vm1, %v1873_v41, %v1860_v24  ;;  %v1882_v60 = vsel %vm511_vm2, %v1873_v41, %v1874_v62  ;;  %v1876_v1 = vrot.slane %v1866_v43, 4 }
 0x344   : > { %v1901_v44 = vmul.f32 %v1881_v26, %v7628_v36  ;;  %v1883_v49 = vsel %vm1880_vm1, %v1882_v60, %v1862_v40  ;;  %v1864_v51 = vpop.permute.xlu0 %1863 }
 0x345   : > { %v1875_v45 = vrot.slane %v1864_v51, 4  ;;  %v1902_v31 = vmul.f32 %v1883_v49, %v7632_v2 }
 0x346   : > { %v1915_v55 = vcombine.high %v1901_v44, %v1901_v44  ;;  %1922 = vrot.lane.b32.xlu1 %v1901_v44, %s6968_s22  ;;  %v1870_v3 = vpop.permute.xlu1 %1869 }
 0x347   : > { %v1884_v52 = vsel %vm511_vm2, %v1874_v62, %v1875_v45  ;;  %v1886_v63 = vsel %vm511_vm2, %v1875_v45, %v1876_v1  ;;  %v1916_v6 = vcombine.high %v1902_v31, %v1902_v31  ;;  %v1878_v16 = vrot.slane %v1870_v3, 4 }
 0x348   : > { %v1885_v0 = vsel %vm1880_vm1, %v1884_v52, %v1864_v51  ;;  %1924 = vrot.lane.b32.xlu0 %v1915_v55, %s6968_s22  ;;  %v1868_v36 = vpop.permute.xlu0 %1867  ;;  %v1887_v2 = vsel %vm1880_vm1, %v1886_v63, %v1866_v43 }
 0x349   : > { %v1877_v59 = vrot.slane %v1868_v36, 4  ;;  %v1903_v4 = vmul.f32 %v1885_v0, %v7640_v47  ;;  %v1904_v18 = vmul.f32 %v1887_v2, %v7649_v53  ;;  %v2000_v53 = vld [vmem:[%s10528_s2] ss:$8 sm:$0xf0] }
 0x34a   : > { %1926 = vrot.lane.b32.xlu1 %v1902_v31, %s6968_s22  ;;  %v2001_v28 = vor.u32 %v2000_v53, %v1999_v21 }
 0x34b   : > { %v1888_v7 = vsel %vm511_vm2, %v1876_v1, %v1877_v59  ;;  %v1917_v5 = vcombine.high %v1903_v4, %v1903_v4  ;;  %v1890_v25 = vsel %vm511_vm2, %v1877_v59, %v1878_v16  ;;  %v1918_v19 = vcombine.high %v1904_v18, %v1904_v18 }
 0x34c   : > { %1928 = vrot.lane.b32.xlu0 %v1916_v6, %s6968_s22  ;;  %v1872_v17 = vpop.permute.xlu0 %1871  ;;  %v1889_v23 = vsel %vm1880_vm1, %v1888_v7, %v1868_v36  ;;  %v1891_v37 = vsel %vm1880_vm1, %v1890_v25, %v1870_v3  ;;  %v2010_v30 = vrot.slane %v2001_v28, %v7071_v10  ;;  %v2014_v57 = vrot.slane %v2001_v28, %v7073_v11 }
 0x34d   : > { %v1879_v47 = vrot.slane %v1872_v17, 4  ;;  %v1905_v54 = vmul.f32 %v1889_v23, %v7657_v35  ;;  %v1906_v35 = vmul.f32 %v1891_v37, %v7671_v22  ;;  %v6543_v22 = vld [vmem:[%s10528_s2 + $0x40] ss:$8 sm:$0x30]  ;;  %v2018_v56 = vrot.slane %v2001_v28, %v7079_v14 }
 0x34e   : > { %1930 = vrot.lane.b32.xlu1 %v1903_v4, %s6968_s22  ;;  %v2022_v58 = vrot.slane %v2001_v28, %v7081_v15  ;;  %v2063_v42 = vcombine.low %v2010_v30, %v2014_v57  ;;  %v2030_v46 = vrot.slane %v2001_v28, %v7069_v9  ;;  %v2004_v48 = vor.u32 %v6543_v22, %v6542_v34  ;;  %v7876_v22 = vld [vmem:[%s7171_s6 + $0xc] sm:$0xff] }
 0x34f   : > { %v1892_v27 = vsel %vm511_vm2, %v1878_v16, %v1879_v47  ;;  %v1919_v38 = vcombine.high %v1905_v54, %v1905_v54  ;;  %v1920_v50 = vcombine.high %v1906_v35, %v1906_v35  ;;  %v2034_v39 = vrot.slane %v2001_v28, %v7075_v12 }
 0x350   : > { %1932 = vrot.lane.b32.xlu0 %v1917_v5, %s6968_s22  ;;  %v1893_v29 = vsel %vm1880_vm1, %v1892_v27, %v1872_v17  ;;  %v2064_v61 = vcombine.low %v2018_v56, %v2022_v58  ;;  %v2038_v40 = vrot.slane %v2001_v28, %v7077_v13  ;;  %v2042_v24 = vrot.slane %v2004_v48, %v7071_v10 }
 0x351   : > { %v1907_v20 = vmul.f32 %v1893_v29, %v7679_v33  ;;  %v2026_v33 = vrot.slane %v2001_v28, %v7067_v8  ;;  %v2046_v41 = vrot.slane %v2004_v48, %v7073_v11  ;;  %v2050_v26 = vrot.slane %v2004_v48, %v7079_v14  ;;  %v7871_v29 = vld [vmem:[%s7171_s6 + $0x4] sm:$0xff] }
 0x352   : > { %1934 = vrot.lane.b32.xlu1 %v1904_v18, %s6968_s22  ;;  %v2066_v43 = vcombine.low %v2034_v39, %v2038_v40  ;;  %v2054_v60 = vrot.slane %v2004_v48, %v7081_v15  ;;  %v2058_v49 = vrot.slane %v2004_v48, %v7067_v8  ;;  %v2062_v51 = vrot.slane %v2004_v48, %v7069_v9 }
 0x353   : > { %v1921_v32 = vcombine.high %v1907_v20, %v1907_v20  ;;  %v2065_v62 = vcombine.low %v2026_v33, %v2030_v46  ;;  %v2067_v44 = vcombine.low %v2042_v24, %v2046_v41  ;;  %vm10586_vm1 = vcmask 801792  }
 0x354   : > { %1936 = vrot.lane.b32.xlu0 %v1918_v19, %s6968_s22  ;;  %v2068_v1 = vcombine.low %v2050_v26, %v2054_v60  ;;  %v2069_v45 = vcombine.low %v2058_v49, %v2062_v51  ;;  %v7892_v49 = vld [vmem:[%s7171_s6 + $0x1c] sm:$0xff] }
 0x356   : > { %1938 = vrot.lane.b32.xlu1 %v1905_v54, %s6968_s22 }
 0x358   : > { %1940 = vrot.lane.b32.xlu0 %v1919_v38, %s6968_s22 }
 0x35a   : > { %1942 = vrot.lane.b32.xlu1 %v1906_v35, %s6968_s22 }
 0x35c   : > { %1944 = vrot.lane.b32.xlu0 %v1920_v50, %s6968_s22 }
 0x35e   : > { %1946 = vrot.lane.b32.xlu1 %v1907_v20, %s6968_s22 }
 0x360   : > { %1948 = vrot.lane.b32.xlu0 %v1921_v32, %s6968_s22  ;;  %s6972_s22 = smov 111  }
 0x362   : > { %2070 = vrot.lane.b32.xlu1 %v2063_v42, %s6969_s8 }
 0x364   : > { %2072 = vrot.lane.b32.xlu0 %v2064_v61, %s6969_s8  ;;  %v7883_v61 = vld [vmem:[%s7171_s6 + $0x14] sm:$0xff] }
 0x366   : > { %2074 = vrot.lane.b32.xlu1 %v2065_v62, %s6969_s8 }
 0x368   : > { %2076 = vrot.lane.b32.xlu0 %v2066_v43, %s6969_s8 }
 0x36a   : > { %2078 = vrot.lane.b32.xlu1 %v2067_v44, %s6969_s8 }
 0x36c   : > { %2080 = vrot.lane.b32.xlu0 %v2068_v1, %s6969_s8 }
 0x36e   : > { %2082 = vrot.lane.b32.xlu1 %v2069_v45, %s6969_s8  ;;  %s6973_s8 = smov 18  }
 0x3b8   : > { %v1923_v55 = vpop.permute.xlu1 %1922 }
 0x3ba   : > { %v1925_v31 = vpop.permute.xlu0 %1924 }
 0x3bb   : > { %v1951_v52 = vsel %vm1950_vm3, %v1923_v55, %v1925_v31 }
 0x3bc   : > { %1978 = vst [vmem:[#allocation2 + $0x1c0] sm:$0xf] %v1951_v52  ;;  %v1927_v0 = vpop.permute.xlu1 %1926 }
 0x3bd   : > { %v1952_v63 = vsel %vm1950_vm3, %v1925_v31, %v1927_v0 }
 0x3be   : > { %1979 = vst [vmem:[#allocation2 + $0x1c8] sm:$0xf] %v1952_v63  ;;  %v1929_v36 = vpop.permute.xlu0 %1928 }
 0x3bf   : > { %v1953_v59 = vsel %vm1950_vm3, %v1927_v0, %v1929_v36  ;;  %v7900_v0 = vld [vmem:[%s7171_s6 + $0x24] sm:$0xff] }
 0x3c0   : > { %1980 = vst [vmem:[#allocation2 + $0x1d0] sm:$0xf] %v1953_v59  ;;  %v1931_v3 = vpop.permute.xlu1 %1930 }
 0x3c1   : > { %v1954_v6 = vsel %vm1950_vm3, %v1929_v36, %v1931_v3 }
 0x3c2   : > { %1981 = vst [vmem:[#allocation2 + $0x1d8] sm:$0xf] %v1954_v6  ;;  %v1933_v4 = vpop.permute.xlu0 %1932 }
 0x3c3   : > { %v1955_v2 = vsel %vm1950_vm3, %v1931_v3, %v1933_v4 }
 0x3c4   : > { %1982 = vst [vmem:[#allocation2 + $0x1e0] sm:$0xf] %v1955_v2  ;;  %v1935_v7 = vpop.permute.xlu1 %1934 }
 0x3c5   : > { %v1956_v16 = vsel %vm1950_vm3, %v1933_v4, %v1935_v7  ;;  %v7907_v4 = vld [vmem:[%s7171_s6 + $0x2c] sm:$0xff] }
 0x3c6   : > { %1983 = vst [vmem:[#allocation2 + $0x1e8] sm:$0xf] %v1956_v16  ;;  %v1937_v17 = vpop.permute.xlu0 %1936  ;;  %v6545_v16 = vld [vmem:[%s10528_s2 + $0x1] ss:$8 sm:$0xf0] }
 0x3c7   : > { %v1957_v5 = vsel %vm1950_vm3, %v1935_v7, %v1937_v17  ;;  %v6544_v7 = vld [vmem:[%s10528_s2 + $0x1] ss:$8 sm:$0xf] }
 0x3c8   : > { %1984 = vst [vmem:[#allocation2 + $0x1f0] sm:$0xf] %v1957_v5  ;;  %v1939_v18 = vpop.permute.xlu1 %1938 }
 0x3c9   : > { %v1958_v23 = vsel %vm1950_vm3, %v1937_v17, %v1939_v18 }
 0x3ca   : > { %1985 = vst [vmem:[#allocation2 + $0x1f8] sm:$0xf] %v1958_v23  ;;  %v1941_v25 = vpop.permute.xlu0 %1940  ;;  %v2212_v23 = vor.u32 %v6545_v16, %v6544_v7 }
 0x3cb   : > { %v1959_v47 = vsel %vm1950_vm3, %v1939_v18, %v1941_v25 }
 0x3cc   : > { %1986 = vst [vmem:[#allocation2 + $0x200] sm:$0xf] %v1959_v47  ;;  %v1943_v19 = vpop.permute.xlu1 %1942 }
 0x3cd   : > { %v1960_v54 = vsel %vm1950_vm3, %v1941_v25, %v1943_v19  ;;  %v7922_v25 = vld [vmem:[%s7171_s6 + $0x34] sm:$0xff] }
 0x3ce   : > { %1987 = vst [vmem:[#allocation2 + $0x208] sm:$0xf] %v1960_v54  ;;  %v1945_v21 = vpop.permute.xlu0 %1944 }
 0x3cf   : > { %v1961_v53 = vsel %vm1950_vm3, %v1943_v19, %v1945_v21 }
 0x3d0   : > { %1988 = vst [vmem:[#allocation2 + $0x210] sm:$0xf] %v1961_v53  ;;  %v1947_v37 = vpop.permute.xlu1 %1946  ;;  %v2233_v53 = vrot.slane %v2212_v23, %v7081_v15 }
 0x3d1   : > { %v1962_v27 = vsel %vm1950_vm3, %v1945_v21, %v1947_v37  ;;  %v2229_v21 = vrot.slane %v2212_v23, %v7079_v14 }
 0x3d2   : > { %1989 = vst [vmem:[#allocation2 + $0x218] sm:$0xf] %v1962_v27  ;;  %v1949_v28 = vpop.permute.xlu0 %1948  ;;  %v2225_v27 = vrot.slane %v2212_v23, %v7073_v11 }
 0x3d3   : > { %v1963_v38 = vsel %vm1950_vm3, %v1947_v37, %v1949_v28  ;;  %1991 = vst.msk [vmem:[#allocation2 + $0x228] sm:$0xf] %vm10585_vm5, %v1949_v28  ;;  %v2221_v37 = vrot.slane %v2212_v23, %v7071_v10  ;;  %v6546_v28 = vld [vmem:[%s10528_s2 + $0x41] ss:$8 sm:$0xf]  ;;  %vm10620_vm3 = vcmask 326656  }
 0x3d4   : > { %1990 = vst [vmem:[#allocation2 + $0x220] sm:$0xf] %v1963_v38  ;;  %v2071_v35 = vpop.permute.xlu1 %2070  ;;  %v6547_v38 = vld [vmem:[%s10528_s2 + $0x41] ss:$8 sm:$0x30] }
 0x3d5   : > { %v2084_v30 = vrot.slane %v2071_v35, 4 }
 0x3d6   : > { %v2073_v57 = vpop.permute.xlu0 %2072 }
 0x3d7   : > { %v2092_v50 = vsel %vm2091_vm4, %v2084_v30, %v2071_v35  ;;  %v2085_v20 = vrot.slane %v2073_v57, 4 }
 0x3d8   : > { %v2112_v34 = vmul.f32 %v2092_v50, %v7871_v29  ;;  %v2075_v56 = vpop.permute.xlu1 %2074  ;;  %v2249_v50 = vrot.slane %v2212_v23, %v7077_v13 }
 0x3d9   : > { %v2093_v58 = vsel %vm511_vm2, %v2084_v30, %v2085_v20  ;;  %v2086_v42 = vrot.slane %v2075_v56, 4  ;;  %v2275_v30 = vcombine.low %v2229_v21, %v2233_v53 }
 0x3da   : > { %v2126_v32 = vcombine.low %v2112_v34, %v2112_v34  ;;  %v2094_v33 = vsel %vm2091_vm4, %v2093_v58, %v2073_v57  ;;  %2135 = vrot.lane.b32.xlu1 %v2112_v34, %s6970_s7  ;;  %v2077_v46 = vpop.permute.xlu0 %2076  ;;  %v2245_v57 = vrot.slane %v2212_v23, %v7075_v12  ;;  %v2237_v34 = vrot.slane %v2212_v23, %v7067_v8 }
 0x3db   : > { %v2113_v48 = vmul.f32 %v2094_v33, %v7876_v22  ;;  %v2095_v39 = vsel %vm511_vm2, %v2085_v20, %v2086_v42  ;;  %v2087_v40 = vrot.slane %v2077_v46, 4  ;;  %v2274_v20 = vcombine.low %v2221_v37, %v2225_v27 }
 0x3dc   : > { %v2096_v62 = vsel %vm2091_vm4, %v2095_v39, %v2075_v56  ;;  %2133 = vrot.lane.b32.xlu0 %v2126_v32, %s6970_s7  ;;  %v2079_v24 = vpop.permute.xlu1 %2078  ;;  %v2241_v56 = vrot.slane %v2212_v23, %v7069_v9  ;;  %v2215_v58 = vor.u32 %v6547_v38, %v6546_v28 }
 0x3dd   : > { %v2127_v41 = vcombine.low %v2113_v48, %v2113_v48  ;;  %v2097_v43 = vsel %vm511_vm2, %v2086_v42, %v2087_v40  ;;  %v2088_v26 = vrot.slane %v2079_v24, 4  ;;  %v2114_v60 = vmul.f32 %v2096_v62, %v7883_v61 }
 0x3de   : > { %2139 = vrot.lane.b32.xlu1 %v2113_v48, %s6970_s7  ;;  %v2081_v44 = vpop.permute.xlu0 %2080  ;;  %v2098_v51 = vsel %vm2091_vm4, %v2097_v43, %v2077_v46  ;;  %v2277_v42 = vcombine.low %v2245_v57, %v2249_v50  ;;  %v2261_v32 = vrot.slane %v2215_v58, %v7079_v14  ;;  %v2265_v33 = vrot.slane %v2215_v58, %v7081_v15 }
 0x3df   : > { %v2099_v1 = vsel %vm511_vm2, %v2087_v40, %v2088_v26  ;;  %v2089_v45 = vrot.slane %v2081_v44, 4  ;;  %v2128_v31 = vcombine.low %v2114_v60, %v2114_v60  ;;  %v2115_v52 = vmul.f32 %v2098_v51, %v7892_v49 }
 0x3e0   : > { %2137 = vrot.lane.b32.xlu0 %v2127_v41, %s6970_s7  ;;  %v2083_v55 = vpop.permute.xlu1 %2082  ;;  %v2100_v63 = vsel %vm2091_vm4, %v2099_v1, %v2079_v24  ;;  %v2276_v46 = vcombine.low %v2237_v34, %v2241_v56  ;;  %v2253_v48 = vrot.slane %v2215_v58, %v7071_v10  ;;  %v2257_v39 = vrot.slane %v2215_v58, %v7073_v11 }
 0x3e1   : > { %v2101_v36 = vsel %vm511_vm2, %v2088_v26, %v2089_v45  ;;  %v2090_v59 = vrot.slane %v2083_v55, 4  ;;  %v2129_v3 = vcombine.low %v2115_v52, %v2115_v52  ;;  %v2116_v6 = vmul.f32 %v2100_v63, %v7900_v0 }
 0x3e2   : > { %2143 = vrot.lane.b32.xlu1 %v2114_v60, %s6970_s7  ;;  %v2102_v2 = vsel %vm2091_vm4, %v2101_v36, %v2081_v44  ;;  %v2279_v40 = vcombine.low %v2261_v32, %v2265_v33  ;;  %v2278_v62 = vcombine.low %v2253_v48, %v2257_v39  ;;  %v2269_v24 = vrot.slane %v2215_v58, %v7067_v8 }
 0x3e3   : > { %v2103_v17 = vsel %vm511_vm2, %v2089_v45, %v2090_v59  ;;  %v2130_v5 = vcombine.low %v2116_v6, %v2116_v6  ;;  %v2117_v18 = vmul.f32 %v2102_v2, %v7907_v4  ;;  %v2273_v41 = vrot.slane %v2215_v58, %v7069_v9 }
 0x3e4   : > { %2141 = vrot.lane.b32.xlu0 %v2128_v31, %s6970_s7  ;;  %v2104_v47 = vsel %vm2091_vm4, %v2103_v17, %v2083_v55  ;;  %vm10587_vm4 = vcmask 334848  }
 0x3e5   : > { %v2131_v19 = vcombine.low %v2117_v18, %v2117_v18  ;;  %v2118_v54 = vmul.f32 %v2104_v47, %v7922_v25  ;;  %v2280_v43 = vcombine.low %v2269_v24, %v2273_v41 }
 0x3e6   : > { %2147 = vrot.lane.b32.xlu1 %v2115_v52, %s6970_s7 }
 0x3e7   : > { %v2132_v35 = vcombine.low %v2118_v54, %v2118_v54 }
 0x3e8   : > { %2145 = vrot.lane.b32.xlu0 %v2129_v3, %s6970_s7 }
 0x3ea   : > { %2151 = vrot.lane.b32.xlu1 %v2116_v6, %s6970_s7 }
 0x3ec   : > { %2149 = vrot.lane.b32.xlu0 %v2130_v5, %s6970_s7 }
 0x3ee   : > { %2155 = vrot.lane.b32.xlu1 %v2117_v18, %s6970_s7 }
 0x3f0   : > { %2153 = vrot.lane.b32.xlu0 %v2131_v19, %s6970_s7 }
 0x3f2   : > { %2159 = vrot.lane.b32.xlu1 %v2118_v54, %s6970_s7 }
 0x3f4   : > { %2157 = vrot.lane.b32.xlu0 %v2132_v35, %s6970_s7  ;;  %s6974_s7 = smov 110  }
 0x3f6   : > { %2283 = vrot.lane.b32.xlu1 %v2275_v30, %s6971_s17 }
 0x3f8   : > { %2281 = vrot.lane.b32.xlu0 %v2274_v20, %s6971_s17 }
 0x3fa   : > { %2287 = vrot.lane.b32.xlu1 %v2277_v42, %s6971_s17 }
 0x3fc   : > { %2285 = vrot.lane.b32.xlu0 %v2276_v46, %s6971_s17 }
 0x3fe   : > { %2291 = vrot.lane.b32.xlu1 %v2279_v40, %s6971_s17 }
 0x400   : > { %2289 = vrot.lane.b32.xlu0 %v2278_v62, %s6971_s17 }
 0x404   : > { %2293 = vrot.lane.b32.xlu0 %v2280_v43, %s6971_s17  ;;  %s6975_s17 = smov 28  }
 0x44c   : > { %v2136_v26 = vpop.permute.xlu1 %2135 }
 0x44e   : > { %v2134_v60 = vpop.permute.xlu0 %2133 }
 0x44f   : > { %v2162_v44 = vsel %vm2161_vm6, %v2134_v60, %v2136_v26 }
 0x450   : > { %2189 = vst [vmem:[#allocation2 + $0x1c0] sm:$0xf0] %v2162_v44  ;;  %v2140_v51 = vpop.permute.xlu1 %2139 }
 0x452   : > { %v2138_v1 = vpop.permute.xlu0 %2137 }
 0x453   : > { %v2163_v45 = vsel %vm2161_vm6, %v2136_v26, %v2138_v1  ;;  %v2164_v55 = vsel %vm2161_vm6, %v2138_v1, %v2140_v51 }
 0x454   : > { %2190 = vst [vmem:[#allocation2 + $0x1c8] sm:$0xf0] %v2163_v45  ;;  %2191 = vst [vmem:[#allocation2 + $0x1d0] sm:$0xf0] %v2164_v55  ;;  %v2144_v31 = vpop.permute.xlu1 %2143 }
 0x456   : > { %v2142_v52 = vpop.permute.xlu0 %2141 }
 0x457   : > { %v2165_v63 = vsel %vm2161_vm6, %v2140_v51, %v2142_v52  ;;  %v2166_v36 = vsel %vm2161_vm6, %v2142_v52, %v2144_v31 }
 0x458   : > { %2192 = vst [vmem:[#allocation2 + $0x1d8] sm:$0xf0] %v2165_v63  ;;  %2193 = vst [vmem:[#allocation2 + $0x1e0] sm:$0xf0] %v2166_v36  ;;  %v2148_v59 = vpop.permute.xlu1 %2147 }
 0x45a   : > { %v2146_v3 = vpop.permute.xlu0 %2145 }
 0x45b   : > { %v2167_v6 = vsel %vm2161_vm6, %v2144_v31, %v2146_v3  ;;  %v2168_v2 = vsel %vm2161_vm6, %v2146_v3, %v2148_v59  ;;  %v6549_v3 = vld [vmem:[%s10528_s2 + $0x2] ss:$8 sm:$0xf0] }
 0x45c   : > { %2194 = vst [vmem:[#allocation2 + $0x1e8] sm:$0xf0] %v2167_v6  ;;  %2195 = vst [vmem:[#allocation2 + $0x1f0] sm:$0xf0] %v2168_v2  ;;  %v2152_v7 = vpop.permute.xlu1 %2151 }
 0x45e   : > { %v2150_v16 = vpop.permute.xlu0 %2149 }
 0x45f   : > { %v2169_v17 = vsel %vm2161_vm6, %v2148_v59, %v2150_v16  ;;  %v2170_v5 = vsel %vm2161_vm6, %v2150_v16, %v2152_v7  ;;  %v6548_v59 = vld [vmem:[%s10528_s2 + $0x2] ss:$8 sm:$0xf] }
 0x460   : > { %2196 = vst [vmem:[#allocation2 + $0x1f8] sm:$0xf0] %v2169_v17  ;;  %2197 = vst [vmem:[#allocation2 + $0x200] sm:$0xf0] %v2170_v5  ;;  %v2156_v18 = vpop.permute.xlu1 %2155 }
 0x462   : > { %v2154_v23 = vpop.permute.xlu0 %2153 }
 0x463   : > { %v2171_v47 = vsel %vm2161_vm6, %v2152_v7, %v2154_v23  ;;  %v2172_v19 = vsel %vm2161_vm6, %v2154_v23, %v2156_v18  ;;  %v2423_v7 = vor.u32 %v6549_v3, %v6548_v59 }
 0x464   : > { %2198 = vst [vmem:[#allocation2 + $0x208] sm:$0xf0] %v2171_v47  ;;  %2199 = vst [vmem:[#allocation2 + $0x210] sm:$0xf0] %v2172_v19  ;;  %v2160_v54 = vpop.permute.xlu1 %2159 }
 0x465   : > { %2202 = vst.msk [vmem:[#allocation2 + $0x228] sm:$0xf0] %vm10573_vm9, %v2160_v54  ;;  %v2436_v23 = vrot.slane %v2423_v7, %v7073_v11 }
 0x466   : > { %v2158_v21 = vpop.permute.xlu0 %2157 }
 0x467   : > { %v2173_v53 = vsel %vm2161_vm6, %v2156_v18, %v2158_v21  ;;  %v2174_v37 = vsel %vm2161_vm6, %v2158_v21, %v2160_v54  ;;  %v2432_v18 = vrot.slane %v2423_v7, %v7071_v10  ;;  %v6550_v54 = vld [vmem:[%s10528_s2 + $0x42] ss:$8 sm:$0xf]  ;;  %vm10588_vm6 = vcmask 343040  }
 0x468   : > { %2200 = vst [vmem:[#allocation2 + $0x218] sm:$0xf0] %v2173_v53  ;;  %2201 = vst [vmem:[#allocation2 + $0x220] sm:$0xf0] %v2174_v37  ;;  %v2284_v27 = vpop.permute.xlu1 %2283  ;;  %v2440_v53 = vrot.slane %v2423_v7, %v7079_v14  ;;  %v2444_v37 = vrot.slane %v2423_v7, %v7081_v15 }
 0x469   : > { %v2296_v28 = vrot.slane %v2284_v27, 4  ;;  %v6551_v21 = vld [vmem:[%s10528_s2 + $0x42] ss:$8 sm:$0x30] }
 0x46a   : > { %v2282_v38 = vpop.permute.xlu0 %2281 }
 0x46b   : > { %v2295_v35 = vrot.slane %v2282_v38, 4 }
 0x46c   : > { %v2288_v30 = vpop.permute.xlu1 %2287 }
 0x46d   : > { %v2303_v57 = vsel %vm2302_vm7, %v2295_v35, %v2282_v38  ;;  %v2304_v50 = vsel %vm511_vm2, %v2295_v35, %v2296_v28  ;;  %v2298_v58 = vrot.slane %v2288_v30, 4  ;;  %v2448_v38 = vrot.slane %v2423_v7, %v7067_v8 }
 0x46e   : > { %v2323_v20 = vmul.f32 %v2303_v57, %v7871_v29  ;;  %v2305_v34 = vsel %vm2302_vm7, %v2304_v50, %v2284_v27  ;;  %v2286_v56 = vpop.permute.xlu0 %2285  ;;  %v2485_v27 = vcombine.low %v2432_v18, %v2436_v23  ;;  %v2452_v35 = vrot.slane %v2423_v7, %v7069_v9 }
 0x46f   : > { %v2297_v42 = vrot.slane %v2286_v56, 4  ;;  %v2324_v33 = vmul.f32 %v2305_v34, %v7876_v22  ;;  %v2486_v57 = vcombine.low %v2440_v53, %v2444_v37  ;;  %v2456_v50 = vrot.slane %v2423_v7, %v7075_v12 }
 0x470   : > { %v2337_v32 = vcombine.high %v2323_v20, %v2323_v20  ;;  %2344 = vrot.lane.b32.xlu1 %v2323_v20, %s6972_s22  ;;  %v2292_v24 = vpop.permute.xlu1 %2291  ;;  %v2460_v20 = vrot.slane %v2423_v7, %v7077_v13  ;;  %v2487_v34 = vcombine.low %v2448_v38, %v2452_v35 }
 0x471   : > { %v2306_v46 = vsel %vm511_vm2, %v2296_v28, %v2297_v42  ;;  %v2308_v39 = vsel %vm511_vm2, %v2297_v42, %v2298_v58  ;;  %v2338_v41 = vcombine.high %v2324_v33, %v2324_v33  ;;  %v2300_v44 = vrot.slane %v2292_v24, 4 }
 0x472   : > { %v2307_v48 = vsel %vm2302_vm7, %v2306_v46, %v2286_v56  ;;  %2346 = vrot.lane.b32.xlu0 %v2337_v32, %s6972_s22  ;;  %v2290_v40 = vpop.permute.xlu0 %2289  ;;  %v2309_v26 = vsel %vm2302_vm7, %v2308_v39, %v2288_v30  ;;  %v2426_v30 = vor.u32 %v6551_v21, %v6550_v54  ;;  %v2488_v42 = vcombine.low %v2456_v50, %v2460_v20 }
 0x473   : > { %v2299_v62 = vrot.slane %v2290_v40, 4  ;;  %v2325_v43 = vmul.f32 %v2307_v48, %v7883_v61  ;;  %v2326_v45 = vmul.f32 %v2309_v26, %v7892_v49 }
 0x474   : > { %2348 = vrot.lane.b32.xlu1 %v2324_v33, %s6972_s22  ;;  %v2464_v56 = vrot.slane %v2426_v30, %v7071_v10  ;;  %v2472_v32 = vrot.slane %v2426_v30, %v7079_v14  ;;  %v2476_v33 = vrot.slane %v2426_v30, %v7081_v15  ;;  %v2480_v48 = vrot.slane %v2426_v30, %v7067_v8 }
 0x475   : > { %v2310_v60 = vsel %vm511_vm2, %v2298_v58, %v2299_v62  ;;  %v2339_v1 = vcombine.high %v2325_v43, %v2325_v43  ;;  %v2312_v31 = vsel %vm511_vm2, %v2299_v62, %v2300_v44  ;;  %v2340_v63 = vcombine.high %v2326_v45, %v2326_v45 }
 0x476   : > { %2350 = vrot.lane.b32.xlu0 %v2338_v41, %s6972_s22  ;;  %v2294_v51 = vpop.permute.xlu0 %2293  ;;  %v2311_v55 = vsel %vm2302_vm7, %v2310_v60, %v2290_v40  ;;  %v2313_v6 = vsel %vm2302_vm7, %v2312_v31, %v2292_v24  ;;  %v2468_v58 = vrot.slane %v2426_v30, %v7073_v11  ;;  %v2484_v39 = vrot.slane %v2426_v30, %v7069_v9 }
 0x477   : > { %v2301_v52 = vrot.slane %v2294_v51, 4  ;;  %v2327_v36 = vmul.f32 %v2311_v55, %v7900_v0  ;;  %v2328_v17 = vmul.f32 %v2313_v6, %v7907_v4  ;;  %v2490_v40 = vcombine.low %v2472_v32, %v2476_v33 }
 0x478   : > { %2352 = vrot.lane.b32.xlu1 %v2325_v43, %s6972_s22  ;;  %v2489_v46 = vcombine.low %v2464_v56, %v2468_v58  ;;  %v2491_v62 = vcombine.low %v2480_v48, %v2484_v39 }
 0x479   : > { %v2314_v2 = vsel %vm511_vm2, %v2300_v44, %v2301_v52  ;;  %v2341_v16 = vcombine.high %v2327_v36, %v2327_v36  ;;  %v2342_v47 = vcombine.high %v2328_v17, %v2328_v17 }
 0x47a   : > { %2354 = vrot.lane.b32.xlu0 %v2339_v1, %s6972_s22  ;;  %v2315_v5 = vsel %vm2302_vm7, %v2314_v2, %v2294_v51  ;;  %vm3870_vm7 = vcmask 261120  }
 0x47b   : > { %v2329_v19 = vmul.f32 %v2315_v5, %v7922_v25 }
 0x47c   : > { %2356 = vrot.lane.b32.xlu1 %v2326_v45, %s6972_s22 }
 0x47d   : > { %v2343_v28 = vcombine.high %v2329_v19, %v2329_v19 }
 0x47e   : > { %2358 = vrot.lane.b32.xlu0 %v2340_v63, %s6972_s22 }
 0x480   : > { %2360 = vrot.lane.b32.xlu1 %v2327_v36, %s6972_s22 }
 0x482   : > { %2362 = vrot.lane.b32.xlu0 %v2341_v16, %s6972_s22 }
 0x484   : > { %2364 = vrot.lane.b32.xlu1 %v2328_v17, %s6972_s22 }
 0x486   : > { %2366 = vrot.lane.b32.xlu0 %v2342_v47, %s6972_s22 }
 0x488   : > { %2368 = vrot.lane.b32.xlu1 %v2329_v19, %s6972_s22 }
 0x48a   : > { %2370 = vrot.lane.b32.xlu0 %v2343_v28, %s6972_s22  ;;  %s6976_s22 = smov 100  }
 0x48c   : > { %2492 = vrot.lane.b32.xlu1 %v2485_v27, %s6973_s8 }
 0x48e   : > { %2494 = vrot.lane.b32.xlu0 %v2486_v57, %s6973_s8 }
 0x490   : > { %2496 = vrot.lane.b32.xlu1 %v2487_v34, %s6973_s8 }
 0x492   : > { %2498 = vrot.lane.b32.xlu0 %v2488_v42, %s6973_s8 }
 0x494   : > { %2500 = vrot.lane.b32.xlu1 %v2489_v46, %s6973_s8 }
 0x496   : > { %2502 = vrot.lane.b32.xlu0 %v2490_v40, %s6973_s8 }
 0x498   : > { %2504 = vrot.lane.b32.xlu1 %v2491_v62, %s6973_s8  ;;  %s6984_s8 = smov 32  }
 0x4e2   : > { %v2345_v24 = vpop.permute.xlu1 %2344 }
 0x4e4   : > { %v2347_v41 = vpop.permute.xlu0 %2346 }
 0x4e5   : > { %v2373_v43 = vsel %vm2372_vm8, %v2345_v24, %v2347_v41 }
 0x4e6   : > { %2400 = vst [vmem:[#allocation2 + $0x230] sm:$0xf] %v2373_v43  ;;  %v2349_v26 = vpop.permute.xlu1 %2348 }
 0x4e7   : > { %v2374_v60 = vsel %vm2372_vm8, %v2347_v41, %v2349_v26 }
 0x4e8   : > { %2401 = vst [vmem:[#allocation2 + $0x238] sm:$0xf] %v2374_v60  ;;  %v2351_v44 = vpop.permute.xlu0 %2350 }
 0x4e9   : > { %v2375_v51 = vsel %vm2372_vm8, %v2349_v26, %v2351_v44 }
 0x4ea   : > { %2402 = vst [vmem:[#allocation2 + $0x240] sm:$0xf] %v2375_v51  ;;  %v2353_v1 = vpop.permute.xlu1 %2352 }
 0x4eb   : > { %v2376_v45 = vsel %vm2372_vm8, %v2351_v44, %v2353_v1 }
 0x4ec   : > { %2403 = vst [vmem:[#allocation2 + $0x248] sm:$0xf] %v2376_v45  ;;  %v2355_v55 = vpop.permute.xlu0 %2354 }
 0x4ed   : > { %v2377_v31 = vsel %vm2372_vm8, %v2353_v1, %v2355_v55 }
 0x4ee   : > { %2404 = vst [vmem:[#allocation2 + $0x250] sm:$0xf] %v2377_v31  ;;  %v2357_v52 = vpop.permute.xlu1 %2356 }
 0x4ef   : > { %v2378_v63 = vsel %vm2372_vm8, %v2355_v55, %v2357_v52 }
 0x4f0   : > { %2405 = vst [vmem:[#allocation2 + $0x258] sm:$0xf] %v2378_v63  ;;  %v2359_v36 = vpop.permute.xlu0 %2358  ;;  %v6552_v63 = vld [vmem:[%s10528_s2 + $0x3] ss:$8 sm:$0xf] }
 0x4f1   : > { %v2379_v59 = vsel %vm2372_vm8, %v2357_v52, %v2359_v36 }
 0x4f2   : > { %2406 = vst [vmem:[#allocation2 + $0x260] sm:$0xf] %v2379_v59  ;;  %v2361_v3 = vpop.permute.xlu1 %2360 }
 0x4f3   : > { %v2380_v6 = vsel %vm2372_vm8, %v2359_v36, %v2361_v3  ;;  %v6553_v36 = vld [vmem:[%s10528_s2 + $0x3] ss:$8 sm:$0xf0] }
 0x4f4   : > { %2407 = vst [vmem:[#allocation2 + $0x268] sm:$0xf] %v2380_v6  ;;  %v2363_v2 = vpop.permute.xlu0 %2362 }
 0x4f5   : > { %v2381_v7 = vsel %vm2372_vm8, %v2361_v3, %v2363_v2 }
 0x4f6   : > { %2408 = vst [vmem:[#allocation2 + $0x270] sm:$0xf] %v2381_v7  ;;  %v2365_v16 = vpop.permute.xlu1 %2364 }
 0x4f7   : > { %v2382_v17 = vsel %vm2372_vm8, %v2363_v2, %v2365_v16  ;;  %v2634_v2 = vor.u32 %v6553_v36, %v6552_v63  ;;  %v5608_v36 = vld [vmem:[#allocation2 + $0x1c8] sm:$0xff] }
 0x4f8   : > { %2409 = vst [vmem:[#allocation2 + $0x278] sm:$0xf] %v2382_v17  ;;  %v2367_v5 = vpop.permute.xlu0 %2366 }
 0x4f9   : > { %v2383_v18 = vsel %vm2372_vm8, %v2365_v16, %v2367_v5 }
 0x4fa   : > { %2410 = vst [vmem:[#allocation2 + $0x280] sm:$0xf] %v2383_v18  ;;  %v2369_v23 = vpop.permute.xlu1 %2368  ;;  %v2655_v18 = vrot.slane %v2634_v2, %v7081_v15 }
 0x4fb   : > { %v2384_v47 = vsel %vm2372_vm8, %v2367_v5, %v2369_v23  ;;  %v2651_v5 = vrot.slane %v2634_v2, %v7079_v14 }
 0x4fc   : > { %2411 = vst [vmem:[#allocation2 + $0x288] sm:$0xf] %v2384_v47  ;;  %v2371_v19 = vpop.permute.xlu0 %2370  ;;  %v2647_v47 = vrot.slane %v2634_v2, %v7073_v11 }
 0x4fd   : > { %v2385_v54 = vsel %vm2372_vm8, %v2369_v23, %v2371_v19  ;;  %2413 = vst.msk [vmem:[#allocation2 + $0x298] sm:$0xf] %vm10585_vm5, %v2371_v19  ;;  %v2643_v23 = vrot.slane %v2634_v2, %v7071_v10  ;;  %v6554_v19 = vld [vmem:[%s10528_s2 + $0x43] ss:$8 sm:$0xf]  ;;  %vm4081_vm8 = vcmask 269312  }
 0x4fe   : > { %2412 = vst [vmem:[#allocation2 + $0x290] sm:$0xf] %v2385_v54  ;;  %v2493_v21 = vpop.permute.xlu1 %2492  ;;  %v6555_v54 = vld [vmem:[%s10528_s2 + $0x43] ss:$8 sm:$0x30] }
 0x4ff   : > { %v2506_v53 = vrot.slane %v2493_v21, 4 }
 0x500   : > { %v2495_v37 = vpop.permute.xlu0 %2494 }
 0x501   : > { %v2514_v27 = vsel %vm2513_vm10, %v2506_v53, %v2493_v21  ;;  %v2507_v28 = vrot.slane %v2495_v37, 4 }
 0x502   : > { %v2534_v38 = vmul.f32 %v2514_v27, %v7871_v29  ;;  %v2497_v35 = vpop.permute.xlu1 %2496  ;;  %v2671_v27 = vrot.slane %v2634_v2, %v7077_v13 }
 0x503   : > { %v2515_v30 = vsel %vm511_vm2, %v2506_v53, %v2507_v28  ;;  %v2508_v57 = vrot.slane %v2497_v35, 4  ;;  %v2697_v53 = vcombine.low %v2651_v5, %v2655_v18 }
 0x504   : > { %v2548_v50 = vcombine.low %v2534_v38, %v2534_v38  ;;  %v2516_v20 = vsel %vm2513_vm10, %v2515_v30, %v2495_v37  ;;  %2557 = vrot.lane.b32.xlu1 %v2534_v38, %s6974_s7  ;;  %v2499_v34 = vpop.permute.xlu0 %2498  ;;  %v2667_v37 = vrot.slane %v2634_v2, %v7075_v12  ;;  %v2659_v38 = vrot.slane %v2634_v2, %v7067_v8 }
 0x505   : > { %v2535_v56 = vmul.f32 %v2516_v20, %v7876_v22  ;;  %v2517_v58 = vsel %vm511_vm2, %v2507_v28, %v2508_v57  ;;  %v2509_v42 = vrot.slane %v2499_v34, 4  ;;  %v2696_v28 = vcombine.low %v2643_v23, %v2647_v47  ;;  %v5610_v23 = vld [vmem:[#allocation2 + $0x1d8] sm:$0xff] }
 0x506   : > { %v2518_v32 = vsel %vm2513_vm10, %v2517_v58, %v2497_v35  ;;  %2555 = vrot.lane.b32.xlu0 %v2548_v50, %s6974_s7  ;;  %v2501_v33 = vpop.permute.xlu1 %2500  ;;  %v2663_v35 = vrot.slane %v2634_v2, %v7069_v9  ;;  %v2637_v30 = vor.u32 %v6555_v54, %v6554_v19  ;;  %v5607_v2 = vld [vmem:[#allocation2 + $0x1c0] sm:$0xff] }
 0x507   : > { %v2549_v46 = vcombine.low %v2535_v56, %v2535_v56  ;;  %v2519_v48 = vsel %vm511_vm2, %v2508_v57, %v2509_v42  ;;  %v2510_v39 = vrot.slane %v2501_v33, 4  ;;  %v2536_v40 = vmul.f32 %v2518_v32, %v7883_v61 }
 0x508   : > { %2561 = vrot.lane.b32.xlu1 %v2535_v56, %s6974_s7  ;;  %v2503_v62 = vpop.permute.xlu0 %2502  ;;  %v2520_v24 = vsel %vm2513_vm10, %v2519_v48, %v2499_v34  ;;  %v2699_v57 = vcombine.low %v2667_v37, %v2671_v27  ;;  %v2683_v50 = vrot.slane %v2637_v30, %v7079_v14  ;;  %v2687_v20 = vrot.slane %v2637_v30, %v7081_v15 }
 0x509   : > { %v2521_v41 = vsel %vm511_vm2, %v2509_v42, %v2510_v39  ;;  %v2511_v43 = vrot.slane %v2503_v62, 4  ;;  %v2550_v60 = vcombine.low %v2536_v40, %v2536_v40  ;;  %v2537_v44 = vmul.f32 %v2520_v24, %v7892_v49 }
 0x50a   : > { %2559 = vrot.lane.b32.xlu0 %v2549_v46, %s6974_s7  ;;  %v2505_v26 = vpop.permute.xlu1 %2504  ;;  %v2522_v51 = vsel %vm2513_vm10, %v2521_v41, %v2501_v33  ;;  %v2698_v34 = vcombine.low %v2659_v38, %v2663_v35  ;;  %v2675_v56 = vrot.slane %v2637_v30, %v7071_v10  ;;  %v2679_v58 = vrot.slane %v2637_v30, %v7073_v11 }
 0x50b   : > { %v2523_v1 = vsel %vm511_vm2, %v2510_v39, %v2511_v43  ;;  %v2512_v45 = vrot.slane %v2505_v26, 4  ;;  %v2551_v55 = vcombine.low %v2537_v44, %v2537_v44  ;;  %v2538_v31 = vmul.f32 %v2522_v51, %v7900_v0 }
 0x50c   : > { %2565 = vrot.lane.b32.xlu1 %v2536_v40, %s6974_s7  ;;  %v2524_v52 = vsel %vm2513_vm10, %v2523_v1, %v2503_v62  ;;  %v2701_v42 = vcombine.low %v2683_v50, %v2687_v20  ;;  %v2700_v32 = vcombine.low %v2675_v56, %v2679_v58  ;;  %v2691_v33 = vrot.slane %v2637_v30, %v7067_v8 }
 0x50d   : > { %v2525_v59 = vsel %vm511_vm2, %v2511_v43, %v2512_v45  ;;  %v2552_v3 = vcombine.low %v2538_v31, %v2538_v31  ;;  %v2539_v6 = vmul.f32 %v2524_v52, %v7907_v4  ;;  %v2695_v46 = vrot.slane %v2637_v30, %v7069_v9 }
 0x50e   : > { %2563 = vrot.lane.b32.xlu0 %v2550_v60, %s6974_s7  ;;  %v2526_v7 = vsel %vm2513_vm10, %v2525_v59, %v2505_v26  ;;  %vm10595_vm10 = vcmask 277504  }
 0x50f   : > { %v2553_v16 = vcombine.low %v2539_v6, %v2539_v6  ;;  %v2540_v17 = vmul.f32 %v2526_v7, %v7922_v25  ;;  %v2702_v48 = vcombine.low %v2691_v33, %v2695_v46 }
 0x510   : > { %2569 = vrot.lane.b32.xlu1 %v2537_v44, %s6974_s7 }
 0x511   : > { %v2554_v21 = vcombine.low %v2540_v17, %v2540_v17 }
 0x512   : > { %2567 = vrot.lane.b32.xlu0 %v2551_v55, %s6974_s7 }
 0x514   : > { %2573 = vrot.lane.b32.xlu1 %v2538_v31, %s6974_s7 }
 0x516   : > { %2571 = vrot.lane.b32.xlu0 %v2552_v3, %s6974_s7 }
 0x518   : > { %2577 = vrot.lane.b32.xlu1 %v2539_v6, %s6974_s7 }
 0x51a   : > { %2575 = vrot.lane.b32.xlu0 %v2553_v16, %s6974_s7 }
 0x51c   : > { %2581 = vrot.lane.b32.xlu1 %v2540_v17, %s6974_s7 }
 0x51e   : > { %2579 = vrot.lane.b32.xlu0 %v2554_v21, %s6974_s7  ;;  %v5609_v21 = vld [vmem:[#allocation2 + $0x1d0] sm:$0xff]  ;;  %s6978_s7 = smov 30  }
 0x520   : > { %2705 = vrot.lane.b32.xlu1 %v2697_v53, %s6975_s17 }
 0x522   : > { %2703 = vrot.lane.b32.xlu0 %v2696_v28, %s6975_s17 }
 0x524   : > { %2709 = vrot.lane.b32.xlu1 %v2699_v57, %s6975_s17 }
 0x526   : > { %2707 = vrot.lane.b32.xlu0 %v2698_v34, %s6975_s17 }
 0x528   : > { %2713 = vrot.lane.b32.xlu1 %v2701_v42, %s6975_s17 }
 0x52a   : > { %2711 = vrot.lane.b32.xlu0 %v2700_v32, %s6975_s17 }
 0x52e   : > { %2715 = vrot.lane.b32.xlu0 %v2702_v48, %s6975_s17  ;;  %s6982_s17 = smov 33  }
 0x576   : > { %v2558_v39 = vpop.permute.xlu1 %2557 }
 0x578   : > { %v2556_v40 = vpop.permute.xlu0 %2555 }
 0x579   : > { %v2584_v62 = vsel %vm2583_vm11, %v2556_v40, %v2558_v39 }
 0x57a   : > { %2611 = vst [vmem:[#allocation2 + $0x230] sm:$0xf0] %v2584_v62  ;;  %v2562_v24 = vpop.permute.xlu1 %2561 }
 0x57c   : > { %v2560_v41 = vpop.permute.xlu0 %2559 }
 0x57d   : > { %v2585_v43 = vsel %vm2583_vm11, %v2558_v39, %v2560_v41  ;;  %v2586_v26 = vsel %vm2583_vm11, %v2560_v41, %v2562_v24 }
 0x57e   : > { %2612 = vst [vmem:[#allocation2 + $0x238] sm:$0xf0] %v2585_v43  ;;  %2613 = vst [vmem:[#allocation2 + $0x240] sm:$0xf0] %v2586_v26  ;;  %v2566_v60 = vpop.permute.xlu1 %2565 }
 0x580   : > { %v2564_v44 = vpop.permute.xlu0 %2563 }
 0x581   : > { %v2587_v51 = vsel %vm2583_vm11, %v2562_v24, %v2564_v44  ;;  %v2588_v1 = vsel %vm2583_vm11, %v2564_v44, %v2566_v60  ;;  %v5621_v31 = vld [vmem:[#allocation2 + $0x230] sm:$0xff] }
 0x582   : > { %2614 = vst [vmem:[#allocation2 + $0x248] sm:$0xf0] %v2587_v51  ;;  %2615 = vst [vmem:[#allocation2 + $0x250] sm:$0xf0] %v2588_v1  ;;  %v2570_v45 = vpop.permute.xlu1 %2569  ;;  %v6636_v7 = vpack.c.bf16 %v5621_v31, %v5607_v2 }
 0x584   : > { %v2568_v55 = vpop.permute.xlu0 %2567 }
 0x585   : > { %v2589_v52 = vsel %vm2583_vm11, %v2566_v60, %v2568_v55  ;;  %v2590_v63 = vsel %vm2583_vm11, %v2568_v55, %v2570_v45  ;;  %v5622_v59 = vld [vmem:[#allocation2 + $0x238] sm:$0xff]  ;;  %v5623_v17 = vld [vmem:[#allocation2 + $0x240] sm:$0xff] }
 0x586   : > { %2616 = vst [vmem:[#allocation2 + $0x258] sm:$0xf0] %v2589_v52  ;;  %2617 = vst [vmem:[#allocation2 + $0x260] sm:$0xf0] %v2590_v63  ;;  %v2574_v3 = vpop.permute.xlu1 %2573  ;;  %v6634_v6 = vpack.c.bf16 %v5622_v59, %v5608_v36  ;;  %v6666_v53 = vpack.c.bf16 %v5623_v17, %v5609_v21 }
 0x588   : > { %v2572_v16 = vpop.permute.xlu0 %2571  ;;  %6635 = vmatprep.subr.bf16.mxu0 %v6634_v6 }
 0x589   : > { %v2591_v5 = vsel %vm2583_vm11, %v2570_v45, %v2572_v16  ;;  %v2592_v18 = vsel %vm2583_vm11, %v2572_v16, %v2574_v3  ;;  %6637 = vmatpush1.bf16.msra.mxu0 %v6636_v7  ;;  %v5624_v47 = vld [vmem:[#allocation2 + $0x248] sm:$0xff] }
 0x58a   : > { %2618 = vst [vmem:[#allocation2 + $0x268] sm:$0xf0] %v2591_v5  ;;  %2619 = vst [vmem:[#allocation2 + $0x270] sm:$0xf0] %v2592_v18  ;;  %v2578_v19 = vpop.permute.xlu1 %2577  ;;  %v6664_v54 = vpack.c.bf16 %v5624_v47, %v5610_v23 }
 0x58c   : > { %v2576_v37 = vpop.permute.xlu0 %2575  ;;  %6665 = vmatprep.subr.bf16.mxu1 %v6664_v54 }
 0x58d   : > { %v2593_v27 = vsel %vm2583_vm11, %v2574_v3, %v2576_v37  ;;  %v2594_v28 = vsel %vm2583_vm11, %v2576_v37, %v2578_v19  ;;  %6667 = vmatpush1.bf16.msra.mxu1 %v6666_v53  ;;  %v2850_v53 = vcombine.low %v7871_v29, %v7871_v29  ;;  %v2851_v37 = vcombine.low %v7876_v22, %v7876_v22 }
 0x58e   : > { %2620 = vst [vmem:[#allocation2 + $0x278] sm:$0xf0] %v2593_v27  ;;  %2621 = vst [vmem:[#allocation2 + $0x280] sm:$0xf0] %v2594_v28  ;;  %v2582_v38 = vpop.permute.xlu1 %2581  ;;  %v2852_v27 = vcombine.low %v7883_v61, %v7883_v61  ;;  %v2853_v28 = vcombine.low %v7892_v49, %v7892_v49 }
 0x58f   : > { %2624 = vst.msk [vmem:[#allocation2 + $0x298] sm:$0xf0] %vm10573_vm9, %v2582_v38 }
 0x590   : > { %v2580_v35 = vpop.permute.xlu0 %2579 }
 0x591   : > { %v2595_v30 = vsel %vm2583_vm11, %v2578_v19, %v2580_v35  ;;  %v2596_v57 = vsel %vm2583_vm11, %v2580_v35, %v2582_v38  ;;  %v6556_v38 = vld [vmem:[%s10528_s2 + $0x5] ss:$8 sm:$0xf]  ;;  %vm4503_vm11 = vcmask 359424  }
 0x592   : > { %2622 = vst [vmem:[#allocation2 + $0x288] sm:$0xf0] %v2595_v30  ;;  %2623 = vst [vmem:[#allocation2 + $0x290] sm:$0xf0] %v2596_v57  ;;  %v2706_v50 = vpop.permute.xlu1 %2705  ;;  %v2856_v30 = vcombine.low %v7922_v25, %v7922_v25 }
 0x593   : > { %v2718_v20 = vrot.slane %v2706_v50, 4 }
 0x594   : > { %v2704_v34 = vpop.permute.xlu0 %2703 }
 0x595   : > { %v2717_v56 = vrot.slane %v2704_v34, 4 }
 0x596   : > { %v2710_v58 = vpop.permute.xlu1 %2709 }
 0x597   : > { %v2725_v42 = vsel %vm2724_vm12, %v2717_v56, %v2704_v34  ;;  %v2726_v32 = vsel %vm511_vm2, %v2717_v56, %v2718_v20  ;;  %v2720_v39 = vrot.slane %v2710_v58, 4 }
 0x598   : > { %v2745_v33 = vmul.f32 %v2725_v42, %v7871_v29  ;;  %v2727_v46 = vsel %vm2724_vm12, %v2726_v32, %v2706_v50  ;;  %v2708_v48 = vpop.permute.xlu0 %2707 }
 0x599   : > { %v2719_v40 = vrot.slane %v2708_v48, 4  ;;  %v2746_v24 = vmul.f32 %v2727_v46, %v7876_v22 }
 0x59a   : > { %v2759_v62 = vcombine.high %v2745_v33, %v2745_v33  ;;  %2766 = vrot.lane.b32.xlu1 %v2745_v33, %s6976_s22  ;;  %v2714_v51 = vpop.permute.xlu1 %2713 }
 0x59b   : > { %v2728_v41 = vsel %vm511_vm2, %v2718_v20, %v2719_v40  ;;  %v2730_v26 = vsel %vm511_vm2, %v2719_v40, %v2720_v39  ;;  %v2760_v1 = vcombine.high %v2746_v24, %v2746_v24  ;;  %v2722_v52 = vrot.slane %v2714_v51, 4  ;;  %v6559_v20 = vld [vmem:[%s10528_s2 + $0x45] ss:$8 sm:$0x30] }
 0x59c   : > { %v2729_v43 = vsel %vm2724_vm12, %v2728_v41, %v2708_v48  ;;  %2768 = vrot.lane.b32.xlu0 %v2759_v62, %s6976_s22  ;;  %v2712_v60 = vpop.permute.xlu0 %2711  ;;  %v2731_v55 = vsel %vm2724_vm12, %v2730_v26, %v2710_v58 }
 0x59d   : > { %v2721_v44 = vrot.slane %v2712_v60, 4  ;;  %v2747_v45 = vmul.f32 %v2729_v43, %v7883_v61  ;;  %v2748_v59 = vmul.f32 %v2731_v55, %v7892_v49 }
 0x59e   : > { %2770 = vrot.lane.b32.xlu1 %v2746_v24, %s6976_s22 }
 0x59f   : > { %v2732_v31 = vsel %vm511_vm2, %v2720_v39, %v2721_v44  ;;  %v2761_v36 = vcombine.high %v2747_v45, %v2747_v45  ;;  %v2734_v6 = vsel %vm511_vm2, %v2721_v44, %v2722_v52  ;;  %v2762_v7 = vcombine.high %v2748_v59, %v2748_v59 }
 0x5a0   : > { %2772 = vrot.lane.b32.xlu0 %v2760_v1, %s6976_s22  ;;  %v2716_v63 = vpop.permute.xlu0 %2715  ;;  %v2733_v3 = vsel %vm2724_vm12, %v2732_v31, %v2712_v60  ;;  %v2735_v17 = vsel %vm2724_vm12, %v2734_v6, %v2714_v51 }
 0x5a1   : > { %v2723_v2 = vrot.slane %v2716_v63, 4  ;;  %v2749_v16 = vmul.f32 %v2733_v3, %v7900_v0  ;;  %v2750_v23 = vmul.f32 %v2735_v17, %v7907_v4 }
 0x5a2   : > { %2774 = vrot.lane.b32.xlu1 %v2747_v45, %s6976_s22 }
 0x5a3   : > { %v2736_v5 = vsel %vm511_vm2, %v2722_v52, %v2723_v2  ;;  %v2763_v18 = vcombine.high %v2749_v16, %v2749_v16  ;;  %v2764_v19 = vcombine.high %v2750_v23, %v2750_v23 }
 0x5a4   : > { %2776 = vrot.lane.b32.xlu0 %v2761_v36, %s6976_s22  ;;  %v2737_v47 = vsel %vm2724_vm12, %v2736_v5, %v2716_v63  ;;  %vm4805_vm12 = vcmask 375808  }
 0x5a5   : > { %v2751_v54 = vmul.f32 %v2737_v47, %v7922_v25 }
 0x5a6   : > { %2778 = vrot.lane.b32.xlu1 %v2748_v59, %s6976_s22 }
 0x5a7   : > { %v2765_v21 = vcombine.high %v2751_v54, %v2751_v54 }
 0x5a8   : > { %2780 = vrot.lane.b32.xlu0 %v2762_v7, %s6976_s22 }
 0x5aa   : > { %2782 = vrot.lane.b32.xlu1 %v2749_v16, %s6976_s22 }
 0x5ac   : > { %2784 = vrot.lane.b32.xlu0 %v2763_v18, %s6976_s22 }
 0x5ae   : > { %2786 = vrot.lane.b32.xlu1 %v2750_v23, %s6976_s22 }
 0x5b0   : > { %2788 = vrot.lane.b32.xlu0 %v2764_v19, %s6976_s22 }
 0x5b2   : > { %2790 = vrot.lane.b32.xlu1 %v2751_v54, %s6976_s22 }
 0x5b4   : > { %2792 = vrot.lane.b32.xlu0 %v2765_v21, %s6976_s22  ;;  %s6996_s22 = smov 94  }
 0x5b6   : > { %2857 = vrot.lane.b32.xlu1 %v2850_v53, %s6977_s23 }
 0x5b8   : > { %2859 = vrot.lane.b32.xlu0 %v7871_v29, %s6977_s23  ;;  %v2854_v29 = vcombine.low %v7900_v0, %v7900_v0 }
 0x5ba   : > { %2861 = vrot.lane.b32.xlu1 %v2851_v37, %s6977_s23 }
 0x5bc   : > { %2863 = vrot.lane.b32.xlu0 %v7876_v22, %s6977_s23  ;;  %v6557_v22 = vld [vmem:[%s10528_s2 + $0x5] ss:$8 sm:$0xf0] }
 0x5bd   : > { %v2936_v35 = vor.u32 %v6557_v22, %v6556_v38 }
 0x5be   : > { %2865 = vrot.lane.b32.xlu1 %v2852_v27, %s6977_s23 }
 0x5bf   : > { %v2945_v57 = vrot.slane %v2936_v35, %v7071_v10  ;;  %v2949_v50 = vrot.slane %v2936_v35, %v7073_v11  ;;  %v2957_v34 = vrot.slane %v2936_v35, %v7081_v15  ;;  %v2961_v58 = vrot.slane %v2936_v35, %v7067_v8 }
 0x5c0   : > { %2867 = vrot.lane.b32.xlu0 %v7883_v61, %s6977_s23  ;;  %v2855_v61 = vcombine.low %v7907_v4, %v7907_v4  ;;  %v2965_v42 = vrot.slane %v2936_v35, %v7069_v9  ;;  %v2969_v46 = vrot.slane %v2936_v35, %v7075_v12 }
 0x5c1   : > { %v2998_v56 = vcombine.low %v2945_v57, %v2949_v50 }
 0x5c2   : > { %2869 = vrot.lane.b32.xlu1 %v2853_v28, %s6977_s23  ;;  %v3000_v48 = vcombine.low %v2961_v58, %v2965_v42 }
 0x5c4   : > { %2871 = vrot.lane.b32.xlu0 %v7892_v49, %s6977_s23  ;;  %v6558_v49 = vld [vmem:[%s10528_s2 + $0x45] ss:$8 sm:$0xf] }
 0x5c5   : > { %v2939_v32 = vor.u32 %v6559_v20, %v6558_v49 }
 0x5c6   : > { %2873 = vrot.lane.b32.xlu1 %v2854_v29, %s6977_s23 }
 0x5c7   : > { %v2977_v39 = vrot.slane %v2939_v32, %v7071_v10  ;;  %v2981_v40 = vrot.slane %v2939_v32, %v7073_v11  ;;  %v2985_v24 = vrot.slane %v2939_v32, %v7079_v14  ;;  %v2989_v41 = vrot.slane %v2939_v32, %v7081_v15 }
 0x5c8   : > { %2875 = vrot.lane.b32.xlu0 %v7900_v0, %s6977_s23  ;;  %v2953_v0 = vrot.slane %v2936_v35, %v7079_v14  ;;  %v2993_v43 = vrot.slane %v2939_v32, %v7067_v8  ;;  %v2997_v26 = vrot.slane %v2939_v32, %v7069_v9 }
 0x5c9   : > { %v3003_v60 = vcombine.low %v2985_v24, %v2989_v41 }
 0x5ca   : > { %2877 = vrot.lane.b32.xlu1 %v2855_v61, %s6977_s23  ;;  %v2999_v33 = vcombine.low %v2953_v0, %v2957_v34  ;;  %v3004_v44 = vcombine.low %v2993_v43, %v2997_v26 }
 0x5cc   : > { %2879 = vrot.lane.b32.xlu0 %v7907_v4, %s6977_s23  ;;  %v2973_v4 = vrot.slane %v2936_v35, %v7077_v13 }
 0x5ce   : > { %2881 = vrot.lane.b32.xlu1 %v2856_v30, %s6977_s23  ;;  %v3001_v62 = vcombine.low %v2969_v46, %v2973_v4 }
 0x5d0   : > { %2883 = vrot.lane.b32.xlu0 %v7922_v25, %s6977_s23  ;;  %v3002_v25 = vcombine.low %v2977_v39, %v2981_v40  ;;  %s10557_s23 = smov 84  }
 0x5d2   : > { %3005 = vrot.lane.b32.xlu1 %v2998_v56, %s6978_s7 }
 0x5d4   : > { %3007 = vrot.lane.b32.xlu0 %v2999_v33, %s6978_s7 }
 0x5d6   : > { %3009 = vrot.lane.b32.xlu1 %v3000_v48, %s6978_s7 }
 0x5d8   : > { %3011 = vrot.lane.b32.xlu0 %v3001_v62, %s6978_s7 }
 0x5da   : > { %3013 = vrot.lane.b32.xlu1 %v3002_v25, %s6978_s7 }
 0x5dc   : > { %3015 = vrot.lane.b32.xlu0 %v3003_v60, %s6978_s7 }
 0x5de   : > { %3017 = vrot.lane.b32.xlu1 %v3004_v44, %s6978_s7  ;;  %v6560_v44 = vld [vmem:[%s10528_s2 + $0x6] ss:$8 sm:$0xf]  ;;  %s6987_s7 = smov 34  }
 0x60c   : > { %v2767_v51 = vpop.permute.xlu1 %2766 }
 0x60e   : > { %v2769_v1 = vpop.permute.xlu0 %2768 }
 0x60f   : > { %v2795_v45 = vsel %vm2794_vm13, %v2767_v51, %v2769_v1  ;;  %v8240_v51 = vld [vmem:[%s7171_s6 + $0x4] sm:$0xff] }
 0x610   : > { %2822 = vst [vmem:[#allocation2 + $0x2a0] sm:$0xf] %v2795_v45  ;;  %v2771_v55 = vpop.permute.xlu1 %2770  ;;  %v6561_v45 = vld [vmem:[%s10528_s2 + $0x6] ss:$8 sm:$0xf0] }
 0x611   : > { %v2796_v31 = vsel %vm2794_vm13, %v2769_v1, %v2771_v55 }
 0x612   : > { %2823 = vst [vmem:[#allocation2 + $0x2a8] sm:$0xf] %v2796_v31  ;;  %v2773_v52 = vpop.permute.xlu0 %2772 }
 0x613   : > { %v2797_v63 = vsel %vm2794_vm13, %v2771_v55, %v2773_v52 }
 0x614   : > { %2824 = vst [vmem:[#allocation2 + $0x2b0] sm:$0xf] %v2797_v63  ;;  %v2775_v36 = vpop.permute.xlu1 %2774 }
 0x615   : > { %v2798_v59 = vsel %vm2794_vm13, %v2773_v52, %v2775_v36 }
 0x616   : > { %2825 = vst [vmem:[#allocation2 + $0x2b8] sm:$0xf] %v2798_v59  ;;  %v2777_v3 = vpop.permute.xlu0 %2776 }
 0x617   : > { %v2799_v6 = vsel %vm2794_vm13, %v2775_v36, %v2777_v3  ;;  %v8248_v36 = vld [vmem:[%s7171_s6 + $0xc] sm:$0xff] }
 0x618   : > { %2826 = vst [vmem:[#allocation2 + $0x2c0] sm:$0xf] %v2799_v6  ;;  %v2779_v2 = vpop.permute.xlu1 %2778 }
 0x619   : > { %v2800_v7 = vsel %vm2794_vm13, %v2777_v3, %v2779_v2  ;;  %v8250_v3 = vor.u32 %v6561_v45, %v6560_v44 }
 0x61a   : > { %2827 = vst [vmem:[#allocation2 + $0x2c8] sm:$0xf] %v2800_v7  ;;  %v2781_v16 = vpop.permute.xlu0 %2780 }
 0x61b   : > { %v2801_v17 = vsel %vm2794_vm13, %v2779_v2, %v2781_v16 }
 0x61c   : > { %2828 = vst [vmem:[#allocation2 + $0x2d0] sm:$0xf] %v2801_v17  ;;  %v2783_v5 = vpop.permute.xlu1 %2782 }
 0x61d   : > { %v2802_v18 = vsel %vm2794_vm13, %v2781_v16, %v2783_v5 }
 0x61e   : > { %2829 = vst [vmem:[#allocation2 + $0x2d8] sm:$0xf] %v2802_v18  ;;  %v2785_v23 = vpop.permute.xlu0 %2784 }
 0x61f   : > { %v2803_v47 = vsel %vm2794_vm13, %v2783_v5, %v2785_v23  ;;  %v6568_v5 = vld [vmem:[%s10528_s2 + $0x70] ss:$8 sm:$0xf] }
 0x620   : > { %2830 = vst [vmem:[#allocation2 + $0x2e0] sm:$0xf] %v2803_v47  ;;  %v2787_v19 = vpop.permute.xlu1 %2786 }
 0x621   : > { %v2804_v54 = vsel %vm2794_vm13, %v2785_v23, %v2787_v19  ;;  %v2929_v23 = vld [vmem:[%s7171_s6 + $0x14] sm:$0xff] }
 0x622   : > { %2831 = vst [vmem:[#allocation2 + $0x2e8] sm:$0xf] %v2804_v54  ;;  %v2789_v21 = vpop.permute.xlu0 %2788  ;;  %v6569_v54 = vld [vmem:[%s10528_s2 + $0x70] ss:$8 sm:$0xf0] }
 0x623   : > { %v2805_v53 = vsel %vm2794_vm13, %v2787_v19, %v2789_v21 }
 0x624   : > { %2832 = vst [vmem:[#allocation2 + $0x2f0] sm:$0xf] %v2805_v53  ;;  %v2791_v37 = vpop.permute.xlu1 %2790  ;;  %v3156_v53 = vrot.slane %v8250_v3, %v7071_v10 }
 0x625   : > { %v2806_v27 = vsel %vm2794_vm13, %v2789_v21, %v2791_v37 }
 0x626   : > { %2833 = vst [vmem:[#allocation2 + $0x2f8] sm:$0xf] %v2806_v27  ;;  %v2793_v28 = vpop.permute.xlu0 %2792 }
 0x627   : > { %v2807_v29 = vsel %vm2794_vm13, %v2791_v37, %v2793_v28  ;;  %2835 = vst.msk [vmem:[#allocation2 + $0x308] sm:$0xf] %vm10585_vm5, %v2793_v28  ;;  %vm5016_vm13 = vcmask 457728   ;;  %vm3518_vm5 = vcmask 711680  }
 0x628   : > { %2834 = vst [vmem:[#allocation2 + $0x300] sm:$0xf] %v2807_v29  ;;  %v2858_v38 = vpop.permute.xlu1 %2857  ;;  %v3160_v29 = vrot.slane %v8250_v3, %v7073_v11 }
 0x62a   : > { %v2860_v22 = vpop.permute.xlu0 %2859 }
 0x62b   : > { %v2886_v61 = vsel %vm2885_vm14, %v2858_v38, %v2860_v22 }
 0x62c   : > { %2913 = vst [vmem:[#allocation2 + $0x2a0] sm:$0xf0] %v2886_v61  ;;  %v2862_v35 = vpop.permute.xlu1 %2861 }
 0x62d   : > { %v2887_v30 = vsel %vm2885_vm14, %v2860_v22, %v2862_v35 }
 0x62e   : > { %2914 = vst [vmem:[#allocation2 + $0x2a8] sm:$0xf0] %v2887_v30  ;;  %v2864_v57 = vpop.permute.xlu0 %2863 }
 0x62f   : > { %v2888_v50 = vsel %vm2885_vm14, %v2862_v35, %v2864_v57  ;;  %v8278_v35 = vor.u32 %v6569_v54, %v6568_v5 }
 0x630   : > { %2915 = vst [vmem:[#allocation2 + $0x2b0] sm:$0xf0] %v2888_v50  ;;  %v2866_v49 = vpop.permute.xlu1 %2865  ;;  %v6575_v50 = vld [vmem:[%s10528_s2 + $0x1] ss:$8 sm:$0xf0] }
 0x631   : > { %v2889_v20 = vsel %vm2885_vm14, %v2864_v57, %v2866_v49  ;;  %v6574_v57 = vld [vmem:[%s10528_s2 + $0x1] ss:$8 sm:$0xf] }
 0x632   : > { %2916 = vst [vmem:[#allocation2 + $0x2b8] sm:$0xf0] %v2889_v20  ;;  %v2868_v0 = vpop.permute.xlu0 %2867  ;;  %v3164_v20 = vrot.slane %v8250_v3, %v7079_v14 }
 0x633   : > { %v2890_v34 = vsel %vm2885_vm14, %v2866_v49, %v2868_v0 }
 0x634   : > { %2917 = vst [vmem:[#allocation2 + $0x2c0] sm:$0xf0] %v2890_v34  ;;  %v2870_v56 = vpop.permute.xlu1 %2869 }
 0x635   : > { %v2891_v58 = vsel %vm2885_vm14, %v2868_v0, %v2870_v56  ;;  %v3168_v0 = vrot.slane %v8250_v3, %v7081_v15 }
 0x636   : > { %2918 = vst [vmem:[#allocation2 + $0x2c8] sm:$0xf0] %v2891_v58  ;;  %v2872_v42 = vpop.permute.xlu0 %2871  ;;  %v3209_v58 = vcombine.low %v3156_v53, %v3160_v29  ;;  %v6586_v53 = vld [vmem:[%s10528_s2 + $0x5] ss:$8 sm:$0xf] }
 0x637   : > { %v2892_v32 = vsel %vm2885_vm14, %v2870_v56, %v2872_v42 }
 0x638   : > { %2919 = vst [vmem:[#allocation2 + $0x2d0] sm:$0xf0] %v2892_v32  ;;  %v2874_v33 = vpop.permute.xlu1 %2873 }
 0x639   : > { %v2893_v46 = vsel %vm2885_vm14, %v2872_v42, %v2874_v33 }
 0x63a   : > { %2920 = vst [vmem:[#allocation2 + $0x2d8] sm:$0xf0] %v2893_v46  ;;  %v2876_v4 = vpop.permute.xlu0 %2875  ;;  %v3578_v46 = vrot.slane %v8278_v35, %v7071_v10 }
 0x63b   : > { %v2894_v48 = vsel %vm2885_vm14, %v2874_v33, %v2876_v4 }
 0x63c   : > { %2921 = vst [vmem:[#allocation2 + $0x2e0] sm:$0xf0] %v2894_v48  ;;  %v2878_v39 = vpop.permute.xlu1 %2877  ;;  %v8306_v48 = vor.u32 %v6575_v50, %v6574_v57 }
 0x63d   : > { %v2895_v40 = vsel %vm2885_vm14, %v2876_v4, %v2878_v39  ;;  %v3582_v4 = vrot.slane %v8278_v35, %v7073_v11 }
 0x63e   : > { %2922 = vst [vmem:[#allocation2 + $0x2e8] sm:$0xf0] %v2895_v40  ;;  %v2880_v62 = vpop.permute.xlu0 %2879  ;;  %v6565_v40 = vld [vmem:[%s10528_s2 + $0x7] ss:$8 sm:$0xf0]  ;;  %v4004_v45 = vrot.slane %v8306_v48, %v7073_v11 }
 0x63f   : > { %v2896_v24 = vsel %vm2885_vm14, %v2878_v39, %v2880_v62  ;;  %v6564_v39 = vld [vmem:[%s10528_s2 + $0x7] ss:$8 sm:$0xf]  ;;  %v3631_v44 = vcombine.low %v3578_v46, %v3582_v4 }
 0x640   : > { %2923 = vst [vmem:[#allocation2 + $0x2f0] sm:$0xf0] %v2896_v24  ;;  %v2882_v41 = vpop.permute.xlu1 %2881  ;;  %v3210_v24 = vcombine.low %v3164_v20, %v3168_v0  ;;  %v6578_v0 = vld [vmem:[%s10528_s2 + $0x2] ss:$8 sm:$0xf] }
 0x641   : > { %v2897_v25 = vsel %vm2885_vm14, %v2880_v62, %v2882_v41 }
 0x642   : > { %2924 = vst [vmem:[#allocation2 + $0x2f8] sm:$0xf0] %v2897_v25  ;;  %v2884_v43 = vpop.permute.xlu0 %2883  ;;  %v3590_v25 = vrot.slane %v8278_v35, %v7081_v15 }
 0x643   : > { %v2898_v26 = vsel %vm2885_vm14, %v2882_v41, %v2884_v43  ;;  %2926 = vst.msk [vmem:[#allocation2 + $0x308] sm:$0xf0] %vm10573_vm9, %v2884_v43  ;;  %v3586_v41 = vrot.slane %v8278_v35, %v7079_v14  ;;  %vm5227_vm14 = vcmask 465920   ;;  %vm10619_vm9 = vcmask 719872  }
 0x644   : > { %2925 = vst [vmem:[#allocation2 + $0x300] sm:$0xf0] %v2898_v26  ;;  %v3006_v60 = vpop.permute.xlu1 %3005  ;;  %v3778_v26 = vld [vmem:[%s10528_s2] ss:$8 sm:$0xf] }
 0x645   : > { %v3019_v1 = vrot.slane %v3006_v60, 4 }
 0x646   : > { %v3008_v55 = vpop.permute.xlu0 %3007 }
 0x647   : > { %v3027_v31 = vsel %vm3026_vm15, %v3019_v1, %v3006_v60  ;;  %v3020_v52 = vrot.slane %v3008_v55, 4  ;;  %v3779_v60 = vld [vmem:[%s10528_s2] ss:$8 sm:$0xf0] }
 0x648   : > { %v3047_v63 = vmul.f32 %v3027_v31, %v8240_v51  ;;  %v3010_v59 = vpop.permute.xlu1 %3009  ;;  %v3632_v31 = vcombine.low %v3586_v41, %v3590_v25 }
 0x649   : > { %v3028_v6 = vsel %vm511_vm2, %v3019_v1, %v3020_v52  ;;  %v3021_v2 = vrot.slane %v3010_v59, 4  ;;  %v4000_v1 = vrot.slane %v8306_v48, %v7071_v10 }
 0x64a   : > { %v3061_v7 = vcombine.high %v3047_v63, %v3047_v63  ;;  %v3029_v16 = vsel %vm3026_vm15, %v3028_v6, %v3008_v55  ;;  %3068 = vrot.lane.b32.xlu0 %v3047_v63, %s6979_s13  ;;  %v3012_v17 = vpop.permute.xlu0 %3011  ;;  %v8336_v55 = vor.u32 %v6565_v40, %v6564_v39  ;;  %v4012_v63 = vrot.slane %v8306_v48, %v7081_v15 }
 0x64b   : > { %v3048_v18 = vmul.f32 %v3029_v16, %v8248_v36  ;;  %v3030_v47 = vsel %vm511_vm2, %v3020_v52, %v3021_v2  ;;  %v3022_v19 = vrot.slane %v3012_v17, 4  ;;  %v4008_v52 = vrot.slane %v8306_v48, %v7079_v14  ;;  %v6582_v16 = vld [vmem:[%s10528_s2 + $0x3] ss:$8 sm:$0xf] }
 0x64c   : > { %v3031_v21 = vsel %vm3026_vm15, %v3030_v47, %v3010_v59  ;;  %3070 = vrot.lane.b32.xlu1 %v3061_v7, %s6979_s13  ;;  %v8268_v37 = vpop.permute.xlu1 %3013  ;;  %v8343_v59 = vor.u32 %v3779_v60, %v3778_v26  ;;  %v4053_v6 = vcombine.low %v4000_v1, %v4004_v45  ;;  %v3371_v7 = vrot.slane %v8336_v55, %v7073_v11 }
 0x64d   : > { %10630 = vst [vmem:[#allocation3_spill] sm:$0xff] %v8268_v37  ;;  %v3062_v27 = vcombine.high %v3048_v18, %v3048_v18  ;;  %v3032_v28 = vsel %vm511_vm2, %v3021_v2, %v3022_v19  ;;  %v10532_v38 = vrot.slane %v8268_v37, 4  ;;  %v3049_v22 = vmul.f32 %v3031_v21, %v2929_v23 }
 0x64e   : > { %v8275_v61 = vsel %vm3026_vm15, %v3032_v28, %v3012_v17  ;;  %3072 = vrot.lane.b32.xlu0 %v3048_v18, %s6979_s13  ;;  %v8280_v30 = vpop.permute.xlu0 %3015  ;;  %v3367_v2 = vrot.slane %v8336_v55, %v7071_v10  ;;  %v6583_v17 = vld [vmem:[%s10528_s2 + $0x3] ss:$8 sm:$0xf0]  ;;  %v4054_v5 = vcombine.low %v4008_v52, %v4012_v63  ;;  %v3789_v18 = vrot.slane %v8343_v59, %v7071_v10  ;;  %v6591_v52 = vld [vmem:[%s10528_s2 + $0x6] ss:$8 sm:$0xf0] }
 0x64f   : > { %10631 = vst [vmem:[#allocation4_spill] sm:$0xff] %v8280_v30  ;;  %v3034_v49 = vsel %vm511_vm2, %v3022_v19, %v10532_v38  ;;  %v10533_v42 = vrot.slane %v8280_v30, 4  ;;  %v3063_v33 = vcombine.high %v3049_v22, %v3049_v22  ;;  %v3793_v23 = vrot.slane %v8343_v59, %v7073_v11 }
 0x650   : > { %3074 = vrot.lane.b32.xlu1 %v3062_v27, %s6979_s13  ;;  %v8298_v34 = vsel %vm3026_vm15, %v3034_v49, %v8268_v37  ;;  %v3018_v56 = vpop.permute.xlu1 %3017  ;;  %v3420_v47 = vcombine.low %v3367_v2, %v3371_v7  ;;  %v3375_v19 = vrot.slane %v8336_v55, %v7079_v14  ;;  %v3379_v54 = vrot.slane %v8336_v55, %v7081_v15  ;;  %v6587_v27 = vld [vmem:[%s10528_s2 + $0x5] ss:$8 sm:$0xf0]  ;;  %v6598_v7 = vld [vmem:[%s10528_s2 + $0x70] ss:$8 sm:$0xf] }
 0x651   : > { %10632 = vst [vmem:[#allocation5_spill] sm:$0xff] %v8298_v34  ;;  %v3025_v32 = vrot.slane %v3018_v56, 4  ;;  %v8366_v21 = vor.u32 %v6583_v17, %v6582_v16  ;;  %v3842_v28 = vcombine.low %v3789_v18, %v3793_v23  ;;  %v3797_v29 = vrot.slane %v8343_v59, %v7079_v14  ;;  %v6599_v16 = vld [vmem:[%s10528_s2 + $0x70] ss:$8 sm:$0xf0] }
 0x652   : > { %3076 = vrot.lane.b32.xlu0 %v3049_v22, %s6979_s13  ;;  %v3801_v22 = vrot.slane %v8343_v59, %v7081_v15  ;;  %v3421_v57 = vcombine.low %v3375_v19, %v3379_v54  ;;  %v8384_v20 = vor.u32 %v6587_v27, %v6586_v53  ;;  %v8451_v53 = vor.u32 %v6599_v16, %v6598_v7 }
 0x653   : > { %v3038_v62 = vsel %vm511_vm2, %v10533_v42, %v3025_v32  ;;  %v4422_v50 = vrot.slane %v8366_v21, %v7071_v10  ;;  %v4426_v49 = vrot.slane %v8366_v21, %v7073_v11  ;;  %v4430_v32 = vrot.slane %v8366_v21, %v7079_v14 }
 0x654   : > { %3078 = vrot.lane.b32.xlu1 %v3063_v33, %s6979_s13  ;;  %v8323_v43 = vsel %vm3026_vm15, %v3038_v62, %v3018_v56  ;;  %v6579_v56 = vld [vmem:[%s10528_s2 + $0x2] ss:$8 sm:$0xf0]  ;;  %v4434_v33 = vrot.slane %v8366_v21, %v7081_v15  ;;  %v4724_v4 = vrot.slane %v8384_v20, %v7071_v10  ;;  %v4728_v39 = vrot.slane %v8384_v20, %v7073_v11  ;;  %v6594_v62 = vld [vmem:[%s10528_s2 + $0x7] ss:$8 sm:$0xf] }
 0x655   : > { %10633 = vst [vmem:[#allocation6_spill] sm:$0xff] %v8323_v43  ;;  %v4475_v46 = vcombine.low %v4422_v50, %v4426_v49  ;;  %v8402_v40 = vor.u32 %v6579_v56, %v6578_v0  ;;  %v4732_v25 = vrot.slane %v8384_v20, %v7079_v14  ;;  %v4736_v26 = vrot.slane %v8384_v20, %v7081_v15 }
 0x656   : > { %3216 = vrot.lane.b32.xlu0 %v3209_v58, %s6980_s10  ;;  %v3843_v58 = vcombine.low %v3797_v29, %v3801_v22  ;;  %v4476_v41 = vcombine.low %v4430_v32, %v4434_v33  ;;  %v4777_v60 = vcombine.low %v4724_v4, %v4728_v39  ;;  %v5361_v50 = vrot.slane %v8451_v53, %v7073_v11 }
 0x657   : > { %v4215_v1 = vrot.slane %v8402_v40, %v7073_v11  ;;  %v4778_v63 = vcombine.low %v4732_v25, %v4736_v26  ;;  %v4223_v2 = vrot.slane %v8402_v40, %v7081_v15  ;;  %v5365_v32 = vrot.slane %v8451_v53, %v7079_v14 }
 0x658   : > { %3218 = vrot.lane.b32.xlu1 %v3210_v24, %s6980_s10  ;;  %v6595_v24 = vld [vmem:[%s10528_s2 + $0x7] ss:$8 sm:$0xf0]  ;;  %v5369_v33 = vrot.slane %v8451_v53, %v7081_v15  ;;  %v3172_v4 = vrot.slane %v8250_v3, %v7067_v8  ;;  %v3176_v39 = vrot.slane %v8250_v3, %v7069_v9  ;;  %v3594_v26 = vrot.slane %v8278_v35, %v7067_v8 }
 0x659   : > { %v8420_v45 = vor.u32 %v6595_v24, %v6594_v62  ;;  %v3180_v24 = vrot.slane %v8250_v3, %v7075_v12  ;;  %v3809_v7 = vrot.slane %v8343_v59, %v7069_v9 }
 0x65a   : > { %3638 = vrot.lane.b32.xlu0 %v3631_v44, %s6981_s11  ;;  %v4211_v44 = vrot.slane %v8402_v40, %v7071_v10  ;;  %v5411_v62 = vcombine.low %v5365_v32, %v5369_v33  ;;  %v3211_v25 = vcombine.low %v3172_v4, %v3176_v39  ;;  %v4227_v32 = vrot.slane %v8402_v40, %v7067_v8 }
 0x65b   : > { %v5150_v18 = vrot.slane %v8420_v45, %v7073_v11  ;;  %v5154_v19 = vrot.slane %v8420_v45, %v7079_v14  ;;  %v5158_v54 = vrot.slane %v8420_v45, %v7081_v15  ;;  %v4231_v33 = vrot.slane %v8402_v40, %v7069_v9 }
 0x65c   : > { %3640 = vrot.lane.b32.xlu1 %v3632_v31, %s6981_s11  ;;  %v6590_v31 = vld [vmem:[%s10528_s2 + $0x6] ss:$8 sm:$0xf]  ;;  %v4264_v17 = vcombine.low %v4211_v44, %v4215_v1  ;;  %v4016_v1 = vrot.slane %v8306_v48, %v7067_v8  ;;  %v4450_v4 = vrot.slane %v8366_v21, %v7077_v13  ;;  %v4748_v39 = vrot.slane %v8384_v20, %v7075_v12 }
 0x65d   : > { %v8444_v23 = vor.u32 %v6591_v52, %v6590_v31  ;;  %v5200_v22 = vcombine.low %v5154_v19, %v5158_v54  ;;  %v4020_v31 = vrot.slane %v8306_v48, %v7069_v9  ;;  %v3383_v52 = vrot.slane %v8336_v55, %v7067_v8 }
 0x65e   : > { %4060 = vrot.lane.b32.xlu0 %v4053_v6, %s6982_s17  ;;  %v4219_v6 = vrot.slane %v8402_v40, %v7079_v14  ;;  %v4028_v19 = vrot.slane %v8306_v48, %v7077_v13 }
 0x65f   : > { %v4939_v29 = vrot.slane %v8444_v23, %v7073_v11  ;;  %v4943_v0 = vrot.slane %v8444_v23, %v7079_v14  ;;  %v4947_v56 = vrot.slane %v8444_v23, %v7081_v15 }
 0x660   : > { %4062 = vrot.lane.b32.xlu1 %v4054_v5, %s6982_s17  ;;  %v5146_v5 = vrot.slane %v8420_v45, %v7071_v10 }
 0x662   : > { %3427 = vrot.lane.b32.xlu0 %v3420_v47, %s6983_s26  ;;  %v4265_v47 = vcombine.low %v4219_v6, %v4223_v2  ;;  %v5199_v27 = vcombine.low %v5146_v5, %v5150_v18  ;;  %v4055_v6 = vcombine.low %v4016_v1, %v4020_v31  ;;  %v3805_v2 = vrot.slane %v8343_v59, %v7067_v8 }
 0x663   : > { %v3606_v5 = vrot.slane %v8278_v35, %v7077_v13  ;;  %v4955_v1 = vrot.slane %v8444_v23, %v7069_v9 }
 0x664   : > { %3849 = vrot.lane.b32.xlu1 %v3842_v28, %s6984_s8  ;;  %v4935_v28 = vrot.slane %v8444_v23, %v7071_v10  ;;  %v3844_v18 = vcombine.low %v3805_v2, %v3809_v7  ;;  %v5170_v2 = vrot.slane %v8420_v45, %v7075_v12  ;;  %v5174_v7 = vrot.slane %v8420_v45, %v7077_v13 }
 0x666   : > { %3429 = vrot.lane.b32.xlu0 %v3421_v57, %s6983_s26  ;;  %v5357_v57 = vrot.slane %v8451_v53, %v7071_v10  ;;  %v4988_v49 = vcombine.low %v4935_v28, %v4939_v29  ;;  %v4442_v28 = vrot.slane %v8366_v21, %v7069_v9  ;;  %v4740_v29 = vrot.slane %v8384_v20, %v7067_v8 }
 0x668   : > { %3851 = vrot.lane.b32.xlu1 %v3843_v58, %s6984_s8  ;;  %v5410_v58 = vcombine.low %v5357_v57, %v5361_v50  ;;  %v3391_v57 = vrot.slane %v8336_v55, %v7075_v12  ;;  %v3395_v50 = vrot.slane %v8336_v55, %v7077_v13 }
 0x66a   : > { %4482 = vrot.lane.b32.xlu0 %v4475_v46, %s6985_s15  ;;  %v4989_v46 = vcombine.low %v4943_v0, %v4947_v56  ;;  %v3813_v0 = vrot.slane %v8343_v59, %v7075_v12  ;;  %v3817_v56 = vrot.slane %v8343_v59, %v7077_v13  ;;  %v4266_v59 = vcombine.low %v4227_v32, %v4231_v33 }
 0x66c   : > { %4484 = vrot.lane.b32.xlu1 %v4476_v41, %s6985_s15  ;;  %v3184_v41 = vrot.slane %v8250_v3, %v7077_v13 }
 0x66e   : > { %4784 = vrot.lane.b32.xlu0 %v4777_v60, %s6986_s30  ;;  %v3598_v60 = vrot.slane %v8278_v35, %v7069_v9  ;;  %v3212_v44 = vcombine.low %v3180_v24, %v3184_v41  ;;  %v5162_v41 = vrot.slane %v8420_v45, %v7067_v8 }
 0x670   : > { %4786 = vrot.lane.b32.xlu1 %v4778_v63, %s6986_s30  ;;  %v3633_v3 = vcombine.low %v3594_v26, %v3598_v60  ;;  %v3387_v63 = vrot.slane %v8336_v55, %v7069_v9  ;;  %v3845_v55 = vcombine.low %v3813_v0, %v3817_v56  ;;  %v4235_v26 = vrot.slane %v8402_v40, %v7075_v12  ;;  %v6572_v0 = vld [vmem:[%s10528_s2 + $0x40] ss:$8 sm:$0xf] }
 0x671   : > { %v4239_v60 = vrot.slane %v8402_v40, %v7077_v13  ;;  %v6562_v40 = vld [vmem:[%s10528_s2 + $0x46] ss:$8 sm:$0xf]  ;;  %v6573_v56 = vld [vmem:[%s10528_s2 + $0x40] ss:$8 sm:$0x30] }
 0x672   : > { %4271 = vrot.lane.b32.xlu0 %v4264_v17, %s6987_s7  ;;  %v3422_v16 = vcombine.low %v3383_v52, %v3387_v63  ;;  %v3602_v17 = vrot.slane %v8278_v35, %v7075_v12  ;;  %v5377_v52 = vrot.slane %v8451_v53, %v7069_v9  ;;  %v6563_v63 = vld [vmem:[%s10528_s2 + $0x46] ss:$8 sm:$0x30] }
 0x673   : > { %v4267_v31 = vcombine.low %v4235_v26, %v4239_v60 }
 0x674   : > { %4273 = vrot.lane.b32.xlu1 %v4265_v47, %s6987_s7  ;;  %v4024_v47 = vrot.slane %v8306_v48, %v7075_v12  ;;  %v3634_v54 = vcombine.low %v3602_v17, %v3606_v5  ;;  %v4959_v17 = vrot.slane %v8444_v23, %v7075_v12  ;;  %v4963_v5 = vrot.slane %v8444_v23, %v7077_v13 }
 0x676   : > { %5206 = vrot.lane.b32.xlu0 %v5199_v27, %s6988_s9  ;;  %v4438_v27 = vrot.slane %v8366_v21, %v7067_v8  ;;  %v4056_v35 = vcombine.low %v4024_v47, %v4028_v19  ;;  %v6570_v47 = vld [vmem:[%s10528_s2 + $0xb0] ss:$8 sm:$0xf] }
 0x677   : > { %v6571_v19 = vld [vmem:[%s10528_s2 + $0xb0] ss:$8 sm:$0x30] }
 0x678   : > { %5208 = vrot.lane.b32.xlu1 %v5200_v22, %s6988_s9  ;;  %v4744_v22 = vrot.slane %v8384_v20, %v7069_v9  ;;  %v4477_v48 = vcombine.low %v4438_v27, %v4442_v28  ;;  %v5385_v27 = vrot.slane %v8451_v53, %v7077_v13  ;;  %v6577_v28 = vld [vmem:[%s10528_s2 + $0x41] ss:$8 sm:$0x30] }
 0x67a   : > { %4995 = vrot.lane.b32.xlu0 %v4988_v49, %s6989_s12  ;;  %v4779_v49 = vcombine.low %v4740_v29, %v4744_v22  ;;  %v8608_v22 = vor.u32 %v6571_v19, %v6570_v47  ;;  %v6580_v47 = vld [vmem:[%s10528_s2 + $0x42] ss:$8 sm:$0xf] }
 0x67b   : > { %v6581_v19 = vld [vmem:[%s10528_s2 + $0x42] ss:$8 sm:$0x30] }
 0x67c   : > { %5417 = vrot.lane.b32.xlu1 %v5410_v58, %s10540_s14  ;;  %v3423_v58 = vcombine.low %v3391_v57, %v3395_v50  ;;  %v3610_v32 = vrot.slane %v8608_v22, %v7071_v10  ;;  %v3614_v33 = vrot.slane %v8608_v22, %v7073_v11 }
 0x67e   : > { %4997 = vrot.lane.b32.xlu0 %v4989_v46, %s6989_s12  ;;  %v4446_v46 = vrot.slane %v8366_v21, %v7075_v12 }
 0x680   : > { %5419 = vrot.lane.b32.xlu1 %v5411_v62, %s10540_s14  ;;  %v4752_v62 = vrot.slane %v8384_v20, %v7077_v13  ;;  %v4478_v24 = vcombine.low %v4446_v46, %v4450_v4  ;;  %v6566_v13 = vld [vmem:[%s10528_s2 + $0x47] ss:$8 sm:$0xf] }
 0x682   : > { %3220 = vrot.lane.b32.xlu0 %v3211_v25, %s6980_s10  ;;  %v5166_v25 = vrot.slane %v8420_v45, %v7069_v9  ;;  %v4780_v21 = vcombine.low %v4748_v39, %v4752_v62  ;;  %v5202_v45 = vcombine.low %v5170_v2, %v5174_v7  ;;  %v8641_v39 = vor.u32 %v6573_v56, %v6572_v0 }
 0x683   : > { %v3635_v62 = vcombine.low %v3610_v32, %v3614_v33 }
 0x684   : > { %3222 = vrot.lane.b32.xlu1 %v3212_v44, %s6980_s10  ;;  %v5201_v20 = vcombine.low %v5162_v41, %v5166_v25  ;;  %v4951_v44 = vrot.slane %v8444_v23, %v7067_v8  ;;  %v6576_v23 = vld [vmem:[%s10528_s2 + $0x41] ss:$8 sm:$0xf]  ;;  %v6584_v25 = vld [vmem:[%s10528_s2 + $0x43] ss:$8 sm:$0xf]  ;;  %v3821_v60 = vrot.slane %v8641_v39, %v7071_v10 }
 0x686   : > { %3642 = vrot.lane.b32.xlu0 %v3633_v3, %s6981_s11  ;;  %v5373_v3 = vrot.slane %v8451_v53, %v7067_v8 }
 0x688   : > { %4064 = vrot.lane.b32.xlu1 %v4055_v6, %s6982_s17  ;;  %v4990_v6 = vcombine.low %v4951_v44, %v4955_v1  ;;  %v6588_v44 = vld [vmem:[%s10528_s2 + $0x45] ss:$8 sm:$0xf] }
 0x689   : > { %v6589_v1 = vld [vmem:[%s10528_s2 + $0x45] ss:$8 sm:$0x30] }
 0x68a   : > { %3431 = vrot.lane.b32.xlu0 %v3422_v16, %s6983_s26  ;;  %v5412_v16 = vcombine.low %v5373_v3, %v5377_v52  ;;  %v3618_v3 = vrot.slane %v8608_v22, %v7079_v14  ;;  %v3622_v52 = vrot.slane %v8608_v22, %v7081_v15  ;;  %v8677_v7 = vor.u32 %v6589_v1, %v6588_v44 }
 0x68c   : > { %3853 = vrot.lane.b32.xlu1 %v3844_v18, %s6984_s8  ;;  %v8584_v18 = vor.u32 %v6563_v63, %v6562_v40 }
 0x68e   : > { %3644 = vrot.lane.b32.xlu0 %v3634_v54, %s6981_s11  ;;  %v5381_v54 = vrot.slane %v8451_v53, %v7075_v12  ;;  %v3188_v29 = vrot.slane %v8584_v18, %v7071_v10  ;;  %v3192_v12 = vrot.slane %v8584_v18, %v7073_v11  ;;  %v6567_v53 = vld [vmem:[%s10528_s2 + $0x47] ss:$8 sm:$0x30]  ;;  %v3196_v57 = vrot.slane %v8584_v18, %v7079_v14 }
 0x68f   : > { %v3200_v50 = vrot.slane %v8584_v18, %v7081_v15 }
 0x690   : > { %4066 = vrot.lane.b32.xlu1 %v4056_v35, %s6982_s17  ;;  %v4991_v35 = vcombine.low %v4959_v17, %v4963_v5 }
 0x691   : > { %v3214_v46 = vcombine.low %v3196_v57, %v3200_v50  ;;  %v6596_v57 = vld [vmem:[%s10528_s2 + $0x47] ss:$8 sm:$0xf] }
 0x692   : > { %4486 = vrot.lane.b32.xlu0 %v4477_v48, %s6985_s15  ;;  %v5413_v48 = vcombine.low %v5381_v54, %v5385_v27  ;;  %v4756_v54 = vrot.slane %v8677_v7, %v7071_v10  ;;  %v4760_v27 = vrot.slane %v8677_v7, %v7073_v11  ;;  %v6597_v50 = vld [vmem:[%s10528_s2 + $0x47] ss:$8 sm:$0x30] }
 0x694   : > { %4788 = vrot.lane.b32.xlu1 %v4779_v49, %s6986_s30  ;;  %v8621_v49 = vor.u32 %v6577_v28, %v6576_v23 }
 0x696   : > { %3433 = vrot.lane.b32.xlu0 %v3423_v58, %s6983_s26  ;;  %v3213_v58 = vcombine.low %v3188_v29, %v3192_v12  ;;  %v4032_v4 = vrot.slane %v8621_v49, %v7071_v10  ;;  %v4044_v2 = vrot.slane %v8621_v49, %v7081_v15  ;;  %v8700_v29 = vor.u32 %v6581_v19, %v6580_v47  ;;  %v6592_v19 = vld [vmem:[%s10528_s2 + $0x46] ss:$8 sm:$0xf] }
 0x698   : > { %3855 = vrot.lane.b32.xlu1 %v3845_v55, %s6984_s8  ;;  %v8634_v55 = vor.u32 %v6567_v53, %v6566_v13  ;;  %v4781_v13 = vcombine.low %v4756_v54, %v4760_v27  ;;  %v3829_v53 = vrot.slane %v8641_v39, %v7079_v14  ;;  %v4247_v32 = vrot.slane %v8700_v29, %v7073_v11 }
 0x69a   : > { %4275 = vrot.lane.b32.xlu0 %v4266_v59, %s6987_s7  ;;  %v4036_v59 = vrot.slane %v8621_v49, %v7073_v11  ;;  %v3403_v41 = vrot.slane %v8634_v55, %v7073_v11  ;;  %v3407_v28 = vrot.slane %v8634_v55, %v7079_v14 }
 0x69c   : > { %4488 = vrot.lane.b32.xlu1 %v4478_v24, %s6985_s15  ;;  %v3399_v24 = vrot.slane %v8634_v55, %v7071_v10  ;;  %v4057_v26 = vcombine.low %v4032_v4, %v4036_v59 }
 0x69e   : > { %4790 = vrot.lane.b32.xlu0 %v4780_v21, %s6986_s30  ;;  %v6585_v21 = vld [vmem:[%s10528_s2 + $0x43] ss:$8 sm:$0x30] }
 0x69f   : > { %v8670_v40 = vor.u32 %v6585_v21, %v6584_v25 }
 0x6a0   : > { %5210 = vrot.lane.b32.xlu1 %v5201_v20, %s6988_s9  ;;  %v3825_v20 = vrot.slane %v8641_v39, %v7073_v11 }
 0x6a1   : > { %v4454_v17 = vrot.slane %v8670_v40, %v7071_v10  ;;  %v4458_v5 = vrot.slane %v8670_v40, %v7073_v11  ;;  %v4462_v59 = vrot.slane %v8670_v40, %v7079_v14 }
 0x6a2   : > { %4277 = vrot.lane.b32.xlu0 %v4267_v31, %s6987_s7  ;;  %v3424_v31 = vcombine.low %v3399_v24, %v3403_v41  ;;  %v3846_v63 = vcombine.low %v3821_v60, %v3825_v20  ;;  %v8724_v24 = vor.u32 %v6597_v50, %v6596_v57  ;;  %v4768_v60 = vrot.slane %v8677_v7, %v7081_v15 }
 0x6a3   : > { %v4479_v23 = vcombine.low %v4454_v17, %v4458_v5  ;;  %v6601_v17 = vld [vmem:[%s10528_s2 + $0xb0] ss:$8 sm:$0x30] }
 0x6a4   : > { %4999 = vrot.lane.b32.xlu1 %v4990_v6, %s6989_s12  ;;  %v4040_v6 = vrot.slane %v8621_v49, %v7079_v14 }
 0x6a6   : > { %5421 = vrot.lane.b32.xlu0 %v5412_v16, %s10540_s14  ;;  %v3636_v16 = vcombine.low %v3618_v3, %v3622_v52  ;;  %v5182_v3 = vrot.slane %v8724_v24, %v7073_v11 }
 0x6a8   : > { %5212 = vrot.lane.b32.xlu1 %v5202_v45, %s6988_s9  ;;  %v4058_v45 = vcombine.low %v4040_v6, %v4044_v2 }
 0x6aa   : > { %5001 = vrot.lane.b32.xlu0 %v4991_v35, %s6989_s12  ;;  %v3411_v35 = vrot.slane %v8634_v55, %v7081_v15 }
 0x6ac   : > { %5423 = vrot.lane.b32.xlu1 %v5413_v48, %s10540_s14  ;;  %v3833_v48 = vrot.slane %v8641_v39, %v7081_v15  ;;  %v3425_v56 = vcombine.low %v3407_v28, %v3411_v35  ;;  %v4255_v28 = vrot.slane %v8700_v29, %v7081_v15 }
 0x6ae   : > { %3224 = vrot.lane.b32.xlu0 %v3213_v58, %s6980_s10  ;;  %v4243_v58 = vrot.slane %v8700_v29, %v7071_v10  ;;  %v3847_v4 = vcombine.low %v3829_v53, %v3833_v48 }
 0x6b0   : > { %3226 = vrot.lane.b32.xlu1 %v3214_v46, %s6980_s10  ;;  %v4268_v21 = vcombine.low %v4243_v58, %v4247_v32 }
 0x6b2   : > { %3646 = vrot.lane.b32.xlu0 %v3635_v62, %s6981_s11  ;;  %v4466_v62 = vrot.slane %v8670_v40, %v7081_v15 }
 0x6b4   : > { %4068 = vrot.lane.b32.xlu1 %v4057_v26, %s6982_s17  ;;  %v4764_v26 = vrot.slane %v8677_v7, %v7079_v14  ;;  %v4480_v1 = vcombine.low %v4462_v59, %v4466_v62 }
 0x6b6   : > { %3435 = vrot.lane.b32.xlu0 %v3424_v31, %s6983_s26  ;;  %v5178_v31 = vrot.slane %v8724_v24, %v7071_v10  ;;  %v4782_v6 = vcombine.low %v4764_v26, %v4768_v60  ;;  %v5186_v26 = vrot.slane %v8724_v24, %v7079_v14  ;;  %v5190_v60 = vrot.slane %v8724_v24, %v7081_v15 }
 0x6b8   : > { %3857 = vrot.lane.b32.xlu1 %v3846_v63, %s6984_s8  ;;  %v5203_v47 = vcombine.low %v5178_v31, %v5182_v3  ;;  %v5204_v3 = vcombine.low %v5186_v26, %v5190_v60 }
 0x6ba   : > { %3648 = vrot.lane.b32.xlu0 %v3636_v16, %s6981_s11  ;;  %v6600_v16 = vld [vmem:[%s10528_s2 + $0xb0] ss:$8 sm:$0xf] }
 0x6bb   : > { %v8764_v35 = vor.u32 %v6601_v17, %v6600_v16 }
 0x6bc   : > { %v3069_v12 = vpop.permute.xlu0 %3068  ;;  %4070 = vrot.lane.b32.xlu1 %v4058_v45, %s6982_s17  ;;  %v6593_v45 = vld [vmem:[%s10528_s2 + $0x46] ss:$8 sm:$0x30] }
 0x6bd   : > { %v8768_v53 = vor.u32 %v6593_v45, %v6592_v19  ;;  %v5389_v32 = vrot.slane %v8764_v35, %v7071_v10 }
 0x6be   : > { %4490 = vrot.lane.b32.xlu0 %v4479_v23, %s6985_s15  ;;  %v3071_v0 = vpop.permute.xlu1 %3070  ;;  %v4251_v23 = vrot.slane %v8700_v29, %v7079_v14 }
 0x6bf   : > { %v3097_v33 = vsel %vm10586_vm1, %v3069_v12, %v3071_v0  ;;  %v4971_v59 = vrot.slane %v8768_v53, %v7073_v11 }
 0x6c0   : > { %3124 = vst [vmem:[#allocation2 + $0x310] sm:$0xf] %v3097_v33  ;;  %v3073_v46 = vpop.permute.xlu0 %3072  ;;  %4792 = vrot.lane.b32.xlu1 %v4781_v13, %s6986_s30  ;;  %v4269_v58 = vcombine.low %v4251_v23, %v4255_v28  ;;  %v5393_v33 = vrot.slane %v8764_v35, %v7073_v11 }
 0x6c1   : > { %v3098_v41 = vsel %vm10586_vm1, %v3071_v0, %v3073_v46 }
 0x6c2   : > { %3125 = vst [vmem:[#allocation2 + $0x318] sm:$0xf] %v3098_v41  ;;  %3437 = vrot.lane.b32.xlu0 %v3425_v56, %s6983_s26  ;;  %v3075_v25 = vpop.permute.xlu1 %3074 }
 0x6c3   : > { %v3099_v20 = vsel %vm10586_vm1, %v3073_v46, %v3075_v25 }
 0x6c4   : > { %3126 = vst [vmem:[#allocation2 + $0x320] sm:$0xf] %v3099_v20  ;;  %v3077_v44 = vpop.permute.xlu0 %3076  ;;  %3859 = vrot.lane.b32.xlu1 %v3847_v4, %s6984_s8  ;;  %v4967_v4 = vrot.slane %v8768_v53, %v7071_v10 }
 0x6c5   : > { %v3100_v52 = vsel %vm10586_vm1, %v3075_v25, %v3077_v44 }
 0x6c6   : > { %3127 = vst [vmem:[#allocation2 + $0x328] sm:$0xf] %v3100_v52  ;;  %4279 = vrot.lane.b32.xlu0 %v4268_v21, %s6987_s7  ;;  %v8740_v63 = vpop.permute.xlu1 %3078  ;;  %v5414_v21 = vcombine.low %v5389_v32, %v5393_v33  ;;  %v4992_v11 = vcombine.low %v4967_v4, %v4971_v59 }
 0x6c7   : > { %10634 = vst [vmem:[#allocation7_spill] sm:$0xff] %v8740_v63  ;;  %v3101_v2 = vsel %vm10586_vm1, %v3077_v44, %v8740_v63  ;;  %vm10592_vm1 = vcmask 703488  }
 0x6c8   : > { %3128 = vst [vmem:[#allocation2 + $0x330] sm:$0xf] %v3101_v2  ;;  %v3217_v5 = vpop.permute.xlu0 %3216  ;;  %4492 = vrot.lane.b32.xlu1 %v4480_v1, %s6985_s15 }
 0x6c9   : > { %v3230_v54 = vrot.slane %v3217_v5, 4 }
 0x6ca   : > { %4794 = vrot.lane.b32.xlu0 %v4782_v6, %s6986_s30  ;;  %v8758_v27 = vpop.permute.xlu1 %3218 }
 0x6cb   : > { %v3238_v12 = vsel %vm10620_vm3, %v3230_v54, %v3217_v5  ;;  %v10542_v13 = vrot.slane %v8758_v27, 4 }
 0x6cc   : > { %v3258_v48 = vmul.f32 %v3238_v12, %v8240_v51  ;;  %v3639_v57 = vpop.permute.xlu0 %3638  ;;  %5214 = vrot.lane.b32.xlu1 %v5203_v47, %s6988_s9 }
 0x6cd   : > { %v3239_v50 = vsel %vm511_vm2, %v3230_v54, %v10542_v13  ;;  %v3652_v44 = vrot.slane %v3639_v57, 4 }
 0x6ce   : > { %v3240_v0 = vsel %vm10620_vm3, %v3239_v50, %v8758_v27  ;;  %3281 = vrot.lane.b32.xlu0 %v3258_v48, %s6991_s25  ;;  %v8778_v56 = vpop.permute.xlu1 %3640  ;;  %v3272_v16 = vcombine.low %v3258_v48, %v3258_v48 }
 0x6cf   : > { %v8785_v46 = vmul.f32 %v3240_v0, %v8248_v36  ;;  %v10541_v10 = vrot.slane %v8778_v56, 4  ;;  %v3660_v33 = vsel %vm10588_vm6, %v3652_v44, %v3639_v57 }
 0x6d0   : > { %v8791_v62 = vpop.permute.xlu0 %4060  ;;  %v3680_v26 = vmul.f32 %v3660_v33, %v8240_v51 }
 0x6d1   : > { %v3273_v41 = vcombine.low %v8785_v46, %v8785_v46  ;;  %v3661_v52 = vsel %vm511_vm2, %v3652_v44, %v10541_v10  ;;  %v4074_v0 = vrot.slane %v8791_v62, 4 }
 0x6d2   : > { %4281 = vrot.lane.b32.xlu0 %v4269_v58, %s6987_s7  ;;  %v8796_v25 = vpop.permute.xlu1 %4062  ;;  %v3662_v47 = vsel %vm10588_vm6, %v3661_v52, %v8778_v56 }
 0x6d3   : > { %3283 = vrot.lane.b32.xlu1 %v3273_v41, %s6991_s25  ;;  %v10538_v54 = vrot.slane %v8796_v25, 4  ;;  %v8832_v50 = vmul.f32 %v3662_v47, %v8248_v36 }
 0x6d4   : > { %v3428_v20 = vpop.permute.xlu0 %3427 }
 0x6d5   : > { %v3441_v1 = vrot.slane %v3428_v20, 4  ;;  %v4083_v41 = vsel %vm511_vm2, %v4074_v0, %v10538_v54  ;;  %v3695_v60 = vcombine.low %v8832_v50, %v8832_v50 }
 0x6d6   : > { %5425 = vrot.lane.b32.xlu0 %v5414_v21, %s10540_s14  ;;  %v3850_v31 = vpop.permute.xlu1 %3849  ;;  %v4084_v44 = vsel %vm4081_vm8, %v4083_v41, %v8796_v25 }
 0x6d7   : > { %v3449_v6 = vsel %vm10587_vm4, %v3441_v1, %v3428_v20  ;;  %5003 = vrot.lane.b32.xlu1 %v4992_v11, %s6989_s12  ;;  %v3863_v19 = vrot.slane %v3850_v31, 4  ;;  %v8863_v20 = vld [vmem:[%s7171_s6 + $0x10] sm:$0xff] }
 0x6d8   : > { %v8810_v2 = vpop.permute.xlu0 %3429  ;;  %v8813_v17 = vmul.f32 %v3449_v6, %v8240_v51 }
 0x6d9   : > { %v10539_v5 = vrot.slane %v8810_v2, 4  ;;  %v3871_v4 = vsel %vm3870_vm7, %v3863_v19, %v3850_v31 }
 0x6da   : > { %5216 = vrot.lane.b32.xlu0 %v5204_v3, %s6988_s9  ;;  %v8819_v45 = vpop.permute.xlu1 %3851  ;;  %v3483_v58 = vcombine.high %v8813_v17, %v8813_v17  ;;  %v8874_v3 = vmul.f32 %v4084_v44, %v8863_v20 }
 0x6db   : > { %v3450_v23 = vsel %vm511_vm2, %v3441_v1, %v10539_v5  ;;  %v10537_v28 = vrot.slane %v8819_v45, 4  ;;  %3279 = vrot.lane.b32.xlu1 %v3272_v16, %s6991_s25  ;;  %v4082_v16 = vsel %vm4081_vm8, %v4074_v0, %v8791_v62  ;;  %v5401_v62 = vrot.slane %v8764_v35, %v7081_v15 }
 0x6dc   : > { %v3451_v12 = vsel %vm10587_vm4, %v3450_v23, %v8810_v2  ;;  %v8829_v48 = vpop.permute.xlu0 %4482  ;;  %v4979_v23 = vrot.slane %v8768_v53, %v7081_v15  ;;  %v4117_v33 = vcombine.low %v8874_v3, %v8874_v3 }
 0x6dd   : > { %v8838_v32 = vmul.f32 %v3451_v12, %v8248_v36  ;;  %v3872_v21 = vsel %vm511_vm2, %v3863_v19, %v10537_v28  ;;  %v8854_v36 = vld [vmem:[%s7171_s6 + $0x8] sm:$0xff]  ;;  %v4975_v19 = vrot.slane %v8768_v53, %v7079_v14  ;;  %v5397_v12 = vrot.slane %v8764_v35, %v7079_v14 }
 0x6de   : > { %v8842_v59 = vpop.permute.xlu1 %4484  ;;  %v3891_v11 = vmul.f32 %v8854_v36, %v3871_v4  ;;  %v3873_v1 = vsel %vm3870_vm7, %v3872_v21, %v8819_v45 }
 0x6df   : > { %3494 = vrot.lane.b32.xlu0 %v8838_v32, %s6992_s27  ;;  %3492 = vrot.lane.b32.xlu1 %v3483_v58, %s6992_s27  ;;  %v8877_v6 = vmul.f32 %v8863_v20, %v3873_v1  ;;  %v4102_v58 = vmul.f32 %v4082_v16, %v8854_v36  ;;  %v4993_v41 = vcombine.low %v4975_v19, %v4979_v23  ;;  %v10536_v44 = vrot.slane %v8842_v59, 4 }
 0x6e0   : > { %v8856_v57 = vpop.permute.xlu0 %4784  ;;  %v3905_v52 = vcombine.high %v3891_v11, %v3891_v11  ;;  %v5415_v21 = vcombine.low %v5397_v12, %v5401_v62  ;;  %v3694_v16 = vcombine.low %v3680_v26, %v3680_v26  ;;  %v4496_v19 = vrot.slane %v8829_v48, 4 }
 0x6e2   : > { %v8869_v31 = vpop.permute.xlu1 %4786  ;;  %v4505_v62 = vsel %vm511_vm2, %v4496_v19, %v10536_v44 }
 0x6e3   : > { %3703 = vrot.lane.b32.xlu1 %v3680_v26, %s6993_s28  ;;  %3705 = vrot.lane.b32.xlu0 %v3695_v60, %s6993_s28 }
 0x6e4   : > { %v4272_v51 = vpop.permute.xlu0 %4271 }
 0x6e5   : > { %v4285_v60 = vrot.slane %v4272_v51, 4 }
 0x6e6   : > { %v8881_v47 = vpop.permute.xlu1 %4273 }
 0x6e7   : > { %3914 = vrot.lane.b32.xlu1 %v3905_v52, %s6994_s29  ;;  %3916 = vrot.lane.b32.xlu0 %v8877_v6, %s6994_s29  ;;  %v10534_v1 = vrot.slane %v8881_v47, 4  ;;  %v4293_v23 = vsel %vm10595_vm10, %v4285_v60, %v4272_v51 }
 0x6e8   : > { %v8894_v0 = vpop.permute.xlu0 %5206  ;;  %v4313_v51 = vmul.f32 %v4293_v23, %v8854_v36 }
 0x6e9   : > { %v5220_v10 = vrot.slane %v8894_v0, 4 }
 0x6ea   : > { %v8899_v4 = vpop.permute.xlu1 %5208  ;;  %v4327_v23 = vcombine.high %v4313_v51, %v4313_v51 }
 0x6eb   : > { %4125 = vrot.lane.b32.xlu1 %v4102_v58, %s6995_s16  ;;  %4127 = vrot.lane.b32.xlu0 %v4117_v33, %s6995_s16  ;;  %v4294_v33 = vsel %vm511_vm2, %v4285_v60, %v10534_v1  ;;  %v10535_v60 = vrot.slane %v8869_v31, 4 }
 0x6ec   : > { %v8903_v14 = vpop.permute.xlu0 %4995  ;;  %v4295_v38 = vsel %vm10595_vm10, %v4294_v33, %v8881_v47  ;;  %v4504_v33 = vsel %vm4503_vm11, %v4496_v19, %v8829_v48 }
 0x6ee   : > { %v8905_v15 = vpop.permute.xlu1 %5417 }
 0x6ef   : > { %5005 = vrot.lane.b32.xlu1 %v4993_v41, %s6989_s12  ;;  %5427 = vrot.lane.b32.xlu0 %v5415_v21, %s10540_s14  ;;  %v4116_v41 = vcombine.low %v4102_v58, %v4102_v58  ;;  %v4506_v21 = vsel %vm4503_vm11, %v4505_v62, %v8842_v59  ;;  %v8945_v62 = vmul.f32 %v4295_v38, %v8863_v20  ;;  %s10551_s14 = smov 82   ;;  %v5431_v34 = vrot.slane %v8905_v15, 4 }
 0x6f0   : > { %v8911_v52 = vpop.permute.xlu0 %4997  ;;  %v8941_v58 = vmul.f32 %v4506_v21, %v8863_v20  ;;  %v4524_v38 = vmul.f32 %v4504_v33, %v8854_v36 }
 0x6f1   : > { %10635 = vst [vmem:[#allocation8_spill] sm:$0xff] %v8911_v52 }
 0x6f2   : > { %v8915_v12 = vpop.permute.xlu1 %5419  ;;  %v4539_v21 = vcombine.low %v8941_v58, %v8941_v58 }
 0x6f3   : > { %10636 = vst [vmem:[#allocation9_spill] sm:$0xff] %v8915_v12  ;;  %3490 = vrot.lane.b32.xlu1 %v8813_v17, %s6992_s27  ;;  %3701 = vrot.lane.b32.xlu0 %v3694_v16, %s6993_s28  ;;  %v4798_v16 = vrot.slane %v8856_v57, 4 }
 0x6f4   : > { %v8926_v26 = vpop.permute.xlu0 %3220 }
 0x6f5   : > { %v4806_v44 = vsel %vm4805_vm12, %v4798_v16, %v8856_v57  ;;  %v10547_v57 = vrot.slane %v8899_v4, 4 }
 0x6f6   : > { %v8933_v42 = vpop.permute.xlu1 %3222 }
 0x6f7   : > { %3912 = vrot.lane.b32.xlu1 %v3891_v11, %s6994_s29  ;;  %4123 = vrot.lane.b32.xlu0 %v4116_v41, %s6995_s16  ;;  %v4807_v11 = vsel %vm511_vm2, %v4798_v16, %v10535_v60  ;;  %v10550_v16 = vrot.slane %v8911_v52, 4  ;;  %v5229_v63 = vsel %vm511_vm2, %v5220_v10, %v10547_v57 }
 0x6f8   : > { %v8938_v17 = vpop.permute.xlu0 %3642  ;;  %v4808_v48 = vsel %vm4805_vm12, %v4807_v11, %v8869_v31  ;;  %v5230_v30 = vsel %vm5227_vm14, %v5229_v63, %v8899_v4 }
 0x6f9   : > { %v8973_v33 = vmul.f32 %v4808_v48, %v8863_v20  ;;  %v5009_v48 = vrot.slane %v8903_v14, 4 }
 0x6fa   : > { %v8949_v1 = vpop.permute.xlu1 %4064 }
 0x6fb   : > { %4336 = vrot.lane.b32.xlu1 %v4327_v23, %s6996_s22  ;;  %4338 = vrot.lane.b32.xlu0 %v8945_v62, %s6996_s22  ;;  %v4629_v23 = vcombine.high %v8854_v36, %v8854_v36  ;;  %10637 = vst [vmem:[#allocation10_spill] sm:$0xff] %v8973_v33  ;;  %v4841_v54 = vcombine.low %v8973_v33, %v8973_v33 }
 0x6fc   : > { %v8957_v41 = vpop.permute.xlu0 %3431  ;;  %v5017_v13 = vsel %vm5016_vm13, %v5009_v48, %v8903_v14  ;;  %v5018_v37 = vsel %vm511_vm2, %v5009_v48, %v10550_v16 }
 0x6fd   : > { %v5037_v14 = vmul.f32 %v5017_v13, %v8854_v36  ;;  %v5019_v57 = vsel %vm5016_vm13, %v5018_v37, %v8911_v52  ;;  %v9026_v13 = vmul.f32 %v5230_v30, %v8863_v20  ;;  %v5228_v37 = vsel %vm5227_vm14, %v5220_v10, %v8894_v0 }
 0x6fe   : > { %v8964_v19 = vpop.permute.xlu1 %3853  ;;  %v9029_v48 = vmul.f32 %v5019_v57, %v8863_v20  ;;  %v5248_v57 = vmul.f32 %v5228_v37, %v8854_v36 }
 0x6ff   : > { %4547 = vrot.lane.b32.xlu1 %v4524_v38, %s10557_s23  ;;  %4549 = vrot.lane.b32.xlu0 %v4539_v21, %s10557_s23  ;;  %v4826_v21 = vmul.f32 %v4806_v44, %v8854_v36  ;;  %v4538_v44 = vcombine.low %v4524_v38, %v4524_v38  ;;  %10638 = vst [vmem:[#allocation11_spill] sm:$0xff] %v9026_v13 }
 0x700   : > { %v8970_v60 = vpop.permute.xlu0 %3644  ;;  %v5051_v63 = vcombine.high %v5037_v14, %v5037_v14  ;;  %10639 = vst [vmem:[#allocation12_spill] sm:$0xff] %v9029_v48  ;;  %v5263_v10 = vcombine.low %v9026_v13, %v9026_v13 }
 0x701   : > { %v4840_v38 = vcombine.low %v4826_v21, %v4826_v21 }
 0x702   : > { %v8977_v28 = vpop.permute.xlu1 %4066 }
 0x703   : > { %4638 = vrot.lane.b32.xlu1 %v4629_v23, %s10554_s24  ;;  %4640 = vrot.lane.b32.xlu0 %v8863_v20, %s10554_s24 }
 0x704   : > { %v8982_v11 = vpop.permute.xlu0 %4486 }
 0x706   : > { %v8988_v5 = vpop.permute.xlu1 %4788 }
 0x707   : > { %4849 = vrot.lane.b32.xlu1 %v4826_v21, %s10551_s14  ;;  %4851 = vrot.lane.b32.xlu0 %v4841_v54, %s10551_s14 }
 0x708   : > { %v8994_v23 = vpop.permute.xlu0 %3433 }
 0x70a   : > { %v8999_v43 = vpop.permute.xlu1 %3855 }
 0x70b   : > { %4334 = vrot.lane.b32.xlu1 %v4313_v51, %s6996_s22  ;;  %4545 = vrot.lane.b32.xlu0 %v4538_v44, %s10557_s23  ;;  %v10556_v51 = vrot.slane %v8915_v12, 4  ;;  %v5439_v44 = vsel %vm5438_vm0, %v5431_v34, %v8905_v15  ;;  %s7002_s23 = smov 70  }
 0x70c   : > { %v9009_v54 = vpop.permute.xlu0 %4275  ;;  %v5459_v0 = vmul.f32 %v5439_v44, %v8854_v36  ;;  %v3208_v44 = vrot.slane %v8584_v18, %v7069_v9 }
 0x70e   : > { %v9017_v33 = vpop.permute.xlu1 %4488 }
 0x70f   : > { %4636 = vrot.lane.b32.xlu1 %v8854_v36, %s10554_s24  ;;  %4847 = vrot.lane.b32.xlu0 %v4840_v38, %s10551_s14  ;;  %v5440_v38 = vsel %vm511_vm2, %v5431_v34, %v10556_v51  ;;  %s7000_s14 = smov 72   ;;  %s7001_s24 = smov 71   ;;  %v3204_v36 = vrot.slane %v8584_v18, %v7067_v8  ;;  %v3630_v18 = vrot.slane %v8608_v22, %v7069_v9 }
 0x710   : > { %v9023_v21 = vpop.permute.xlu0 %4790  ;;  %v5441_v15 = vsel %vm5438_vm0, %v5440_v38, %v8915_v12  ;;  %v10568_v12 = vmov 0.0  }
 0x711   : > { %v9058_v37 = vmul.f32 %v5441_v15, %v8863_v20  ;;  %v3215_v15 = vcombine.low %v3204_v36, %v3208_v44  ;;  %v3415_v36 = vrot.slane %v8634_v55, %v7067_v8  ;;  %v3837_v44 = vrot.slane %v8641_v39, %v7067_v8  ;;  %5857 = vmatprep.mubr.f32.mxu0 %v10568_v12 }
 0x712   : > { %v9035_v16 = vpop.permute.xlu1 %5210  ;;  %5928 = vmatprep.mubr.f32.mxu1 %v10568_v12 }
 0x713   : > { %5060 = vrot.lane.b32.xlu1 %v5051_v63, %s7000_s14  ;;  %5062 = vrot.lane.b32.xlu0 %v9029_v48, %s7000_s14  ;;  %v5473_v63 = vcombine.high %v5459_v0, %v5459_v0  ;;  %10641 = vst [vmem:[#allocation14_spill] sm:$0xff] %v9058_v37  ;;  %v4470_v48 = vrot.slane %v8670_v40, %v7067_v8 }
 0x714   : > { %v9043_v30 = vpop.permute.xlu0 %4277 }
 0x716   : > { %v9051_v52 = vpop.permute.xlu1 %4999 }
 0x717   : > { %5271 = vrot.lane.b32.xlu1 %v5248_v57, %s7001_s24  ;;  %5273 = vrot.lane.b32.xlu0 %v5263_v10, %s7001_s24  ;;  %v5262_v10 = vcombine.low %v5248_v57, %v5248_v57 }
 0x718   : > { %v9055_v34 = vpop.permute.xlu0 %5421 }
 0x719   : > { %10640 = vst [vmem:[#allocation13_spill] sm:$0xff] %v9055_v34 }
 0x71a   : > { %v9060_v51 = vpop.permute.xlu1 %5212 }
 0x71b   : > { %10642 = vst [vmem:[#allocation15_spill] sm:$0xff] %v9060_v51  ;;  %5482 = vrot.lane.b32.xlu1 %v5473_v63, %s7002_s23  ;;  %5484 = vrot.lane.b32.xlu0 %v9058_v37, %s7002_s23  ;;  %v3626_v51 = vrot.slane %v8608_v22, %v7067_v8  ;;  %v4048_v63 = vrot.slane %v8621_v49, %v7067_v8 }
 0x71c   : > { %v9069_v38 = vpop.permute.xlu0 %5001  ;;  %v4052_v37 = vrot.slane %v8621_v49, %v7069_v9  ;;  %v3841_v22 = vrot.slane %v8641_v39, %v7069_v9 }
 0x71d   : > { %10643 = vst [vmem:[#allocation16_spill] sm:$0xff] %v9069_v38  ;;  %v3637_v49 = vcombine.low %v3626_v51, %v3630_v18  ;;  %v10646_v51 = vrot.slane %v8758_v27, 4  ;;  %v4776_v18 = vrot.slane %v8677_v7, %v7069_v9 }
 0x71e   : > { %v9071_v13 = vpop.permute.xlu1 %5423  ;;  %v3848_v39 = vcombine.low %v3837_v44, %v3841_v22 }
 0x71f   : > { %5058 = vrot.lane.b32.xlu1 %v5037_v14, %s7000_s14  ;;  %5269 = vrot.lane.b32.xlu0 %v5262_v10, %s7001_s24  ;;  %v3419_v14 = vrot.slane %v8634_v55, %v7069_v9  ;;  %v3232_v10 = vrot.slane %v8926_v26, 4 }
 0x720   : > { %v9083_v57 = vpop.permute.xlu0 %3224 }
 0x721   : > { %10644 = vst [vmem:[#allocation17_spill] sm:$0xff] %v9083_v57  ;;  %v3426_v34 = vcombine.low %v3415_v36, %v3419_v14  ;;  %v3140_v36 = vld [vmem:[%s7171_s6 + $0x14] sm:$0xff] }
 0x722   : > { %v9085_v38 = vpop.permute.xlu1 %3226 }
 0x723   : > { %10645 = vst [vmem:[#allocation18_spill] sm:$0xff] %v9085_v38  ;;  %5480 = vrot.lane.b32.xlu1 %v5459_v0, %s7002_s23  ;;  %3228 = vrot.lane.b32.xlu0 %v3215_v15, %s6980_s10  ;;  %v4059_v38 = vcombine.low %v4048_v63, %v4052_v37  ;;  %v4474_v0 = vrot.slane %v8670_v40, %v7069_v9  ;;  %s10663_s10 = smov 58  }
 0x724   : > { %v9098_v57 = vpop.permute.xlu0 %3646  ;;  %v3241_v37 = vsel %vm511_vm2, %v10646_v51, %v3232_v10  ;;  %v4772_v15 = vrot.slane %v8677_v7, %v7067_v8  ;;  %v4259_v7 = vrot.slane %v8700_v29, %v7067_v8  ;;  %v10571_v51 = vrot.slane %v8933_v42, 4 }
 0x725   : > { %v3242_v40 = vsel %vm10620_vm3, %v3241_v37, %v8926_v26  ;;  %v4481_v27 = vcombine.low %v4470_v48, %v4474_v0  ;;  %v4263_v26 = vrot.slane %v8700_v29, %v7069_v9  ;;  %v5194_v48 = vrot.slane %v8724_v24, %v7067_v8 }
 0x726   : > { %v9102_v55 = vpop.permute.xlu1 %4068  ;;  %v3260_v22 = vmul.f32 %v3242_v40, %v3140_v36 }
 0x727   : > { %3650 = vrot.lane.b32.xlu1 %v3637_v49, %s6981_s11  ;;  %4072 = vrot.lane.b32.xlu0 %v4059_v38, %s6982_s17  ;;  %v4783_v38 = vcombine.low %v4772_v15, %v4776_v18  ;;  %v3243_v15 = vsel %vm511_vm2, %v3232_v10, %v10571_v51  ;;  %v4270_v29 = vcombine.low %v4259_v7, %v4263_v26  ;;  %v10572_v10 = vrot.slane %v8957_v41, 4  ;;  %s10671_s11 = smov 84   ;;  %s10672_s17 = smov 83  }
 0x728   : > { %v9117_v63 = vpop.permute.xlu0 %3435  ;;  %v3274_v0 = vcombine.low %v3260_v22, %v3260_v22 }
 0x72a   : > { %v9122_v14 = vpop.permute.xlu1 %3857 }
 0x72b   : > { %3439 = vrot.lane.b32.xlu1 %v3426_v34, %s6983_s26  ;;  %3861 = vrot.lane.b32.xlu0 %v3848_v39, %s6984_s8  ;;  %v5198_v34 = vrot.slane %v8724_v24, %v7069_v9  ;;  %v9155_v24 = vld [vmem:[%s7171_s6 + $0x1c] sm:$0xff]  ;;  %s10673_s26 = smov 82  }
 0x72c   : > { %v9126_v44 = vpop.permute.xlu0 %3648 }
 0x72d   : > { %v5205_v18 = vcombine.low %v5194_v48, %v5198_v34  ;;  %v10648_v48 = vrot.slane %v8778_v56, 4  ;;  %v3484_v56 = vcombine.high %v8838_v32, %v8838_v32 }
 0x72e   : > { %v9128_v49 = vpop.permute.xlu1 %4070 }
 0x72f   : > { %4494 = vrot.lane.b32.xlu1 %v4481_v27, %s6985_s15  ;;  %4796 = vrot.lane.b32.xlu0 %v4783_v38, %s6986_s30  ;;  %v2930_v27 = vld [vmem:[%s7171_s6 + $0x1c] sm:$0xff]  ;;  %v3244_v38 = vsel %vm10620_vm3, %v3243_v15, %v8933_v42 }
 0x730   : > { %v9141_v39 = vpop.permute.xlu0 %4490  ;;  %v9168_v7 = vmul.f32 %v8275_v61, %v2930_v27  ;;  %v9171_v26 = vmul.f32 %v3244_v38, %v9155_v24  ;;  %v10575_v38 = vrot.slane %v8949_v1, 4 }
 0x732   : > { %v9143_v37 = vpop.permute.xlu1 %4792 }
 0x733   : > { %10647 = vst [vmem:[#allocation19_spill] sm:$0xff] %v9143_v37  ;;  %3285 = vrot.lane.b32.xlu1 %v8785_v46, %s6991_s25  ;;  %3287 = vrot.lane.b32.xlu0 %v3274_v0, %s6991_s25  ;;  %v10576_v37 = vrot.slane %v8938_v17, 4  ;;  %v10649_v0 = vrot.slane %v8810_v2, 4 }
 0x734   : > { %v9151_v40 = vpop.permute.xlu0 %3437 }
 0x735   : > { %v3663_v34 = vsel %vm511_vm2, %v10648_v48, %v10576_v37  ;;  %v3452_v15 = vsel %vm511_vm2, %v10649_v0, %v10572_v10  ;;  %v10574_v48 = vrot.slane %v8964_v19, 4  ;;  %v10653_v10 = vrot.slane %v8819_v45, 4 }
 0x736   : > { %v9159_v12 = vpop.permute.xlu1 %3859  ;;  %v3664_v2 = vsel %vm10588_vm6, %v3663_v34, %v8938_v17  ;;  %v3453_v27 = vsel %vm10587_vm4, %v3452_v15, %v8957_v41  ;;  %v10652_v34 = vrot.slane %v8796_v25, 4 }
 0x737   : > { %4283 = vrot.lane.b32.xlu1 %v4270_v29, %s6987_s7  ;;  %5218 = vrot.lane.b32.xlu0 %v5205_v18, %s6988_s9  ;;  %v3275_v18 = vcombine.low %v9171_v26, %v9171_v26  ;;  %v9202_v32 = vmul.f32 %v3664_v2, %v3140_v36  ;;  %v3471_v0 = vmul.f32 %v3453_v27, %v3140_v36  ;;  %v9228_v27 = vld [vmem:[%s7171_s6 + $0x18] sm:$0xff] }
 0x738   : > { %v9165_v46 = vpop.permute.xlu0 %4279  ;;  %v4085_v15 = vsel %vm511_vm2, %v10652_v34, %v10575_v38  ;;  %v4987_v34 = vrot.slane %v8768_v53, %v7069_v9  ;;  %v5405_v38 = vrot.slane %v8764_v35, %v7067_v8 }
 0x739   : > { %v3696_v25 = vcombine.low %v9202_v32, %v9202_v32  ;;  %v4086_v45 = vsel %vm4081_vm8, %v4085_v15, %v8949_v1 }
 0x73a   : > { %v9183_v29 = vpop.permute.xlu1 %4492  ;;  %v9245_v15 = vmul.f32 %v4086_v45, %v9228_v27 }
 0x73b   : > { %3080 = vrot.lane.b32.xlu1 %v9168_v7, %s6979_s13  ;;  %3289 = vrot.lane.b32.xlu0 %v3260_v22, %s6991_s25 }
 0x73c   : > { %v9188_v61 = vpop.permute.xlu0 %4794  ;;  %v4118_v45 = vcombine.low %v9245_v15, %v9245_v15 }
 0x73d   : > { %10650 = vst [vmem:[#allocation20_spill] sm:$0xff] %v9188_v61 }
 0x73e   : > { %v9204_v51 = vpop.permute.xlu1 %5214 }
 0x73f   : > { %3496 = vrot.lane.b32.xlu0 %v3484_v56, %s6992_s27  ;;  %3291 = vrot.lane.b32.xlu1 %v3275_v18, %s6991_s25  ;;  %10651 = vst [vmem:[#allocation21_spill] sm:$0xff] %v9204_v51  ;;  %v3874_v56 = vsel %vm511_vm2, %v10653_v10, %v10574_v48  ;;  %v3906_v18 = vcombine.high %v8877_v6, %v8877_v6 }
 0x740   : > { %v3282_v22 = vpop.permute.xlu0 %3281  ;;  %v4983_v6 = vrot.slane %v8768_v53, %v7067_v8  ;;  %v5409_v53 = vrot.slane %v8764_v35, %v7069_v9 }
 0x742   : > { %v4994_v8 = vcombine.low %v4983_v6, %v4987_v34  ;;  %v5416_v61 = vcombine.low %v5405_v38, %v5409_v53  ;;  %v10659_v6 = vrot.slane %v8970_v60, 4  ;;  %v10660_v34 = vrot.slane %v8938_v17, 4 }
 0x743   : > { %3707 = vrot.lane.b32.xlu0 %v8832_v50, %s6993_s28  ;;  %3498 = vrot.lane.b32.xlu1 %v3471_v0, %s6992_s27  ;;  %v3875_v50 = vsel %vm3870_vm7, %v3874_v56, %v8964_v19  ;;  %v3485_v38 = vcombine.high %v3471_v0, %v3471_v0 }
 0x744   : > { %v9219_v36 = vpop.permute.xlu0 %4281  ;;  %v9248_v56 = vmul.f32 %v9228_v27, %v3875_v50 }
 0x745   : > { %10654 = vst [vmem:[#allocation22_spill] sm:$0xff] %v9219_v36  ;;  %v9225_v2 = vpop.permute.xlu1 %3283 }
 0x746   : > { %v3309_v10 = vsel %vm10619_vm9, %v3282_v22, %v9225_v2 }
 0x747   : > { %3336 = vst [vmem:[#allocation2 + $0x318] sm:$0xf0] %v3309_v10  ;;  %3918 = vrot.lane.b32.xlu0 %v3906_v18, %s6994_s29  ;;  %3709 = vrot.lane.b32.xlu1 %v3696_v25, %s6993_s28  ;;  %v10579_v10 = vrot.slane %v9071_v13, 4 }
 0x748   : > { %v9242_v48 = vpop.permute.xlu0 %5425 }
 0x749   : > { %10655 = vst [vmem:[#allocation23_spill] sm:$0xff] %v9242_v48  ;;  %v10578_v18 = vrot.slane %v9242_v48, 4  ;;  %v9252_v25 = vpop.permute.xlu1 %5003 }
 0x74a   : > { %10656 = vst [vmem:[#allocation24_spill] sm:$0xff] %v9252_v25  ;;  %v9270_v25 = vld [vmem:[%s7171_s6 + $0x28] sm:$0xff] }
 0x74b   : > { %v5446_v50 = vsel %vm511_vm2, %v10579_v10, %v10578_v18  ;;  %4129 = vrot.lane.b32.xlu0 %v8874_v3, %s6995_s16  ;;  %3920 = vrot.lane.b32.xlu1 %v9248_v56, %s6994_s29  ;;  %v5636_v10 = vld [vmem:[#allocation2 + $0x2a8] sm:$0xff] }
 0x74c   : > { %v5447_v9 = vsel %vm5438_vm0, %v5446_v50, %v9242_v48  ;;  %v9274_v35 = vpop.permute.xlu0 %5216  ;;  %v3665_v50 = vsel %vm511_vm2, %v10660_v34, %v10659_v6  ;;  %v10661_v48 = vrot.slane %v8994_v23, 4 }
 0x74d   : > { %10657 = vst [vmem:[#allocation25_spill] sm:$0xff] %v9274_v35  ;;  %v9279_v37 = vmul.f32 %v5447_v9, %v9270_v25  ;;  %v3280_v18 = vpop.permute.xlu1 %3279  ;;  %v10662_v35 = vrot.slane %v8957_v41, 4  ;;  %v3666_v17 = vsel %vm10588_vm6, %v3665_v50, %v8970_v60  ;;  %vm10593_vm6 = vcmask 777216  }
 0x74e   : > { %v3308_v3 = vsel %vm10619_vm9, %v3280_v18, %v3282_v22  ;;  %v5650_v51 = vld [vmem:[#allocation2 + $0x318] sm:$0xff]  ;;  %v9310_v0 = vmul.f32 %v3666_v17, %v9155_v24  ;;  %v9340_v17 = vld [vmem:[%s7171_s6 + $0x20] sm:$0xff] }
 0x74f   : > { %10658 = vst [vmem:[#allocation26_spill] sm:$0xff] %v9279_v37  ;;  %v3454_v36 = vsel %vm511_vm2, %v10662_v35, %v10661_v48  ;;  %3335 = vst [vmem:[#allocation2 + $0x310] sm:$0xf0] %v3308_v3  ;;  %5007 = vrot.lane.b32.xlu0 %v4994_v8, %s6989_s12  ;;  %4131 = vrot.lane.b32.xlu1 %v4118_v45, %s6995_s16  ;;  %v6638_v22 = vpack.c.bf16 %v5650_v51, %v5636_v10  ;;  %v10590_v45 = vrot.slane %v8977_v28, 4  ;;  %v5635_v35 = vld [vmem:[#allocation2 + $0x2a0] sm:$0xff] }
 0x750   : > { %v3455_v41 = vsel %vm10587_vm4, %v3454_v36, %v8994_v23  ;;  %v10589_v51 = vrot.slane %v8999_v43, 4  ;;  %vm10594_vm4 = vcmask 785408  }
 0x751   : > { %v9294_v18 = vpop.permute.xlu0 %3494  ;;  %v9296_v53 = vpop.permute.xlu1 %3492  ;;  %6639 = vmatprep.subr.bf16.mxu0 %v6638_v22  ;;  %v9313_v10 = vmul.f32 %v3455_v41, %v9155_v24  ;;  %v10665_v24 = vrot.slane %v8964_v19, 4  ;;  %v3697_v22 = vcombine.low %v9310_v0, %v9310_v0 }
 0x752   : > { %v3520_v48 = vsel %vm3518_vm5, %v9296_v53, %v9294_v18 }
 0x753   : > { %3547 = vst [vmem:[#allocation2 + $0x388] sm:$0xf] %v3520_v48  ;;  %3500 = vrot.lane.b32.xlu0 %v3485_v38, %s6992_s27  ;;  %5429 = vrot.lane.b32.xlu1 %v5416_v61, %s10663_s10  ;;  %v10664_v61 = vrot.slane %v8949_v1, 4  ;;  %v3876_v34 = vsel %vm511_vm2, %v10665_v24, %v10589_v51  ;;  %v3907_v1 = vcombine.high %v9248_v56, %v9248_v56  ;;  %v4498_v56 = vrot.slane %v8982_v11, 4 }
 0x754   : > { %v3877_v41 = vsel %vm3870_vm7, %v3876_v34, %v8999_v43  ;;  %v10666_v34 = vrot.slane %v8842_v59, 4 }
 0x755   : > { %v9315_v36 = vpop.permute.xlu0 %3705  ;;  %v3704_v8 = vpop.permute.xlu1 %3703  ;;  %v4087_v6 = vsel %vm511_vm2, %v10664_v61, %v10590_v45 }
 0x756   : > { %v3731_v9 = vsel %vm10592_vm1, %v3704_v8, %v9315_v36  ;;  %v5649_v3 = vld [vmem:[#allocation2 + $0x310] sm:$0xff] }
 0x757   : > { %3758 = vst [vmem:[#allocation2 + $0x388] sm:$0xf0] %v3731_v9  ;;  %3711 = vrot.lane.b32.xlu0 %v9202_v32, %s6993_s28  ;;  %3502 = vrot.lane.b32.xlu1 %v9313_v10, %s6992_s27  ;;  %v6640_v50 = vpack.c.bf16 %v5649_v3, %v5635_v35  ;;  %v4088_v32 = vsel %vm4081_vm8, %v4087_v6, %v8977_v28  ;;  %v4287_v9 = vrot.slane %v9009_v54, 4 }
 0x758   : > { %v9353_v35 = vmul.f32 %v4088_v32, %v9340_v17  ;;  %v9356_v3 = vmul.f32 %v9340_v17, %v3877_v41  ;;  %v4328_v32 = vcombine.high %v8945_v62, %v8945_v62 }
 0x759   : > { %v9337_v38 = vpop.permute.xlu0 %3916  ;;  %v3915_v19 = vpop.permute.xlu1 %3914  ;;  %6641 = vmatpush1.bf16.msra.mxu0 %v6640_v50  ;;  %v4507_v50 = vsel %vm511_vm2, %v10666_v34, %v4498_v56 }
 0x75a   : > { %v3942_v48 = vsel %vm10594_vm4, %v3915_v19, %v9337_v38  ;;  %v4119_v41 = vcombine.low %v9353_v35, %v9353_v35 }
 0x75b   : > { %3969 = vst [vmem:[#allocation2 + $0x3f8] sm:$0xf] %v3942_v48  ;;  %3922 = vrot.lane.b32.xlu0 %v3907_v1, %s6994_s29  ;;  %3713 = vrot.lane.b32.xlu1 %v3697_v22, %s6993_s28  ;;  %v10667_v1 = vrot.slane %v8881_v47, 4  ;;  %v4508_v47 = vsel %vm4503_vm11, %v4507_v50, %v8982_v11 }
 0x75c   : > { %v4526_v62 = vmul.f32 %v4508_v47, %v9228_v27 }
 0x75d   : > { %v9358_v61 = vpop.permute.xlu0 %4127  ;;  %v4126_v6 = vpop.permute.xlu1 %4125  ;;  %v4296_v22 = vsel %vm511_vm2, %v10667_v1, %v4287_v9 }
 0x75e   : > { %v4153_v24 = vsel %vm10593_vm6, %v4126_v6, %v9358_v61  ;;  %v5664_v50 = vld [vmem:[#allocation2 + $0x388] sm:$0xff] }
 0x75f   : > { %4180 = vst [vmem:[#allocation2 + $0x3f8] sm:$0xf0] %v4153_v24  ;;  %4133 = vrot.lane.b32.xlu0 %v9245_v15, %s6995_s16  ;;  %3924 = vrot.lane.b32.xlu1 %v9356_v3, %s6994_s29  ;;  %v4297_v24 = vsel %vm10595_vm10, %v4296_v22, %v9009_v54  ;;  %v4800_v15 = vrot.slane %v8988_v5, 4  ;;  %v4630_v54 = vcombine.high %v8863_v20, %v8863_v20  ;;  %v10670_v22 = vrot.slane %v8869_v31, 4 }
 0x760   : > { %v4315_v34 = vmul.f32 %v4297_v24, %v9228_v27  ;;  %v10597_v24 = vrot.slane %v9043_v30, 4 }
 0x761   : > { %v9376_v59 = vpop.permute.xlu0 %5427  ;;  %v9378_v48 = vpop.permute.xlu1 %5005 }
 0x762   : > { %10668 = vst [vmem:[#allocation27_spill] sm:$0xff] %v9376_v59  ;;  %10669 = vst [vmem:[#allocation28_spill] sm:$0xff] %v9378_v48 }
 0x763   : > { %4340 = vrot.lane.b32.xlu0 %v4328_v32, %s6996_s22  ;;  %4135 = vrot.lane.b32.xlu1 %v4119_v41, %s6995_s16  ;;  %v4809_v32 = vsel %vm511_vm2, %v10670_v22, %v4800_v15  ;;  %v4329_v22 = vcombine.high %v4315_v34, %v4315_v34 }
 0x764   : > { %v4810_v20 = vsel %vm4805_vm12, %v4809_v32, %v8988_v5 }
 0x765   : > { %v3702_v1 = vpop.permute.xlu0 %3701  ;;  %v3491_v51 = vpop.permute.xlu1 %3490 }
 0x766   : > { %v3730_v45 = vsel %vm10592_vm1, %v3702_v1, %v3704_v8  ;;  %v3519_v11 = vsel %vm3518_vm5, %v3491_v51, %v9296_v53  ;;  %v5678_v37 = vld [vmem:[#allocation2 + $0x3f8] sm:$0xff]  ;;  %v4540_v53 = vcombine.low %v4526_v62, %v4526_v62  ;;  %vm4362_vm1 = vcmask 769024  }
 0x767   : > { %3757 = vst [vmem:[#allocation2 + $0x380] sm:$0xf0] %v3730_v45  ;;  %3546 = vst [vmem:[#allocation2 + $0x380] sm:$0xf] %v3519_v11  ;;  %4551 = vrot.lane.b32.xlu0 %v8941_v58, %s10671_s11  ;;  %4342 = vrot.lane.b32.xlu1 %v4315_v34, %s6996_s22  ;;  %v6642_v8 = vpack.c.bf16 %v5678_v37, %v5664_v50  ;;  %v10598_v45 = vrot.slane %v9017_v33, 4  ;;  %v4828_v58 = vmul.f32 %v4810_v20, %v9228_v27  ;;  %v10674_v50 = vld [vmem:[#allocation10_spill] sm:$0xff] }
 0x768   : > { %v4298_v11 = vsel %vm511_vm2, %v4287_v9, %v10597_v24  ;;  %v10596_v20 = vrot.slane %v9023_v21, 4 }
 0x769   : > { %v4124_v51 = vpop.permute.xlu0 %4123  ;;  %v3913_v41 = vpop.permute.xlu1 %3912  ;;  %6643 = vmatprep.subr.bf16.mxu0 %v6642_v8 }
 0x76a   : > { %v4152_v47 = vsel %vm10593_vm6, %v4124_v51, %v4126_v6  ;;  %v3941_v31 = vsel %vm10594_vm4, %v3913_v41, %v3915_v19  ;;  %v4509_v19 = vsel %vm511_vm2, %v4498_v56, %v10598_v45  ;;  %vm10600_vm6 = vcmask 687104   ;;  %v10677_v45 = vld [vmem:[#allocation8_spill] sm:$0xff] }
 0x76b   : > { %4179 = vst [vmem:[#allocation2 + $0x3f0] sm:$0xf0] %v4152_v47  ;;  %3968 = vst [vmem:[#allocation2 + $0x3f0] sm:$0xf] %v3941_v31  ;;  %4642 = vrot.lane.b32.xlu0 %v4630_v54, %s10672_s17  ;;  %4553 = vrot.lane.b32.xlu1 %v4540_v53, %s10671_s11  ;;  %v4842_v54 = vcombine.low %v4828_v58, %v4828_v58  ;;  %v4510_v56 = vsel %vm4503_vm11, %v4509_v19, %v9017_v33  ;;  %vm10603_vm4 = vcmask 678912   ;;  %v10678_v59 = vrot.slane %v10677_v45, 4 }
 0x76c   : > { %v4299_v53 = vsel %vm10595_vm10, %v4298_v11, %v9043_v30  ;;  %v9437_v47 = vmul.f32 %v4510_v56, %v9340_v17  ;;  %vm10601_vm10 = vcmask 670720  }
 0x76d   : > { %v9411_v37 = vpop.permute.xlu0 %4338  ;;  %v4337_v1 = vpop.permute.xlu1 %4336  ;;  %v9440_v31 = vmul.f32 %v4299_v53, %v9340_v17 }
 0x76e   : > { %v4364_v6 = vsel %vm4362_vm1, %v4337_v1, %v9411_v37  ;;  %v5663_v51 = vld [vmem:[#allocation2 + $0x380] sm:$0xff] }
 0x76f   : > { %4391 = vst [vmem:[#allocation2 + $0x468] sm:$0xf] %v4364_v6  ;;  %4853 = vrot.lane.b32.xlu0 %v10674_v50, %s10673_s26  ;;  %4644 = vrot.lane.b32.xlu1 %v9228_v27, %s10672_s17  ;;  %v4811_v50 = vsel %vm511_vm2, %v4800_v15, %v10596_v20  ;;  %v10676_v20 = vrot.slane %v8899_v4, 4 }
 0x770   : > { %v4812_v5 = vsel %vm4805_vm12, %v4811_v50, %v9023_v21 }
 0x771   : > { %v9425_v32 = vpop.permute.xlu0 %4549  ;;  %v4548_v8 = vpop.permute.xlu1 %4547 }
 0x772   : > { %v4575_v9 = vsel %vm10600_vm6, %v4548_v8, %v9425_v32  ;;  %v5677_v41 = vld [vmem:[#allocation2 + $0x3f0] sm:$0xff] }
 0x773   : > { %4602 = vst [vmem:[#allocation2 + $0x468] sm:$0xf0] %v4575_v9  ;;  %4344 = vrot.lane.b32.xlu0 %v4329_v22, %s6996_s22  ;;  %4855 = vrot.lane.b32.xlu1 %v4842_v54, %s10673_s26  ;;  %v6644_v34 = vpack.c.bf16 %v5677_v41, %v5663_v51  ;;  %v4631_v54 = vcombine.high %v9228_v27, %v9228_v27  ;;  %v5222_v9 = vrot.slane %v9035_v16, 4 }
 0x774   : > { %v4541_v22 = vcombine.low %v9437_v47, %v9437_v47  ;;  %v9469_v51 = vmul.f32 %v4812_v5, %v9340_v17 }
 0x775   : > { %v9442_v6 = vpop.permute.xlu0 %4640  ;;  %v4639_v19 = vpop.permute.xlu1 %4638  ;;  %6645 = vmatpush1.bf16.msra.mxu0 %v6644_v34  ;;  %v5231_v24 = vsel %vm511_vm2, %v10676_v20, %v5222_v9 }
 0x776   : > { %v4666_v11 = vsel %vm10603_vm4, %v4639_v19, %v9442_v6  ;;  %v5232_v45 = vsel %vm5227_vm14, %v5231_v24, %v9035_v16 }
 0x777   : > { %4693 = vst [vmem:[#allocation2 + $0x4d8] sm:$0xf] %v4666_v11  ;;  %4555 = vrot.lane.b32.xlu0 %v4526_v62, %s10671_s11  ;;  %4346 = vrot.lane.b32.xlu1 %v9440_v31, %s6996_s22  ;;  %v5011_v62 = vrot.slane %v9051_v52, 4  ;;  %v5250_v16 = vmul.f32 %v5232_v45, %v9228_v27  ;;  %v10686_v45 = vld [vmem:[#allocation11_spill] sm:$0xff] }
 0x779   : > { %v9458_v56 = vpop.permute.xlu0 %4851  ;;  %v4850_v53 = vpop.permute.xlu1 %4849 }
 0x77a   : > { %10675 = vst [vmem:[#allocation10_spill] sm:$0xff] %v9458_v56  ;;  %v4877_v15 = vsel %vm10601_vm10, %v4850_v53, %v9458_v56  ;;  %v5692_v5 = vld [vmem:[#allocation2 + $0x468] sm:$0xff] }
 0x77b   : > { %4904 = vst [vmem:[#allocation2 + $0x4d8] sm:$0xf0] %v4877_v15  ;;  %4646 = vrot.lane.b32.xlu0 %v4631_v54, %s10672_s17  ;;  %4557 = vrot.lane.b32.xlu1 %v4541_v22, %s10671_s11  ;;  %v5020_v15 = vsel %vm511_vm2, %v10678_v59, %v5011_v62  ;;  %v10679_v54 = vld [vmem:[#allocation12_spill] sm:$0xff] }
 0x77c   : > { %v5021_v59 = vsel %vm5016_vm13, %v5020_v15, %v9051_v52  ;;  %v10682_v15 = vld [vmem:[#allocation9_spill] sm:$0xff] }
 0x77d   : > { %v4546_v41 = vpop.permute.xlu0 %4545  ;;  %v4335_v34 = vpop.permute.xlu1 %4334  ;;  %v5039_v52 = vmul.f32 %v5021_v59, %v9228_v27  ;;  %v10687_v59 = vld [vmem:[#allocation14_spill] sm:$0xff] }
 0x77e   : > { %v4574_v11 = vsel %vm10600_vm6, %v4546_v41, %v4548_v8  ;;  %v4363_v50 = vsel %vm4362_vm1, %v4335_v34, %v4337_v1  ;;  %v5052_v8 = vcombine.high %v10679_v54, %v10679_v54  ;;  %v4843_v1 = vcombine.low %v9469_v51, %v9469_v51  ;;  %v10680_v34 = vld [vmem:[#allocation13_spill] sm:$0xff] }
 0x77f   : > { %4601 = vst [vmem:[#allocation2 + $0x460] sm:$0xf0] %v4574_v11  ;;  %4390 = vst [vmem:[#allocation2 + $0x460] sm:$0xf] %v4363_v50  ;;  %4857 = vrot.lane.b32.xlu0 %v4828_v58, %s10673_s26  ;;  %4648 = vrot.lane.b32.xlu1 %v9340_v17, %s10672_s17  ;;  %v5433_v11 = vrot.slane %v10680_v34, 4  ;;  %vm10608_vm6 = vcmask 588800  }
 0x780   : > { %v10683_v54 = vrot.slane %v10682_v15, 4 }
 0x781   : > { %v4848_v4 = vpop.permute.xlu0 %4847  ;;  %v4637_v22 = vpop.permute.xlu1 %4636 }
 0x782   : > { %v4876_v20 = vsel %vm10601_vm10, %v4848_v4, %v4850_v53  ;;  %v4665_v58 = vsel %vm10603_vm4, %v4637_v22, %v4639_v19  ;;  %v5706_v41 = vld [vmem:[#allocation2 + $0x4d8] sm:$0xff]  ;;  %v5442_v4 = vsel %vm511_vm2, %v10683_v54, %v5433_v11  ;;  %vm10607_vm10 = vcmask 580608  }
 0x783   : > { %4903 = vst [vmem:[#allocation2 + $0x4d0] sm:$0xf0] %v4876_v20  ;;  %4692 = vst [vmem:[#allocation2 + $0x4d0] sm:$0xf] %v4665_v58  ;;  %5064 = vrot.lane.b32.xlu0 %v5052_v8, %s7000_s14  ;;  %4859 = vrot.lane.b32.xlu1 %v4843_v1, %s10673_s26  ;;  %v6646_v50 = vpack.c.bf16 %v5706_v41, %v5692_v5  ;;  %v10684_v8 = vld [vmem:[#allocation15_spill] sm:$0xff]  ;;  %v10685_v1 = vld [vmem:[#allocation16_spill] sm:$0xff]  ;;  %v5474_v58 = vcombine.high %v10687_v59, %v10687_v59 }
 0x784   : > { %v10609_v22 = vrot.slane %v10684_v8, 4  ;;  %v5264_v5 = vcombine.low %v5250_v16, %v5250_v16  ;;  %v5443_v15 = vsel %vm5438_vm0, %v5442_v4, %v10680_v34  ;;  %vm5508_vm4 = vcmask 572416  }
 0x785   : > { %v9497_v24 = vpop.permute.xlu0 %5062  ;;  %v5061_v53 = vpop.permute.xlu1 %5060  ;;  %6647 = vmatprep.subr.bf16.mxu0 %v6646_v50  ;;  %v5053_v4 = vcombine.high %v5039_v52, %v5039_v52 }
 0x786   : > { %10681 = vst [vmem:[#allocation8_spill] sm:$0xff] %v9497_v24  ;;  %v5088_v19 = vsel %vm10608_vm6, %v5061_v53, %v9497_v24  ;;  %v10689_v24 = vrot.slane %v10685_v1, 4 }
 0x787   : > { %5115 = vst [vmem:[#allocation2 + $0x548] sm:$0xf] %v5088_v19  ;;  %5275 = vrot.lane.b32.xlu0 %v10686_v45, %s7001_s24  ;;  %5066 = vrot.lane.b32.xlu1 %v5039_v52, %s7000_s14  ;;  %v5691_v19 = vld [vmem:[#allocation2 + $0x460] sm:$0xff]  ;;  %v5233_v45 = vsel %vm511_vm2, %v5222_v9, %v10609_v22 }
 0x788   : > { %v5022_v59 = vsel %vm511_vm2, %v5011_v62, %v10689_v24  ;;  %v5234_v9 = vsel %vm5227_vm14, %v5233_v45, %v10684_v8  ;;  %v10692_v45 = vld [vmem:[#allocation17_spill] sm:$0xff] }
 0x789   : > { %v9511_v41 = vpop.permute.xlu0 %5273  ;;  %v5272_v50 = vpop.permute.xlu1 %5271  ;;  %v5023_v62 = vsel %vm5016_vm13, %v5022_v59, %v10685_v1  ;;  %v3234_v59 = vrot.slane %v10692_v45, 4 }
 0x78a   : > { %10688 = vst [vmem:[#allocation12_spill] sm:$0xff] %v9511_v41  ;;  %v5299_v54 = vsel %vm10607_vm10, %v5272_v50, %v9511_v41  ;;  %v5705_v20 = vld [vmem:[#allocation2 + $0x4d0] sm:$0xff]  ;;  %v5461_v41 = vmul.f32 %v5443_v15, %v9228_v27  ;;  %v9537_v27 = vmul.f32 %v5234_v9, %v9340_v17  ;;  %v9540_v52 = vmul.f32 %v5023_v62, %v9340_v17 }
 0x78b   : > { %5326 = vst [vmem:[#allocation2 + $0x548] sm:$0xf0] %v5299_v54  ;;  %5486 = vrot.lane.b32.xlu0 %v5474_v58, %s7002_s23  ;;  %5277 = vrot.lane.b32.xlu1 %v5264_v5, %s7001_s24  ;;  %v6648_v34 = vpack.c.bf16 %v5705_v20, %v5691_v19  ;;  %v10691_v54 = vrot.slane %v9071_v13, 4 }
 0x78d   : > { %v9526_v48 = vpop.permute.xlu0 %5484  ;;  %v5483_v56 = vpop.permute.xlu1 %5482  ;;  %6649 = vmatpush1.bf16.msra.mxu0 %v6648_v34  ;;  %v5444_v19 = vsel %vm511_vm2, %v5433_v11, %v10691_v54  ;;  %v5475_v34 = vcombine.high %v5461_v41, %v5461_v41 }
 0x78e   : > { %10690 = vst [vmem:[#allocation13_spill] sm:$0xff] %v9526_v48  ;;  %v5510_v24 = vsel %vm5508_vm4, %v5483_v56, %v9526_v48  ;;  %v5445_v9 = vsel %vm5438_vm0, %v5444_v19, %v9071_v13  ;;  %v10698_v19 = vld [vmem:[#allocation18_spill] sm:$0xff] }
 0x78f   : > { %5537 = vst [vmem:[#allocation2 + $0x5b8] sm:$0xf] %v5510_v24  ;;  %5068 = vrot.lane.b32.xlu0 %v5053_v4, %s7000_s14  ;;  %5488 = vrot.lane.b32.xlu1 %v5461_v41, %s7002_s23  ;;  %v5265_v4 = vcombine.low %v9537_v27, %v9537_v27  ;;  %v10695_v41 = vrot.slane %v8933_v42, 4  ;;  %v2931_v42 = vld [vmem:[%s7171_s6 + $0x24] sm:$0xff] }
 0x791   : > { %v5270_v20 = vpop.permute.xlu0 %5269  ;;  %v5059_v58 = vpop.permute.xlu1 %5058 }
 0x792   : > { %v5298_v5 = vsel %vm10607_vm10, %v5270_v20, %v5272_v50  ;;  %v5087_v15 = vsel %vm10608_vm6, %v5059_v58, %v5061_v53  ;;  %v5720_v62 = vld [vmem:[#allocation2 + $0x548] sm:$0xff]  ;;  %vm7004_vm10 = vmmov 1   ;;  %v3245_v20 = vsel %vm511_vm2, %v10695_v41, %v3234_v59 }
 0x793   : > { %5325 = vst [vmem:[#allocation2 + $0x540] sm:$0xf0] %v5298_v5  ;;  %5114 = vst [vmem:[#allocation2 + $0x540] sm:$0xf] %v5087_v15  ;;  %5279 = vrot.lane.b32.xlu0 %v5250_v16, %s7001_s24  ;;  %5070 = vrot.lane.b32.xlu1 %v9540_v52, %s7000_s14  ;;  %v9571_v58 = vmul.f32 %v5445_v9, %v9340_v17  ;;  %v3246_v54 = vsel %vm10620_vm3, %v3245_v20, %v10692_v45  ;;  %v10704_v45 = vld [vmem:[#allocation3_spill] sm:$0xff] }
 0x794   : > { %vm9559_vm6 = vmpackc.low %vm511_vm2, %vm7004_vm10  ;;  %v10705_v20 = vrot.slane %v10704_v45, 4  ;;  %vm10616_vm10 = vcmask 883712  }
 0x795   : > { %v9553_v50 = vpop.permute.xlu0 %3228  ;;  %v5481_v53 = vpop.permute.xlu1 %5480 }
 0x796   : > { %v5509_v11 = vsel %vm5508_vm4, %v5481_v53, %v5483_v56  ;;  %v5734_v24 = vld [vmem:[#allocation2 + $0x5b8] sm:$0xf]  ;;  %v3064_v56 = vcombine.high %v9168_v7, %v9168_v7  ;;  %v10699_v7 = vld [vmem:[#allocation5_spill] sm:$0xff]  ;;  %v3262_v53 = vmul.f32 %v3246_v54, %v2931_v42  ;;  %v5556_v54 = vld [vmem:[#allocation2 + $0x28] sm:$0xff] }
 0x797   : > { %5536 = vst [vmem:[#allocation2 + $0x5b0] sm:$0xf] %v5509_v11  ;;  %5490 = vrot.lane.b32.xlu0 %v5475_v34, %s7002_s23  ;;  %5281 = vrot.lane.b32.xlu1 %v5265_v4, %s7001_s24  ;;  %v6650_v13 = vpack.c.bf16 %v5734_v24, %v5720_v62  ;;  %v3051_v4 = vmul.f32 %v10699_v7, %v2931_v42  ;;  %v5570_v62 = vld [vmem:[#allocation2 + $0x98] sm:$0xff] }
 0x798   : > { %v6686_v7 = vpack.c.bf16 %v5570_v62, %v5556_v54 }
 0x799   : > { %v9573_v5 = vpop.permute.xlu0 %4072  ;;  %v9575_v15 = vpop.permute.xlu1 %3650  ;;  %6652 = vmatprep.subr.msk.bf16.mxu0 %vm9559_vm6, %v6650_v13  ;;  %v10702_v13 = vld [vmem:[#allocation4_spill] sm:$0xff] }
 0x79a   : > { %10696 = vst [vmem:[#allocation9_spill] sm:$0xff] %v9573_v5  ;;  %10697 = vst [vmem:[#allocation15_spill] sm:$0xff] %v9575_v15  ;;  %v5719_v24 = vld [vmem:[#allocation2 + $0x540] sm:$0xff]  ;;  %v10703_v22 = vrot.slane %v10702_v13, 4  ;;  %v3276_v15 = vcombine.low %v3262_v53, %v3262_v53 }
 0x79b   : > { %3082 = vrot.lane.b32.xlu0 %v3064_v56, %s6979_s13  ;;  %5492 = vrot.lane.b32.xlu1 %v9571_v58, %s7002_s23  ;;  %v10706_v56 = vrot.slane %v10698_v19, 4 }
 0x79c   : > { %v3036_v34 = vsel %vm511_vm2, %v10705_v20, %v10703_v22  ;;  %v9611_v22 = vld [vmem:[%s10527_s1] sm:$0xff]  ;;  %v10708_v20 = vmov 0.0  }
 0x79d   : > { %v9587_v9 = vpop.permute.xlu0 %3861  ;;  %v9589_v11 = vpop.permute.xlu1 %3439  ;;  %v3247_v5 = vsel %vm511_vm2, %v3234_v59, %v10706_v56  ;;  %v2932_v59 = vld [vmem:[%s7171_s6 + $0x2c] sm:$0xff]  ;;  %v3037_v62 = vsel %vm3026_vm15, %v3036_v34, %v10702_v13  ;;  %vm10714_vm15 = vcmask 343040  }
 0x79e   : > { %10700 = vst [vmem:[#allocation16_spill] sm:$0xff] %v9587_v9  ;;  %10701 = vst [vmem:[#allocation11_spill] sm:$0xff] %v9589_v11  ;;  %v5733_v41 = vld [vmem:[#allocation2 + $0x5b0] sm:$0xf]  ;;  %v3065_v11 = vcombine.high %v3051_v4, %v3051_v4  ;;  %v9624_v13 = vmul.f32 %v3037_v62, %v2932_v59  ;;  %v10710_v62 = vrot.slane %v8970_v60, 4 }
 0x79f   : > { %3293 = vrot.lane.b32.xlu0 %v9171_v26, %s6991_s25  ;;  %3084 = vrot.lane.b32.xlu1 %v3051_v4, %s6979_s13  ;;  %v6653_v42 = vpack.c.bf16 %v5733_v41, %v5719_v24  ;;  %v5569_v9 = vld [vmem:[#allocation2 + $0x90] sm:$0xff]  ;;  %v5598_v26 = vld [vmem:[#allocation2 + $0x178] sm:$0xff]  ;;  %v3248_v4 = vsel %vm10620_vm3, %v3247_v5, %v10698_v19  ;;  %v5555_v24 = vld [vmem:[#allocation2 + $0x20] sm:$0xff]  ;;  %vm10727_vm3 = vcmask 703488  }
 0x7a0   : > { %v6688_v56 = vpack.c.bf16 %v5569_v9, %v5555_v24  ;;  %v5597_v34 = vld [vmem:[#allocation2 + $0x170] sm:$0xff]  ;;  %v9626_v5 = vmul.f32 %v3248_v4, %v2932_v59  ;;  %v5626_v41 = vld [vmem:[#allocation2 + $0x258] sm:$0xff]  ;;  %v10711_v4 = vrot.slane %v9117_v63, 4  ;;  %v10712_v24 = vrot.slane %v8994_v23, 4 }
 0x7a1   : > { %v9602_v48 = vpop.permute.xlu0 %4796  ;;  %v9604_v45 = vpop.permute.xlu1 %4494  ;;  %6655 = vmatpush1.bf16.msk.msra.mxu0 %vm9559_vm6, %v6653_v42  ;;  %v5584_v42 = vld [vmem:[#allocation2 + $0x108] sm:$0xff]  ;;  %v5625_v60 = vld [vmem:[#allocation2 + $0x250] sm:$0xff] }
 0x7a2   : > { %10707 = vst [vmem:[#allocation14_spill] sm:$0xff] %v9602_v48  ;;  %6687 = vmatprep.subr.bf16.mxu0 %v6686_v7  ;;  %v6690_v54 = vpack.c.bf16 %v5598_v26, %v5584_v42  ;;  %v10709_v26 = vrot.slane %v9098_v57, 4 }
 0x7a3   : > { %3086 = vrot.lane.b32.xlu0 %v3065_v11, %s6979_s13  ;;  %3295 = vrot.lane.b32.xlu1 %v3276_v15, %s6991_s25  ;;  %v5583_v11 = vld [vmem:[#allocation2 + $0x100] sm:$0xff] }
 0x7a4   : > { %6604 = vmatmul.mubr.msk.f32.vlgmr.msra.gmra.mrb[0].mxu0 %vm10616_vm10, %v9611_v22  ;;  %v3667_v59 = vsel %vm511_vm2, %v10710_v62, %v10709_v26  ;;  %v3277_v26 = vcombine.low %v9626_v5, %v9626_v5  ;;  %vm10715_vm10 = vcmask 334848  }
 0x7a5   : > { %v3288_v7 = vpop.permute.xlu0 %3287  ;;  %v3286_v48 = vpop.permute.xlu1 %3285  ;;  %6689 = vmatpush1.bf16.msra.mxu0 %v6688_v56  ;;  %5999 = vmatprep.mubr.f32.mxu0 %v10708_v20  ;;  %v3456_v56 = vsel %vm511_vm2, %v10712_v24, %v10711_v4 }
 0x7a6   : > { %v3310_v15 = vsel %vm10619_vm9, %v9225_v2, %v3286_v48  ;;  %v3311_v9 = vsel %vm10619_vm9, %v3286_v48, %v3288_v7  ;;  %6691 = vmatprep.subr.bf16.mxu0 %v6690_v54  ;;  %v6692_v2 = vpack.c.bf16 %v5597_v34, %v5583_v11  ;;  %v5612_v48 = vld [vmem:[#allocation2 + $0x1e8] sm:$0xff]  ;;  %v3486_v54 = vcombine.high %v9313_v10, %v9313_v10 }
 0x7a7   : > { %3337 = vst [vmem:[#allocation2 + $0x320] sm:$0xf0] %v3310_v15  ;;  %3338 = vst [vmem:[#allocation2 + $0x328] sm:$0xf0] %v3311_v9  ;;  %3297 = vrot.lane.b32.xlu0 %v3262_v53, %s6991_s25  ;;  %3088 = vrot.lane.b32.xlu1 %v9624_v13, %s6979_s13  ;;  %v6694_v42 = vpack.c.bf16 %v5626_v41, %v5612_v48  ;;  %v3564_v15 = vld [vmem:[%s7171_s6 + $0x24] sm:$0xff]  ;;  %v3668_v53 = vsel %vm10714_vm15, %v3667_v59, %v9098_v57  ;;  %v10617_v34 = vrot.slane %v9102_v55, 4 }
 0x7a8   : > { %v3457_v41 = vsel %vm10715_vm10, %v3456_v56, %v9117_v63  ;;  %v5611_v9 = vld [vmem:[#allocation2 + $0x1e0] sm:$0xff]  ;;  %v9662_v4 = vmul.f32 %v3668_v53, %v3564_v15  ;;  %v5637_v59 = vld [vmem:[#allocation2 + $0x2b0] sm:$0xff]  ;;  %v10716_v56 = vrot.slane %v8977_v28, 4  ;;  %vm10718_vm10 = vcmask 801792  }
 0x7a9   : > { %v9649_v23 = vpop.permute.xlu0 %5218  ;;  %v9651_v62 = vpop.permute.xlu1 %4283  ;;  %6693 = vmatpush1.bf16.msra.mxu0 %v6692_v2  ;;  %v6696_v11 = vpack.c.bf16 %v5625_v60, %v5611_v9  ;;  %v3473_v24 = vmul.f32 %v3564_v15, %v3457_v41  ;;  %v10719_v41 = vrot.slane %v9122_v14, 4  ;;  %v10720_v9 = vrot.slane %v8999_v43, 4 }
 0x7aa   : > { %10713 = vst [vmem:[#allocation17_spill] sm:$0xff] %v9649_v23  ;;  %6695 = vmatprep.subr.bf16.mxu0 %v6694_v42  ;;  %v4089_v42 = vsel %vm511_vm2, %v10716_v56, %v10617_v34  ;;  %v3908_v56 = vcombine.high %v9356_v3, %v9356_v3  ;;  %v3657_v3 = vrot.slane %v9126_v44, 4  ;;  %vm10721_vm15 = vcmask 703488  }
 0x7ab   : > { %3504 = vrot.lane.b32.xlu0 %v3486_v54, %s6992_s27  ;;  %3299 = vrot.lane.b32.xlu1 %v3277_v26, %s6991_s25  ;;  %v10717_v54 = vld [vmem:[#allocation7_spill] sm:$0xff]  ;;  %v5638_v26 = vld [vmem:[#allocation2 + $0x2b8] sm:$0xff]  ;;  %v4090_v43 = vsel %vm4081_vm8, %v4089_v42, %v9102_v55 }
 0x7ac   : > { %v9702_v42 = vmul.f32 %v4090_v43, %v9270_v25 }
 0x7ad   : > { %v3290_v2 = vpop.permute.xlu0 %3289  ;;  %v9664_v48 = vpop.permute.xlu1 %3080  ;;  %6697 = vmatpush1.bf16.msra.mxu0 %v6696_v11  ;;  %v3878_v11 = vsel %vm511_vm2, %v10720_v9, %v10719_v41  ;;  %v10722_v41 = vrot.slane %v9098_v57, 4 }
 0x7ae   : > { %v3312_v10 = vsel %vm10619_vm9, %v3288_v7, %v3290_v2  ;;  %v3102_v60 = vsel %vm10718_vm10, %v10717_v54, %v9664_v48  ;;  %v5652_v53 = vld [vmem:[#allocation2 + $0x328] sm:$0xff]  ;;  %v5651_v15 = vld [vmem:[#allocation2 + $0x320] sm:$0xff]  ;;  %v3698_v54 = vcombine.low %v9662_v4, %v9662_v4  ;;  %vm10724_vm10 = vcmask 343040  }
 0x7af   : > { %3339 = vst [vmem:[#allocation2 + $0x330] sm:$0xf0] %v3312_v10  ;;  %3129 = vst [vmem:[#allocation2 + $0x338] sm:$0xf] %v3102_v60  ;;  %3715 = vrot.lane.b32.xlu0 %v9310_v0, %s6993_s28  ;;  %3506 = vrot.lane.b32.xlu1 %v3473_v24, %s6992_s27  ;;  %v6668_v28 = vpack.c.bf16 %v5652_v53, %v5638_v26  ;;  %v6670_v7 = vpack.c.bf16 %v5651_v15, %v5637_v59  ;;  %v10621_v60 = vrot.slane %v9151_v40, 4 }
 0x7b0   : > { %v3879_v0 = vsel %vm3870_vm7, %v3878_v11, %v9122_v14  ;;  %v3669_v9 = vsel %vm511_vm2, %v10722_v41, %v3657_v3  ;;  %v10723_v11 = vrot.slane %v9117_v63, 4  ;;  %v5639_v41 = vld [vmem:[#allocation2 + $0x2c0] sm:$0xff] }
 0x7b1   : > { %v3497_v34 = vpop.permute.xlu0 %3496  ;;  %v9687_v23 = vpop.permute.xlu1 %3291  ;;  %6669 = vmatprep.subr.bf16.mxu1 %v6668_v28  ;;  %v3895_v26 = vmul.f32 %v9270_v25, %v3879_v0  ;;  %v3670_v63 = vsel %vm10724_vm10, %v3669_v9, %v9126_v44 }
 0x7b2   : > { %v3521_v10 = vsel %vm3518_vm5, %v9294_v18, %v3497_v34  ;;  %v3313_v59 = vsel %vm10619_vm9, %v3290_v2, %v9687_v23  ;;  %6671 = vmatpush1.bf16.msra.mxu1 %v6670_v7  ;;  %v3458_v28 = vsel %vm511_vm2, %v10723_v11, %v10621_v60  ;;  %vm10726_vm9 = vcmask 785408  }
 0x7b3   : > { %3548 = vst [vmem:[#allocation2 + $0x390] sm:$0xf] %v3521_v10  ;;  %3340 = vst [vmem:[#allocation2 + $0x338] sm:$0xf0] %v3313_v59  ;;  %3926 = vrot.lane.b32.xlu0 %v3908_v56, %s6994_s29  ;;  %3717 = vrot.lane.b32.xlu1 %v3698_v54, %s6993_s28  ;;  %v3565_v54 = vld [vmem:[%s7171_s6 + $0x2c] sm:$0xff] }
 0x7b4   : > { %v5640_v10 = vld [vmem:[#allocation2 + $0x2c8] sm:$0xff]  ;;  %v9738_v11 = vmul.f32 %v3670_v63, %v3565_v54 }
 0x7b5   : > { %v3708_v18 = vpop.permute.xlu0 %3707  ;;  %v3499_v53 = vpop.permute.xlu1 %3498 }
 0x7b6   : > { %v3732_v2 = vsel %vm10721_vm15, %v9315_v36, %v3708_v18  ;;  %v3522_v15 = vsel %vm3518_vm5, %v3497_v34, %v3499_v53  ;;  %v4120_v36 = vcombine.low %v9702_v42, %v9702_v42  ;;  %v3487_v34 = vcombine.high %v3473_v24, %v3473_v24  ;;  %v5653_v56 = vld [vmem:[#allocation2 + $0x330] sm:$0xff] }
 0x7b7   : > { %3759 = vst [vmem:[#allocation2 + $0x390] sm:$0xf0] %v3732_v2  ;;  %3549 = vst [vmem:[#allocation2 + $0x398] sm:$0xf] %v3522_v15  ;;  %4137 = vrot.lane.b32.xlu0 %v9353_v35, %s6995_s16  ;;  %3928 = vrot.lane.b32.xlu1 %v3895_v26, %s6994_s29  ;;  %vm10725_vm15 = vcmask 334848   ;;  %v10623_v24 = vrot.slane %v9128_v49, 4  ;;  %v6700_v9 = vpack.c.bf16 %v5653_v56, %v5639_v41 }
 0x7b8   : > { %v3459_v43 = vsel %vm10725_vm15, %v3458_v28, %v9151_v40  ;;  %v10622_v2 = vrot.slane %v9159_v12, 4  ;;  %v10731_v56 = vrot.slane %v9122_v14, 4  ;;  %vm10735_vm15 = vcmask 277504  }
 0x7b9   : > { %v3919_v57 = vpop.permute.xlu0 %3918  ;;  %v9723_v7 = vpop.permute.xlu1 %3709 }
 0x7ba   : > { %v3943_v35 = vsel %vm10726_vm9, %v9337_v38, %v3919_v57  ;;  %v3733_v0 = vsel %vm10727_vm3, %v3708_v18, %v9723_v7  ;;  %v5654_v59 = vld [vmem:[#allocation2 + $0x338] sm:$0xff]  ;;  %v9740_v38 = vmul.f32 %v3565_v54, %v3459_v43  ;;  %vm10728_vm9 = vcmask 777216   ;;  %v9764_v43 = vld [vmem:[%s7171_s6 + $0x30] sm:$0xff] }
 0x7bb   : > { %3970 = vst [vmem:[#allocation2 + $0x400] sm:$0xf] %v3943_v35  ;;  %3760 = vst [vmem:[#allocation2 + $0x398] sm:$0xf0] %v3733_v0  ;;  %3508 = vrot.lane.b32.xlu0 %v3487_v34, %s6992_s27  ;;  %4139 = vrot.lane.b32.xlu1 %v4120_v36, %s6995_s16  ;;  %v6698_v15 = vpack.c.bf16 %v5654_v59, %v5640_v10  ;;  %vm10729_vm3 = vcmask 785408   ;;  %v10730_v36 = vrot.slane %v9102_v55, 4  ;;  %v3880_v54 = vsel %vm511_vm2, %v10731_v56, %v10622_v2 }
 0x7bc   : > { %v3699_v55 = vcombine.low %v9738_v11, %v9738_v11  ;;  %vm10732_vm10 = vmmov %vm10728_vm9  ;;  %v4500_v0 = vrot.slane %v9141_v39, 4 }
 0x7bd   : > { %v4130_v18 = vpop.permute.xlu0 %4129  ;;  %v3921_v28 = vpop.permute.xlu1 %3920  ;;  %6699 = vmatprep.subr.bf16.mxu0 %v6698_v15  ;;  %v4091_v34 = vsel %vm511_vm2, %v10730_v36, %v10623_v24  ;;  %v10734_v36 = vrot.slane %v9043_v30, 4 }
 0x7be   : > { %v4154_v60 = vsel %vm10728_vm9, %v9358_v61, %v4130_v18  ;;  %v3944_v35 = vsel %vm10729_vm3, %v3919_v57, %v3921_v28  ;;  %6701 = vmatpush1.bf16.msra.mxu0 %v6700_v9  ;;  %v3909_v61 = vcombine.high %v3895_v26, %v3895_v26  ;;  %v4092_v14 = vsel %vm4081_vm8, %v4091_v34, %v9128_v49 }
 0x7bf   : > { %4181 = vst [vmem:[#allocation2 + $0x400] sm:$0xf0] %v4154_v60  ;;  %3971 = vst [vmem:[#allocation2 + $0x408] sm:$0xf] %v3944_v35  ;;  %3719 = vrot.lane.b32.xlu0 %v9662_v4, %s6993_s28  ;;  %3510 = vrot.lane.b32.xlu1 %v9740_v38, %s6992_s27  ;;  %v3881_v60 = vsel %vm3870_vm7, %v3880_v54, %v9159_v12  ;;  %v4289_v26 = vrot.slane %v9165_v46, 4  ;;  %v9776_v10 = vmul.f32 %v4092_v14, %v9764_v43  ;;  %vm10736_vm9 = vcmask 703488  }
 0x7c0   : > { %v9779_v59 = vmul.f32 %v9764_v43, %v3881_v60 }
 0x7c1   : > { %v9761_v57 = vpop.permute.xlu0 %5007  ;;  %v4132_v63 = vpop.permute.xlu1 %4131  ;;  %v4300_v34 = vsel %vm511_vm2, %v10734_v36, %v4289_v26 }
 0x7c2   : > { %v4155_v4 = vsel %vm10732_vm10, %v4130_v18, %v4132_v63  ;;  %v10733_v18 = vrot.slane %v9017_v33, 4  ;;  %v4121_v33 = vcombine.low %v9776_v10, %v9776_v10  ;;  %vm10738_vm10 = vmmov %vm10736_vm9 }
 0x7c3   : > { %4182 = vst [vmem:[#allocation2 + $0x408] sm:$0xf0] %v4155_v4  ;;  %3930 = vrot.lane.b32.xlu0 %v3909_v61, %s6994_s29  ;;  %3721 = vrot.lane.b32.xlu1 %v3699_v55, %s6993_s28  ;;  %v4301_v55 = vsel %vm10735_vm15, %v4300_v34, %v9165_v46  ;;  %v10737_v4 = vld [vmem:[#allocation19_spill] sm:$0xff]  ;;  %vm10740_vm15 = vcmask 777216  }
 0x7c4   : > { %v4511_v35 = vsel %vm511_vm2, %v10733_v18, %v4500_v0 }
 0x7c5   : > { %v3501_v15 = vpop.permute.xlu0 %3500  ;;  %v9781_v41 = vpop.permute.xlu1 %5429  ;;  %v4512_v30 = vsel %vm4503_vm11, %v4511_v35, %v9141_v39  ;;  %v5665_v35 = vld [vmem:[#allocation2 + $0x390] sm:$0xff] }
 0x7c6   : > { %v3523_v9 = vsel %vm3518_vm5, %v3499_v53, %v3501_v15  ;;  %v4330_v53 = vcombine.high %v9440_v31, %v9440_v31  ;;  %v5679_v61 = vld [vmem:[#allocation2 + $0x400] sm:$0xff]  ;;  %v5666_v31 = vld [vmem:[#allocation2 + $0x398] sm:$0xff]  ;;  %v9816_v34 = vmul.f32 %v4512_v30, %v9270_v25 }
 0x7c7   : > { %3550 = vst [vmem:[#allocation2 + $0x3a0] sm:$0xf] %v3523_v9  ;;  %4141 = vrot.lane.b32.xlu0 %v9702_v42, %s6995_s16  ;;  %3932 = vrot.lane.b32.xlu1 %v9779_v59, %s6994_s29  ;;  %v4802_v9 = vrot.slane %v10737_v4, 4  ;;  %v6674_v36 = vpack.c.bf16 %v5679_v61, %v5665_v35  ;;  %v4632_v61 = vcombine.high %v9340_v17, %v9340_v17 }
 0x7c9   : > { %v3712_v56 = vpop.permute.xlu0 %3711  ;;  %v9802_v54 = vpop.permute.xlu1 %3502 }
 0x7ca   : > { %v3734_v42 = vsel %vm10736_vm9, %v9723_v7, %v3712_v56  ;;  %v3524_v14 = vsel %vm3518_vm5, %v3501_v15, %v9802_v54  ;;  %v5680_v60 = vld [vmem:[#allocation2 + $0x408] sm:$0xff]  ;;  %v4317_v7 = vmul.f32 %v4301_v55, %v9270_v25  ;;  %vm10741_vm9 = vmmov %vm10729_vm3 }
 0x7cb   : > { %3761 = vst [vmem:[#allocation2 + $0x3a0] sm:$0xf0] %v3734_v42  ;;  %3551 = vst [vmem:[#allocation2 + $0x3a8] sm:$0xf] %v3524_v14  ;;  %4348 = vrot.lane.b32.xlu0 %v4330_v53, %s6996_s22  ;;  %4143 = vrot.lane.b32.xlu1 %v4121_v33, %s6995_s16  ;;  %v6672_v18 = vpack.c.bf16 %v5680_v60, %v5666_v31  ;;  %v10739_v53 = vrot.slane %v9023_v21, 4  ;;  %v10742_v14 = vld [vmem:[#allocation22_spill] sm:$0xff] }
 0x7cc   : > { %v4331_v39 = vcombine.high %v4317_v7, %v4317_v7 }
 0x7cd   : > { %v3923_v2 = vpop.permute.xlu0 %3922  ;;  %v9819_v15 = vpop.permute.xlu1 %3713  ;;  %6673 = vmatprep.subr.bf16.mxu1 %v6672_v18  ;;  %v4813_v33 = vsel %vm511_vm2, %v10739_v53, %v4802_v9 }
 0x7ce   : > { %v3945_v24 = vsel %vm10729_vm3, %v3921_v28, %v3923_v2  ;;  %v3735_v42 = vsel %vm10738_vm10, %v3712_v56, %v9819_v15  ;;  %6675 = vmatpush1.bf16.msra.mxu1 %v6674_v36  ;;  %v4542_v28 = vcombine.low %v9816_v34, %v9816_v34  ;;  %v4814_v21 = vsel %vm4805_vm12, %v4813_v33, %v10737_v4  ;;  %vm10743_vm3 = vmmov %vm10740_vm15  ;;  %v10746_v33 = vld [vmem:[#allocation20_spill] sm:$0xff] }
 0x7cf   : > { %3972 = vst [vmem:[#allocation2 + $0x410] sm:$0xf] %v3945_v24  ;;  %3762 = vst [vmem:[#allocation2 + $0x3a8] sm:$0xf0] %v3735_v42  ;;  %4559 = vrot.lane.b32.xlu0 %v9437_v47, %s10671_s11  ;;  %4350 = vrot.lane.b32.xlu1 %v4317_v7, %s6996_s22  ;;  %v10629_v24 = vrot.slane %v9183_v29, 4  ;;  %v10628_v47 = vrot.slane %v10742_v14, 4  ;;  %v9848_v31 = vmul.f32 %v4814_v21, %v9270_v25 }
 0x7d0   : > { %vm10744_vm10 = vcmask 277504  }
 0x7d1   : > { %v4134_v56 = vpop.permute.xlu0 %4133  ;;  %v9836_v30 = vpop.permute.xlu1 %3924  ;;  %v4513_v35 = vsel %vm511_vm2, %v4500_v0, %v10629_v24  ;;  %v4302_v25 = vsel %vm511_vm2, %v4289_v26, %v10628_v47  ;;  %v4844_v36 = vcombine.low %v9848_v31, %v9848_v31 }
 0x7d2   : > { %v4156_v55 = vsel %vm10740_vm15, %v4132_v63, %v4134_v56  ;;  %v3946_v17 = vsel %vm10741_vm9, %v3923_v2, %v9836_v30  ;;  %v4514_v53 = vsel %vm4503_vm11, %v4513_v35, %v9183_v29  ;;  %v4303_v46 = vsel %vm10744_vm10, %v4302_v25, %v10742_v14  ;;  %v5667_v25 = vld [vmem:[#allocation2 + $0x3a0] sm:$0xff] }
 0x7d3   : > { %4183 = vst [vmem:[#allocation2 + $0x410] sm:$0xf0] %v4156_v55  ;;  %3973 = vst [vmem:[#allocation2 + $0x418] sm:$0xf] %v3946_v17  ;;  %4650 = vrot.lane.b32.xlu0 %v4632_v61, %s10672_s17  ;;  %4561 = vrot.lane.b32.xlu1 %v4542_v28, %s10671_s11  ;;  %vm10745_vm15 = vcmask 687104   ;;  %v10627_v61 = vrot.slane %v10746_v33, 4  ;;  %v9883_v7 = vmul.f32 %v4514_v53, %v9764_v43  ;;  %v9886_v28 = vmul.f32 %v4303_v46, %v9764_v43 }
 0x7d4   : > { %vm10747_vm9 = vcmask 678912   ;;  %vm10750_vm10 = vcmask 670720   ;;  %v10752_v46 = vld [vmem:[#allocation21_spill] sm:$0xff] }
 0x7d5   : > { %v4341_v60 = vpop.permute.xlu0 %4340  ;;  %v9850_v18 = vpop.permute.xlu1 %4135 }
 0x7d6   : > { %v4365_v2 = vsel %vm4362_vm1, %v9411_v37, %v4341_v60  ;;  %v4157_v63 = vsel %vm10743_vm3, %v4134_v56, %v9850_v18  ;;  %v6926_v37 = vld [vmem:[%s7171_s6 + $0x28] sm:$0xff]  ;;  %vm10748_vm3 = vmmov %vm10745_vm15 }
 0x7d7   : > { %4392 = vst [vmem:[#allocation2 + $0x470] sm:$0xf] %v4365_v2  ;;  %4184 = vst [vmem:[#allocation2 + $0x418] sm:$0xf0] %v4157_v63  ;;  %4861 = vrot.lane.b32.xlu0 %v9469_v51, %s10673_s26  ;;  %4652 = vrot.lane.b32.xlu1 %v6926_v37, %s10672_s17  ;;  %v4815_v63 = vsel %vm511_vm2, %v4802_v9, %v10627_v61  ;;  %v4633_v35 = vcombine.high %v6926_v37, %v6926_v37  ;;  %v10749_v9 = vld [vmem:[#allocation10_spill] sm:$0xff] }
 0x7d8   : > { %v4816_v4 = vsel %vm4805_vm12, %v4815_v63, %v10746_v33  ;;  %v10755_v63 = vrot.slane %v10684_v8, 4  ;;  %v5054_v8 = vcombine.high %v9540_v52, %v9540_v52  ;;  %v6928_v52 = vld [vmem:[%s7171_s6 + $0x28] sm:$0xff] }
 0x7d9   : > { %v4552_v42 = vpop.permute.xlu0 %4551  ;;  %v4343_v0 = vpop.permute.xlu1 %4342 }
 0x7da   : > { %v4576_v26 = vsel %vm10745_vm15, %v9425_v32, %v4552_v42  ;;  %v4366_v51 = vsel %vm4362_vm1, %v4341_v60, %v4343_v0  ;;  %v5681_v55 = vld [vmem:[#allocation2 + $0x410] sm:$0xff]  ;;  %v5668_v60 = vld [vmem:[#allocation2 + $0x3a8] sm:$0xff]  ;;  %vm10751_vm15 = vmmov %vm10747_vm9 }
 0x7db   : > { %4603 = vst [vmem:[#allocation2 + $0x470] sm:$0xf0] %v4576_v26  ;;  %4393 = vst [vmem:[#allocation2 + $0x478] sm:$0xf] %v4366_v51  ;;  %4352 = vrot.lane.b32.xlu0 %v4331_v39, %s6996_s22  ;;  %4863 = vrot.lane.b32.xlu1 %v4844_v36, %s10673_s26  ;;  %v6704_v36 = vpack.c.bf16 %v5681_v55, %v5667_v25  ;;  %v4543_v39 = vcombine.low %v9883_v7, %v9883_v7  ;;  %v5224_v26 = vrot.slane %v10752_v46, 4  ;;  %v10753_v51 = vld [vmem:[#allocation24_spill] sm:$0xff] }
 0x7dc   : > { %v5013_v55 = vrot.slane %v10753_v51, 4  ;;  %v10756_v25 = vrot.slane %v10685_v1, 4 }
 0x7dd   : > { %v4643_v56 = vpop.permute.xlu0 %4642  ;;  %v4554_v21 = vpop.permute.xlu1 %4553 }
 0x7de   : > { %v4667_v32 = vsel %vm10747_vm9, %v9442_v6, %v4643_v56  ;;  %v4577_v17 = vsel %vm10748_vm3, %v4552_v42, %v4554_v21  ;;  %v5682_v2 = vld [vmem:[#allocation2 + $0x418] sm:$0xff]  ;;  %vm10754_vm9 = vmmov %vm10750_vm10 }
 0x7df   : > { %4694 = vst [vmem:[#allocation2 + $0x4e0] sm:$0xf] %v4667_v32  ;;  %4604 = vst [vmem:[#allocation2 + $0x478] sm:$0xf0] %v4577_v17  ;;  %4563 = vrot.lane.b32.xlu0 %v9816_v34, %s10671_s11  ;;  %4354 = vrot.lane.b32.xlu1 %v9886_v28, %s6996_s22  ;;  %v6702_v6 = vpack.c.bf16 %v5682_v2, %v5668_v60  ;;  %v9912_v32 = vmul.f32 %v4816_v4, %v9764_v43 }
 0x7e1   : > { %v4854_v42 = vpop.permute.xlu0 %4853  ;;  %v4645_v53 = vpop.permute.xlu1 %4644  ;;  %6703 = vmatprep.subr.bf16.mxu0 %v6702_v6  ;;  %v5235_v6 = vsel %vm511_vm2, %v10755_v63, %v5224_v26 }
 0x7e2   : > { %v4878_v37 = vsel %vm10750_vm10, %v10749_v9, %v4854_v42  ;;  %v4668_v34 = vsel %vm10751_vm15, %v4643_v56, %v4645_v53  ;;  %6705 = vmatpush1.bf16.msra.mxu0 %v6704_v36  ;;  %v5024_v36 = vsel %vm511_vm2, %v10756_v25, %v5013_v55  ;;  %vm10757_vm10 = vmmov %vm10751_vm15 }
 0x7e3   : > { %4905 = vst [vmem:[#allocation2 + $0x4e0] sm:$0xf0] %v4878_v37  ;;  %4695 = vst [vmem:[#allocation2 + $0x4e8] sm:$0xf] %v4668_v34  ;;  %4654 = vrot.lane.b32.xlu0 %v4633_v35, %s10672_s17  ;;  %4565 = vrot.lane.b32.xlu1 %v4543_v39, %s10671_s11  ;;  %v9925_v35 = vld [vmem:[%s7171_s6 + $0x30] sm:$0xff] }
 0x7e4   : > { %vm10758_vm15 = vmmov %vm10748_vm3 }
 0x7e5   : > { %v4345_v17 = vpop.permute.xlu0 %4344  ;;  %v4856_v60 = vpop.permute.xlu1 %4855 }
 0x7e6   : > { %v4367_v2 = vsel %vm4362_vm1, %v4343_v0, %v4345_v17  ;;  %v4879_v56 = vsel %vm10754_vm9, %v4854_v42, %v4856_v60  ;;  %v4845_v0 = vcombine.low %v9912_v32, %v9912_v32  ;;  %v5236_v42 = vsel %vm5227_vm14, %v5235_v6, %v10752_v46  ;;  %v5694_v63 = vld [vmem:[#allocation2 + $0x478] sm:$0xff]  ;;  %v10759_v6 = vld [vmem:[#allocation25_spill] sm:$0xff] }
 0x7e7   : > { %4394 = vst [vmem:[#allocation2 + $0x480] sm:$0xf] %v4367_v2  ;;  %4906 = vst [vmem:[#allocation2 + $0x4e8] sm:$0xf0] %v4879_v56  ;;  %4865 = vrot.lane.b32.xlu0 %v9848_v31, %s10673_s26  ;;  %4656 = vrot.lane.b32.xlu1 %v9925_v35, %s10672_s17  ;;  %v5025_v31 = vsel %vm5016_vm13, %v5024_v36, %v10753_v51  ;;  %v5252_v37 = vmul.f32 %v6928_v52, %v5236_v42  ;;  %v10626_v25 = vrot.slane %v10759_v6, 4  ;;  %v10760_v36 = vld [vmem:[#allocation28_spill] sm:$0xff] }
 0x7e8   : > { %v5041_v34 = vmul.f32 %v6928_v52, %v5025_v31  ;;  %v5693_v42 = vld [vmem:[#allocation2 + $0x470] sm:$0xff] }
 0x7e9   : > { %v4556_v1 = vpop.permute.xlu0 %4555  ;;  %v9933_v39 = vpop.permute.xlu1 %4346 }
 0x7ea   : > { %v4578_v4 = vsel %vm10748_vm3, %v4554_v21, %v4556_v1  ;;  %v4368_v9 = vsel %vm4362_vm1, %v4345_v17, %v9933_v39  ;;  %v5707_v46 = vld [vmem:[#allocation2 + $0x4e0] sm:$0xff]  ;;  %vm10761_vm3 = vmmov %vm10757_vm10 }
 0x7eb   : > { %4605 = vst [vmem:[#allocation2 + $0x480] sm:$0xf0] %v4578_v4  ;;  %4395 = vst [vmem:[#allocation2 + $0x488] sm:$0xf] %v4368_v9  ;;  %5072 = vrot.lane.b32.xlu0 %v5054_v8, %s7000_s14  ;;  %4867 = vrot.lane.b32.xlu1 %v4845_v0, %s10673_s26  ;;  %v10625_v8 = vrot.slane %v10760_v36, 4  ;;  %v6678_v31 = vpack.c.bf16 %v5707_v46, %v5693_v42 }
 0x7ed   : > { %v4647_v2 = vpop.permute.xlu0 %4646  ;;  %v9945_v56 = vpop.permute.xlu1 %4557  ;;  %v5026_v46 = vsel %vm511_vm2, %v5013_v55, %v10625_v8 }
 0x7ee   : > { %v4669_v51 = vsel %vm10757_vm10, %v4645_v53, %v4647_v2  ;;  %v4579_v21 = vsel %vm10758_vm15, %v4556_v1, %v9945_v56  ;;  %v5708_v17 = vld [vmem:[#allocation2 + $0x4e8] sm:$0xff]  ;;  %v5476_v53 = vcombine.high %v9571_v58, %v9571_v58  ;;  %v5266_v1 = vcombine.low %v5252_v37, %v5252_v37  ;;  %vm10764_vm15 = vmmov %vm10754_vm9 }
 0x7ef   : > { %4696 = vst [vmem:[#allocation2 + $0x4f0] sm:$0xf] %v4669_v51  ;;  %4606 = vst [vmem:[#allocation2 + $0x488] sm:$0xf0] %v4579_v21  ;;  %5283 = vrot.lane.b32.xlu0 %v9537_v27, %s7001_s24  ;;  %5074 = vrot.lane.b32.xlu1 %v5041_v34, %s7000_s14  ;;  %v6676_v0 = vpack.c.bf16 %v5708_v17, %v5694_v63  ;;  %v5237_v27 = vsel %vm511_vm2, %v5224_v26, %v10626_v25  ;;  %v10762_v63 = vld [vmem:[#allocation8_spill] sm:$0xff]  ;;  %vm10763_vm10 = vcmask 588800  }
 0x7f0   : > { %v5055_v58 = vcombine.high %v5041_v34, %v5041_v34  ;;  %v5027_v26 = vsel %vm5016_vm13, %v5026_v46, %v10760_v36  ;;  %v10766_v34 = vld [vmem:[#allocation26_spill] sm:$0xff]  ;;  %v10770_v46 = vld [vmem:[#allocation23_spill] sm:$0xff] }
 0x7f1   : > { %v4858_v4 = vpop.permute.xlu0 %4857  ;;  %v9957_v9 = vpop.permute.xlu1 %4648  ;;  %6677 = vmatprep.subr.bf16.mxu1 %v6676_v0  ;;  %v10765_v0 = vld [vmem:[#allocation27_spill] sm:$0xff] }
 0x7f2   : > { %v4880_v52 = vsel %vm10754_vm9, %v4856_v60, %v4858_v4  ;;  %v4670_v51 = vsel %vm10761_vm3, %v4647_v2, %v9957_v9  ;;  %6679 = vmatpush1.bf16.msra.mxu1 %v6678_v31  ;;  %v5238_v2 = vsel %vm5227_vm14, %v5237_v27, %v10759_v6  ;;  %v10624_v42 = vrot.slane %v10765_v0, 4  ;;  %vm10769_vm3 = vmmov %vm10763_vm10  ;;  %v5695_v25 = vld [vmem:[#allocation2 + $0x480] sm:$0xff] }
 0x7f3   : > { %4907 = vst [vmem:[#allocation2 + $0x4f0] sm:$0xf0] %v4880_v52  ;;  %4697 = vst [vmem:[#allocation2 + $0x4f8] sm:$0xf] %v4670_v51  ;;  %5494 = vrot.lane.b32.xlu0 %v5476_v53, %s7002_s23  ;;  %5285 = vrot.lane.b32.xlu1 %v5266_v1, %s7001_s24  ;;  %v9985_v31 = vmul.f32 %v5238_v2, %v9764_v43  ;;  %v9988_v53 = vmul.f32 %v5027_v26, %v9764_v43  ;;  %v10767_v51 = vld [vmem:[#allocation12_spill] sm:$0xff]  ;;  %vm10768_vm9 = vcmask 580608  }
 0x7f4   : > { %v5477_v2 = vcombine.high %v10766_v34, %v10766_v34 }
 0x7f5   : > { %v5065_v60 = vpop.permute.xlu0 %5064  ;;  %v9970_v21 = vpop.permute.xlu1 %4859 }
 0x7f6   : > { %v5089_v17 = vsel %vm10763_vm10, %v10762_v63, %v5065_v60  ;;  %v4881_v55 = vsel %vm10764_vm15, %v4858_v4, %v9970_v21  ;;  %vm10773_vm10 = vmmov %vm10768_vm9  ;;  %vm10775_vm15 = vcmask 326656  }
 0x7f7   : > { %5116 = vst [vmem:[#allocation2 + $0x550] sm:$0xf] %v5089_v17  ;;  %4908 = vst [vmem:[#allocation2 + $0x4f8] sm:$0xf0] %v4881_v55  ;;  %5076 = vrot.lane.b32.xlu0 %v5055_v58, %s7000_s14  ;;  %5496 = vrot.lane.b32.xlu1 %v10766_v34, %s7002_s23  ;;  %v10771_v58 = vrot.slane %v10770_v46, 4  ;;  %v3236_v17 = vrot.slane %v9553_v50, 4 }
 0x7f8   : > { %v10774_v34 = vrot.slane %v10698_v19, 4  ;;  %v2933_v19 = vld [vmem:[%s7171_s6 + $0x34] sm:$0xff] }
 0x7f9   : > { %v5276_v1 = vpop.permute.xlu0 %5275  ;;  %v5067_v52 = vpop.permute.xlu1 %5066  ;;  %v5448_v63 = vsel %vm511_vm2, %v10771_v58, %v10624_v42  ;;  %v10772_v58 = vld [vmem:[#allocation13_spill] sm:$0xff] }
 0x7fa   : > { %v5300_v4 = vsel %vm10768_vm9, %v10767_v51, %v5276_v1  ;;  %v5090_v27 = vsel %vm10769_vm3, %v5065_v60, %v5067_v52  ;;  %v5267_v60 = vcombine.low %v9985_v31, %v9985_v31  ;;  %v5709_v51 = vld [vmem:[#allocation2 + $0x4f0] sm:$0xff]  ;;  %v5449_v46 = vsel %vm5438_vm0, %v5448_v63, %v10765_v0  ;;  %vm10776_vm9 = vmmov %vm10769_vm3 }
 0x7fb   : > { %5327 = vst [vmem:[#allocation2 + $0x550] sm:$0xf0] %v5300_v4  ;;  %5117 = vst [vmem:[#allocation2 + $0x558] sm:$0xf] %v5090_v27  ;;  %5287 = vrot.lane.b32.xlu0 %v5252_v37, %s7001_s24  ;;  %5078 = vrot.lane.b32.xlu1 %v9988_v53, %s7000_s14  ;;  %v5696_v27 = vld [vmem:[#allocation2 + $0x488] sm:$0xff]  ;;  %v3249_v8 = vsel %vm511_vm2, %v10774_v34, %v3236_v17  ;;  %v6708_v61 = vpack.c.bf16 %v5709_v51, %v5695_v25  ;;  %v3144_v17 = vld [vmem:[%s7171_s6 + $0x34] sm:$0xff] }
 0x7fc   : > { %v10777_v25 = vld [vmem:[#allocation15_spill] sm:$0xff]  ;;  %vm10780_vm3 = vmmov %vm10773_vm10 }
 0x7fd   : > { %v5487_v26 = vpop.permute.xlu0 %5486  ;;  %v5278_v55 = vpop.permute.xlu1 %5277  ;;  %v10778_v51 = vld [vmem:[#allocation11_spill] sm:$0xff] }
 0x7fe   : > { %v5511_v4 = vsel %vm5508_vm4, %v10772_v58, %v5487_v26  ;;  %v5301_v37 = vsel %vm10773_vm10, %v5276_v1, %v5278_v55  ;;  %v5710_v42 = vld [vmem:[#allocation2 + $0x4f8] sm:$0xff]  ;;  %v3066_v1 = vcombine.high %v9624_v13, %v9624_v13  ;;  %v10019_v58 = vmul.f32 %v5449_v46, %v9764_v43  ;;  %vm10781_vm10 = vmmov %vm10776_vm9 }
 0x7ff   : > { %5538 = vst [vmem:[#allocation2 + $0x5c0] sm:$0xf] %v5511_v4  ;;  %5328 = vst [vmem:[#allocation2 + $0x558] sm:$0xf0] %v5301_v37  ;;  %5498 = vrot.lane.b32.xlu0 %v5477_v2, %s7002_s23  ;;  %5289 = vrot.lane.b32.xlu1 %v5267_v60, %s7001_s24  ;;  %v6706_v63 = vpack.c.bf16 %v5710_v42, %v5696_v27  ;;  %v3250_v4 = vsel %vm10775_vm15, %v3249_v8, %v9553_v50  ;;  %v3658_v60 = vrot.slane %v10777_v25, 4  ;;  %v10779_v43 = vld [vmem:[#allocation6_spill] sm:$0xff] }
 0x800   : > { %v3447_v13 = vrot.slane %v10778_v51, 4  ;;  %v10033_v46 = vmul.f32 %v10779_v43, %v2933_v19  ;;  %v10035_v50 = vmul.f32 %v3250_v4, %v3144_v17  ;;  %v10782_v27 = vrot.slane %v9151_v40, 4 }
 0x801   : > { %v5069_v47 = vpop.permute.xlu0 %5068  ;;  %v5489_v24 = vpop.permute.xlu1 %5488  ;;  %6707 = vmatprep.subr.bf16.mxu0 %v6706_v63  ;;  %v3671_v37 = vsel %vm511_vm2, %v3657_v3, %v3658_v60  ;;  %vm10784_vm15 = vcmask 343040   ;;  %v10786_v60 = vld [vmem:[#allocation16_spill] sm:$0xff] }
 0x802   : > { %v5091_v2 = vsel %vm10776_vm9, %v5067_v52, %v5069_v47  ;;  %v5512_v42 = vsel %vm5508_vm4, %v5487_v26, %v5489_v24  ;;  %6709 = vmatpush1.bf16.msra.mxu0 %v6708_v61  ;;  %v3460_v34 = vsel %vm511_vm2, %v10782_v27, %v3447_v13  ;;  %v3278_v44 = vcombine.low %v10035_v50, %v10035_v50  ;;  %v5558_v27 = vld [vmem:[#allocation2 + $0x38] sm:$0xff] }
 0x803   : > { %5118 = vst [vmem:[#allocation2 + $0x560] sm:$0xf] %v5091_v2  ;;  %5539 = vst [vmem:[#allocation2 + $0x5c8] sm:$0xf] %v5512_v42  ;;  %3090 = vrot.lane.b32.xlu0 %v3066_v1, %s6979_s13  ;;  %5500 = vrot.lane.b32.xlu1 %v10019_v58, %s7002_s23  ;;  %v3672_v19 = vsel %vm10784_vm15, %v3671_v37, %v10777_v25  ;;  %vm10785_vm9 = vcmask 334848   ;;  %v3869_v13 = vrot.slane %v10786_v60, 4 }
 0x804   : > { %v5721_v25 = vld [vmem:[#allocation2 + $0x550] sm:$0xff]  ;;  %vm10790_vm15 = vcmask 883712  }
 0x805   : > { %v5280_v8 = vpop.permute.xlu0 %5279  ;;  %v10037_v52 = vpop.permute.xlu1 %5070 }
 0x806   : > { %v5302_v61 = vsel %vm10780_vm3, %v5278_v55, %v5280_v8  ;;  %v5092_v26 = vsel %vm10781_vm10, %v5069_v47, %v10037_v52  ;;  %v3488_v55 = vcombine.high %v9740_v38, %v9740_v38  ;;  %v10783_v47 = vld [vmem:[#allocation9_spill] sm:$0xff]  ;;  %v5735_v1 = vld [vmem:[#allocation2 + $0x5c0] sm:$0xf]  ;;  %v5722_v2 = vld [vmem:[#allocation2 + $0x558] sm:$0xff]  ;;  %vm10788_vm10 = vcmask 801792  }
 0x807   : > { %5329 = vst [vmem:[#allocation2 + $0x560] sm:$0xf0] %v5302_v61  ;;  %5119 = vst [vmem:[#allocation2 + $0x568] sm:$0xf] %v5092_v26  ;;  %3301 = vrot.lane.b32.xlu0 %v9626_v5, %s6991_s25  ;;  %3092 = vrot.lane.b32.xlu1 %v10033_v46, %s6979_s13  ;;  %v4080_v3 = vrot.slane %v10783_v47, 4  ;;  %v3461_v5 = vsel %vm10785_vm9, %v3460_v34, %v10778_v51  ;;  %v5572_v61 = vld [vmem:[#allocation2 + $0xa8] sm:$0xff]  ;;  %v6683_v26 = vpack.c.bf16 %v5735_v1, %v5721_v25 }
 0x808   : > { %v10069_v51 = vmul.f32 %v3672_v19, %v3144_v17  ;;  %v5571_v34 = vld [vmem:[#allocation2 + $0xa0] sm:$0xff]  ;;  %v5600_v19 = vld [vmem:[#allocation2 + $0x188] sm:$0xff]  ;;  %v10102_v25 = vld [vmem:[%s7171_s6 + $0x38] sm:$0xff]  ;;  %vm10791_vm9 = vcmask 719872  }
 0x809   : > { %v5491_v63 = vpop.permute.xlu0 %5490  ;;  %v10057_v40 = vpop.permute.xlu1 %5281 }
 0x80a   : > { %v5513_v4 = vsel %vm5508_vm4, %v5489_v24, %v5491_v63  ;;  %v5303_v38 = vsel %vm10780_vm3, %v5280_v8, %v10057_v40  ;;  %v5736_v42 = vld [vmem:[#allocation2 + $0x5c8] sm:$0xf]  ;;  %v10071_v24 = vmul.f32 %v3461_v5, %v3144_v17  ;;  %v6716_v17 = vpack.c.bf16 %v5572_v61, %v5558_v27  ;;  %vm10792_vm3 = vmmov %vm10788_vm10 }
 0x80b   : > { %5540 = vst [vmem:[#allocation2 + $0x5d0] sm:$0xf] %v5513_v4  ;;  %5330 = vst [vmem:[#allocation2 + $0x568] sm:$0xf0] %v5303_v38  ;;  %3512 = vrot.lane.b32.xlu0 %v3488_v55, %s6992_s27  ;;  %3303 = vrot.lane.b32.xlu1 %v3278_v44, %s6991_s25  ;;  %v6680_v43 = vpack.c.bf16 %v5736_v42, %v5722_v2  ;;  %v10787_v55 = vrot.slane %v9128_v49, 4  ;;  %v10789_v5 = vrot.slane %v9159_v12, 4 }
 0x80c   : > { %v5557_v49 = vld [vmem:[#allocation2 + $0x30] sm:$0xff]  ;;  %v3700_v2 = vcombine.low %v10069_v51, %v10069_v51  ;;  %v5628_v27 = vld [vmem:[#allocation2 + $0x268] sm:$0xff] }
 0x80d   : > { %v3083_v37 = vpop.permute.xlu0 %3082  ;;  %v10073_v8 = vpop.permute.xlu1 %5492  ;;  %6682 = vmatprep.subr.msk.bf16.mxu1 %vm9559_vm6, %v6680_v43  ;;  %v4093_v44 = vsel %vm511_vm2, %v10787_v55, %v4080_v3  ;;  %v3882_v38 = vsel %vm511_vm2, %v10789_v5, %v3869_v13  ;;  %v5586_v3 = vld [vmem:[#allocation2 + $0x118] sm:$0xff]  ;;  %v5599_v43 = vld [vmem:[#allocation2 + $0x180] sm:$0xff] }
 0x80e   : > { %v3103_v4 = vsel %vm10788_vm10, %v9664_v48, %v3083_v37  ;;  %v5514_v1 = vsel %vm5508_vm4, %v5491_v63, %v10073_v8  ;;  %6685 = vmatpush1.bf16.msk.msra.mxu1 %vm9559_vm6, %v6683_v26  ;;  %v6718_v48 = vpack.c.bf16 %v5571_v34, %v5557_v49  ;;  %v3910_v63 = vcombine.high %v9779_v59, %v9779_v59  ;;  %v5585_v26 = vld [vmem:[#allocation2 + $0x110] sm:$0xff] }
 0x80f   : > { %3130 = vst [vmem:[#allocation2 + $0x340] sm:$0xf] %v3103_v4  ;;  %5541 = vst [vmem:[#allocation2 + $0x5d8] sm:$0xf] %v5514_v1  ;;  %3723 = vrot.lane.b32.xlu0 %v9738_v11, %s6993_s28  ;;  %3514 = vrot.lane.b32.xlu1 %v10071_v24, %s6992_s27  ;;  %v4094_v12 = vsel %vm4081_vm8, %v4093_v44, %v10783_v47  ;;  %v6720_v11 = vpack.c.bf16 %v5600_v19, %v5586_v3  ;;  %v5614_v44 = vld [vmem:[#allocation2 + $0x1f8] sm:$0xff]  ;;  %v5627_v1 = vld [vmem:[#allocation2 + $0x260] sm:$0xff] }
 0x810   : > { %6717 = vmatprep.subr.bf16.mxu1 %v6716_v17  ;;  %v3883_v61 = vsel %vm3870_vm7, %v3882_v38, %v10786_v60  ;;  %v6722_v34 = vpack.c.bf16 %v5599_v43, %v5585_v26  ;;  %v10113_v60 = vmul.f32 %v4094_v12, %v10102_v25  ;;  %v4502_v17 = vrot.slane %v9604_v45, 4  ;;  %vm10793_vm7 = vmmov %vm10792_vm3  ;;  %v5574_v3 = vld [vmem:[#allocation2 + $0xb8] sm:$0xff]  ;;  %v5560_v43 = vld [vmem:[#allocation2 + $0x48] sm:$0xff] }
 0x811   : > { %v3294_v42 = vpop.permute.xlu0 %3293  ;;  %v3085_v13 = vpop.permute.xlu1 %3084  ;;  %6607 = vmatmul.mubr.msk.f32.vlgmr.msra.gmra.mrb[0].mxu1 %vm10790_vm15, %v9611_v22  ;;  %vm10794_vm8 = vmmov %vm10791_vm9  ;;  %v6724_v38 = vpack.c.bf16 %v5628_v27, %v5614_v44  ;;  %v5573_v27 = vld [vmem:[#allocation2 + $0xb0] sm:$0xff] }
 0x812   : > { %v3314_v59 = vsel %vm10791_vm9, %v9687_v23, %v3294_v42  ;;  %v3104_v47 = vsel %vm10792_vm3, %v3083_v37, %v3085_v13  ;;  %6719 = vmatpush1.bf16.msra.mxu1 %v6718_v48  ;;  %6070 = vmatprep.mubr.f32.mxu1 %v10708_v20  ;;  %v10116_v23 = vmul.f32 %v10102_v25, %v3883_v61  ;;  %v5737_v4 = vld [vmem:[#allocation2 + $0x5d0] sm:$0xf]  ;;  %v5724_v49 = vld [vmem:[#allocation2 + $0x568] sm:$0xff]  ;;  %vm10796_vm10 = vmmov %vm10794_vm8  ;;  %vm10799_vm9 = vcmask 883712  }
 0x813   : > { %3341 = vst [vmem:[#allocation2 + $0x340] sm:$0xf0] %v3314_v59  ;;  %3131 = vst [vmem:[#allocation2 + $0x348] sm:$0xf] %v3104_v47  ;;  %3934 = vrot.lane.b32.xlu0 %v3910_v63, %s6994_s29  ;;  %3725 = vrot.lane.b32.xlu1 %v3700_v2, %s6993_s28  ;;  %v4291_v63 = vrot.slane %v9651_v62, 4  ;;  %v5723_v2 = vld [vmem:[#allocation2 + $0x560] sm:$0xff]  ;;  %v3067_v61 = vcombine.high %v10033_v46, %v10033_v46  ;;  %v4122_v59 = vcombine.low %v10113_v60, %v10113_v60 }
 0x814   : > { %6721 = vmatprep.subr.bf16.mxu1 %v6720_v11  ;;  %vm10797_vm15 = vmmov %vm10792_vm3  ;;  %vm10800_vm3 = vcmask 277504  }
 0x815   : > { %v3087_v37 = vpop.permute.xlu0 %3086  ;;  %v3296_v55 = vpop.permute.xlu1 %3295 }
 0x816   : > { %v3105_v19 = vsel %vm10793_vm7, %v3085_v13, %v3087_v37  ;;  %v3315_v5 = vsel %vm10794_vm8, %v3294_v42, %v3296_v55  ;;  %6723 = vmatpush1.bf16.msra.mxu1 %v6722_v34  ;;  %v5738_v48 = vld [vmem:[#allocation2 + $0x5d8] sm:$0xf]  ;;  %v5613_v13 = vld [vmem:[#allocation2 + $0x1f0] sm:$0xff]  ;;  %v6713_v42 = vpack.c.bf16 %v5737_v4, %v5723_v2  ;;  %v10795_v34 = vrot.slane %v9183_v29, 4  ;;  %v5559_v29 = vld [vmem:[#allocation2 + $0x40] sm:$0xff] }
 0x817   : > { %3132 = vst [vmem:[#allocation2 + $0x350] sm:$0xf] %v3105_v19  ;;  %3342 = vst [vmem:[#allocation2 + $0x348] sm:$0xf0] %v3315_v5  ;;  %4145 = vrot.lane.b32.xlu0 %v9776_v10, %s6995_s16  ;;  %3936 = vrot.lane.b32.xlu1 %v10116_v23, %s6994_s29  ;;  %v6710_v12 = vpack.c.bf16 %v5738_v48, %v5724_v49  ;;  %v6726_v11 = vpack.c.bf16 %v5627_v1, %v5613_v13  ;;  %v5602_v1 = vld [vmem:[#allocation2 + $0x198] sm:$0xff]  ;;  %v10798_v19 = vrot.slane %v10742_v14, 4 }
 0x818   : > { %6725 = vmatprep.subr.bf16.mxu1 %v6724_v38  ;;  %v6746_v10 = vpack.c.bf16 %v5574_v3, %v5560_v43  ;;  %v4515_v44 = vsel %vm511_vm2, %v10795_v34, %v4502_v17  ;;  %v5588_v17 = vld [vmem:[#allocation2 + $0x128] sm:$0xff]  ;;  %vm10801_vm7 = vmmov %vm10794_vm8  ;;  %v5630_v43 = vld [vmem:[#allocation2 + $0x278] sm:$0xff]  ;;  %vm10805_vm8 = vcmask 785408  }
 0x819   : > { %v3298_v47 = vpop.permute.xlu0 %3297  ;;  %v10130_v26 = vpop.permute.xlu1 %3088  ;;  %6712 = vmatprep.subr.msk.bf16.mxu0 %vm9559_vm6, %v6710_v12  ;;  %v4304_v5 = vsel %vm511_vm2, %v10798_v19, %v4291_v63  ;;  %v4516_v38 = vsel %vm4503_vm11, %v4515_v44, %v9604_v45  ;;  %v6750_v48 = vpack.c.bf16 %v5602_v1, %v5588_v17  ;;  %v5601_v63 = vld [vmem:[#allocation2 + $0x190] sm:$0xff]  ;;  %v5642_v45 = vld [vmem:[#allocation2 + $0x2d8] sm:$0xff]  ;;  %v5616_v44 = vld [vmem:[#allocation2 + $0x208] sm:$0xff]  ;;  %vm10803_vm11 = vcmask 703488  }
 0x81a   : > { %v3316_v4 = vsel %vm10796_vm10, %v3296_v55, %v3298_v47  ;;  %v3106_v46 = vsel %vm10797_vm15, %v3087_v37, %v10130_v26  ;;  %6715 = vmatpush1.bf16.msk.msra.mxu0 %vm9559_vm6, %v6713_v42  ;;  %6727 = vmatpush1.bf16.msra.mxu1 %v6726_v11  ;;  %v6748_v55 = vpack.c.bf16 %v5573_v27, %v5559_v29  ;;  %v5655_v3 = vld [vmem:[#allocation2 + $0x340] sm:$0xff]  ;;  %v10802_v42 = vld [vmem:[#allocation14_spill] sm:$0xff]  ;;  %v10804_v19 = vrot.slane %v10746_v33, 4  ;;  %vm10806_vm10 = vmmov %vm10803_vm11 }
 0x81b   : > { %3343 = vst [vmem:[#allocation2 + $0x350] sm:$0xf0] %v3316_v4  ;;  %3133 = vst [vmem:[#allocation2 + $0x358] sm:$0xf] %v3106_v46  ;;  %3094 = vrot.lane.b32.xlu0 %v3067_v61, %s6979_s13  ;;  %4147 = vrot.lane.b32.xlu1 %v4122_v59, %s6995_s16  ;;  %v4332_v37 = vcombine.high %v9886_v28, %v9886_v28  ;;  %v4305_v12 = vsel %vm10800_vm3, %v4304_v5, %v9651_v62  ;;  %v4804_v11 = vrot.slane %v10802_v42, 4  ;;  %v5641_v62 = vld [vmem:[#allocation2 + $0x2d0] sm:$0xff] }
 0x81c   : > { %6747 = vmatprep.subr.bf16.mxu0 %v6746_v10  ;;  %v6730_v61 = vpack.c.bf16 %v5655_v3, %v5641_v62  ;;  %v10170_v10 = vmul.f32 %v4305_v12, %v10102_v25  ;;  %v5629_v4 = vld [vmem:[#allocation2 + $0x270] sm:$0xff]  ;;  %v6754_v1 = vpack.c.bf16 %v5630_v43, %v5616_v44  ;;  %v4634_v29 = vcombine.high %v9925_v35, %v9925_v35  ;;  %v5643_v12 = vld [vmem:[#allocation2 + $0x2e0] sm:$0xff]  ;;  %vm10808_vm15 = vmmov %vm10805_vm8 }
 0x81d   : > { %v3505_v49 = vpop.permute.xlu0 %3504  ;;  %v10151_v14 = vpop.permute.xlu1 %3299  ;;  %6610 = vmatmul.mubr.msk.f32.vlgmr.msra.gmra.mrb[2].mxu0 %vm10799_vm9, %v9611_v22  ;;  %v4817_v5 = vsel %vm511_vm2, %v10804_v19, %v4804_v11  ;;  %v5015_v44 = vrot.slane %v9761_v57, 4  ;;  %vm10811_vm3 = vmmov %vm10806_vm10  ;;  %v10813_v19 = vrot.slane %v10760_v36, 4 }
 0x81e   : > { %v3525_v2 = vsel %vm3518_vm5, %v9802_v54, %v3505_v49  ;;  %v3317_v28 = vsel %vm10801_vm7, %v3298_v47, %v10151_v14  ;;  %6749 = vmatpush1.bf16.msra.mxu0 %v6748_v55  ;;  %v5656_v13 = vld [vmem:[#allocation2 + $0x348] sm:$0xff]  ;;  %6141 = vmatprep.mubr.f32.mxu0 %v10708_v20  ;;  %v5587_v54 = vld [vmem:[#allocation2 + $0x120] sm:$0xff]  ;;  %v10167_v47 = vmul.f32 %v4516_v38, %v10102_v25  ;;  %vm10814_vm7 = vmmov %vm10805_vm8 }
 0x81f   : > { %3552 = vst [vmem:[#allocation2 + $0x3b0] sm:$0xf] %v3525_v2  ;;  %3344 = vst [vmem:[#allocation2 + $0x358] sm:$0xf0] %v3317_v28  ;;  %4356 = vrot.lane.b32.xlu0 %v4332_v37, %s6996_s22  ;;  %3305 = vrot.lane.b32.xlu1 %v10035_v50, %s6991_s25  ;;  %v6728_v22 = vpack.c.bf16 %v5656_v13, %v5642_v45  ;;  %v6752_v59 = vpack.c.bf16 %v5601_v63, %v5587_v54  ;;  %v10194_v28 = vld [vmem:[%s7171_s6 + $0x38] sm:$0xff]  ;;  %s6836_s6 = smul.u32 112, %s10894_s18 }
 0x820   : > { %6751 = vmatprep.subr.bf16.mxu0 %v6750_v48  ;;  %v4544_v17 = vcombine.low %v10167_v47, %v10167_v47  ;;  %v4818_v35 = vsel %vm4805_vm12, %v4817_v5, %v10802_v42  ;;  %v5644_v48 = vld [vmem:[#allocation2 + $0x2e8] sm:$0xff]  ;;  %vm10807_vm12 = vcmask 777216   ;;  %v5028_v5 = vsel %vm511_vm2, %v10813_v19, %v5015_v44 }
 0x821   : > { %v3716_v27 = vpop.permute.xlu0 %3715  ;;  %v3507_v34 = vpop.permute.xlu1 %3506  ;;  %6729 = vmatprep.subr.bf16.mxu1 %v6728_v22  ;;  %v10197_v45 = vmul.f32 %v4818_v35, %v10102_v25  ;;  %v3489_v22 = vcombine.high %v10071_v24, %v10071_v24  ;;  %vm10809_vm9 = vmmov %vm10807_vm12  ;;  %v5029_v36 = vsel %vm5016_vm13, %v5028_v5, %v9761_v57  ;;  %s10350_s7 = scalar_lea.vmem %s10529_s3, %s6836_s6 }
 0x822   : > { %v3736_v50 = vsel %vm10803_vm11, %v9819_v15, %v3716_v27  ;;  %v3526_v46 = vsel %vm3518_vm5, %v3505_v49, %v3507_v34  ;;  %6731 = vmatpush1.bf16.msra.mxu1 %v6730_v61  ;;  %6753 = vmatpush1.bf16.msra.mxu0 %v6752_v59  ;;  %v5615_v15 = vld [vmem:[#allocation2 + $0x200] sm:$0xff]  ;;  %v5657_v38 = vld [vmem:[#allocation2 + $0x350] sm:$0xff]  ;;  %vm10815_vm11 = vmmov %vm10811_vm3 }
 0x823   : > { %3763 = vst [vmem:[#allocation2 + $0x3b0] sm:$0xf0] %v3736_v50  ;;  %3553 = vst [vmem:[#allocation2 + $0x3b8] sm:$0xf] %v3526_v46  ;;  %4567 = vrot.lane.b32.xlu0 %v9883_v7, %s10671_s11  ;;  %4358 = vrot.lane.b32.xlu1 %v10170_v10, %s6996_s22  ;;  %v6756_v55 = vpack.c.bf16 %v5629_v4, %v5615_v15  ;;  %v6760_v2 = vpack.c.bf16 %v5657_v38, %v5643_v12  ;;  %v10810_v59 = vld [vmem:[#allocation17_spill] sm:$0xff]  ;;  %v10812_v46 = vrot.slane %v10759_v6, 4 }
 0x824   : > { %6755 = vmatprep.subr.bf16.mxu0 %v6754_v1  ;;  %v4846_v62 = vcombine.low %v10197_v45, %v10197_v45  ;;  %v5437_v38 = vrot.slane %v9781_v41, 4  ;;  %vm10816_vm13 = vmmov %vm10809_vm9 }
 0x825   : > { %v3927_v33 = vpop.permute.xlu0 %3926  ;;  %v3718_v37 = vpop.permute.xlu1 %3717 }
 0x826   : > { %v3947_v49 = vsel %vm10805_vm8, %v9836_v30, %v3927_v33  ;;  %v3737_v7 = vsel %vm10806_vm10, %v3716_v27, %v3718_v37  ;;  %6757 = vmatpush1.bf16.msra.mxu0 %v6756_v55  ;;  %v5658_v3 = vld [vmem:[#allocation2 + $0x358] sm:$0xff]  ;;  %v5226_v27 = vrot.slane %v10810_v59, 4  ;;  %vm10821_vm8 = vcmask 678912  }
 0x827   : > { %3974 = vst [vmem:[#allocation2 + $0x420] sm:$0xf] %v3947_v49  ;;  %3764 = vst [vmem:[#allocation2 + $0x3b8] sm:$0xf0] %v3737_v7  ;;  %4658 = vrot.lane.b32.xlu0 %v4634_v29, %s10672_s17  ;;  %4569 = vrot.lane.b32.xlu1 %v4544_v17, %s10671_s11  ;;  %v6758_v63 = vpack.c.bf16 %v5658_v3, %v5644_v48  ;;  %v5043_v7 = vmul.f32 %v5029_v36, %v10102_v25 }
 0x828   : > { %v5239_v1 = vsel %vm511_vm2, %v10812_v46, %v5226_v27 }
 0x829   : > { %v4138_v30 = vpop.permute.xlu0 %4137  ;;  %v3929_v13 = vpop.permute.xlu1 %3928  ;;  %6759 = vmatprep.subr.bf16.mxu0 %v6758_v63  ;;  %v5240_v55 = vsel %vm5227_vm14, %v5239_v1, %v10810_v59  ;;  %vm10817_vm14 = vmmov %vm10814_vm7 }
 0x82a   : > { %v4158_v42 = vsel %vm10807_vm12, %v9850_v18, %v4138_v30  ;;  %v3948_v11 = vsel %vm10808_vm15, %v3927_v33, %v3929_v13  ;;  %6761 = vmatpush1.bf16.msra.mxu0 %v6760_v2  ;;  %v5669_v35 = vld [vmem:[#allocation2 + $0x3b0] sm:$0xff]  ;;  %v10248_v57 = vmul.f32 %v5240_v55, %v10102_v25  ;;  %vm10823_vm12 = vcmask 670720   ;;  %vm10824_vm15 = vmmov %vm10821_vm8 }
 0x82b   : > { %4185 = vst [vmem:[#allocation2 + $0x420] sm:$0xf0] %v4158_v42  ;;  %3975 = vst [vmem:[#allocation2 + $0x428] sm:$0xf] %v3948_v11  ;;  %4869 = vrot.lane.b32.xlu0 %v9912_v32, %s10673_s26  ;;  %4660 = vrot.lane.b32.xlu1 %v10194_v28, %s10672_s17  ;;  %v3911_v32 = vcombine.high %v10116_v23, %v10116_v23  ;;  %v5056_v23 = vcombine.high %v9988_v53, %v9988_v53 }
 0x82d   : > { %v3509_v54 = vpop.permute.xlu0 %3508  ;;  %v4140_v43 = vpop.permute.xlu1 %4139 }
 0x82e   : > { %v3527_v18 = vsel %vm3518_vm5, %v3507_v34, %v3509_v54  ;;  %v4159_v61 = vsel %vm10809_vm9, %v4138_v30, %v4140_v43  ;;  %v5478_v30 = vcombine.high %v10019_v58, %v10019_v58  ;;  %v4333_v58 = vcombine.high %v10170_v10, %v10170_v10 }
 0x82f   : > { %3554 = vst [vmem:[#allocation2 + $0x3c0] sm:$0xf] %v3527_v18  ;;  %4186 = vst [vmem:[#allocation2 + $0x428] sm:$0xf0] %v4159_v61  ;;  %3516 = vrot.lane.b32.xlu0 %v3489_v22, %s6992_s27  ;;  %4871 = vrot.lane.b32.xlu1 %v4846_v62, %s10673_s26  ;;  %v4635_v18 = vcombine.high %v10194_v28, %v10194_v28 }
 0x831   : > { %v3720_v24 = vpop.permute.xlu0 %3719  ;;  %v10218_v4 = vpop.permute.xlu1 %3510 }
 0x832   : > { %v3738_v34 = vsel %vm10811_vm3, %v3718_v37, %v3720_v24  ;;  %v3528_v50 = vsel %vm3518_vm5, %v3509_v54, %v10218_v4  ;;  %v5683_v6 = vld [vmem:[#allocation2 + $0x420] sm:$0xff]  ;;  %v5670_v37 = vld [vmem:[#allocation2 + $0x3b8] sm:$0xff] }
 0x833   : > { %3765 = vst [vmem:[#allocation2 + $0x3c0] sm:$0xf0] %v3738_v34  ;;  %3555 = vst [vmem:[#allocation2 + $0x3c8] sm:$0xf] %v3528_v50  ;;  %3938 = vrot.lane.b32.xlu0 %v3911_v32, %s6994_s29  ;;  %3727 = vrot.lane.b32.xlu1 %v10069_v51, %s6993_s28  ;;  %v6734_v49 = vpack.c.bf16 %v5683_v6, %v5669_v35  ;;  %v5057_v34 = vcombine.high %v5043_v7, %v5043_v7 }
 0x835   : > { %v3931_v29 = vpop.permute.xlu0 %3930  ;;  %v10234_v15 = vpop.permute.xlu1 %3721 }
 0x836   : > { %v3949_v17 = vsel %vm10814_vm7, %v3929_v13, %v3931_v29  ;;  %v3739_v33 = vsel %vm10815_vm11, %v3720_v24, %v10234_v15  ;;  %v5684_v51 = vld [vmem:[#allocation2 + $0x428] sm:$0xff]  ;;  %v5268_v13 = vcombine.low %v10248_v57, %v10248_v57  ;;  %vm10827_vm7 = vmmov %vm10821_vm8 }
 0x837   : > { %3976 = vst [vmem:[#allocation2 + $0x430] sm:$0xf] %v3949_v17  ;;  %3766 = vst [vmem:[#allocation2 + $0x3c8] sm:$0xf0] %v3739_v33  ;;  %5080 = vrot.lane.b32.xlu0 %v5056_v23, %s7000_s14  ;;  %4149 = vrot.lane.b32.xlu1 %v10113_v60, %s6995_s16  ;;  %v6732_v53 = vpack.c.bf16 %v5684_v51, %v5670_v37  ;;  %v10818_v60 = vrot.slane %v10765_v0, 4 }
 0x839   : > { %v4142_v48 = vpop.permute.xlu0 %4141  ;;  %v10251_v3 = vpop.permute.xlu1 %3932  ;;  %6733 = vmatprep.subr.bf16.mxu1 %v6732_v53  ;;  %v5450_v2 = vsel %vm511_vm2, %v10818_v60, %v5437_v38  ;;  %vm10819_vm2 = vmmov %vm10809_vm9 }
 0x83a   : > { %v4160_v63 = vsel %vm10816_vm13, %v4140_v43, %v4142_v48  ;;  %v3950_v12 = vsel %vm10817_vm14, %v3931_v29, %v10251_v3  ;;  %6735 = vmatpush1.bf16.msra.mxu1 %v6734_v49  ;;  %v5451_v0 = vsel %vm5438_vm0, %v5450_v2, %v9781_v41  ;;  %vm10820_vm0 = vcmask 687104   ;;  %v5671_v32 = vld [vmem:[#allocation2 + $0x3c0] sm:$0xff]  ;;  %vm10825_vm9 = vmmov %vm10823_vm12 }
 0x83b   : > { %4187 = vst [vmem:[#allocation2 + $0x430] sm:$0xf0] %v4160_v63  ;;  %3977 = vst [vmem:[#allocation2 + $0x438] sm:$0xf] %v3950_v12  ;;  %5291 = vrot.lane.b32.xlu0 %v9985_v31, %s7001_s24  ;;  %5082 = vrot.lane.b32.xlu1 %v5043_v7, %s7000_s14  ;;  %v5465_v62 = vmul.f32 %v5451_v0, %v10102_v25 }
 0x83c   : > { %vm10822_vm10 = vmmov %vm10820_vm0 }
 0x83d   : > { %v4349_v42 = vpop.permute.xlu0 %4348  ;;  %v10266_v11 = vpop.permute.xlu1 %4143  ;;  %vm10826_vm3 = vmmov %vm10820_vm0 }
 0x83e   : > { %v4369_v22 = vsel %vm4362_vm1, %v9933_v39, %v4349_v42  ;;  %v4161_v31 = vsel %vm10819_vm2, %v4142_v48, %v10266_v11  ;;  %vm10828_vm11 = vmmov %vm10820_vm0  ;;  %vm10831_vm2 = vcmask 588800  }
 0x83f   : > { %4396 = vst [vmem:[#allocation2 + $0x490] sm:$0xf] %v4369_v22  ;;  %4188 = vst [vmem:[#allocation2 + $0x438] sm:$0xf0] %v4161_v31  ;;  %5502 = vrot.lane.b32.xlu0 %v5478_v30, %s7002_s23  ;;  %5293 = vrot.lane.b32.xlu1 %v5268_v13, %s7001_s24 }
 0x840   : > { %vm10829_vm13 = vmmov %vm10825_vm9 }
 0x841   : > { %v4560_v54 = vpop.permute.xlu0 %4559  ;;  %v4351_v43 = vpop.permute.xlu1 %4350  ;;  %vm10830_vm14 = vmmov %vm10827_vm7 }
 0x842   : > { %v4580_v41 = vsel %vm10820_vm0, %v9945_v56, %v4560_v54  ;;  %v4370_v39 = vsel %vm4362_vm1, %v4349_v42, %v4351_v43  ;;  %v5685_v59 = vld [vmem:[#allocation2 + $0x430] sm:$0xff]  ;;  %v5672_v56 = vld [vmem:[#allocation2 + $0x3c8] sm:$0xff]  ;;  %vm10832_vm0 = vmmov %vm10825_vm9 }
 0x843   : > { %4607 = vst [vmem:[#allocation2 + $0x490] sm:$0xf0] %v4580_v41  ;;  %4397 = vst [vmem:[#allocation2 + $0x498] sm:$0xf] %v4370_v39  ;;  %4360 = vrot.lane.b32.xlu0 %v4333_v58, %s6996_s22  ;;  %5504 = vrot.lane.b32.xlu1 %v5465_v62, %s7002_s23  ;;  %v6764_v24 = vpack.c.bf16 %v5685_v59, %v5671_v32 }
 0x845   : > { %v4651_v61 = vpop.permute.xlu0 %4650  ;;  %v4562_v10 = vpop.permute.xlu1 %4561 }
 0x846   : > { %v4671_v25 = vsel %vm10821_vm8, %v9957_v9, %v4651_v61  ;;  %v4581_v27 = vsel %vm10822_vm10, %v4560_v54, %v4562_v10  ;;  %v5686_v44 = vld [vmem:[#allocation2 + $0x438] sm:$0xff]  ;;  %vm10833_vm8 = vcmask 580608   ;;  %vm10834_vm10 = vmmov %vm10831_vm2 }
 0x847   : > { %4698 = vst [vmem:[#allocation2 + $0x500] sm:$0xf] %v4671_v25  ;;  %4608 = vst [vmem:[#allocation2 + $0x498] sm:$0xf0] %v4581_v27  ;;  %4662 = vrot.lane.b32.xlu0 %v4635_v18, %s10672_s17  ;;  %4571 = vrot.lane.b32.xlu1 %v10167_v47, %s10671_s11  ;;  %v6762_v28 = vpack.c.bf16 %v5686_v44, %v5672_v56  ;;  %v5479_v47 = vcombine.high %v5465_v62, %v5465_v62 }
 0x849   : > { %v4862_v50 = vpop.permute.xlu0 %4861  ;;  %v4653_v46 = vpop.permute.xlu1 %4652  ;;  %6763 = vmatprep.subr.bf16.mxu0 %v6762_v28 }
 0x84a   : > { %v4882_v9 = vsel %vm10823_vm12, %v9970_v21, %v4862_v50  ;;  %v4672_v1 = vsel %vm10824_vm15, %v4651_v61, %v4653_v46  ;;  %6765 = vmatpush1.bf16.msra.mxu0 %v6764_v24  ;;  %v5697_v49 = vld [vmem:[#allocation2 + $0x490] sm:$0xff]  ;;  %vm10835_vm12 = vmmov %vm10833_vm8 }
 0x84b   : > { %4909 = vst [vmem:[#allocation2 + $0x500] sm:$0xf0] %v4882_v9  ;;  %4699 = vst [vmem:[#allocation2 + $0x508] sm:$0xf] %v4672_v1  ;;  %5084 = vrot.lane.b32.xlu0 %v5057_v34, %s7000_s14  ;;  %4873 = vrot.lane.b32.xlu1 %v10197_v45, %s10673_s26  ;;  %s6510_s14 = sshll.u32 %s10894_s18, 3 }
 0x84c   : > { %vm10836_vm15 = vmmov %vm10831_vm2  ;;  %s271_s28 = scalar_lea.vmem %s10530_s4, %s6510_s14  ;;  %s277_s22 = scalar_lea.vmem %s10531_s5, %s6510_s14 }
 0x84d   : > { %v4353_v19 = vpop.permute.xlu0 %4352  ;;  %v4864_v5 = vpop.permute.xlu1 %4863 }
 0x84e   : > { %v4371_v23 = vsel %vm4362_vm1, %v4351_v43, %v4353_v19  ;;  %v4883_v29 = vsel %vm10825_vm9, %v4862_v50, %v4864_v5  ;;  %v5698_v38 = vld [vmem:[#allocation2 + $0x498] sm:$0xff]  ;;  %vm10837_vm9 = vmmov %vm10833_vm8 }
 0x84f   : > { %4398 = vst [vmem:[#allocation2 + $0x4a0] sm:$0xf] %v4371_v23  ;;  %4910 = vst [vmem:[#allocation2 + $0x508] sm:$0xf0] %v4883_v29  ;;  %5506 = vrot.lane.b32.xlu0 %v5479_v47, %s7002_s23  ;;  %5295 = vrot.lane.b32.xlu1 %v10248_v57, %s7001_s24  ;;  %v5576_v47 = vld [vmem:[#allocation2 + $0xc8] sm:$0xff]  ;;  %v5562_v29 = vld [vmem:[#allocation2 + $0x58] sm:$0xff] }
 0x851   : > { %v4564_v21 = vpop.permute.xlu0 %4563  ;;  %v10303_v6 = vpop.permute.xlu1 %4354 }
 0x852   : > { %v4582_v55 = vsel %vm10826_vm3, %v4562_v10, %v4564_v21  ;;  %v4372_v45 = vsel %vm4362_vm1, %v4353_v19, %v10303_v6  ;;  %v5711_v33 = vld [vmem:[#allocation2 + $0x500] sm:$0xff]  ;;  %vm10838_vm3 = vmmov %vm10831_vm2 }
 0x853   : > { %4609 = vst [vmem:[#allocation2 + $0x4a0] sm:$0xf0] %v4582_v55  ;;  %4399 = vst [vmem:[#allocation2 + $0x4a8] sm:$0xf] %v4372_v45  ;;  %v6738_v57 = vpack.c.bf16 %v5711_v33, %v5697_v49  ;;  %v6776_v45 = vpack.c.bf16 %v5576_v47, %v5562_v29  ;;  %v5590_v49 = vld [vmem:[#allocation2 + $0x138] sm:$0xff]  ;;  %v5592_v29 = vld [vmem:[#allocation2 + $0x148] sm:$0xff] }
 0x855   : > { %v4655_v36 = vpop.permute.xlu0 %4654  ;;  %v10308_v17 = vpop.permute.xlu1 %4565 }
 0x856   : > { %v4673_v37 = vsel %vm10827_vm7, %v4653_v46, %v4655_v36  ;;  %v4583_v51 = vsel %vm10828_vm11, %v4564_v21, %v10308_v17  ;;  %v5712_v53 = vld [vmem:[#allocation2 + $0x508] sm:$0xff]  ;;  %vm10839_vm7 = vmmov %vm10833_vm8  ;;  %vm10840_vm11 = vcmask 801792  }
 0x857   : > { %4700 = vst [vmem:[#allocation2 + $0x510] sm:$0xf] %v4673_v37  ;;  %4610 = vst [vmem:[#allocation2 + $0x4a8] sm:$0xf0] %v4583_v51  ;;  %v6736_v35 = vpack.c.bf16 %v5712_v53, %v5698_v38  ;;  %v5604_v51 = vld [vmem:[#allocation2 + $0x1a8] sm:$0xff]  ;;  %v5561_v38 = vld [vmem:[#allocation2 + $0x50] sm:$0xff] }
 0x859   : > { %v4866_v7 = vpop.permute.xlu0 %4865  ;;  %v10313_v48 = vpop.permute.xlu1 %4656  ;;  %6737 = vmatprep.subr.bf16.mxu1 %v6736_v35 }
 0x85a   : > { %v4884_v63 = vsel %vm10829_vm13, %v4864_v5, %v4866_v7  ;;  %v4674_v12 = vsel %vm10830_vm14, %v4655_v36, %v10313_v48  ;;  %6739 = vmatpush1.bf16.msra.mxu1 %v6738_v57  ;;  %v5699_v61 = vld [vmem:[#allocation2 + $0x4a0] sm:$0xff]  ;;  %vm10841_vm13 = vcmask 883712   ;;  %vm10842_vm14 = vcmask 719872  }
 0x85b   : > { %4911 = vst [vmem:[#allocation2 + $0x510] sm:$0xf0] %v4884_v63  ;;  %4701 = vst [vmem:[#allocation2 + $0x518] sm:$0xf] %v4674_v12  ;;  %v5575_v36 = vld [vmem:[#allocation2 + $0xc0] sm:$0xff] }
 0x85c   : > { %v6778_v35 = vpack.c.bf16 %v5575_v36, %v5561_v38  ;;  %v10364_v12 = vld [vmem:[%s10527_s1] sm:$0xff]  ;;  %v5646_v38 = vld [vmem:[#allocation2 + $0x2f8] sm:$0xff] }
 0x85d   : > { %v5073_v60 = vpop.permute.xlu0 %5072  ;;  %v10318_v2 = vpop.permute.xlu1 %4867 }
 0x85e   : > { %v5093_v30 = vsel %vm10831_vm2, %v10037_v52, %v5073_v60  ;;  %v4885_v13 = vsel %vm10832_vm0, %v4866_v7, %v10318_v2  ;;  %v5700_v41 = vld [vmem:[#allocation2 + $0x4a8] sm:$0xff]  ;;  %vm10843_vm2 = vmmov %vm10840_vm11 }
 0x85f   : > { %5120 = vst [vmem:[#allocation2 + $0x570] sm:$0xf] %v5093_v30  ;;  %4912 = vst [vmem:[#allocation2 + $0x518] sm:$0xf0] %v4885_v13  ;;  %v5603_v30 = vld [vmem:[#allocation2 + $0x1a0] sm:$0xff] }
 0x860   : > { %vm10844_vm0 = vmmov %vm10842_vm14 }
 0x861   : > { %v5284_v42 = vpop.permute.xlu0 %5283  ;;  %v5075_v0 = vpop.permute.xlu1 %5074 }
 0x862   : > { %v5304_v22 = vsel %vm10833_vm8, %v10057_v40, %v5284_v42  ;;  %v5094_v31 = vsel %vm10834_vm10, %v5073_v60, %v5075_v0  ;;  %v5713_v54 = vld [vmem:[#allocation2 + $0x510] sm:$0xff]  ;;  %v6780_v60 = vpack.c.bf16 %v5604_v51, %v5590_v49  ;;  %vm10845_vm8 = vcmask 703488   ;;  %vm10846_vm10 = vmmov %vm10841_vm13 }
 0x863   : > { %5331 = vst [vmem:[#allocation2 + $0x570] sm:$0xf0] %v5304_v22  ;;  %5121 = vst [vmem:[#allocation2 + $0x578] sm:$0xf] %v5094_v31  ;;  %v6768_v10 = vpack.c.bf16 %v5713_v54, %v5699_v61  ;;  %v5632_v31 = vld [vmem:[#allocation2 + $0x288] sm:$0xff] }
 0x865   : > { %v5495_v58 = vpop.permute.xlu0 %5494  ;;  %v5286_v62 = vpop.permute.xlu1 %5285 }
 0x866   : > { %v5515_v52 = vsel %vm5508_vm4, %v10073_v8, %v5495_v58  ;;  %v5305_v43 = vsel %vm10835_vm12, %v5284_v42, %v5286_v62  ;;  %v5714_v39 = vld [vmem:[#allocation2 + $0x518] sm:$0xff]  ;;  %vm10847_vm12 = vcmask 785408  }
 0x867   : > { %5542 = vst [vmem:[#allocation2 + $0x5e0] sm:$0xf] %v5515_v52  ;;  %5332 = vst [vmem:[#allocation2 + $0x578] sm:$0xf0] %v5305_v43  ;;  %v6766_v18 = vpack.c.bf16 %v5714_v39, %v5700_v41  ;;  %v5618_v52 = vld [vmem:[#allocation2 + $0x218] sm:$0xff] }
 0x868   : > { %v6784_v39 = vpack.c.bf16 %v5632_v31, %v5618_v52 }
 0x869   : > { %v5077_v40 = vpop.permute.xlu0 %5076  ;;  %v5497_v59 = vpop.permute.xlu1 %5496  ;;  %6767 = vmatprep.subr.bf16.mxu0 %v6766_v18  ;;  %v5631_v18 = vld [vmem:[#allocation2 + $0x280] sm:$0xff] }
 0x86a   : > { %v5095_v25 = vsel %vm10836_vm15, %v5075_v0, %v5077_v40  ;;  %v5516_v27 = vsel %vm5508_vm4, %v5495_v58, %v5497_v59  ;;  %6769 = vmatpush1.bf16.msra.mxu0 %v6768_v10  ;;  %v5725_v5 = vld [vmem:[#allocation2 + $0x570] sm:$0xff]  ;;  %vm10848_vm15 = vmmov %vm10845_vm8 }
 0x86b   : > { %5122 = vst [vmem:[#allocation2 + $0x580] sm:$0xf] %v5095_v25  ;;  %5543 = vst [vmem:[#allocation2 + $0x5e8] sm:$0xf] %v5516_v27  ;;  %v5589_v58 = vld [vmem:[#allocation2 + $0x130] sm:$0xff]  ;;  %v5578_v25 = vld [vmem:[#allocation2 + $0xd8] sm:$0xff] }
 0x86c   : > { %v6782_v54 = vpack.c.bf16 %v5603_v30, %v5589_v58  ;;  %v5620_v30 = vld [vmem:[#allocation2 + $0x228] sm:$0xff]  ;;  %v5619_v58 = vld [vmem:[#allocation2 + $0x220] sm:$0xff] }
 0x86d   : > { %v5288_v8 = vpop.permute.xlu0 %5287  ;;  %v10332_v56 = vpop.permute.xlu1 %5078 }
 0x86e   : > { %v5306_v44 = vsel %vm10837_vm9, %v5286_v62, %v5288_v8  ;;  %v5096_v28 = vsel %vm10838_vm3, %v5077_v40, %v10332_v56  ;;  %v5739_v34 = vld [vmem:[#allocation2 + $0x5e0] sm:$0xf]  ;;  %v5726_v9 = vld [vmem:[#allocation2 + $0x578] sm:$0xff]  ;;  %vm10849_vm9 = vcmask 777216   ;;  %vm10850_vm3 = vmmov %vm10847_vm12 }
 0x86f   : > { %5333 = vst [vmem:[#allocation2 + $0x580] sm:$0xf0] %v5306_v44  ;;  %5123 = vst [vmem:[#allocation2 + $0x588] sm:$0xf] %v5096_v28  ;;  %v6743_v23 = vpack.c.bf16 %v5739_v34, %v5725_v5  ;;  %v5617_v44 = vld [vmem:[#allocation2 + $0x210] sm:$0xff]  ;;  %v5564_v34 = vld [vmem:[#allocation2 + $0x68] sm:$0xff] }
 0x870   : > { %v5563_v5 = vld [vmem:[#allocation2 + $0x60] sm:$0xff] }
 0x871   : > { %v5499_v32 = vpop.permute.xlu0 %5498  ;;  %v10337_v24 = vpop.permute.xlu1 %5289 }
 0x872   : > { %v5517_v50 = vsel %vm5508_vm4, %v5497_v59, %v5499_v32  ;;  %v5307_v46 = vsel %vm10839_vm7, %v5288_v8, %v10337_v24  ;;  %v5740_v1 = vld [vmem:[#allocation2 + $0x5e8] sm:$0xf]  ;;  %vm10851_vm7 = vmmov %vm10843_vm2 }
 0x873   : > { %5544 = vst [vmem:[#allocation2 + $0x5f0] sm:$0xf] %v5517_v50  ;;  %5334 = vst [vmem:[#allocation2 + $0x588] sm:$0xf0] %v5307_v46  ;;  %v6740_v19 = vpack.c.bf16 %v5740_v1, %v5726_v9  ;;  %v5577_v9 = vld [vmem:[#allocation2 + $0xd0] sm:$0xff] }
 0x875   : > { %v3091_v21 = vpop.permute.xlu0 %3090  ;;  %v10343_v55 = vpop.permute.xlu1 %5500  ;;  %6742 = vmatprep.subr.msk.bf16.mxu1 %vm9559_vm6, %v6740_v19  ;;  %v5606_v19 = vld [vmem:[#allocation2 + $0x1b8] sm:$0xff] }
 0x876   : > { %v3107_v33 = vsel %vm10840_vm11, %v10130_v26, %v3091_v21  ;;  %v5518_v37 = vsel %vm5508_vm4, %v5499_v32, %v10343_v55  ;;  %6745 = vmatpush1.bf16.msk.msra.mxu1 %vm9559_vm6, %v6743_v23  ;;  %v5727_v8 = vld [vmem:[#allocation2 + $0x580] sm:$0xff]  ;;  %v6786_v32 = vpack.c.bf16 %v5631_v18, %v5617_v44  ;;  %v6808_v23 = vpack.c.bf16 %v5577_v9, %v5563_v5 }
 0x877   : > { %3134 = vst [vmem:[#allocation2 + $0x360] sm:$0xf] %v3107_v33  ;;  %5545 = vst [vmem:[#allocation2 + $0x5f8] sm:$0xf] %v5518_v37  ;;  %6777 = vmatprep.subr.bf16.mxu1 %v6776_v45  ;;  %v5859_v53 = vpop.f32.mrb[0].mxu0  ;;  %v5605_v33 = vld [vmem:[#allocation2 + $0x1b0] sm:$0xff] }
 0x878   : > { %6290 = vst [vmem:[%s10350_s7] sm:$0xff] %v5859_v53  ;;  %v6322_v57 = vmul.f32 %v5859_v53, %v5859_v53  ;;  %v5861_v7 = vpop.f32.mrb[1].mxu0  ;;  %vm10852_vm11 = vcmask 519168  }
 0x879   : > { %v3302_v63 = vpop.permute.xlu0 %3301  ;;  %v10359_v26 = vpop.permute.xlu1 %3092  ;;  %6613 = vmatmul.mubr.msk.f32.vlgmr.msra.gmra.mrb[2].mxu1 %vm10841_vm13, %v10364_v12  ;;  %6291 = vst [vmem:[%s10350_s7 + $0x8] sm:$0xff] %v5861_v7  ;;  %v10369_v13 = vadd.f32 %v5861_v7, %v5859_v53  ;;  %v6323_v42 = vmul.f32 %v5861_v7, %v5861_v7  ;;  %v5591_v7 = vld [vmem:[#allocation2 + $0x140] sm:$0xff]  ;;  %vm10853_vm13 = vmmov %vm10849_vm9 }
 0x87a   : > { %v3318_v0 = vsel %vm10842_vm14, %v10151_v14, %v3302_v63  ;;  %v3108_v22 = vsel %vm10843_vm2, %v3091_v21, %v10359_v26  ;;  %6779 = vmatpush1.bf16.msra.mxu1 %v6778_v35  ;;  %6212 = vmatprep.mubr.f32.mxu1 %v10708_v20  ;;  %v5741_v14 = vld [vmem:[#allocation2 + $0x5f0] sm:$0xf]  ;;  %v5728_v40 = vld [vmem:[#allocation2 + $0x588] sm:$0xff]  ;;  %v5634_v35 = vld [vmem:[#allocation2 + $0x298] sm:$0xff]  ;;  %vm10855_vm2 = vcmask 523268  }
 0x87b   : > { %3345 = vst [vmem:[#allocation2 + $0x360] sm:$0xf0] %v3318_v0  ;;  %3135 = vst [vmem:[#allocation2 + $0x368] sm:$0xf] %v3108_v22  ;;  %6781 = vmatprep.subr.bf16.mxu1 %v6780_v60  ;;  %v10376_v62 = vadd.f32 %v6323_v42, %v6322_v57  ;;  %v6773_v28 = vpack.c.bf16 %v5741_v14, %v5727_v8  ;;  %v5645_v57 = vld [vmem:[#allocation2 + $0x2f0] sm:$0xff]  ;;  %v6812_v60 = vpack.c.bf16 %v5605_v33, %v5591_v7 }
 0x87c   : > { %v6814_v0 = vpack.c.bf16 %v5634_v35, %v5620_v30  ;;  %v5633_v22 = vld [vmem:[#allocation2 + $0x290] sm:$0xff]  ;;  %vm10854_vm14 = vmmov %vm10844_vm0 }
 0x87d   : > { %v3513_v43 = vpop.permute.xlu0 %3512  ;;  %v10378_v41 = vpop.permute.xlu1 %3303 }
 0x87e   : > { %v3529_v61 = vsel %vm3518_vm5, %v10218_v4, %v3513_v43  ;;  %v3319_v10 = vsel %vm10844_vm0, %v3302_v63, %v10378_v41  ;;  %6783 = vmatpush1.bf16.msra.mxu1 %v6782_v54  ;;  %v5742_v59 = vld [vmem:[#allocation2 + $0x5f8] sm:$0xf]  ;;  %v6806_v4 = vpack.c.bf16 %v5578_v25, %v5564_v34  ;;  %v6816_v54 = vpack.c.bf16 %v5633_v22, %v5619_v58 }
 0x87f   : > { %3556 = vst [vmem:[#allocation2 + $0x3d0] sm:$0xf] %v3529_v61  ;;  %3346 = vst [vmem:[#allocation2 + $0x368] sm:$0xf0] %v3319_v10  ;;  %6785 = vmatprep.subr.bf16.mxu1 %v6784_v39  ;;  %v6770_v27 = vpack.c.bf16 %v5742_v59, %v5728_v40  ;;  %vm10856_vm0 = vcmask 687104  }
 0x881   : > { %v3724_v50 = vpop.permute.xlu0 %3723  ;;  %v10384_v46 = vpop.permute.xlu1 %3514  ;;  %6772 = vmatprep.subr.msk.bf16.mxu0 %vm9559_vm6, %v6770_v27 }
 0x882   : > { %v3740_v1 = vsel %vm10845_vm8, %v10234_v15, %v3724_v50  ;;  %v3530_v47 = vsel %vm3518_vm5, %v3513_v43, %v10384_v46  ;;  %6775 = vmatpush1.bf16.msk.msra.mxu0 %vm9559_vm6, %v6773_v28  ;;  %6787 = vmatpush1.bf16.msra.mxu1 %v6786_v32  ;;  %v6810_v15 = vpack.c.bf16 %v5606_v19, %v5592_v29  ;;  %v5659_v36 = vld [vmem:[#allocation2 + $0x360] sm:$0xff]  ;;  %vm10857_vm8 = vcmask 678912  }
 0x883   : > { %3767 = vst [vmem:[#allocation2 + $0x3d0] sm:$0xf0] %v3740_v1  ;;  %3557 = vst [vmem:[#allocation2 + $0x3d8] sm:$0xf] %v3530_v47  ;;  %6807 = vmatprep.subr.bf16.mxu0 %v6806_v4  ;;  %v6790_v63 = vpack.c.bf16 %v5659_v36, %v5645_v57  ;;  %v5647_v47 = vld [vmem:[#allocation2 + $0x300] sm:$0xff] }
 0x885   : > { %v3935_v21 = vpop.permute.xlu0 %3934  ;;  %v10394_v45 = vpop.permute.xlu1 %3725  ;;  %6616 = vmatmul.mubr.msk.f32.vlgmr.msra.gmra.mrb[4].mxu0 %vm10846_vm10, %v10364_v12  ;;  %vm10858_vm10 = vmmov %vm10856_vm0 }
 0x886   : > { %v3951_v37 = vsel %vm10847_vm12, %v10251_v3, %v3935_v21  ;;  %v3741_v51 = vsel %vm10848_vm15, %v3724_v50, %v10394_v45  ;;  %6809 = vmatpush1.bf16.msra.mxu0 %v6808_v23  ;;  %v5660_v53 = vld [vmem:[#allocation2 + $0x368] sm:$0xff]  ;;  %6283 = vmatprep.mubr.f32.mxu0 %v10708_v20  ;;  %vm10859_vm12 = vcmask 670720   ;;  %vm10860_vm15 = vmmov %vm10857_vm8 }
 0x887   : > { %3978 = vst [vmem:[#allocation2 + $0x440] sm:$0xf] %v3951_v37  ;;  %3768 = vst [vmem:[#allocation2 + $0x3d8] sm:$0xf0] %v3741_v51  ;;  %6811 = vmatprep.subr.bf16.mxu0 %v6810_v15  ;;  %v6788_v49 = vpack.c.bf16 %v5660_v53, %v5646_v38  ;;  %v5648_v50 = vld [vmem:[#allocation2 + $0x308] sm:$0xff] }
 0x889   : > { %v4146_v42 = vpop.permute.xlu0 %4145  ;;  %v10403_v3 = vpop.permute.xlu1 %3936  ;;  %6789 = vmatprep.subr.bf16.mxu1 %v6788_v49 }
 0x88a   : > { %v4162_v31 = vsel %vm10849_vm9, %v10266_v11, %v4146_v42  ;;  %v3952_v20 = vsel %vm10850_vm3, %v3935_v21, %v10403_v3  ;;  %6791 = vmatpush1.bf16.msra.mxu1 %v6790_v63  ;;  %6813 = vmatpush1.bf16.msra.mxu0 %v6812_v60  ;;  %vm10861_vm9 = vmmov %vm10852_vm11 }
 0x88b   : > { %4189 = vst [vmem:[#allocation2 + $0x440] sm:$0xf0] %v4162_v31  ;;  %3979 = vst [vmem:[#allocation2 + $0x448] sm:$0xf] %v3952_v20  ;;  %6815 = vmatprep.subr.bf16.mxu0 %v6814_v0 }
 0x88c   : > { %vm10862_vm3 = vmmov %vm10859_vm12 }
 0x88d   : > { %v3095_v52 = vpop.permute.xlu0 %3094  ;;  %v10409_v43 = vpop.permute.xlu1 %4147 }
 0x88e   : > { %v3109_v39 = vsel %vm10851_vm7, %v10359_v26, %v3095_v52  ;;  %3137 = vst.msk [vmem:[#allocation2 + $0x378] sm:$0xf] %vm10852_vm11, %v3095_v52  ;;  %v4163_v11 = vsel %vm10853_vm13, %v4146_v42, %v10409_v43  ;;  %6817 = vmatpush1.bf16.msra.mxu0 %v6816_v54  ;;  %v5674_v8 = vld [vmem:[#allocation2 + $0x3d8] sm:$0xff]  ;;  %vm10863_vm7 = vcmask 785408   ;;  %vm10864_vm11 = vmmov %vm10861_vm9  ;;  %vm10865_vm13 = vcmask 703488  }
 0x88f   : > { %3136 = vst [vmem:[#allocation2 + $0x370] sm:$0xf] %v3109_v39  ;;  %4190 = vst [vmem:[#allocation2 + $0x448] sm:$0xf0] %v4163_v11 }
 0x891   : > { %v4357_v14 = vpop.permute.xlu0 %4356  ;;  %v3306_v18 = vpop.permute.xlu1 %3305 }
 0x892   : > { %v4373_v61 = vsel %vm4362_vm1, %v10303_v6, %v4357_v14  ;;  %v3320_v10 = vsel %vm10854_vm14, %v10378_v41, %v3306_v18  ;;  %3348 = vst.msk [vmem:[#allocation2 + $0x378] sm:$0xf0] %vm10855_vm2, %v3306_v18  ;;  %v5687_v59 = vld [vmem:[#allocation2 + $0x440] sm:$0xff]  ;;  %v5673_v41 = vld [vmem:[#allocation2 + $0x3d0] sm:$0xff]  ;;  %vm10866_vm14 = vmmov %vm10855_vm2  ;;  %vm10868_vm2 = vcmask 777216  }
 0x893   : > { %4400 = vst [vmem:[#allocation2 + $0x4b0] sm:$0xf] %v4373_v61  ;;  %3347 = vst [vmem:[#allocation2 + $0x370] sm:$0xf0] %v3320_v10  ;;  %v6794_v28 = vpack.c.bf16 %v5687_v59, %v5673_v41 }
 0x895   : > { %v4568_v26 = vpop.permute.xlu0 %4567  ;;  %v10421_v40 = vpop.permute.xlu1 %4358 }
 0x896   : > { %v4584_v25 = vsel %vm10856_vm0, %v10308_v17, %v4568_v26  ;;  %v4374_v27 = vsel %vm4362_vm1, %v4357_v14, %v10421_v40  ;;  %v5688_v44 = vld [vmem:[#allocation2 + $0x448] sm:$0xff]  ;;  %vm10869_vm0 = vmmov %vm10866_vm14 }
 0x897   : > { %4611 = vst [vmem:[#allocation2 + $0x4b0] sm:$0xf0] %v4584_v25  ;;  %4401 = vst [vmem:[#allocation2 + $0x4b8] sm:$0xf] %v4374_v27  ;;  %v6792_v6 = vpack.c.bf16 %v5688_v44, %v5674_v8 }
 0x899   : > { %v4659_v32 = vpop.permute.xlu0 %4658  ;;  %v10427_v34 = vpop.permute.xlu1 %4569  ;;  %6793 = vmatprep.subr.bf16.mxu1 %v6792_v6  ;;  %v5662_v4 = vld [vmem:[#allocation2 + $0x378] sm:$0xff] }
 0x89a   : > { %v4675_v9 = vsel %vm10857_vm8, %v10313_v48, %v4659_v32  ;;  %v4585_v17 = vsel %vm10858_vm10, %v4568_v26, %v10427_v34  ;;  %6795 = vmatpush1.bf16.msra.mxu1 %v6794_v28  ;;  %v6818_v1 = vpack.c.bf16 %v5662_v4, %v5648_v50  ;;  %v5661_v19 = vld [vmem:[#allocation2 + $0x370] sm:$0xff]  ;;  %vm10870_vm8 = vcmask 580608  }
 0x89b   : > { %4702 = vst [vmem:[#allocation2 + $0x520] sm:$0xf] %v4675_v9  ;;  %4612 = vst [vmem:[#allocation2 + $0x4b8] sm:$0xf0] %v4585_v17  ;;  %v6820_v5 = vpack.c.bf16 %v5661_v19, %v5647_v47 }
 0x89c   : > { %6819 = vmatprep.subr.bf16.mxu0 %v6818_v1 }
 0x89d   : > { %v4870_v23 = vpop.permute.xlu0 %4869  ;;  %v10433_v29 = vpop.permute.xlu1 %4660  ;;  %6821 = vmatpush1.bf16.msra.mxu0 %v6820_v5 }
 0x89e   : > { %v4886_v21 = vsel %vm10859_vm12, %v10318_v2, %v4870_v23  ;;  %v4676_v48 = vsel %vm10860_vm15, %v4659_v32, %v10433_v29  ;;  %v5701_v30 = vld [vmem:[#allocation2 + $0x4b0] sm:$0xff]  ;;  %vm10872_vm12 = vmmov %vm10870_vm8 }
 0x89f   : > { %4913 = vst [vmem:[#allocation2 + $0x520] sm:$0xf0] %v4886_v21  ;;  %4703 = vst [vmem:[#allocation2 + $0x528] sm:$0xf] %v4676_v48 }
 0x8a0   : > { %vm10873_vm15 = vmmov %vm10861_vm9 }
 0x8a1   : > { %v3517_v15 = vpop.permute.xlu0 %3516  ;;  %v10439_v36 = vpop.permute.xlu1 %4871 }
 0x8a2   : > { %v3531_v33 = vsel %vm3518_vm5, %v10384_v46, %v3517_v15  ;;  %3559 = vst.msk [vmem:[#allocation2 + $0x3e8] sm:$0xf] %vm10861_vm9, %v3517_v15  ;;  %v4887_v37 = vsel %vm10862_vm3, %v4870_v23, %v10439_v36  ;;  %vm10867_vm5 = vcmask 588800   ;;  %v5702_v63 = vld [vmem:[#allocation2 + $0x4b8] sm:$0xff]  ;;  %vm10874_vm9 = vcmask 678912   ;;  %vm10875_vm3 = vmmov %vm10864_vm11 }
 0x8a3   : > { %3558 = vst [vmem:[#allocation2 + $0x3e0] sm:$0xf] %v3531_v33  ;;  %4914 = vst [vmem:[#allocation2 + $0x528] sm:$0xf0] %v4887_v37 }
 0x8a4   : > { %vm10871_vm10 = vmmov %vm10867_vm5 }
 0x8a5   : > { %v3939_v51 = vpop.permute.xlu0 %3938  ;;  %v3728_v2 = vpop.permute.xlu1 %3727 }
 0x8a6   : > { %v3953_v38 = vsel %vm10863_vm7, %v10403_v3, %v3939_v51  ;;  %3981 = vst.msk [vmem:[#allocation2 + $0x458] sm:$0xf] %vm10864_vm11, %v3939_v51  ;;  %v3742_v53 = vsel %vm10865_vm13, %v10394_v45, %v3728_v2  ;;  %v5715_v49 = vld [vmem:[#allocation2 + $0x520] sm:$0xff]  ;;  %vm10876_vm7 = vcmask 687104   ;;  %vm10877_vm11 = vmmov %vm10869_vm0 }
 0x8a7   : > { %3770 = vst.msk [vmem:[#allocation2 + $0x3e8] sm:$0xf0] %vm10866_vm14, %v3728_v2  ;;  %3980 = vst [vmem:[#allocation2 + $0x450] sm:$0xf] %v3953_v38  ;;  %v6798_v42 = vpack.c.bf16 %v5715_v49, %v5701_v30  ;;  %vm10880_vm14 = vcmask 670720  }
 0x8a8   : > { %3769 = vst [vmem:[#allocation2 + $0x3e0] sm:$0xf0] %v3742_v53  ;;  %vm10879_vm13 = vmmov %vm10875_vm3 }
 0x8a9   : > { %v5081_v46 = vpop.permute.xlu0 %5080  ;;  %v4150_v35 = vpop.permute.xlu1 %4149 }
 0x8aa   : > { %v5097_v57 = vsel %vm10867_vm5, %v10332_v56, %v5081_v46  ;;  %v4164_v7 = vsel %vm10868_vm2, %v10409_v43, %v4150_v35  ;;  %4192 = vst.msk [vmem:[#allocation2 + $0x458] sm:$0xf0] %vm10869_vm0, %v4150_v35  ;;  %v5716_v60 = vld [vmem:[#allocation2 + $0x528] sm:$0xff]  ;;  %vm10882_vm2 = vmmov %vm10875_vm3 }
 0x8ab   : > { %5124 = vst [vmem:[#allocation2 + $0x590] sm:$0xf] %v5097_v57  ;;  %4191 = vst [vmem:[#allocation2 + $0x450] sm:$0xf0] %v4164_v7  ;;  %v6796_v45 = vpack.c.bf16 %v5716_v60, %v5702_v63 }
 0x8ad   : > { %v5292_v3 = vpop.permute.xlu0 %5291  ;;  %v5083_v0 = vpop.permute.xlu1 %5082  ;;  %6797 = vmatprep.subr.bf16.mxu1 %v6796_v45 }
 0x8ae   : > { %v5308_v22 = vsel %vm10870_vm8, %v10337_v24, %v5292_v3  ;;  %v5098_v56 = vsel %vm10871_vm10, %v5081_v46, %v5083_v0  ;;  %6799 = vmatpush1.bf16.msra.mxu1 %v6798_v42  ;;  %v5676_v58 = vld [vmem:[#allocation2 + $0x3e8] sm:$0xff]  ;;  %vm10885_vm10 = vcmask 883712  }
 0x8af   : > { %5335 = vst [vmem:[#allocation2 + $0x590] sm:$0xf0] %v5308_v22  ;;  %5125 = vst [vmem:[#allocation2 + $0x598] sm:$0xf] %v5098_v56  ;;  %v5675_v11 = vld [vmem:[#allocation2 + $0x3e0] sm:$0xff] }
 0x8b1   : > { %v5503_v31 = vpop.permute.xlu0 %5502  ;;  %v5294_v20 = vpop.permute.xlu1 %5293  ;;  %v5690_v54 = vld [vmem:[#allocation2 + $0x458] sm:$0xff] }
 0x8b2   : > { %v5519_v52 = vsel %vm5508_vm4, %v10343_v55, %v5503_v31  ;;  %v5309_v43 = vsel %vm10872_vm12, %v5292_v3, %v5294_v20  ;;  %v6822_v39 = vpack.c.bf16 %v5690_v54, %v5676_v58  ;;  %v5689_v14 = vld [vmem:[#allocation2 + $0x450] sm:$0xff]  ;;  %vm10887_vm12 = vcmask 7168  }
 0x8b3   : > { %5546 = vst [vmem:[#allocation2 + $0x600] sm:$0xf] %v5519_v52  ;;  %5336 = vst [vmem:[#allocation2 + $0x598] sm:$0xf0] %v5309_v43  ;;  %v6824_v24 = vpack.c.bf16 %v5689_v14, %v5675_v11 }
 0x8b4   : > { %6823 = vmatprep.subr.bf16.mxu0 %v6822_v39 }
 0x8b5   : > { %v4361_v18 = vpop.permute.xlu0 %4360  ;;  %v5505_v61 = vpop.permute.xlu1 %5504  ;;  %6825 = vmatpush1.bf16.msra.mxu0 %v6824_v24 }
 0x8b6   : > { %v4375_v10 = vsel %vm4362_vm1, %v10421_v40, %v4361_v18  ;;  %4403 = vst.msk [vmem:[#allocation2 + $0x4c8] sm:$0xf] %vm10873_vm15, %v4361_v18  ;;  %v5520_v26 = vsel %vm5508_vm4, %v5503_v31, %v5505_v61  ;;  %vm10878_vm1 = vmmov %vm10867_vm5  ;;  %v5729_v50 = vld [vmem:[#allocation2 + $0x590] sm:$0xff] }
 0x8b7   : > { %4402 = vst [vmem:[#allocation2 + $0x4c0] sm:$0xf] %v4375_v10  ;;  %5547 = vst [vmem:[#allocation2 + $0x608] sm:$0xf] %v5520_v26 }
 0x8b8   : > { %vm10881_vm5 = vmmov %vm10869_vm0 }
 0x8b9   : > { %v4663_v55 = vpop.permute.xlu0 %4662  ;;  %v4572_v59 = vpop.permute.xlu1 %4571  ;;  %vm10883_vm0 = vmmov %vm10870_vm8 }
 0x8ba   : > { %v4677_v25 = vsel %vm10874_vm9, %v10433_v29, %v4663_v55  ;;  %4705 = vst.msk [vmem:[#allocation2 + $0x538] sm:$0xf] %vm10875_vm3, %v4663_v55  ;;  %v4586_v27 = vsel %vm10876_vm7, %v10427_v34, %v4572_v59  ;;  %v5743_v44 = vld [vmem:[#allocation2 + $0x600] sm:$0xf]  ;;  %v5730_v28 = vld [vmem:[#allocation2 + $0x598] sm:$0xff]  ;;  %vm10884_vm8 = vmmov %vm10881_vm5 }
 0x8bb   : > { %4614 = vst.msk [vmem:[#allocation2 + $0x4c8] sm:$0xf0] %vm10877_vm11, %v4572_v59  ;;  %4704 = vst [vmem:[#allocation2 + $0x530] sm:$0xf] %v4677_v25  ;;  %v6803_v4 = vpack.c.bf16 %v5743_v44, %v5729_v50 }
 0x8bc   : > { %4613 = vst [vmem:[#allocation2 + $0x4c0] sm:$0xf0] %v4586_v27  ;;  %vm10888_vm15 = vmmov %vm10887_vm12 }
 0x8bd   : > { %v5085_v40 = vpop.permute.xlu0 %5084  ;;  %v4874_v8 = vpop.permute.xlu1 %4873 }
 0x8be   : > { %v5099_v6 = vsel %vm10878_vm1, %v5083_v0, %v5085_v40  ;;  %5127 = vst.msk [vmem:[#allocation2 + $0x5a8] sm:$0xf] %vm10879_vm13, %v5085_v40  ;;  %v4888_v41 = vsel %vm10880_vm14, %v10439_v36, %v4874_v8  ;;  %v5744_v32 = vld [vmem:[#allocation2 + $0x608] sm:$0xf] }
 0x8bf   : > { %4916 = vst.msk [vmem:[#allocation2 + $0x538] sm:$0xf0] %vm10881_vm5, %v4874_v8  ;;  %5126 = vst [vmem:[#allocation2 + $0x5a0] sm:$0xf] %v5099_v6  ;;  %v6800_v34 = vpack.c.bf16 %v5744_v32, %v5730_v28 }
 0x8c0   : > { %4915 = vst [vmem:[#allocation2 + $0x530] sm:$0xf0] %v4888_v41 }
 0x8c1   : > { %v5507_v9 = vpop.permute.xlu0 %5506  ;;  %v5296_v17 = vpop.permute.xlu1 %5295  ;;  %6802 = vmatprep.subr.msk.bf16.mxu1 %vm9559_vm6, %v6800_v34 }
 0x8c2   : > { %v5521_v1 = vsel %vm5508_vm4, %v5505_v61, %v5507_v9  ;;  %5549 = vst.msk [vmem:[#allocation2 + $0x618] sm:$0xf] %vm10882_vm2, %v5507_v9  ;;  %v5310_v47 = vsel %vm10883_vm0, %v5294_v20, %v5296_v17  ;;  %6805 = vmatpush1.bf16.msk.msra.mxu1 %vm9559_vm6, %v6803_v4  ;;  %v5704_v19 = vld [vmem:[#allocation2 + $0x4c8] sm:$0xff]  ;;  %vm10886_vm4 = vmmov %vm10885_vm10 }
 0x8c3   : > { %5338 = vst.msk [vmem:[#allocation2 + $0x5a8] sm:$0xf0] %vm10884_vm8, %v5296_v17  ;;  %5548 = vst [vmem:[#allocation2 + $0x610] sm:$0xf] %v5521_v1  ;;  %v5703_v29 = vld [vmem:[#allocation2 + $0x4c0] sm:$0xff] }
 0x8c4   : > { %5337 = vst [vmem:[#allocation2 + $0x5a0] sm:$0xf0] %v5310_v47 }
 0x8c5   : > { %6619 = vmatmul.mubr.msk.f32.vlgmr.msra.gmra.mrb[4].mxu1 %vm10885_vm10, %v10364_v12 }
 0x8c6   : > { %v5718_v5 = vld [vmem:[#allocation2 + $0x538] sm:$0xff] }
 0x8c7   : > { %v6826_v23 = vpack.c.bf16 %v5718_v5, %v5704_v19  ;;  %v5717_v21 = vld [vmem:[#allocation2 + $0x530] sm:$0xff] }
 0x8c8   : > { %v6828_v48 = vpack.c.bf16 %v5717_v21, %v5703_v29 }
 0x8c9   : > { %6827 = vmatprep.subr.bf16.mxu0 %v6826_v23  ;;  %v5746_v36 = vld [vmem:[#allocation2 + $0x618] sm:$0xf] }
 0x8ca   : > { %6829 = vmatpush1.bf16.msra.mxu0 %v6828_v48  ;;  %v5732_v15 = vld [vmem:[#allocation2 + $0x5a8] sm:$0xff]  ;;  %v5745_v51 = vld [vmem:[#allocation2 + $0x610] sm:$0xf] }
 0x8cb   : > { %v6830_v33 = vpack.c.bf16 %v5746_v36, %v5732_v15  ;;  %v5731_v37 = vld [vmem:[#allocation2 + $0x5a0] sm:$0xff] }
 0x8cc   : > { %v6833_v2 = vpack.c.bf16 %v5745_v51, %v5731_v37 }
 0x8cd   : > { %6832 = vmatprep.subr.msk.bf16.mxu0 %vm9559_vm6, %v6830_v33 }
 0x8ce   : > { %6835 = vmatpush1.bf16.msk.msra.mxu0 %vm9559_vm6, %v6833_v2  ;;  %vm6303_vm6 = vcmask 523264  }
 0x8d1   : > { %6622 = vmatmul.mubr.msk.f32.vlgmr.msra.gmra.mrb[6].mxu0 %vm10886_vm4, %v10364_v12 }
 0x8e4   : > { %v5930_v38 = vpop.f32.mrb[0].mxu1 }
 0x8e5   : > { %6292 = vst [vmem:[%s10350_s7 + $0x10] sm:$0xff] %v5930_v38  ;;  %v6306_v53 = vadd.f32 %v10369_v13, %v5930_v38  ;;  %v6324_v46 = vmul.f32 %v5930_v38, %v5930_v38  ;;  %v5932_v35 = vpop.f32.mrb[1].mxu1 }
 0x8e6   : > { %6293 = vst [vmem:[%s10350_s7 + $0x18] sm:$0xff] %v5932_v35  ;;  %v6325_v49 = vmul.f32 %v5932_v35, %v5932_v35 }
 0x8e7   : > { %v6337_v57 = vadd.f32 %v10376_v62, %v6324_v46  ;;  %v6307_v7 = vadd.f32 %v6306_v53, %v5932_v35 }
 0x8e9   : > { %v6338_v63 = vadd.f32 %v6337_v57, %v6325_v49 }
 0x8f0   : > { %v6001_v16 = vpop.f32.mrb[2].mxu0 }
 0x8f1   : > { %6294 = vst [vmem:[%s10350_s7 + $0x20] sm:$0xff] %v6001_v16  ;;  %v6308_v60 = vadd.f32 %v6307_v7, %v6001_v16  ;;  %v6326_v45 = vmul.f32 %v6001_v16, %v6001_v16  ;;  %v6003_v12 = vpop.f32.mrb[3].mxu0 }
 0x8f2   : > { %6295 = vst [vmem:[%s10350_s7 + $0x28] sm:$0xff] %v6003_v12  ;;  %v6327_v30 = vmul.f32 %v6003_v12, %v6003_v12 }
 0x8f3   : > { %v6339_v42 = vadd.f32 %v6338_v63, %v6326_v45  ;;  %v6309_v13 = vadd.f32 %v6308_v60, %v6003_v12 }
 0x8f5   : > { %v6340_v3 = vadd.f32 %v6339_v42, %v6327_v30 }
 0x94c   : > { %v6072_v0 = vpop.f32.mrb[2].mxu1 }
 0x94d   : > { %6296 = vst [vmem:[%s10350_s7 + $0x30] sm:$0xff] %v6072_v0  ;;  %v6310_v22 = vadd.f32 %v6309_v13, %v6072_v0  ;;  %v6328_v56 = vmul.f32 %v6072_v0, %v6072_v0  ;;  %v6074_v62 = vpop.f32.mrb[3].mxu1 }
 0x94e   : > { %6297 = vst [vmem:[%s10350_s7 + $0x38] sm:$0xff] %v6074_v62  ;;  %v6329_v31 = vmul.f32 %v6074_v62, %v6074_v62 }
 0x94f   : > { %v6341_v20 = vadd.f32 %v6340_v3, %v6328_v56  ;;  %v6311_v58 = vadd.f32 %v6310_v22, %v6074_v62 }
 0x951   : > { %v6342_v54 = vadd.f32 %v6341_v20, %v6329_v31 }
 0x958   : > { %v6143_v52 = vpop.f32.mrb[4].mxu0 }
 0x959   : > { %6298 = vst [vmem:[%s10350_s7 + $0x40] sm:$0xff] %v6143_v52  ;;  %v6312_v43 = vadd.f32 %v6311_v58, %v6143_v52  ;;  %v6330_v39 = vmul.f32 %v6143_v52, %v6143_v52  ;;  %v6145_v11 = vpop.f32.mrb[5].mxu0 }
 0x95a   : > { %6299 = vst [vmem:[%s10350_s7 + $0x48] sm:$0xff] %v6145_v11  ;;  %v6331_v14 = vmul.f32 %v6145_v11, %v6145_v11 }
 0x95b   : > { %v6343_v24 = vadd.f32 %v6342_v54, %v6330_v39  ;;  %v6313_v18 = vadd.f32 %v6312_v43, %v6145_v11 }
 0x95d   : > { %v6344_v61 = vadd.f32 %v6343_v24, %v6331_v14 }
 0x998   : > { %v6214_v10 = vpop.f32.mrb[4].mxu1 }
 0x999   : > { %6300 = vst [vmem:[%s10350_s7 + $0x50] sm:$0xff] %v6214_v10  ;;  %v6314_v26 = vadd.f32 %v6313_v18, %v6214_v10  ;;  %v6332_v55 = vmul.f32 %v6214_v10, %v6214_v10  ;;  %v6216_v59 = vpop.f32.mrb[5].mxu1 }
 0x99a   : > { %6301 = vst [vmem:[%s10350_s7 + $0x58] sm:$0xff] %v6216_v59  ;;  %v6333_v25 = vmul.f32 %v6216_v59, %v6216_v59 }
 0x99b   : > { %v6345_v27 = vadd.f32 %v6344_v61, %v6332_v55  ;;  %v6315_v40 = vadd.f32 %v6314_v26, %v6216_v59 }
 0x99d   : > { %v6346_v8 = vadd.f32 %v6345_v27, %v6333_v25 }
 0x9a4   : > { %v6285_v44 = vpop.f32.mrb[6].mxu0 }
 0x9a5   : > { %6302 = vst [vmem:[%s10350_s7 + $0x60] sm:$0xff] %v6285_v44  ;;  %v6316_v6 = vadd.f32 %v6315_v40, %v6285_v44  ;;  %v6334_v41 = vmul.f32 %v6285_v44, %v6285_v44  ;;  %v6287_v28 = vpop.f32.mrb[7].mxu0 }
 0x9a6   : > { %6304 = vst.msk [vmem:[%s10350_s7 + $0x68] sm:$0xff] %vm6303_vm6, %v6287_v28  ;;  %v6317_v32 = vsel %vm6303_vm6, %v6287_v28, 0.0  ;;  %v6335_v34 = vmul.f32 %v6287_v28, %v6287_v28 }
 0x9a7   : > { %v6347_v50 = vadd.f32 %v6346_v8, %v6334_v41  ;;  %v6318_v4 = vadd.f32 %v6317_v32, %v6316_v6 }
 0x9a8   : > { %v6348_v9 = vsel %vm6303_vm6, %v6335_v34, 0.0 }
 0x9a9   : > { %6319 = vadd.xlane.f32.xlu1 %v6318_v4  ;;  %v6349_v17 = vadd.f32 %v6348_v9, %v6347_v50 }
 0x9ab   : > { %6350 = vadd.xlane.f32.xlu0 %v6349_v17 }
 0xa36   : > { %v6320_v1 = vpop.xlane.xlu1 %6319 }
 0xa37   : > { %6321 = vst.msk [vmem:[%s271_s28] sm:$0xff] %vm10887_vm12, %v6320_v1 }
 0xa38   : > { %v6351_v47 = vpop.xlane.xlu0 %6350 }
 0xa39   : > { %6352 = vst.msk [vmem:[%s277_s22] sm:$0xff] %vm10888_vm15, %v6351_v47 }
 0xa3a PF: > { %s16_s20 = sadd.s32 1, %s6952_s20   ;;  %s10889_s18 = smov %s6948_s19 }
 0xa3b   : > { %p13_p5 = scmp.ge.s32.totalorder %s16_s20, 4   ;;  %s10890_s19 = smov %s10892_s21 }
 0xa3d   :  { %15 = sbr.rel (!%p13_p5) target bundleno = 2 (0x2), region = 101 }

// kernel: mutil_stride_module_v3.9
= control target key start
LH: loop header
LB: loop body
LE: loop exit
PB: predicated region body
PF: predicated region fallthrough
CT: control target
= control target key end

     0   :  { %s674_s15 = smov 0   ;;  %s676_s16 = smov 0   ;;  %s751_s0 = inlined_call_operand.vmem [shape: f32[2,108,216], index: 0, kind: input, shape index: {}]   ;;  %s752_s1 = inlined_call_operand.vmem [shape: f32[8,108], index: 1, kind: input, shape index: {}]   ;;  %s753_s2 = inlined_call_operand.vmem [shape: f32[2,8,216], index: 2, kind: output, shape index: {0}]   ;;  %s754_s3 = inlined_call_operand.vmem [shape: f32[2,8,1], index: 3, kind: output, shape index: {1}]   ;;  %s755_s4 = inlined_call_operand.vmem [shape: f32[2,8,1], index: 4, kind: output, shape index: {2}]  }
   0x1   :  { %s678_s17 = smov 0  }
   0x2 LB: > { %s27_s18 = sadd.s32 1, %s641_s16  ;;  %p554_p0 = scmp.ge.s32.totalorder %s645_s17, 1  ;;  %s645_s17 = sphi %s678_s17, %s15_s17   ;;  %s641_s16 = sphi %s676_s16, %s757_s16   ;;  %s637_s15 = sphi %s674_s15, %s756_s15  }
   0x3   : > { %p29_p1 = scmp.ge.s32.totalorder %s27_s18, 2  ;;  %p192_p2 = scmp.lt.s32.totalorder %s645_s17, 3 }
   0x5   : > { %s759_s18 = smov (%p29_p1, %s27_s18), 0  ;;  %p193_p3 = pnand %p554_p0, %p192_p2 }
   0x6   : > { %p237_p4 = scmp.lt.s32.totalorder (!%p193_p3), %s637_s15, 1  ;;  %v647_v0 = vmov (!%p193_p3), 0.0   ;;  %vm301_vm0 = vcmask (!%p193_p3), 1043456   ;;  %vm648_vm1 = vmmov (!%p193_p3), 1   ;;  %v268_v43 = vld [vmem:[%s752_s1] sm:$0xff] (!%p193_p3)  ;;  %vm297_vm3 = vcmask (!%p193_p3), 883712  }
   0x7   : > { %196 = sbr.rel (%p193_p3) target bundleno = 412 (0x19c), region = 28  ;;  %372 = vmatprep.mubr.f32.mxu0 (!%p193_p3), %v647_v0  ;;  %vm591_vm2 = vmpackc.low (!%p193_p3), %vm301_vm0, %vm648_vm1  ;;  %vm380_vm4 = vcmask (!%p193_p3), 719872   ;;  %vm386_vm5 = vcmask (!%p193_p3), 7168  }
   0xe   : > { %s761_s15 = smov (!%p237_p4, %s637_s15), 1 }
   0xf   : > { %s596_s19 = smul.u32 224, %s761_s15  ;;  %s565_s25 = sshll.u32 %s761_s15, 4 }
  0x10   : > { %s254_s28 = scalar_lea.vmem %s753_s2, %s565_s25  ;;  %s558_s29 = sshll.u32 %s761_s15, 3 }
  0x11   : > { %s698_s22 = scalar_lea.vmem %s751_s0, %s596_s19  ;;  %s260_s6 = scalar_lea.vmem %s754_s3, %s558_s29 }
  0x12   : > { %v270_v1 = vld [vmem:[%s698_s22 + $0x8] sm:$0xff]  ;;  %v272_v2 = vld [vmem:[%s698_s22 + $0x18] sm:$0xff]  ;;  %v269_v3 = vld [vmem:[%s698_s22] sm:$0xff]  ;;  %s266_s9 = scalar_lea.vmem %s755_s4, %s558_s29 }
  0x13   : > { %v566_v4 = vpack.c.bf16 %v272_v2, %v270_v1  ;;  %v271_v5 = vld [vmem:[%s698_s22 + $0x10] sm:$0xff]  ;;  %v274_v6 = vld [vmem:[%s698_s22 + $0x28] sm:$0xff]  ;;  %v276_v7 = vld [vmem:[%s698_s22 + $0x38] sm:$0xff] }
  0x14   : > { %v568_v8 = vpack.c.bf16 %v271_v5, %v269_v3  ;;  %v570_v9 = vpack.c.bf16 %v276_v7, %v274_v6  ;;  %v273_v10 = vld [vmem:[%s698_s22 + $0x20] sm:$0xff]  ;;  %v275_v11 = vld [vmem:[%s698_s22 + $0x30] sm:$0xff]  ;;  %v278_v12 = vld [vmem:[%s698_s22 + $0x48] sm:$0xff] }
  0x15   : > { %567 = vmatprep.subr.bf16.mxu0 %v566_v4  ;;  %v280_v13 = vld [vmem:[%s698_s22 + $0x58] sm:$0xff]  ;;  %v572_v14 = vpack.c.bf16 %v275_v11, %v273_v10  ;;  %v277_v16 = vld [vmem:[%s698_s22 + $0x40] sm:$0xff]  ;;  %v279_v17 = vld [vmem:[%s698_s22 + $0x50] sm:$0xff] }
  0x16   : > { %569 = vmatpush1.bf16.msra.mxu0 %v568_v8  ;;  %v574_v15 = vpack.c.bf16 %v280_v13, %v278_v12  ;;  %v282_v18 = vld [vmem:[%s698_s22 + $0x68] sm:$0xff]  ;;  %v284_v19 = vld [vmem:[%s698_s22 + $0x78] sm:$0xff]  ;;  %v576_v20 = vpack.c.bf16 %v279_v17, %v277_v16  ;;  %v281_v22 = vld [vmem:[%s698_s22 + $0x60] sm:$0xff] }
  0x17   : > { %571 = vmatprep.subr.bf16.mxu0 %v570_v9  ;;  %v578_v21 = vpack.c.bf16 %v284_v19, %v282_v18  ;;  %v283_v23 = vld [vmem:[%s698_s22 + $0x70] sm:$0xff]  ;;  %v286_v24 = vld [vmem:[%s698_s22 + $0x88] sm:$0xff]  ;;  %v288_v25 = vld [vmem:[%s698_s22 + $0x98] sm:$0xff] }
  0x18   : > { %v580_v26 = vpack.c.bf16 %v283_v23, %v281_v22  ;;  %v582_v27 = vpack.c.bf16 %v288_v25, %v286_v24  ;;  %v285_v28 = vld [vmem:[%s698_s22 + $0x80] sm:$0xff]  ;;  %v287_v29 = vld [vmem:[%s698_s22 + $0x90] sm:$0xff]  ;;  %v290_v30 = vld [vmem:[%s698_s22 + $0xa8] sm:$0xff] }
  0x19   : > { %v292_v31 = vld [vmem:[%s698_s22 + $0xb8] sm:$0xff]  ;;  %v584_v32 = vpack.c.bf16 %v287_v29, %v285_v28  ;;  %v289_v34 = vld [vmem:[%s698_s22 + $0xa0] sm:$0xff]  ;;  %v291_v35 = vld [vmem:[%s698_s22 + $0xb0] sm:$0xff] }
  0x1a   : > { %573 = vmatpush1.bf16.msra.mxu0 %v572_v14  ;;  %v586_v33 = vpack.c.bf16 %v292_v31, %v290_v30  ;;  %v294_v36 = vld [vmem:[%s698_s22 + $0xc8] sm:$0xff]  ;;  %v296_v37 = vld [vmem:[%s698_s22 + $0xd8] sm:$0xf]  ;;  %v588_v38 = vpack.c.bf16 %v291_v35, %v289_v34  ;;  %v293_v40 = vld [vmem:[%s698_s22 + $0xc0] sm:$0xff] }
  0x1b   : > { %575 = vmatprep.subr.bf16.mxu0 %v574_v15  ;;  %v590_v39 = vpack.c.bf16 %v296_v37, %v294_v36  ;;  %v295_v41 = vld [vmem:[%s698_s22 + $0xd0] sm:$0xf] }
  0x1c   : > { %v593_v42 = vpack.c.bf16 %v295_v41, %v293_v40 }
  0x1e   : > { %577 = vmatpush1.bf16.msra.mxu0 %v576_v20 }
  0x1f   : > { %579 = vmatprep.subr.bf16.mxu0 %v578_v21 }
  0x22   : > { %581 = vmatpush1.bf16.msra.mxu0 %v580_v26 }
  0x23   : > { %583 = vmatprep.subr.bf16.mxu0 %v582_v27 }
  0x26   : > { %585 = vmatpush1.bf16.msra.mxu0 %v584_v32 }
  0x27   : > { %587 = vmatprep.subr.bf16.mxu0 %v586_v33 }
  0x2a   : > { %589 = vmatpush1.bf16.msra.mxu0 %v588_v38 }
  0x2b   : > { %592 = vmatprep.subr.msk.bf16.mxu0 %vm591_vm2, %v590_v39 }
  0x2e   : > { %595 = vmatpush1.bf16.msk.msra.mxu0 %vm591_vm2, %v593_v42 }
  0x31   : > { %562 = vmatmul.mubr.msk.f32.vlgmr.msra.gmra.mrb[0].mxu0 %vm297_vm3, %v268_v43 }
 0x104   : > { %v374_v44 = vpop.f32.mrb[0].mxu0 }
 0x105   : > { %379 = vst [vmem:[%s254_s28] sm:$0xff] %v374_v44  ;;  %v376_v45 = vpop.f32.mrb[1].mxu0  ;;  %v388_v49 = vmul.f32 %v374_v44, %v374_v44 }
 0x106   : > { %381 = vst.msk [vmem:[%s254_s28 + $0x8] sm:$0xff] %vm380_vm4, %v376_v45  ;;  %v389_v46 = vmul.f32 %v376_v45, %v376_v45  ;;  %v382_v47 = vsel %vm380_vm4, %v376_v45, 0.0 }
 0x107   : > { %v383_v48 = vadd.f32 %v382_v47, %v374_v44 }
 0x108   : > { %v390_v50 = vsel %vm380_vm4, %v389_v46, 0.0 }
 0x109   : > { %384 = vadd.xlane.f32.xlu0 %v383_v48  ;;  %v391_v51 = vadd.f32 %v390_v50, %v388_v49 }
 0x10d   : > { %392 = vadd.xlane.f32.xlu0 %v391_v51 }
 0x196   : > { %v385_v52 = vpop.xlane.xlu0 %384 }
 0x197   : > { %387 = vst.msk [vmem:[%s260_s6] sm:$0xff] %vm386_vm5, %v385_v52 }
 0x19a   : > { %v393_v53 = vpop.xlane.xlu0 %392 }
 0x19b   : > { %394 = vst.msk [vmem:[%s266_s9] sm:$0xff] %vm386_vm5, %v393_v53 }
 0x19c PF: > { %s15_s17 = sadd.s32 1, %s645_s17   ;;  %s756_s15 = smov %s641_s16 }
 0x19d   : > { %p12_p5 = scmp.ge.s32.totalorder %s15_s17, 4   ;;  %s757_s16 = smov %s759_s18 }
 0x19f   :  { %14 = sbr.rel (!%p12_p5) target bundleno = 2 (0x2), region = 82 }

// kernel: mutil_stride_module_v3.12
= control target key start
LH: loop header
LB: loop body
LE: loop exit
PB: predicated region body
PF: predicated region fallthrough
CT: control target
= control target key end

     0   :  { %s790_s24 = smov 0   ;;  %s792_s25 = smov 0   ;;  %s845_s0 = inlined_call_operand.vmem [shape: f32[2,8,216], index: 0, kind: input, shape index: {}]   ;;  %s846_s1 = inlined_call_operand.vmem [shape: f32[8,1], index: 1, kind: input, shape index: {}]   ;;  %s847_s2 = inlined_call_operand.vmem [shape: f32[8,1], index: 2, kind: input, shape index: {}]   ;;  %s848_s3 = inlined_call_operand.vmem [shape: f32[2,8,216], index: 3, kind: input, shape index: {}]   ;;  %s849_s4 = inlined_call_operand.vmem [shape: f32[8,8], index: 4, kind: input, shape index: {}]   ;;  %s850_s5 = inlined_call_operand.vmem [shape: f32[2,8,216], index: 5, kind: output, shape index: {0}]   ;;  %s851_s6 = inlined_call_operand.vmem [shape: f32[2,8,1], index: 6, kind: output, shape index: {1}]   ;;  %s852_s7 = inlined_call_operand.vmem [shape: f32[2,8,1], index: 7, kind: output, shape index: {2}]  }
   0x1   :  { %s794_s26 = smov 0  }
   0x2 LB: > { %s30_s27 = sadd.s32 1, %s742_s25  ;;  %p682_p0 = scmp.ge.s32.totalorder %s746_s26, 1  ;;  %s746_s26 = sphi %s794_s26, %s18_s26   ;;  %s742_s25 = sphi %s792_s25, %s854_s25   ;;  %s738_s24 = sphi %s790_s24, %s853_s24  }
   0x3   : > { %p32_p1 = scmp.ge.s32.totalorder %s30_s27, 2  ;;  %p284_p2 = scmp.lt.s32.totalorder %s746_s26, 3 }
   0x5   : > { %s856_s27 = smov (%p32_p1, %s30_s27), 0  ;;  %p285_p3 = pnand %p682_p0, %p284_p2 }
   0x6   : > { %v387_v0 = vld [vmem:[%s846_s1] sm:$0xff] (!%p285_p3)  ;;  %v748_v1 = vmov (!%p285_p3), 0   ;;  %v749_v3 = vmov (!%p285_p3), 0.0   ;;  %p344_p4 = scmp.lt.s32.totalorder (!%p285_p3), %s738_s24, 1  ;;  %vm414_vm2 = vcmask (!%p285_p3), 64512   ;;  %vm490_vm3 = vcmask (!%p285_p3), 719872  }
   0x7   : > { %288 = sbr.rel (%p285_p3) target bundleno = 512 (0x200), region = 40  ;;  %723 = vset.pattern.permute.xlu0 (!%p285_p3), %v748_v1  ;;  %v395_v2 = vld [vmem:[%s847_s2] sm:$0xff] (!%p285_p3)  ;;  %482 = vmatprep.mubr.f32.mxu0 (!%p285_p3), %v749_v3  ;;  %vm496_vm4 = vcmask (!%p285_p3), 7168  }
   0x8   : > { %390 = vperm.xlu0 (!%p285_p3), %723, %v387_v0   ;;  %v413_v20 = vld [vmem:[%s849_s4] sm:$0xff] (!%p285_p3) }
   0xc   : > { %398 = vperm.xlu0 (!%p285_p3), %723, %v395_v2  }
   0xe   : > { %s858_s24 = smov (!%p344_p4, %s738_s24), 1 }
   0xf   : > { %s694_s9 = sshll.u32 %s858_s24, 4  ;;  %s689_s21 = sshll.u32 %s858_s24, 3 }
  0x10   : > { %s351_s12 = scalar_lea.vmem %s845_s0, %s694_s9  ;;  %s361_s15 = scalar_lea.vmem %s848_s3, %s694_s9 }
  0x11   : > { %v385_v5 = vld [vmem:[%s351_s12] sm:$0xff]  ;;  %v386_v6 = vld [vmem:[%s351_s12 + $0x8] sm:$0xff]  ;;  %s371_s20 = scalar_lea.vmem %s850_s5, %s694_s9  ;;  %s377_s28 = scalar_lea.vmem %s851_s6, %s689_s21 }
  0x12   : > { %v410_v12 = vld [vmem:[%s361_s15 + $0x8] sm:$0xff]  ;;  %v409_v13 = vld [vmem:[%s361_s15] sm:$0xff]  ;;  %s383_s8 = scalar_lea.vmem %s852_s7, %s689_s21 }
  0x87   : > { %v391_v4 = vpop.permute.xlu0 %390 }
  0x88   : > { %v393_v7 = vmul.f32 %v391_v4, %v385_v5  ;;  %v394_v8 = vmul.f32 %v391_v4, %v386_v6 }
  0x8b   : > { %v399_v9 = vpop.permute.xlu0 %398 }
  0x8c   : > { %v401_v10 = vadd.f32 %v399_v9, %v393_v7  ;;  %v402_v11 = vadd.f32 %v399_v9, %v394_v8 }
  0x8e   : > { %v405_v14 = vmul.f32 0.01, %v401_v10  ;;  %v406_v15 = vmul.f32 0.01, %v402_v11  ;;  %vm404_vm0 = vcmp.ge.f32.partialorder %v402_v11, 0.0  ;;  %vm403_vm1 = vcmp.ge.f32.partialorder %v401_v10, 0.0 }
  0x90   : > { %v408_v16 = vsel %vm404_vm0, %v402_v11, %v406_v15  ;;  %v407_v17 = vsel %vm403_vm1, %v401_v10, %v405_v14 }
  0x91   : > { %v412_v18 = vadd.f32 %v410_v12, %v408_v16  ;;  %v411_v19 = vadd.f32 %v409_v13, %v407_v17 }
  0x93   : > { %418 = vmatprep.subr.mxu0 %v412_v18 }
  0x94   : > { %419 = vmatpush1.msra.mxu0 %v411_v19 }
  0x95   : > { %691 = vmatmul.mubr.msk.f32.vlgmr.msra.gmra.mrb[0].mxu0 %vm414_vm2, %v413_v20 }
 0x168   : > { %v484_v21 = vpop.f32.mrb[0].mxu0 }
 0x169   : > { %489 = vst [vmem:[%s371_s20] sm:$0xff] %v484_v21  ;;  %v486_v22 = vpop.f32.mrb[1].mxu0  ;;  %v498_v26 = vmul.f32 %v484_v21, %v484_v21 }
 0x16a   : > { %491 = vst.msk [vmem:[%s371_s20 + $0x8] sm:$0xff] %vm490_vm3, %v486_v22  ;;  %v499_v23 = vmul.f32 %v486_v22, %v486_v22  ;;  %v492_v24 = vsel %vm490_vm3, %v486_v22, 0.0 }
 0x16b   : > { %v493_v25 = vadd.f32 %v492_v24, %v484_v21 }
 0x16c   : > { %v500_v27 = vsel %vm490_vm3, %v499_v23, 0.0 }
 0x16d   : > { %494 = vadd.xlane.f32.xlu1 %v493_v25  ;;  %v501_v28 = vadd.f32 %v500_v27, %v498_v26 }
 0x171   : > { %502 = vadd.xlane.f32.xlu1 %v501_v28 }
 0x1fa   : > { %v495_v29 = vpop.xlane.xlu1 %494 }
 0x1fb   : > { %497 = vst.msk [vmem:[%s377_s28] sm:$0xff] %vm496_vm4, %v495_v29 }
 0x1fe   : > { %v503_v30 = vpop.xlane.xlu1 %502 }
 0x1ff   : > { %504 = vst.msk [vmem:[%s383_s8] sm:$0xff] %vm496_vm4, %v503_v30 }
 0x200 PF: > { %s18_s26 = sadd.s32 1, %s746_s26   ;;  %s853_s24 = smov %s742_s25 }
 0x201   : > { %p15_p5 = scmp.ge.s32.totalorder %s18_s26, 4   ;;  %s854_s25 = smov %s856_s27 }
 0x203   :  { %17 = sbr.rel (!%p15_p5) target bundleno = 2 (0x2), region = 97 }

// kernel: mutil_stride_module_v3.13
= control target key start
LH: loop header
LB: loop body
LE: loop exit
PB: predicated region body
PF: predicated region fallthrough
CT: control target
= control target key end

     0   :  { %s408_s12 = smov 0   ;;  %s410_s13 = smov 0   ;;  %s447_s0 = inlined_call_operand.vmem [shape: f32[2,8,216], index: 0, kind: input, shape index: {}]   ;;  %s448_s1 = inlined_call_operand.vmem [shape: f32[8,1], index: 1, kind: input, shape index: {}]   ;;  %s449_s2 = inlined_call_operand.vmem [shape: f32[8,1], index: 2, kind: input, shape index: {}]   ;;  %s450_s3 = inlined_call_operand.vmem [shape: f32[2,8,216], index: 3, kind: output, shape index: {}]  }
   0x1   :  { %s412_s14 = smov 0  }
   0x2 LB: > { %s25_s15 = sadd.s32 1, %s381_s13  ;;  %p328_p0 = scmp.ge.s32.totalorder %s385_s14, 1  ;;  %s385_s14 = sphi %s412_s14, %s13_s14   ;;  %s381_s13 = sphi %s410_s13, %s452_s13   ;;  %s377_s12 = sphi %s408_s12, %s451_s12  }
   0x3   : > { %p27_p1 = scmp.ge.s32.totalorder %s25_s15, 2  ;;  %p158_p2 = scmp.lt.s32.totalorder %s385_s14, 3 }
   0x5   : > { %s454_s15 = smov (%p27_p1, %s25_s15), 0  ;;  %p159_p3 = pnand %p328_p0, %p158_p2 }
   0x6   : > { %v212_v0 = vld [vmem:[%s448_s1] sm:$0xff] (!%p159_p3)  ;;  %v387_v1 = vmov (!%p159_p3), 0   ;;  %p191_p4 = scmp.lt.s32.totalorder (!%p159_p3), %s377_s12, 1  ;;  %vm235_vm0 = vcmask (!%p159_p3), 719872  }
   0x7   : > { %162 = sbr.rel (%p159_p3) target bundleno = 146 (0x92), region = 32  ;;  %362 = vset.pattern.permute.xlu0 (!%p159_p3), %v387_v1  ;;  %v220_v2 = vld [vmem:[%s449_s2] sm:$0xff] (!%p159_p3) }
   0x8   : > { %215 = vperm.xlu0 (!%p159_p3), %362, %v212_v0  }
   0xc   : > { %223 = vperm.xlu0 (!%p159_p3), %362, %v220_v2  }
   0xe   : > { %s456_s12 = smov (!%p191_p4, %s377_s12), 1 }
   0xf   : > { %s335_s20 = sshll.u32 %s456_s12, 4 }
  0x10   : > { %s198_s23 = scalar_lea.vmem %s447_s0, %s335_s20  ;;  %s208_s26 = scalar_lea.vmem %s450_s3, %s335_s20 }
  0x11   : > { %v210_v4 = vld [vmem:[%s198_s23] sm:$0xff]  ;;  %v211_v5 = vld [vmem:[%s198_s23 + $0x8] sm:$0xff] }
  0x87   : > { %v216_v3 = vpop.permute.xlu0 %215 }
  0x88   : > { %v218_v6 = vmul.f32 %v216_v3, %v210_v4  ;;  %v219_v7 = vmul.f32 %v216_v3, %v211_v5 }
  0x8b   : > { %v224_v8 = vpop.permute.xlu0 %223 }
  0x8c   : > { %v226_v9 = vadd.f32 %v224_v8, %v218_v6  ;;  %v227_v10 = vadd.f32 %v224_v8, %v219_v7 }
  0x8e   : > { %vm228_vm1 = vcmp.ge.f32.partialorder %v226_v9, 0.0  ;;  %vm229_vm2 = vcmp.ge.f32.partialorder %v227_v10, 0.0  ;;  %v230_v11 = vmul.f32 0.01, %v226_v9  ;;  %v231_v12 = vmul.f32 0.01, %v227_v10 }
  0x90   : > { %v232_v13 = vsel %vm228_vm1, %v226_v9, %v230_v11  ;;  %v233_v14 = vsel %vm229_vm2, %v227_v10, %v231_v12 }
  0x91   : > { %234 = vst [vmem:[%s208_s26] sm:$0xff] %v232_v13  ;;  %236 = vst.msk [vmem:[%s208_s26 + $0x8] sm:$0xff] %vm235_vm0, %v233_v14 }
  0x92 PF: > { %s13_s14 = sadd.s32 1, %s385_s14   ;;  %s451_s12 = smov %s381_s13 }
  0x93   : > { %p10_p5 = scmp.ge.s32.totalorder %s13_s14, 4   ;;  %s452_s13 = smov %s454_s15 }
  0x95   :  { %12 = sbr.rel (!%p10_p5) target bundleno = 2 (0x2), region = 62 }

// kernel: mutil_stride_module_v3.14
= control target key start
LH: loop header
LB: loop body
LE: loop exit
PB: predicated region body
PF: predicated region fallthrough
CT: control target
= control target key end

     0   :  { %s1476_s27 = smov 0   ;;  %s1478_s28 = smov 0   ;;  %s1649_s0 = inlined_call_operand.vmem [shape: f32[2,8,1728], index: 0, kind: input, shape index: {}]   ;;  %s1650_s1 = inlined_call_operand.vmem [shape: f32[8,1], index: 1, kind: input, shape index: {}]   ;;  %s1651_s2 = inlined_call_operand.vmem [shape: f32[8,1], index: 2, kind: input, shape index: {}]   ;;  %s1652_s3 = inlined_call_operand.vmem [shape: f32[2,8,1728], index: 3, kind: input, shape index: {}]   ;;  %s1653_s4 = inlined_call_operand.vmem [shape: f32[2,8,1728], index: 4, kind: input, shape index: {}]   ;;  %s1654_s5 = inlined_call_operand.vmem [shape: f32[8,8], index: 5, kind: input, shape index: {}]   ;;  %s1655_s6 = inlined_call_operand.vmem [shape: f32[2,8,1728], index: 6, kind: output, shape index: {0}]   ;;  %s1656_s7 = inlined_call_operand.vmem [shape: f32[2,8,1], index: 7, kind: output, shape index: {1}]   ;;  %s1657_s8 = inlined_call_operand.vmem [shape: f32[2,8,1], index: 8, kind: output, shape index: {2}]  }
   0x1   :  { %s1480_s29 = smov 0  }
   0x2 LB: > { %s31_s30 = sadd.s32 1, %s1423_s28  ;;  %p1361_p0 = scmp.ge.s32.totalorder %s1427_s29, 1  ;;  %s1427_s29 = sphi %s1480_s29, %s19_s29   ;;  %s1423_s28 = sphi %s1478_s28, %s1659_s28   ;;  %s1419_s27 = sphi %s1476_s27, %s1658_s27  }
   0x3   : > { %p33_p1 = scmp.ge.s32.totalorder %s31_s30, 2  ;;  %p326_p2 = scmp.lt.s32.totalorder %s1427_s29, 3 }
   0x5   : > { %s1661_s30 = smov (%p33_p1, %s31_s30), 0  ;;  %p327_p3 = pnand %p1361_p0, %p326_p2 }
   0x6   : > { %v462_v0 = vld [vmem:[%s1650_s1] sm:$0xff] (!%p327_p3)  ;;  %v1429_v1 = vmov (!%p327_p3), 0   ;;  %v1430_v3 = vmov (!%p327_p3), 0.0   ;;  %p397_p4 = scmp.lt.s32.totalorder (!%p327_p3), %s1419_s27, 1  ;;  %vm601_vm0 = vcmask (!%p327_p3), 64512   ;;  %vm1115_vm15 = vcmask (!%p327_p3), 523264  }
   0x7   : > { %330 = sbr.rel (%p327_p3) target bundleno = 537 (0x219), region = 44  ;;  %1404 = vset.pattern.permute.xlu0 (!%p327_p3), %v1429_v1  ;;  %v482_v2 = vld [vmem:[%s1651_s2] sm:$0xff] (!%p327_p3)  ;;  %669 = vmatprep.mubr.f32.mxu0 (!%p327_p3), %v1430_v3 }
   0x8   : > { %465 = vperm.xlu0 (!%p327_p3), %1404, %v462_v0   ;;  %740 = vmatprep.mubr.f32.mxu1 (!%p327_p3), %v1430_v3 }
   0xc   : > { %485 = vperm.xlu0 (!%p327_p3), %1404, %v482_v2  }
   0xe   : > { %s1663_s27 = smov (!%p397_p4, %s1419_s27), 1 }
   0xf   : > { %s1505_s13 = smul.u32 112, %s1663_s27  ;;  %s1366_s10 = sshll.u32 %s1663_s27, 3 }
  0x11   : > { %s404_s16 = scalar_lea.vmem %s1649_s0, %s1505_s13  ;;  %s1515_s19 = scalar_lea.vmem %s1652_s3, %s1505_s13 }
  0x12   : > { %v449_v4 = vld [vmem:[%s404_s16 + $0x8] sm:$0xff]  ;;  %v451_v5 = vld [vmem:[%s404_s16 + $0x18] sm:$0xff]  ;;  %v448_v6 = vld [vmem:[%s404_s16] sm:$0xff]  ;;  %s1540_s22 = scalar_lea.vmem %s1653_s4, %s1505_s13  ;;  %s1614_s9 = scalar_lea.vmem %s1655_s6, %s1505_s13 }
  0x13   : > { %v450_v7 = vld [vmem:[%s404_s16 + $0x10] sm:$0xff]  ;;  %v453_v8 = vld [vmem:[%s404_s16 + $0x28] sm:$0xff]  ;;  %v455_v9 = vld [vmem:[%s404_s16 + $0x38] sm:$0xff]  ;;  %s440_s13 = scalar_lea.vmem %s1656_s7, %s1366_s10 }
  0x14   : > { %v452_v10 = vld [vmem:[%s404_s16 + $0x20] sm:$0xff]  ;;  %v454_v11 = vld [vmem:[%s404_s16 + $0x30] sm:$0xff]  ;;  %v457_v13 = vld [vmem:[%s404_s16 + $0x48] sm:$0xff] }
  0x15   : > { %v459_v14 = vld [vmem:[%s404_s16 + $0x58] sm:$0xff]  ;;  %v456_v15 = vld [vmem:[%s404_s16 + $0x40] sm:$0xff]  ;;  %v458_v18 = vld [vmem:[%s404_s16 + $0x50] sm:$0xff] }
  0x16   : > { %v461_v19 = vld [vmem:[%s404_s16 + $0x68] sm:$0xff]  ;;  %v460_v20 = vld [vmem:[%s404_s16 + $0x60] sm:$0xff]  ;;  %v547_v39 = vld [vmem:[%s1515_s19 + $0x18] sm:$0xff]  ;;  %s446_s16 = scalar_lea.vmem %s1657_s8, %s1366_s10 }
  0x17   : > { %v545_v35 = vld [vmem:[%s1515_s19 + $0x8] sm:$0xff]  ;;  %v544_v40 = vld [vmem:[%s1515_s19] sm:$0xff]  ;;  %v546_v41 = vld [vmem:[%s1515_s19 + $0x10] sm:$0xff] }
  0x18   : > { %v573_v51 = vld [vmem:[%s1540_s22 + $0x8] sm:$0xff]  ;;  %v575_v53 = vld [vmem:[%s1540_s22 + $0x18] sm:$0xff]  ;;  %v572_v59 = vld [vmem:[%s1540_s22] sm:$0xff] }
  0x19   : > { %v549_v55 = vld [vmem:[%s1515_s19 + $0x28] sm:$0xff]  ;;  %v574_v61 = vld [vmem:[%s1540_s22 + $0x10] sm:$0xff] }
  0x1a   : > { %v577_v1 = vld [vmem:[%s1540_s22 + $0x28] sm:$0xff] }
  0x87   : > { %v466_v12 = vpop.permute.xlu0 %465 }
  0x88   : > { %v469_v16 = vmul.f32 %v466_v12, %v449_v4  ;;  %v471_v17 = vmul.f32 %v466_v12, %v451_v5  ;;  %v468_v21 = vmul.f32 %v466_v12, %v448_v6  ;;  %v470_v22 = vmul.f32 %v466_v12, %v450_v7  ;;  %v551_v7 = vld [vmem:[%s1515_s19 + $0x38] sm:$0xff] }
  0x89   : > { %v473_v23 = vmul.f32 %v466_v12, %v453_v8  ;;  %v475_v24 = vmul.f32 %v466_v12, %v455_v9  ;;  %v472_v25 = vmul.f32 %v466_v12, %v452_v10  ;;  %v474_v26 = vmul.f32 %v466_v12, %v454_v11  ;;  %v1559_v10 = vld [vmem:[%s1654_s5] sm:$0xff] }
  0x8a   : > { %v1517_v27 = vmul.f32 %v466_v12, %v457_v13  ;;  %v1519_v28 = vmul.f32 %v466_v12, %v459_v14  ;;  %v1523_v30 = vmul.f32 %v466_v12, %v456_v15  ;;  %v1525_v31 = vmul.f32 %v466_v12, %v458_v18  ;;  %v579_v15 = vld [vmem:[%s1540_s22 + $0x38] sm:$0xff] }
  0x8b   : > { %v1521_v29 = vpop.permute.xlu0 %485  ;;  %v1527_v32 = vmul.f32 %v466_v12, %v461_v19  ;;  %v1529_v33 = vmul.f32 %v466_v12, %v460_v20  ;;  %v548_v12 = vld [vmem:[%s1515_s19 + $0x20] sm:$0xff] }
  0x8c   : > { %v489_v34 = vadd.f32 %v1521_v29, %v469_v16  ;;  %v491_v36 = vadd.f32 %v1521_v29, %v471_v17  ;;  %v488_v37 = vadd.f32 %v1521_v29, %v468_v21  ;;  %v490_v38 = vadd.f32 %v1521_v29, %v470_v22  ;;  %v550_v17 = vld [vmem:[%s1515_s19 + $0x30] sm:$0xff]  ;;  %v576_v20 = vld [vmem:[%s1540_s22 + $0x20] sm:$0xff] }
  0x8d   : > { %v493_v42 = vadd.f32 %v1521_v29, %v473_v23  ;;  %v495_v43 = vadd.f32 %v1521_v29, %v475_v24  ;;  %v492_v44 = vadd.f32 %v1521_v29, %v472_v25  ;;  %v494_v45 = vadd.f32 %v1521_v29, %v474_v26  ;;  %v578_v24 = vld [vmem:[%s1540_s22 + $0x30] sm:$0xff] }
  0x8e   : > { %vm503_vm1 = vcmp.ge.f32.partialorder %v489_v34, 0.0  ;;  %v517_v46 = vmul.f32 0.01, %v489_v34  ;;  %vm505_vm2 = vcmp.ge.f32.partialorder %v491_v36, 0.0  ;;  %v519_v47 = vmul.f32 0.01, %v491_v36 }
  0x8f   : > { %vm502_vm3 = vcmp.ge.f32.partialorder %v488_v37, 0.0  ;;  %v516_v48 = vmul.f32 0.01, %v488_v37  ;;  %vm504_vm4 = vcmp.ge.f32.partialorder %v490_v38, 0.0  ;;  %v518_v49 = vmul.f32 0.01, %v490_v38 }
  0x90   : > { %v531_v50 = vsel %vm503_vm1, %v489_v34, %v517_v46  ;;  %v533_v52 = vsel %vm505_vm2, %v491_v36, %v519_v47  ;;  %vm507_vm5 = vcmp.ge.f32.partialorder %v493_v42, 0.0  ;;  %v521_v54 = vmul.f32 0.01, %v493_v42  ;;  %v583_v46 = vld [vmem:[%s1540_s22 + $0x58] sm:$0xff] }
  0x91   : > { %v559_v56 = vadd.f32 %v545_v35, %v531_v50  ;;  %v561_v57 = vadd.f32 %v547_v39, %v533_v52  ;;  %v530_v58 = vsel %vm502_vm3, %v488_v37, %v516_v48  ;;  %v532_v60 = vsel %vm504_vm4, %v490_v38, %v518_v49  ;;  %v555_v38 = vld [vmem:[%s1515_s19 + $0x58] sm:$0xff]  ;;  %v554_v49 = vld [vmem:[%s1515_s19 + $0x50] sm:$0xff] }
  0x92   : > { %v558_v62 = vadd.f32 %v544_v40, %v530_v58  ;;  %v560_v63 = vadd.f32 %v546_v41, %v532_v60  ;;  %v535_v0 = vsel %vm507_vm5, %v493_v42, %v521_v54  ;;  %vm509_vm6 = vcmp.ge.f32.partialorder %v495_v43, 0.0  ;;  %v581_v41 = vld [vmem:[%s1540_s22 + $0x48] sm:$0xff]  ;;  %v582_v58 = vld [vmem:[%s1540_s22 + $0x50] sm:$0xff] }
  0x93   : > { %v587_v2 = vadd.f32 %v573_v51, %v559_v56  ;;  %v589_v4 = vadd.f32 %v575_v53, %v561_v57  ;;  %v563_v5 = vadd.f32 %v549_v55, %v535_v0  ;;  %v523_v6 = vmul.f32 0.01, %v495_v43  ;;  %v580_v51 = vld [vmem:[%s1540_s22 + $0x40] sm:$0xff]  ;;  %v557_v53 = vld [vmem:[%s1515_s19 + $0x68] sm:$0xff] }
  0x94   : > { %v586_v8 = vadd.f32 %v572_v59, %v558_v62  ;;  %v588_v9 = vadd.f32 %v574_v61, %v560_v63  ;;  %vm506_vm7 = vcmp.ge.f32.partialorder %v492_v44, 0.0  ;;  %v520_v11 = vmul.f32 0.01, %v492_v44  ;;  %v585_v61 = vld [vmem:[%s1540_s22 + $0x68] sm:$0xff]  ;;  %v556_v63 = vld [vmem:[%s1515_s19 + $0x60] sm:$0xff] }
  0x95   : > { %605 = vmatprep.subr.mxu0 %v587_v2  ;;  %676 = vmatprep.subr.mxu1 %v589_v4  ;;  %v591_v13 = vadd.f32 %v577_v1, %v563_v5  ;;  %v537_v14 = vsel %vm509_vm6, %v495_v43, %v523_v6  ;;  %vm508_vm8 = vcmp.ge.f32.partialorder %v494_v45, 0.0  ;;  %v522_v16 = vmul.f32 0.01, %v494_v45  ;;  %v584_v2 = vld [vmem:[%s1540_s22 + $0x60] sm:$0xff] }
  0x96   : > { %606 = vmatpush1.msra.mxu0 %v586_v8  ;;  %677 = vmatpush1.msra.mxu1 %v588_v9  ;;  %v565_v18 = vadd.f32 %v551_v7, %v537_v14  ;;  %v534_v19 = vsel %vm506_vm7, %v492_v44, %v520_v11  ;;  %v497_v21 = vadd.f32 %v1521_v29, %v1517_v27  ;;  %v553_v27 = vld [vmem:[%s1515_s19 + $0x48] sm:$0xff] }
  0x97   : > { %1368 = vmatmul.mubr.msk.f32.vlgmr.msra.gmra.mrb[0].mxu0 %vm601_vm0, %v1559_v10  ;;  %1369 = vmatmul.mubr.msk.f32.vlgmr.msra.gmra.mrb[0].mxu1 %vm601_vm0, %v1559_v10  ;;  %v562_v22 = vadd.f32 %v548_v12, %v534_v19  ;;  %v536_v23 = vsel %vm508_vm8, %v494_v45, %v522_v16  ;;  %v499_v25 = vadd.f32 %v1521_v29, %v1519_v28 }
  0x98   : > { %747 = vmatprep.subr.mxu0 %v591_v13  ;;  %v593_v26 = vadd.f32 %v579_v15, %v565_v18  ;;  %v564_v34 = vadd.f32 %v550_v17, %v536_v23  ;;  %vm511_vm9 = vcmp.ge.f32.partialorder %v497_v21, 0.0  ;;  %v525_v35 = vmul.f32 0.01, %v497_v21  ;;  %811 = vmatprep.mubr.f32.mxu0 %v1430_v3 }
  0x99   : > { %v590_v36 = vadd.f32 %v576_v20, %v562_v22  ;;  %vm513_vm10 = vcmp.ge.f32.partialorder %v499_v25, 0.0  ;;  %v527_v37 = vmul.f32 0.01, %v499_v25  ;;  %882 = vmatprep.mubr.f32.mxu1 %v1430_v3  ;;  %v496_v28 = vadd.f32 %v1521_v29, %v1523_v30  ;;  %v552_v30 = vld [vmem:[%s1515_s19 + $0x40] sm:$0xff] }
  0x9a   : > { %818 = vmatprep.subr.mxu1 %v593_v26  ;;  %v592_v39 = vadd.f32 %v578_v24, %v564_v34  ;;  %v539_v40 = vsel %vm511_vm9, %v497_v21, %v525_v35  ;;  %v498_v42 = vadd.f32 %v1521_v29, %v1525_v31  ;;  %v501_v43 = vadd.f32 %v1521_v29, %v1527_v32 }
  0x9b   : > { %748 = vmatpush1.msra.mxu0 %v590_v36  ;;  %v567_v44 = vadd.f32 %v553_v27, %v539_v40  ;;  %v541_v45 = vsel %vm513_vm10, %v499_v25, %v527_v37  ;;  %vm510_vm11 = vcmp.ge.f32.partialorder %v496_v28, 0.0  ;;  %v524_v47 = vmul.f32 0.01, %v496_v28 }
  0x9c   : > { %819 = vmatpush1.msra.mxu1 %v592_v39  ;;  %v569_v48 = vadd.f32 %v555_v38, %v541_v45  ;;  %1370 = vmatmul.mubr.msk.f32.vlgmr.msra.gmra.mrb[2].mxu0 %vm601_vm0, %v1559_v10  ;;  %vm512_vm12 = vcmp.ge.f32.partialorder %v498_v42, 0.0  ;;  %v526_v31 = vmul.f32 0.01, %v498_v42  ;;  %vm515_vm13 = vcmp.ge.f32.partialorder %v501_v43, 0.0 }
  0x9d   : > { %v595_v32 = vadd.f32 %v581_v41, %v567_v44  ;;  %1371 = vmatmul.mubr.msk.f32.vlgmr.msra.gmra.mrb[2].mxu1 %vm601_vm0, %v1559_v10  ;;  %v538_v50 = vsel %vm510_vm11, %v496_v28, %v524_v47  ;;  %v529_v52 = vmul.f32 0.01, %v501_v43  ;;  %953 = vmatprep.mubr.f32.mxu0 %v1430_v3  ;;  %v500_v54 = vadd.f32 %v1521_v29, %v1529_v33 }
  0x9e   : > { %v597_v55 = vadd.f32 %v583_v46, %v569_v48  ;;  %v566_v56 = vadd.f32 %v552_v30, %v538_v50  ;;  %v540_v57 = vsel %vm512_vm12, %v498_v42, %v526_v31  ;;  %1024 = vmatprep.mubr.f32.mxu1 %v1430_v3 }
  0x9f   : > { %889 = vmatprep.subr.mxu0 %v595_v32  ;;  %v568_v59 = vadd.f32 %v554_v49, %v540_v57  ;;  %v543_v60 = vsel %vm515_vm13, %v501_v43, %v529_v52  ;;  %vm514_vm14 = vcmp.ge.f32.partialorder %v500_v54, 0.0  ;;  %v528_v62 = vmul.f32 0.01, %v500_v54 }
  0xa0   : > { %960 = vmatprep.subr.mxu1 %v597_v55  ;;  %v594_v0 = vadd.f32 %v580_v51, %v566_v56  ;;  %v571_v1 = vadd.f32 %v557_v53, %v543_v60 }
  0xa1   : > { %v596_v29 = vadd.f32 %v582_v58, %v568_v59  ;;  %v542_v33 = vsel %vm514_vm14, %v500_v54, %v528_v62 }
  0xa2   : > { %890 = vmatpush1.msra.mxu0 %v594_v0  ;;  %v599_v4 = vadd.f32 %v585_v61, %v571_v1  ;;  %v570_v5 = vadd.f32 %v556_v63, %v542_v33 }
  0xa3   : > { %961 = vmatpush1.msra.mxu1 %v596_v29  ;;  %1372 = vmatmul.mubr.msk.f32.vlgmr.msra.gmra.mrb[4].mxu0 %vm601_vm0, %v1559_v10 }
  0xa4   : > { %1031 = vmatprep.subr.mxu0 %v599_v4  ;;  %v598_v6 = vadd.f32 %v584_v2, %v570_v5  ;;  %1373 = vmatmul.mubr.msk.f32.vlgmr.msra.gmra.mrb[4].mxu1 %vm601_vm0, %v1559_v10 }
  0xa5   : > { %1095 = vmatprep.mubr.f32.mxu0 %v1430_v3 }
  0xa6   : > { %1032 = vmatpush1.msra.mxu0 %v598_v6 }
  0xa7   : > { %1374 = vmatmul.mubr.msk.f32.vlgmr.msra.gmra.mrb[6].mxu0 %vm601_vm0, %v1559_v10  ;;  %vm1133_vm0 = vcmask 7168  }
 0x16a   : > { %v671_v7 = vpop.f32.mrb[0].mxu0  ;;  %v742_v8 = vpop.f32.mrb[0].mxu1 }
 0x16b   : > { %1102 = vst [vmem:[%s1614_s9] sm:$0xff] %v671_v7  ;;  %v1135_v9 = vmul.f32 %v671_v7, %v671_v7  ;;  %v673_v11 = vpop.f32.mrb[1].mxu0  ;;  %1104 = vst [vmem:[%s1614_s9 + $0x10] sm:$0xff] %v742_v8  ;;  %v744_v3 = vpop.f32.mrb[1].mxu1  ;;  %v1137_v13 = vmul.f32 %v742_v8, %v742_v8 }
 0x16c   : > { %1103 = vst [vmem:[%s1614_s9 + $0x8] sm:$0xff] %v673_v11  ;;  %v1117_v10 = vadd.f32 %v673_v11, %v671_v7  ;;  %v1136_v12 = vmul.f32 %v673_v11, %v673_v11  ;;  %1105 = vst [vmem:[%s1614_s9 + $0x18] sm:$0xff] %v744_v3  ;;  %v1138_v19 = vmul.f32 %v744_v3, %v744_v3 }
 0x16e   : > { %v1149_v14 = vadd.f32 %v1136_v12, %v1135_v9  ;;  %v1118_v15 = vadd.f32 %v1117_v10, %v742_v8 }
 0x16f   : > { %v813_v16 = vpop.f32.mrb[2].mxu0 }
 0x170   : > { %v1150_v17 = vadd.f32 %v1149_v14, %v1137_v13  ;;  %v1119_v18 = vadd.f32 %v1118_v15, %v744_v3  ;;  %1106 = vst [vmem:[%s1614_s9 + $0x20] sm:$0xff] %v813_v16  ;;  %v1139_v20 = vmul.f32 %v813_v16, %v813_v16  ;;  %v815_v21 = vpop.f32.mrb[3].mxu0  ;;  %v884_v22 = vpop.f32.mrb[2].mxu1 }
 0x171   : > { %1107 = vst [vmem:[%s1614_s9 + $0x28] sm:$0xff] %v815_v21  ;;  %1108 = vst [vmem:[%s1614_s9 + $0x30] sm:$0xff] %v884_v22  ;;  %v886_v23 = vpop.f32.mrb[3].mxu1  ;;  %v1140_v35 = vmul.f32 %v815_v21, %v815_v21  ;;  %v1141_v27 = vmul.f32 %v884_v22, %v884_v22 }
 0x172   : > { %v1151_v24 = vadd.f32 %v1150_v17, %v1138_v19  ;;  %v1120_v25 = vadd.f32 %v1119_v18, %v813_v16  ;;  %1109 = vst [vmem:[%s1614_s9 + $0x38] sm:$0xff] %v886_v23  ;;  %v1142_v42 = vmul.f32 %v886_v23, %v886_v23 }
 0x174   : > { %v1152_v26 = vadd.f32 %v1151_v24, %v1139_v20  ;;  %v1121_v34 = vadd.f32 %v1120_v25, %v815_v21 }
 0x176   : > { %v1153_v36 = vadd.f32 %v1152_v26, %v1140_v35  ;;  %v1122_v37 = vadd.f32 %v1121_v34, %v884_v22  ;;  %v955_v38 = vpop.f32.mrb[4].mxu0 }
 0x177   : > { %1110 = vst [vmem:[%s1614_s9 + $0x40] sm:$0xff] %v955_v38  ;;  %v957_v28 = vpop.f32.mrb[5].mxu0  ;;  %v1026_v39 = vpop.f32.mrb[4].mxu1  ;;  %v1143_v43 = vmul.f32 %v955_v38, %v955_v38 }
 0x178   : > { %v1154_v40 = vadd.f32 %v1153_v36, %v1141_v27  ;;  %v1123_v41 = vadd.f32 %v1122_v37, %v886_v23  ;;  %1111 = vst [vmem:[%s1614_s9 + $0x48] sm:$0xff] %v957_v28  ;;  %1112 = vst [vmem:[%s1614_s9 + $0x50] sm:$0xff] %v1026_v39  ;;  %v1028_v44 = vpop.f32.mrb[5].mxu1  ;;  %v1144_v49 = vmul.f32 %v957_v28, %v957_v28 }
 0x179   : > { %1113 = vst [vmem:[%s1614_s9 + $0x58] sm:$0xff] %v1028_v44  ;;  %v1145_v32 = vmul.f32 %v1026_v39, %v1026_v39  ;;  %v1146_v55 = vmul.f32 %v1028_v44, %v1028_v44 }
 0x17a   : > { %v1155_v45 = vadd.f32 %v1154_v40, %v1142_v42  ;;  %v1124_v46 = vadd.f32 %v1123_v41, %v955_v38  ;;  %v1097_v47 = vpop.f32.mrb[6].mxu0 }
 0x17b   : > { %1114 = vst [vmem:[%s1614_s9 + $0x60] sm:$0xff] %v1097_v47  ;;  %v1099_v30 = vpop.f32.mrb[7].mxu0  ;;  %v1147_v56 = vmul.f32 %v1097_v47, %v1097_v47 }
 0x17c   : > { %v1156_v48 = vadd.f32 %v1155_v45, %v1143_v43  ;;  %v1125_v31 = vadd.f32 %v1124_v46, %v957_v28  ;;  %1116 = vst.msk [vmem:[%s1614_s9 + $0x68] sm:$0xff] %vm1115_vm15, %v1099_v30  ;;  %v1148_v52 = vmul.f32 %v1099_v30, %v1099_v30  ;;  %v1129_v57 = vsel %vm1115_vm15, %v1099_v30, 0.0 }
 0x17e   : > { %v1157_v50 = vadd.f32 %v1156_v48, %v1144_v49  ;;  %v1126_v51 = vadd.f32 %v1125_v31, %v1026_v39  ;;  %v1161_v60 = vsel %vm1115_vm15, %v1148_v52, 0.0 }
 0x180   : > { %v1158_v53 = vadd.f32 %v1157_v50, %v1145_v32  ;;  %v1127_v54 = vadd.f32 %v1126_v51, %v1028_v44 }
 0x182   : > { %v1159_v58 = vadd.f32 %v1158_v53, %v1146_v55  ;;  %v1128_v59 = vadd.f32 %v1127_v54, %v1097_v47 }
 0x184   : > { %v1130_v61 = vadd.f32 %v1129_v57, %v1128_v59  ;;  %v1160_v62 = vadd.f32 %v1159_v58, %v1147_v56 }
 0x186   : > { %1131 = vadd.xlane.f32.xlu1 %v1130_v61  ;;  %v1162_v63 = vadd.f32 %v1161_v60, %v1160_v62 }
 0x18a   : > { %1163 = vadd.xlane.f32.xlu1 %v1162_v63 }
 0x213   : > { %v1132_v0 = vpop.xlane.xlu1 %1131 }
 0x214   : > { %1134 = vst.msk [vmem:[%s440_s13] sm:$0xff] %vm1133_vm0, %v1132_v0 }
 0x217   : > { %v1164_v1 = vpop.xlane.xlu1 %1163 }
 0x218   : > { %1165 = vst.msk [vmem:[%s446_s16] sm:$0xff] %vm1133_vm0, %v1164_v1 }
 0x219 PF: > { %s19_s29 = sadd.s32 1, %s1427_s29   ;;  %s1658_s27 = smov %s1423_s28 }
 0x21a   : > { %p16_p5 = scmp.ge.s32.totalorder %s19_s29, 4   ;;  %s1659_s28 = smov %s1661_s30 }
 0x21c   :  { %18 = sbr.rel (!%p16_p5) target bundleno = 2 (0x2), region = 104 }

// kernel: mutil_stride_module_v3.15
= control target key start
LH: loop header
LB: loop body
LE: loop exit
PB: predicated region body
PF: predicated region fallthrough
CT: control target
= control target key end

     0   :  { %s489_s12 = smov 0   ;;  %s491_s13 = smov 0   ;;  %s566_s0 = inlined_call_operand.vmem [shape: f32[2,8,1728], index: 0, kind: input, shape index: {}]   ;;  %s567_s1 = inlined_call_operand.vmem [shape: f32[8,1], index: 1, kind: input, shape index: {}]   ;;  %s568_s2 = inlined_call_operand.vmem [shape: f32[8,1], index: 2, kind: input, shape index: {}]   ;;  %s569_s3 = inlined_call_operand.vmem [shape: f32[2,8,1728], index: 3, kind: output, shape index: {}]  }
   0x1   :  { %s493_s14 = smov 0  }
   0x2 LB: > { %s25_s15 = sadd.s32 1, %s462_s13  ;;  %p412_p0 = scmp.ge.s32.totalorder %s466_s14, 1  ;;  %s466_s14 = sphi %s493_s14, %s13_s14   ;;  %s462_s13 = sphi %s491_s13, %s571_s13   ;;  %s458_s12 = sphi %s489_s12, %s570_s12  }
   0x3   : > { %p27_p1 = scmp.ge.s32.totalorder %s25_s15, 2  ;;  %p158_p2 = scmp.lt.s32.totalorder %s466_s14, 3 }
   0x5   : > { %s573_s15 = smov (%p27_p1, %s25_s15), 0  ;;  %p159_p3 = pnand %p412_p0, %p158_p2 }
   0x6   : > { %v224_v0 = vld [vmem:[%s567_s1] sm:$0xff] (!%p159_p3)  ;;  %v468_v1 = vmov (!%p159_p3), 0   ;;  %p191_p4 = scmp.lt.s32.totalorder (!%p159_p3), %s458_s12, 1  ;;  %vm319_vm2 = vcmask (!%p159_p3), 523264  }
   0x7   : > { %162 = sbr.rel (%p159_p3) target bundleno = 159 (0x9f), region = 32  ;;  %443 = vset.pattern.permute.xlu0 (!%p159_p3), %v468_v1  ;;  %v244_v2 = vld [vmem:[%s568_s2] sm:$0xff] (!%p159_p3) }
   0x8   : > { %227 = vperm.xlu0 (!%p159_p3), %443, %v224_v0  }
   0xc   : > { %247 = vperm.xlu0 (!%p159_p3), %443, %v244_v2  }
   0xe   : > { %s575_s12 = smov (!%p191_p4, %s458_s12), 1 }
   0xf   : > { %s417_s20 = smul.u32 112, %s575_s12 }
  0x11   : > { %s198_s23 = scalar_lea.vmem %s566_s0, %s417_s20  ;;  %s526_s26 = scalar_lea.vmem %s569_s3, %s417_s20 }
  0x12   : > { %v210_v3 = vld [vmem:[%s198_s23] sm:$0xff]  ;;  %v211_v4 = vld [vmem:[%s198_s23 + $0x8] sm:$0xff]  ;;  %v212_v5 = vld [vmem:[%s198_s23 + $0x10] sm:$0xff] }
  0x13   : > { %v213_v6 = vld [vmem:[%s198_s23 + $0x18] sm:$0xff]  ;;  %v214_v7 = vld [vmem:[%s198_s23 + $0x20] sm:$0xff]  ;;  %v215_v8 = vld [vmem:[%s198_s23 + $0x28] sm:$0xff] }
  0x14   : > { %v216_v9 = vld [vmem:[%s198_s23 + $0x30] sm:$0xff]  ;;  %v217_v10 = vld [vmem:[%s198_s23 + $0x38] sm:$0xff]  ;;  %v218_v12 = vld [vmem:[%s198_s23 + $0x40] sm:$0xff] }
  0x15   : > { %v219_v13 = vld [vmem:[%s198_s23 + $0x48] sm:$0xff]  ;;  %v220_v14 = vld [vmem:[%s198_s23 + $0x50] sm:$0xff]  ;;  %v221_v15 = vld [vmem:[%s198_s23 + $0x58] sm:$0xff] }
  0x16   : > { %v222_v16 = vld [vmem:[%s198_s23 + $0x60] sm:$0xff]  ;;  %v223_v17 = vld [vmem:[%s198_s23 + $0x68] sm:$0xff] }
  0x87   : > { %v228_v11 = vpop.permute.xlu0 %227 }
  0x88   : > { %v230_v18 = vmul.f32 %v228_v11, %v210_v3  ;;  %v231_v19 = vmul.f32 %v228_v11, %v211_v4  ;;  %v232_v20 = vmul.f32 %v228_v11, %v212_v5  ;;  %v233_v21 = vmul.f32 %v228_v11, %v213_v6 }
  0x89   : > { %v234_v22 = vmul.f32 %v228_v11, %v214_v7  ;;  %v235_v23 = vmul.f32 %v228_v11, %v215_v8  ;;  %v236_v24 = vmul.f32 %v228_v11, %v216_v9  ;;  %v237_v25 = vmul.f32 %v228_v11, %v217_v10 }
  0x8a   : > { %v238_v26 = vmul.f32 %v228_v11, %v218_v12  ;;  %v239_v27 = vmul.f32 %v228_v11, %v219_v13  ;;  %v240_v29 = vmul.f32 %v228_v11, %v220_v14  ;;  %v241_v30 = vmul.f32 %v228_v11, %v221_v15 }
  0x8b   : > { %v248_v28 = vpop.permute.xlu0 %247  ;;  %v242_v31 = vmul.f32 %v228_v11, %v222_v16  ;;  %v243_v32 = vmul.f32 %v228_v11, %v223_v17 }
  0x8c   : > { %v250_v33 = vadd.f32 %v248_v28, %v230_v18  ;;  %v251_v34 = vadd.f32 %v248_v28, %v231_v19  ;;  %v252_v35 = vadd.f32 %v248_v28, %v232_v20  ;;  %v253_v36 = vadd.f32 %v248_v28, %v233_v21 }
  0x8d   : > { %v254_v37 = vadd.f32 %v248_v28, %v234_v22  ;;  %v255_v38 = vadd.f32 %v248_v28, %v235_v23  ;;  %v256_v39 = vadd.f32 %v248_v28, %v236_v24  ;;  %v257_v40 = vadd.f32 %v248_v28, %v237_v25 }
  0x8e   : > { %v258_v41 = vadd.f32 %v248_v28, %v238_v26  ;;  %v259_v42 = vadd.f32 %v248_v28, %v239_v27  ;;  %v260_v43 = vadd.f32 %v248_v28, %v240_v29  ;;  %v261_v44 = vadd.f32 %v248_v28, %v241_v30 }
  0x8f   : > { %v262_v45 = vadd.f32 %v248_v28, %v242_v31  ;;  %v263_v46 = vadd.f32 %v248_v28, %v243_v32  ;;  %vm264_vm0 = vcmp.ge.f32.partialorder %v250_v33, 0.0  ;;  %vm265_vm1 = vcmp.ge.f32.partialorder %v251_v34, 0.0 }
  0x90   : > { %vm266_vm3 = vcmp.ge.f32.partialorder %v252_v35, 0.0  ;;  %vm267_vm4 = vcmp.ge.f32.partialorder %v253_v36, 0.0  ;;  %vm268_vm5 = vcmp.ge.f32.partialorder %v254_v37, 0.0  ;;  %vm269_vm6 = vcmp.ge.f32.partialorder %v255_v38, 0.0 }
  0x91   : > { %vm270_vm7 = vcmp.ge.f32.partialorder %v256_v39, 0.0  ;;  %vm271_vm8 = vcmp.ge.f32.partialorder %v257_v40, 0.0  ;;  %vm272_vm9 = vcmp.ge.f32.partialorder %v258_v41, 0.0  ;;  %vm273_vm10 = vcmp.ge.f32.partialorder %v259_v42, 0.0 }
  0x92   : > { %vm274_vm11 = vcmp.ge.f32.partialorder %v260_v43, 0.0  ;;  %vm275_vm12 = vcmp.ge.f32.partialorder %v261_v44, 0.0  ;;  %vm276_vm13 = vcmp.ge.f32.partialorder %v262_v45, 0.0  ;;  %vm277_vm14 = vcmp.ge.f32.partialorder %v263_v46, 0.0 }
  0x93   : > { %v278_v47 = vmul.f32 0.01, %v250_v33  ;;  %v279_v48 = vmul.f32 0.01, %v251_v34  ;;  %v280_v49 = vmul.f32 0.01, %v252_v35 }
  0x94   : > { %v281_v50 = vmul.f32 0.01, %v253_v36  ;;  %v282_v51 = vmul.f32 0.01, %v254_v37  ;;  %v283_v52 = vmul.f32 0.01, %v255_v38 }
  0x95   : > { %v284_v53 = vmul.f32 0.01, %v256_v39  ;;  %v285_v54 = vmul.f32 0.01, %v257_v40  ;;  %v286_v55 = vmul.f32 0.01, %v258_v41  ;;  %v292_v56 = vsel %vm264_vm0, %v250_v33, %v278_v47 }
  0x96   : > { %v287_v57 = vmul.f32 0.01, %v259_v42  ;;  %v288_v58 = vmul.f32 0.01, %v260_v43  ;;  %v289_v59 = vmul.f32 0.01, %v261_v44  ;;  %v293_v60 = vsel %vm265_vm1, %v251_v34, %v279_v48  ;;  %306 = vst [vmem:[%s526_s26] sm:$0xff] %v292_v56 }
  0x97   : > { %v290_v61 = vmul.f32 0.01, %v262_v45  ;;  %v291_v62 = vmul.f32 0.01, %v263_v46  ;;  %v294_v63 = vsel %vm266_vm3, %v252_v35, %v280_v49  ;;  %v295_v0 = vsel %vm267_vm4, %v253_v36, %v281_v50  ;;  %307 = vst [vmem:[%s526_s26 + $0x8] sm:$0xff] %v293_v60 }
  0x98   : > { %v296_v1 = vsel %vm268_vm5, %v254_v37, %v282_v51  ;;  %v297_v2 = vsel %vm269_vm6, %v255_v38, %v283_v52  ;;  %v298_v3 = vsel %vm270_vm7, %v256_v39, %v284_v53  ;;  %v299_v4 = vsel %vm271_vm8, %v257_v40, %v285_v54  ;;  %308 = vst [vmem:[%s526_s26 + $0x10] sm:$0xff] %v294_v63 }
  0x99   : > { %309 = vst [vmem:[%s526_s26 + $0x18] sm:$0xff] %v295_v0  ;;  %v300_v5 = vsel %vm272_vm9, %v258_v41, %v286_v55  ;;  %v301_v6 = vsel %vm273_vm10, %v259_v42, %v287_v57  ;;  %v302_v7 = vsel %vm274_vm11, %v260_v43, %v288_v58  ;;  %v303_v8 = vsel %vm275_vm12, %v261_v44, %v289_v59 }
  0x9a   : > { %310 = vst [vmem:[%s526_s26 + $0x20] sm:$0xff] %v296_v1  ;;  %311 = vst [vmem:[%s526_s26 + $0x28] sm:$0xff] %v297_v2  ;;  %v304_v9 = vsel %vm276_vm13, %v262_v45, %v290_v61  ;;  %v305_v10 = vsel %vm277_vm14, %v263_v46, %v291_v62 }
  0x9b   : > { %312 = vst [vmem:[%s526_s26 + $0x30] sm:$0xff] %v298_v3  ;;  %313 = vst [vmem:[%s526_s26 + $0x38] sm:$0xff] %v299_v4 }
  0x9c   : > { %314 = vst [vmem:[%s526_s26 + $0x40] sm:$0xff] %v300_v5  ;;  %315 = vst [vmem:[%s526_s26 + $0x48] sm:$0xff] %v301_v6 }
  0x9d   : > { %316 = vst [vmem:[%s526_s26 + $0x50] sm:$0xff] %v302_v7  ;;  %317 = vst [vmem:[%s526_s26 + $0x58] sm:$0xff] %v303_v8 }
  0x9e   : > { %318 = vst [vmem:[%s526_s26 + $0x60] sm:$0xff] %v304_v9  ;;  %320 = vst.msk [vmem:[%s526_s26 + $0x68] sm:$0xff] %vm319_vm2, %v305_v10 }
  0x9f PF: > { %s13_s14 = sadd.s32 1, %s466_s14   ;;  %s570_s12 = smov %s462_s13 }
  0xa0   : > { %p10_p5 = scmp.ge.s32.totalorder %s13_s14, 4   ;;  %s571_s13 = smov %s573_s15 }
  0xa2   :  { %12 = sbr.rel (!%p10_p5) target bundleno = 2 (0x2), region = 62 }

</bundles_post_ra>
